<compile_context>
chip_gen: v7x
topology: tpu7x:2x2x1
jax: 0.10.0
libtpu: 0.0.40
codegen_flags: <defaults>
</compile_context>

<pallas_src>
import jax
import jax.numpy as jnp
from jax.experimental import pallas as pl
from jax.experimental.pallas import tpu as pltpu

# ----------------------------- configuration --------------------------------
INP_DIM = 32
EMB_DIM = 64
DIST_DIM = 2
NUM_HIDDEN = 1
MIN_STD = 0.01
LN_EPS = 1e-5


def _round_up(x, m):
    return ((x + m - 1) // m) * m


def _cdiv(a, b):
    return (a + b - 1) // b


# ------------------------------- kernel --------------------------------------
def _ln_normalize(x):
    """One-pass LayerNorm statistics, no affine (gamma/beta folded into the
    following linear by the wrapper).  All stats in f32."""
    mu = jnp.mean(x, axis=-1, keepdims=True)
    mean_sq = jnp.mean(x * x, axis=-1, keepdims=True)
    var = mean_sq - mu * mu
    inv = jax.lax.rsqrt(var + LN_EPS)
    return (x - mu) * inv


def _idm_kernel(
    inp_ref,                       # (tn, INP_DIM)        compute dtype
    w_enc_ref, b_enc_ref,          # (INP, EMB) cd, (1, EMB) f32
    h_w1_ref, h_b1_ref,            # (H, EMB, EMB) cd, (H, 1, EMB) f32  (LN folded)
    h_w2_ref, h_b2_ref,            # (H, EMB, EMB) cd, (H, 1, EMB) f32
    w_head_ref, b_head_ref,        # (EMB, 2*DIST) cd, (1, 2*DIST) f32  (LN + head folded)
    out_ref,                       # (tn, 2*DIST) f32
):
    cd = w_enc_ref.dtype           # MXU operand dtype

    # encoder: Linear(inp_dim -> emb_dim), f32 accumulation
    x = jnp.dot(inp_ref[...], w_enc_ref[...],
                preferred_element_type=jnp.float32) + b_enc_ref[...]

    # residual hidden blocks: x = x + Lin2(ReLU(Lin1(LayerNorm(x))))
    # LN affine is pre-folded into (h_w1, h_b1).
    for h in range(NUM_HIDDEN):    # static unroll, NUM_HIDDEN is small
        nx = _ln_normalize(x)
        hx = jnp.dot(nx.astype(cd), h_w1_ref[h],
                     preferred_element_type=jnp.float32) + h_b1_ref[h]
        hx = jnp.maximum(hx, 0.0)
        hx = jnp.dot(hx.astype(cd), h_w2_ref[h],
                     preferred_element_type=jnp.float32) + h_b2_ref[h]
        x = x + hx

    # output head: LN (affine folded) -> single (EMB, 2*DIST) matmul + bias.
    nx = _ln_normalize(x)
    out_ref[...] = (jnp.dot(nx.astype(cd), w_head_ref[...],
                            preferred_element_type=jnp.float32)
                    + b_head_ref[...]).astype(out_ref.dtype)


# ------------------------------- wrapper --------------------------------------
def inverse_dynamics_forward(inp, params, *, tile_n=2048,
                             compute_dtype=jnp.bfloat16):
    """inp: (..., INP_DIM) float32. Returns (..., 2*DIST_DIM) float32."""
    start_shape = inp.shape[:-1]
    x = inp.reshape(-1, INP_DIM)
    n = x.shape[0]

    # Adaptive tile: grid_n = cdiv(n, tile_n), then tn = round_up(cdiv(n, grid_n), 8)
    # so over-padding is < 8 rows per step.  For moderately large n force >= 2
    # grid steps so v7x's two TensorCores both get work.
    grid_n = max(1, _cdiv(n, tile_n))
    if n >= 2 * 1024:
        grid_n = max(grid_n, 2)
    tn = max(8, _round_up(_cdiv(n, grid_n), 8))
    n_pad = grid_n * tn
    if n_pad != n:
        x = jnp.pad(x, ((0, n_pad - n), (0, 0)))
    x = x.astype(compute_dtype)

    f32 = jnp.float32

    # ---- fold LayerNorm affine params into the following linears (f32) ----
    # hidden block:  (norm*gamma + beta) @ W1 + b1
    #              =  norm @ (diag(gamma) @ W1) + (beta @ W1 + b1)
    h_w1 = params["h_lng"][:, :, None].astype(f32) * params["h_w1"].astype(f32)
    h_b1 = (jnp.einsum("he,hef->hf", params["h_lnb"].astype(f32),
                       params["h_w1"].astype(f32))
            + params["h_b1"].astype(f32)).reshape(NUM_HIDDEN, 1, EMB_DIM)

    # ---- fold output head (Linear -> *action_std -> +action_mean, std col) ----
    a_std = params["a_std"].astype(f32)
    a_mean = params["a_mean"].astype(f32)
    std_row = (MIN_STD + jnp.exp(params["log_std"].astype(f32))) * a_std   # (DIST,)
    w_head_full = jnp.concatenate(
        [params["w_out"].astype(f32) * a_std[None, :],
         jnp.zeros((EMB_DIM, DIST_DIM), f32)], axis=1)                     # (EMB, 2*DIST)
    b_head_full = jnp.concatenate(
        [params["b_out"].astype(f32) * a_std + a_mean, std_row])           # (2*DIST,)
    # fold output LayerNorm affine into the head (zero std columns unaffected)
    w_head = params["o_lng"].astype(f32)[:, None] * w_head_full
    b_head = (params["o_lnb"].astype(f32) @ w_head_full
              + b_head_full).reshape(1, 2 * DIST_DIM)

    weight_arrays = [
        params["w_enc"].astype(compute_dtype),
        params["b_enc"].astype(f32).reshape(1, EMB_DIM),
        h_w1.astype(compute_dtype),
        h_b1,
        params["h_w2"].astype(compute_dtype),
        params["h_b2"].astype(f32).reshape(NUM_HIDDEN, 1, EMB_DIM),
        w_head.astype(compute_dtype),
        b_head,
    ]

    # Replicated (resident) weights: constant index_map -> no re-DMA per step.
    def rep_spec(shape):
        nd = len(shape)
        return pl.BlockSpec(shape, lambda i, _nd=nd: (0,) * _nd)

    in_specs = [pl.BlockSpec((tn, INP_DIM), lambda i: (i, 0))]
    in_specs += [rep_spec(w.shape) for w in weight_arrays]

    # Advisory cost estimate for the XLA scheduler.
    itemsize = jnp.dtype(compute_dtype).itemsize
    flops = 2 * n_pad * (INP_DIM * EMB_DIM
                         + NUM_HIDDEN * 2 * EMB_DIM * EMB_DIM
                         + EMB_DIM * 2 * DIST_DIM)
    transcendentals = n_pad * (NUM_HIDDEN + 1)       # one rsqrt per LN row
    weight_bytes = sum(int(w.size) * w.dtype.itemsize for w in weight_arrays)
    bytes_accessed = (n_pad * INP_DIM * itemsize
                      + n_pad * 2 * DIST_DIM * 4
                      + weight_bytes)

    out = pl.pallas_call(
        _idm_kernel,
        out_shape=jax.ShapeDtypeStruct((n_pad, 2 * DIST_DIM), jnp.float32),
        grid_spec=pltpu.PrefetchScalarGridSpec(
            num_scalar_prefetch=0,
            grid=(grid_n,),
            in_specs=in_specs,
            out_specs=pl.BlockSpec((tn, 2 * DIST_DIM), lambda i: (i, 0)),
        ),
        compiler_params=pltpu.CompilerParams(
            dimension_semantics=("parallel",)),
        cost_estimate=pl.CostEstimate(
            flops=int(flops),
            transcendentals=int(transcendentals),
            bytes_accessed=int(bytes_accessed)),
    )(x, *weight_arrays)

    return out[:n].reshape(*start_shape, 2 * DIST_DIM)


# ------------------------------ test harness ----------------------------------
def make_params(key):
    ks = jax.random.split(key, 8)
    scale = 0.05
    return {
        "w_enc": scale * jax.random.normal(ks[0], (INP_DIM, EMB_DIM), jnp.float32),
        "b_enc": jnp.zeros((EMB_DIM,), jnp.float32),
        "h_lng": jnp.ones((NUM_HIDDEN, EMB_DIM), jnp.float32)
                 + 0.1 * jax.random.normal(ks[4], (NUM_HIDDEN, EMB_DIM), jnp.float32),
        "h_lnb": 0.1 * jax.random.normal(ks[5], (NUM_HIDDEN, EMB_DIM), jnp.float32),
        "h_w1": scale * jax.random.normal(ks[1], (NUM_HIDDEN, EMB_DIM, EMB_DIM), jnp.float32),
        "h_b1": jnp.zeros((NUM_HIDDEN, EMB_DIM), jnp.float32),
        "h_w2": scale * jax.random.normal(ks[2], (NUM_HIDDEN, EMB_DIM, EMB_DIM), jnp.float32),
        "h_b2": jnp.zeros((NUM_HIDDEN, EMB_DIM), jnp.float32),
        "o_lng": jnp.ones((EMB_DIM,), jnp.float32)
                 + 0.1 * jax.random.normal(ks[6], (EMB_DIM,), jnp.float32),
        "o_lnb": 0.1 * jax.random.normal(ks[7], (EMB_DIM,), jnp.float32),
        "w_out": scale * jax.random.normal(ks[3], (EMB_DIM, DIST_DIM), jnp.float32),
        "b_out": jnp.zeros((DIST_DIM,), jnp.float32),
        "log_std": jnp.array([0.1, -0.3], jnp.float32),    # nn.Parameter
        "a_mean": jnp.array([0.3, -0.2], jnp.float32),     # action_mean
        "a_std": jnp.array([1.5, 0.7], jnp.float32),       # action_std
    }


def _layernorm_ref(x, gamma, beta):
    mu = jnp.mean(x, axis=-1, keepdims=True)
    var = jnp.mean((x - mu) ** 2, axis=-1, keepdims=True)
    return (x - mu) * jax.lax.rsqrt(var + LN_EPS) * gamma + beta


def reference_forward(inp, p):
    """Pure-JAX reference mirroring the PyTorch module (norm='layer', tanh=False)."""
    start_shape = inp.shape[:-1]
    x = inp.reshape(-1, INP_DIM)
    x = x @ p["w_enc"] + p["b_enc"]
    for h in range(NUM_HIDDEN):
        hx = _layernorm_ref(x, p["h_lng"][h][None, :], p["h_lnb"][h][None, :])
        hx = jnp.maximum(hx @ p["h_w1"][h] + p["h_b1"][h], 0.0)
        hx = hx @ p["h_w2"][h] + p["h_b2"][h]
        x = x + hx
    ox = _layernorm_ref(x, p["o_lng"][None, :], p["o_lnb"][None, :])
    mean = ox @ p["w_out"] + p["b_out"]
    mean = mean * p["a_std"] + p["a_mean"]
    std = jnp.broadcast_to((MIN_STD + jnp.exp(p["log_std"])) * p["a_std"], mean.shape)
    return jnp.concatenate([mean, std], axis=-1).reshape(*start_shape, 2 * DIST_DIM)


if __name__ == "__main__":
    key = jax.random.PRNGKey(0)
    kp, kx1, kx2 = jax.random.split(key, 3)
    params = make_params(kp)

    # Small shape: N = 600 rows -> single grid step, adaptive tile 608.
    batch, seq = 6, 100
    inp = jax.random.normal(kx1, (batch, seq, INP_DIM), jnp.float32)
    ref = reference_forward(inp, params)

    # f32 compute path: tight numerical check of the LN/head folding.
    out_f32 = inverse_dynamics_forward(inp, params, compute_dtype=jnp.float32)
    out_f32 = jax.block_until_ready(out_f32)
    assert out_f32.shape == (batch, seq, 2 * DIST_DIM)
    assert jnp.allclose(out_f32, ref, atol=1e-5, rtol=1e-5), "f32 mismatch vs reference"

    # Default bf16 MXU path (f32 accumulation, f32 LN stats): loose check.
    out_bf16 = inverse_dynamics_forward(inp, params)
    out_bf16 = jax.block_until_ready(out_bf16)
    assert out_bf16.shape == (batch, seq, 2 * DIST_DIM)
    assert jnp.allclose(out_bf16, ref, atol=1e-1, rtol=1e-1), "bf16 mismatch vs reference"

    # Moderately larger shape: N = 2600 rows -> exercises the forced >=2-step
    # grid (v7x megacore split) and the adaptive-tile padding path.
    inp2 = jax.random.normal(kx2, (4, 650, INP_DIM), jnp.float32)
    ref2 = reference_forward(inp2, params)
    out2 = jax.block_until_ready(inverse_dynamics_forward(inp2, params))
    assert out2.shape == (4, 650, 2 * DIST_DIM)
    assert jnp.allclose(out2, ref2, atol=1e-1, rtol=1e-1), "multi-step grid mismatch"

    print("KERNEL_OK")
</pallas_src>

<mosaic_0001>
module attributes {stable_mosaic.version = 11 : i64} {
  func.func @_idm_kernel(%arg0: i32, %arg1: memref<600x32xf32, #tpu.memory_space<vmem>>, %arg2: memref<32x64xf32, #tpu.memory_space<vmem>>, %arg3: memref<1x64xf32, #tpu.memory_space<vmem>>, %arg4: memref<1x64x64xf32, #tpu.memory_space<vmem>>, %arg5: memref<1x1x64xf32, #tpu.memory_space<vmem>>, %arg6: memref<1x64x64xf32, #tpu.memory_space<vmem>>, %arg7: memref<1x1x64xf32, #tpu.memory_space<vmem>>, %arg8: memref<64x4xf32, #tpu.memory_space<vmem>>, %arg9: memref<1x4xf32, #tpu.memory_space<vmem>>, %arg10: memref<600x4xf32, #tpu.memory_space<vmem>>) attributes {dimension_semantics = [#tpu.dimension_semantics<parallel>], iteration_bounds = array<i64: 1>, scalar_prefetch = 0 : i64, scratch_operands = 0 : i64, tpu.core_type = #tpu.core_type<tc>, window_params = [{transform_indices = @transform_0, window_bounds = array<i64: 600, 32>}, {pipeline_mode = #tpu.pipeline_mode<synchronous>, transform_indices = @transform_1, window_bounds = array<i64: 32, 64>}, {pipeline_mode = #tpu.pipeline_mode<synchronous>, transform_indices = @transform_2, window_bounds = array<i64: 1, 64>}, {pipeline_mode = #tpu.pipeline_mode<synchronous>, transform_indices = @transform_3, window_bounds = array<i64: 1, 64, 64>}, {pipeline_mode = #tpu.pipeline_mode<synchronous>, transform_indices = @transform_4, window_bounds = array<i64: 1, 1, 64>}, {pipeline_mode = #tpu.pipeline_mode<synchronous>, transform_indices = @transform_5, window_bounds = array<i64: 1, 64, 64>}, {pipeline_mode = #tpu.pipeline_mode<synchronous>, transform_indices = @transform_6, window_bounds = array<i64: 1, 1, 64>}, {pipeline_mode = #tpu.pipeline_mode<synchronous>, transform_indices = @transform_7, window_bounds = array<i64: 64, 4>}, {pipeline_mode = #tpu.pipeline_mode<synchronous>, transform_indices = @transform_8, window_bounds = array<i64: 1, 4>}, {transform_indices = @transform_9, window_bounds = array<i64: 600, 4>}]} {
    %c0 = arith.constant 0 : index
    %c0_0 = arith.constant 0 : index
    %0 = vector.load %arg1[%c0, %c0_0] : memref<600x32xf32, #tpu.memory_space<vmem>>, vector<600x32xf32>
    %c0_1 = arith.constant 0 : index
    %c0_2 = arith.constant 0 : index
    %1 = vector.load %arg2[%c0_1, %c0_2] : memref<32x64xf32, #tpu.memory_space<vmem>>, vector<32x64xf32>
    %cst = arith.constant dense<0.000000e+00> : vector<600x64xf32>
    %2 = tpu.matmul %0, %1, %cst {dimension_numbers = #tpu.dot_dimension_numbers<[1], [0], [0], [1], [0, 0, 1, 1], [], []>} : vector<600x32xf32>, vector<32x64xf32>, vector<600x64xf32> -> vector<600x64xf32>
    %c0_3 = arith.constant 0 : index
    %c0_4 = arith.constant 0 : index
    %3 = vector.load %arg3[%c0_3, %c0_4] : memref<1x64xf32, #tpu.memory_space<vmem>>, vector<1x64xf32>
    %4 = vector.broadcast %3 : vector<1x64xf32> to vector<600x64xf32>
    %5 = arith.addf %2, %4 : vector<600x64xf32>
    %cst_5 = arith.constant dense<0.000000e+00> : vector<600xf32>
    %6 = vector.multi_reduction <add>, %5, %cst_5 [1] : vector<600x64xf32> to vector<600xf32>
    %7 = vector.shape_cast %6 : vector<600xf32> to vector<600x1xf32>
    %cst_6 = arith.constant 6.400000e+01 : f32
    %8 = vector.broadcast %cst_6 : f32 to vector<600x1xf32>
    %9 = arith.divf %7, %8 : vector<600x1xf32>
    %10 = arith.mulf %5, %5 : vector<600x64xf32>
    %cst_7 = arith.constant dense<0.000000e+00> : vector<600xf32>
    %11 = vector.multi_reduction <add>, %10, %cst_7 [1] : vector<600x64xf32> to vector<600xf32>
    %12 = vector.shape_cast %11 : vector<600xf32> to vector<600x1xf32>
    %cst_8 = arith.constant 6.400000e+01 : f32
    %13 = vector.broadcast %cst_8 : f32 to vector<600x1xf32>
    %14 = arith.divf %12, %13 : vector<600x1xf32>
    %15 = arith.mulf %9, %9 : vector<600x1xf32>
    %16 = arith.subf %14, %15 : vector<600x1xf32>
    %cst_9 = arith.constant 9.99999974E-6 : f32
    %17 = vector.broadcast %cst_9 : f32 to vector<600x1xf32>
    %18 = arith.addf %16, %17 : vector<600x1xf32>
    %19 = math.rsqrt %18 : vector<600x1xf32>
    %20 = vector.broadcast %9 : vector<600x1xf32> to vector<600x64xf32>
    %21 = arith.subf %5, %20 : vector<600x64xf32>
    %22 = vector.broadcast %19 : vector<600x1xf32> to vector<600x64xf32>
    %23 = arith.mulf %21, %22 : vector<600x64xf32>
    %c0_10 = arith.constant 0 : index
    %c0_11 = arith.constant 0 : index
    %c0_12 = arith.constant 0 : index
    %24 = vector.load %arg4[%c0_10, %c0_11, %c0_12] : memref<1x64x64xf32, #tpu.memory_space<vmem>>, vector<1x64x64xf32>
    %25 = vector.shape_cast %24 : vector<1x64x64xf32> to vector<64x64xf32>
    %cst_13 = arith.constant dense<0.000000e+00> : vector<600x64xf32>
    %26 = tpu.matmul %23, %25, %cst_13 {dimension_numbers = #tpu.dot_dimension_numbers<[1], [0], [0], [1], [0, 0, 1, 1], [], []>} : vector<600x64xf32>, vector<64x64xf32>, vector<600x64xf32> -> vector<600x64xf32>
    %c0_14 = arith.constant 0 : index
    %c0_15 = arith.constant 0 : index
    %c0_16 = arith.constant 0 : index
    %27 = vector.load %arg5[%c0_14, %c0_15, %c0_16] : memref<1x1x64xf32, #tpu.memory_space<vmem>>, vector<1x1x64xf32>
    %28 = vector.shape_cast %27 : vector<1x1x64xf32> to vector<1x64xf32>
    %29 = vector.broadcast %28 : vector<1x64xf32> to vector<600x64xf32>
    %30 = arith.addf %26, %29 : vector<600x64xf32>
    %cst_17 = arith.constant 0.000000e+00 : f32
    %31 = vector.broadcast %cst_17 : f32 to vector<600x64xf32>
    %32 = arith.maximumf %30, %31 : vector<600x64xf32>
    %c0_18 = arith.constant 0 : index
    %c0_19 = arith.constant 0 : index
    %c0_20 = arith.constant 0 : index
    %33 = vector.load %arg6[%c0_18, %c0_19, %c0_20] : memref<1x64x64xf32, #tpu.memory_space<vmem>>, vector<1x64x64xf32>
    %34 = vector.shape_cast %33 : vector<1x64x64xf32> to vector<64x64xf32>
    %cst_21 = arith.constant dense<0.000000e+00> : vector<600x64xf32>
    %35 = tpu.matmul %32, %34, %cst_21 {dimension_numbers = #tpu.dot_dimension_numbers<[1], [0], [0], [1], [0, 0, 1, 1], [], []>} : vector<600x64xf32>, vector<64x64xf32>, vector<600x64xf32> -> vector<600x64xf32>
    %c0_22 = arith.constant 0 : index
    %c0_23 = arith.constant 0 : index
    %c0_24 = arith.constant 0 : index
    %36 = vector.load %arg7[%c0_22, %c0_23, %c0_24] : memref<1x1x64xf32, #tpu.memory_space<vmem>>, vector<1x1x64xf32>
    %37 = vector.shape_cast %36 : vector<1x1x64xf32> to vector<1x64xf32>
    %38 = vector.broadcast %37 : vector<1x64xf32> to vector<600x64xf32>
    %39 = arith.addf %35, %38 : vector<600x64xf32>
    %40 = arith.addf %5, %39 : vector<600x64xf32>
    %cst_25 = arith.constant dense<0.000000e+00> : vector<600xf32>
    %41 = vector.multi_reduction <add>, %40, %cst_25 [1] : vector<600x64xf32> to vector<600xf32>
    %42 = vector.shape_cast %41 : vector<600xf32> to vector<600x1xf32>
    %cst_26 = arith.constant 6.400000e+01 : f32
    %43 = vector.broadcast %cst_26 : f32 to vector<600x1xf32>
    %44 = arith.divf %42, %43 : vector<600x1xf32>
    %45 = arith.mulf %40, %40 : vector<600x64xf32>
    %cst_27 = arith.constant dense<0.000000e+00> : vector<600xf32>
    %46 = vector.multi_reduction <add>, %45, %cst_27 [1] : vector<600x64xf32> to vector<600xf32>
    %47 = vector.shape_cast %46 : vector<600xf32> to vector<600x1xf32>
    %cst_28 = arith.constant 6.400000e+01 : f32
    %48 = vector.broadcast %cst_28 : f32 to vector<600x1xf32>
    %49 = arith.divf %47, %48 : vector<600x1xf32>
    %50 = arith.mulf %44, %44 : vector<600x1xf32>
    %51 = arith.subf %49, %50 : vector<600x1xf32>
    %cst_29 = arith.constant 9.99999974E-6 : f32
    %52 = vector.broadcast %cst_29 : f32 to vector<600x1xf32>
    %53 = arith.addf %51, %52 : vector<600x1xf32>
    %54 = math.rsqrt %53 : vector<600x1xf32>
    %55 = vector.broadcast %44 : vector<600x1xf32> to vector<600x64xf32>
    %56 = arith.subf %40, %55 : vector<600x64xf32>
    %57 = vector.broadcast %54 : vector<600x1xf32> to vector<600x64xf32>
    %58 = arith.mulf %56, %57 : vector<600x64xf32>
    %c0_30 = arith.constant 0 : index
    %c0_31 = arith.constant 0 : index
    %59 = vector.load %arg8[%c0_30, %c0_31] : memref<64x4xf32, #tpu.memory_space<vmem>>, vector<64x4xf32>
    %cst_32 = arith.constant dense<0.000000e+00> : vector<600x4xf32>
    %60 = tpu.matmul %58, %59, %cst_32 {dimension_numbers = #tpu.dot_dimension_numbers<[1], [0], [0], [1], [0, 0, 1, 1], [], []>} : vector<600x64xf32>, vector<64x4xf32>, vector<600x4xf32> -> vector<600x4xf32>
    %c0_33 = arith.constant 0 : index
    %c0_34 = arith.constant 0 : index
    %61 = vector.load %arg9[%c0_33, %c0_34] : memref<1x4xf32, #tpu.memory_space<vmem>>, vector<1x4xf32>
    %62 = vector.broadcast %61 : vector<1x4xf32> to vector<600x4xf32>
    %63 = arith.addf %60, %62 : vector<600x4xf32>
    %c0_35 = arith.constant 0 : index
    %c0_36 = arith.constant 0 : index
    %64 = vector.load %arg10[%c0_35, %c0_36] : memref<600x4xf32, #tpu.memory_space<vmem>>, vector<600x4xf32>
    tpu.vector_store %arg10[%c0_35, %c0_36], %63 {strides = array<i32>} : memref<600x4xf32, #tpu.memory_space<vmem>>, vector<600x4xf32>,
    return
  }
  func.func @transform_0(%arg0: i32) -> (i32, i32) {
    %c0_i32 = arith.constant 0 : i32
    %c0_i32_0 = arith.constant 0 : i32
    return %arg0, %c0_i32 : i32, i32
  }
  func.func @transform_1(%arg0: i32) -> (i32, i32) {
    %c0_i32 = arith.constant 0 : i32
    %c0_i32_0 = arith.constant 0 : i32
    %c0_i32_1 = arith.constant 0 : i32
    return %c0_i32, %c0_i32_0 : i32, i32
  }
  func.func @transform_2(%arg0: i32) -> (i32, i32) {
    %c0_i32 = arith.constant 0 : i32
    %c0_i32_0 = arith.constant 0 : i32
    %c0_i32_1 = arith.constant 0 : i32
    return %c0_i32, %c0_i32_0 : i32, i32
  }
  func.func @transform_3(%arg0: i32) -> (i32, i32, i32) {
    %c0_i32 = arith.constant 0 : i32
    %c0_i32_0 = arith.constant 0 : i32
    %c0_i32_1 = arith.constant 0 : i32
    %c0_i32_2 = arith.constant 0 : i32
    return %c0_i32, %c0_i32_0, %c0_i32_1 : i32, i32, i32
  }
  func.func @transform_4(%arg0: i32) -> (i32, i32, i32) {
    %c0_i32 = arith.constant 0 : i32
    %c0_i32_0 = arith.constant 0 : i32
    %c0_i32_1 = arith.constant 0 : i32
    %c0_i32_2 = arith.constant 0 : i32
    return %c0_i32, %c0_i32_0, %c0_i32_1 : i32, i32, i32
  }
  func.func @transform_5(%arg0: i32) -> (i32, i32, i32) {
    %c0_i32 = arith.constant 0 : i32
    %c0_i32_0 = arith.constant 0 : i32
    %c0_i32_1 = arith.constant 0 : i32
    %c0_i32_2 = arith.constant 0 : i32
    return %c0_i32, %c0_i32_0, %c0_i32_1 : i32, i32, i32
  }
  func.func @transform_6(%arg0: i32) -> (i32, i32, i32) {
    %c0_i32 = arith.constant 0 : i32
    %c0_i32_0 = arith.constant 0 : i32
    %c0_i32_1 = arith.constant 0 : i32
    %c0_i32_2 = arith.constant 0 : i32
    return %c0_i32, %c0_i32_0, %c0_i32_1 : i32, i32, i32
  }
  func.func @transform_7(%arg0: i32) -> (i32, i32) {
    %c0_i32 = arith.constant 0 : i32
    %c0_i32_0 = arith.constant 0 : i32
    %c0_i32_1 = arith.constant 0 : i32
    return %c0_i32, %c0_i32_0 : i32, i32
  }
  func.func @transform_8(%arg0: i32) -> (i32, i32) {
    %c0_i32 = arith.constant 0 : i32
    %c0_i32_0 = arith.constant 0 : i32
    %c0_i32_1 = arith.constant 0 : i32
    return %c0_i32, %c0_i32_0 : i32, i32
  }
  func.func @transform_9(%arg0: i32) -> (i32, i32) {
    %c0_i32 = arith.constant 0 : i32
    %c0_i32_0 = arith.constant 0 : i32
    return %arg0, %c0_i32 : i32, i32
  }
}

</mosaic_0001>

<bundles_post_ra>
// kernel: tpu_custom_call.1
= control target key start
LH: loop header
LB: loop body
LE: loop exit
PB: predicated region body
PF: predicated region fallthrough
CT: control target
= control target key end

     0   :  { %v11209_v0 = vmov 0.0|0.0   ;;  %vm7254_vm0 = vmmov 0   ;;  %v11211_v4 = vmov 0.0   ;;  %vm118_vm1 = vcmask 261120   ;;  %s11199_s1 = inlined_call_operand.vmem [shape: f32[32,64], index: 1, kind: input, shape index: {}]   ;;  %s11200_s0 = inlined_call_operand.vmem [shape: f32[600,32], index: 0, kind: input, shape index: {}]   ;;  %s11201_s5 = inlined_call_operand.vmem [shape: f32[1,64,64], index: 5, kind: input, shape index: {}]   ;;  %s11202_s2 = inlined_call_operand.vmem [shape: f32[1,64], index: 2, kind: input, shape index: {}]   ;;  %s11203_s3 = inlined_call_operand.vmem [shape: f32[1,64,64], index: 3, kind: input, shape index: {}]   ;;  %s11204_s7 = inlined_call_operand.vmem [shape: f32[64,4], index: 7, kind: input, shape index: {}]   ;;  %s11205_s4 = inlined_call_operand.vmem [shape: f32[1,1,64], index: 4, kind: input, shape index: {}]   ;;  %s11206_s6 = inlined_call_operand.vmem [shape: f32[1,1,64], index: 6, kind: input, shape index: {}]   ;;  %s11207_s8 = inlined_call_operand.vmem [shape: f32[1,4], index: 8, kind: input, shape index: {}]   ;;  %s11208_s9 = inlined_call_operand.vmem [shape: f32[600,4], index: 9, kind: output, shape index: {}]  }
   0x1   :  { %6894 = vmatprep.subr.bf16.mxu0 %v11209_v0  ;;  %v107_v1 = vld [vmem:[%s11199_s1] sm:$0xff]  ;;  %v108_v2 = vld [vmem:[%s11199_s1 + $0x8] sm:$0xff]  ;;  %v109_v3 = vld [vmem:[%s11199_s1 + $0x10] sm:$0xff]  ;;  %5946 = vmatprep.mubr.msk.f32.mxu0 %vm7254_vm0, %v11211_v4  ;;  %vm784_vm2 = vcmask 523264   ;;  %vm5226_vm3 = vcmask 31744  }
   0x2   :  { %v6895_v5 = vpack.c.bf16 %v108_v2, %v107_v1  ;;  %v110_v6 = vld [vmem:[%s11199_s1 + $0x18] sm:$0xff]  ;;  %6900 = vmatprep.subr.bf16.mxu1 %v11209_v0  ;;  %6187 = vmatprep.mubr.msk.f32.mxu1 %vm7254_vm0, %v11211_v4  ;;  %v32_v8 = vld [vmem:[%s11200_s0] sm:$0xff]  ;;  %v33_v9 = vld [vmem:[%s11200_s0 + $0x8] sm:$0xff] }
   0x3   :  { %v6898_v7 = vpack.c.bf16 %v110_v6, %v109_v3  ;;  %v34_v10 = vld [vmem:[%s11200_s0 + $0x10] sm:$0xff]  ;;  %v35_v11 = vld [vmem:[%s11200_s0 + $0x18] sm:$0xff]  ;;  %v36_v12 = vld [vmem:[%s11200_s0 + $0x20] sm:$0xff] }
   0x4   :  { %6896 = vmatpush3.bf16.msra.mxu0 %v6895_v5  ;;  %v37_v13 = vld [vmem:[%s11200_s0 + $0x28] sm:$0xff]  ;;  %v38_v14 = vld [vmem:[%s11200_s0 + $0x30] sm:$0xff]  ;;  %v39_v15 = vld [vmem:[%s11200_s0 + $0x38] sm:$0xff] }
   0x5   :  { %6897 = vmatprep.subr.bf16.mxu0 %v11209_v0  ;;  %v40_v16 = vld [vmem:[%s11200_s0 + $0x40] sm:$0xff]  ;;  %v41_v17 = vld [vmem:[%s11200_s0 + $0x48] sm:$0xff]  ;;  %v42_v18 = vld [vmem:[%s11200_s0 + $0x50] sm:$0xff] }
   0x6   :  { %v43_v19 = vld [vmem:[%s11200_s0 + $0x58] sm:$0xff]  ;;  %v44_v20 = vld [vmem:[%s11200_s0 + $0x60] sm:$0xff]  ;;  %v45_v21 = vld [vmem:[%s11200_s0 + $0x68] sm:$0xff] }
   0x7   :  { %v46_v22 = vld [vmem:[%s11200_s0 + $0x70] sm:$0xff]  ;;  %v47_v23 = vld [vmem:[%s11200_s0 + $0x78] sm:$0xff]  ;;  %v48_v24 = vld [vmem:[%s11200_s0 + $0x80] sm:$0xff] }
   0x8   :  { %6899 = vmatpush3.bf16.msra.mxu0 %v6898_v7  ;;  %v49_v25 = vld [vmem:[%s11200_s0 + $0x88] sm:$0xff]  ;;  %v50_v26 = vld [vmem:[%s11200_s0 + $0x90] sm:$0xff]  ;;  %v51_v27 = vld [vmem:[%s11200_s0 + $0x98] sm:$0xff] }
   0x9   :  { %6912 = vmatprep.subr.bf16.mxu0 %v11209_v0  ;;  %v52_v28 = vld [vmem:[%s11200_s0 + $0xa0] sm:$0xff]  ;;  %v53_v29 = vld [vmem:[%s11200_s0 + $0xa8] sm:$0xff]  ;;  %v54_v30 = vld [vmem:[%s11200_s0 + $0xb0] sm:$0xff] }
   0xa   :  { %v55_v31 = vld [vmem:[%s11200_s0 + $0xb8] sm:$0xff]  ;;  %v56_v32 = vld [vmem:[%s11200_s0 + $0xc0] sm:$0xff]  ;;  %v57_v33 = vld [vmem:[%s11200_s0 + $0xc8] sm:$0xff] }
   0xb   :  { %5947 = vmatmul.mubr.msk.f32.vlgmr.msra.gmra.mrb[0].mxu0 %vm118_vm1, %v32_v8  ;;  %v58_v34 = vld [vmem:[%s11200_s0 + $0xd0] sm:$0xff]  ;;  %v59_v35 = vld [vmem:[%s11200_s0 + $0xd8] sm:$0xff]  ;;  %v60_v36 = vld [vmem:[%s11200_s0 + $0xe0] sm:$0xff] }
   0xc   :  { %5949 = vmatprep.mubr.msk.f32.mxu0 %vm7254_vm0, %v11211_v4  ;;  %v61_v37 = vld [vmem:[%s11200_s0 + $0xe8] sm:$0xff]  ;;  %v62_v38 = vld [vmem:[%s11200_s0 + $0xf0] sm:$0xff]  ;;  %v63_v39 = vld [vmem:[%s11200_s0 + $0xf8] sm:$0xff] }
   0xd   :  { %v64_v40 = vld [vmem:[%s11200_s0 + $0x100] sm:$0xff]  ;;  %v65_v41 = vld [vmem:[%s11200_s0 + $0x108] sm:$0xff]  ;;  %v66_v42 = vld [vmem:[%s11200_s0 + $0x110] sm:$0xff] }
   0xe   :  { %v67_v43 = vld [vmem:[%s11200_s0 + $0x118] sm:$0xff]  ;;  %v68_v44 = vld [vmem:[%s11200_s0 + $0x120] sm:$0xff]  ;;  %v69_v45 = vld [vmem:[%s11200_s0 + $0x128] sm:$0xff] }
   0xf   :  { %5950 = vmatmul.mubr.msk.f32.gmra.mrb[2].mxu0 %vm118_vm1, %v33_v9  ;;  %v70_v46 = vld [vmem:[%s11200_s0 + $0x130] sm:$0xff]  ;;  %v71_v47 = vld [vmem:[%s11200_s0 + $0x138] sm:$0xff]  ;;  %v72_v48 = vld [vmem:[%s11200_s0 + $0x140] sm:$0xff] }
  0x10   :  { %5952 = vmatprep.mubr.msk.f32.mxu0 %vm7254_vm0, %v11211_v4  ;;  %v73_v49 = vld [vmem:[%s11200_s0 + $0x148] sm:$0xff]  ;;  %v74_v50 = vld [vmem:[%s11200_s0 + $0x150] sm:$0xff]  ;;  %v75_v51 = vld [vmem:[%s11200_s0 + $0x158] sm:$0xff] }
  0x11   :  { %v2666_v52 = vld [vmem:[%s11201_s5] sm:$0xff]  ;;  %v2667_v53 = vld [vmem:[%s11201_s5 + $0x8] sm:$0xff]  ;;  %v78_v57 = vld [vmem:[%s11200_s0 + $0x170] sm:$0xff] }
  0x12   :  { %v6913_v54 = vpack.c.bf16 %v2667_v53, %v2666_v52  ;;  %v76_v55 = vld [vmem:[%s11200_s0 + $0x160] sm:$0xff]  ;;  %v77_v56 = vld [vmem:[%s11200_s0 + $0x168] sm:$0xff]  ;;  %v79_v58 = vld [vmem:[%s11200_s0 + $0x178] sm:$0xff] }
  0x13   :  { %5953 = vmatmul.mubr.msk.f32.gmra.mrb[4].mxu0 %vm118_vm1, %v34_v10  ;;  %v80_v59 = vld [vmem:[%s11200_s0 + $0x180] sm:$0xff]  ;;  %v81_v60 = vld [vmem:[%s11200_s0 + $0x188] sm:$0xff]  ;;  %v82_v61 = vld [vmem:[%s11200_s0 + $0x190] sm:$0xff] }
  0x14   :  { %5955 = vmatprep.mubr.msk.f32.mxu0 %vm7254_vm0, %v11211_v4  ;;  %6914 = vmatpush3.bf16.msra.mxu0 %v6913_v54  ;;  %v83_v62 = vld [vmem:[%s11200_s0 + $0x198] sm:$0xff]  ;;  %v84_v63 = vld [vmem:[%s11200_s0 + $0x1a0] sm:$0xff]  ;;  %v85_v2 = vld [vmem:[%s11200_s0 + $0x1a8] sm:$0xff] }
  0x15   :  { %6915 = vmatprep.subr.bf16.mxu0 %v11209_v0  ;;  %v7652_v1 = vld [vmem:[%s11202_s2] ss:$0 sm:$0xff]  ;;  %v86_v7 = vld [vmem:[%s11200_s0 + $0x1b0] sm:$0xff] }
  0x16   :  { %v92_v52 = vld [vmem:[%s11200_s0 + $0x1e0] sm:$0xff] }
  0x17   :  { %5956 = vmatmul.mubr.msk.f32.gmra.mrb[6].mxu0 %vm118_vm1, %v35_v11 }
  0x18   :  { %5958 = vmatprep.mubr.msk.f32.mxu0 %vm7254_vm0, %v11211_v4 }
  0x1b   :  { %5959 = vmatmul.mubr.msk.f32.gmra.mrb[8].mxu0 %vm118_vm1, %v36_v12 }
  0x1c   :  { %5961 = vmatprep.mubr.msk.f32.mxu0 %vm7254_vm0, %v11211_v4 }
  0x1f   :  { %5962 = vmatmul.mubr.msk.f32.gmra.mrb[10].mxu0 %vm118_vm1, %v37_v13  ;;  %v87_v13 = vld [vmem:[%s11200_s0 + $0x1b8] sm:$0xff] }
  0x20   :  { %5964 = vmatprep.mubr.msk.f32.mxu0 %vm7254_vm0, %v11211_v4 }
  0x23   :  { %5965 = vmatmul.mubr.msk.f32.gmra.mrb[12].mxu0 %vm118_vm1, %v38_v14 }
  0x24   :  { %5967 = vmatprep.mubr.msk.f32.mxu0 %vm7254_vm0, %v11211_v4 }
  0x27   :  { %5968 = vmatmul.mubr.msk.f32.gmra.mrb[14].mxu0 %vm118_vm1, %v39_v15 }
  0x28   :  { %5970 = vmatprep.mubr.msk.f32.mxu0 %vm7254_vm0, %v11211_v4 }
  0x2b   :  { %5971 = vmatmul.mubr.msk.f32.gmra.mrb[16].mxu0 %vm118_vm1, %v40_v16 }
  0x2c   :  { %5973 = vmatprep.mubr.msk.f32.mxu0 %vm7254_vm0, %v11211_v4 }
  0x2f   :  { %5974 = vmatmul.mubr.msk.f32.gmra.mrb[18].mxu0 %vm118_vm1, %v41_v17 }
  0x30   :  { %5976 = vmatprep.mubr.msk.f32.mxu0 %vm7254_vm0, %v11211_v4 }
  0x33   :  { %5977 = vmatmul.mubr.msk.f32.gmra.mrb[20].mxu0 %vm118_vm1, %v42_v18 }
  0x34   :  { %5979 = vmatprep.mubr.msk.f32.mxu0 %vm7254_vm0, %v11211_v4 }
  0x37   :  { %5980 = vmatmul.mubr.msk.f32.gmra.mrb[22].mxu0 %vm118_vm1, %v43_v19 }
  0x38   :  { %5982 = vmatprep.mubr.msk.f32.mxu0 %vm7254_vm0, %v11211_v4 }
  0x3b   :  { %5983 = vmatmul.mubr.msk.f32.gmra.mrb[24].mxu0 %vm118_vm1, %v44_v20  ;;  %v88_v20 = vld [vmem:[%s11200_s0 + $0x1c0] sm:$0xff] }
  0x3c   :  { %5985 = vmatprep.mubr.msk.f32.mxu0 %vm7254_vm0, %v11211_v4 }
  0x3f   :  { %5986 = vmatmul.mubr.msk.f32.gmra.mrb[26].mxu0 %vm118_vm1, %v45_v21 }
  0x40   :  { %5988 = vmatprep.mubr.msk.f32.mxu0 %vm7254_vm0, %v11211_v4 }
  0x43   :  { %5989 = vmatmul.mubr.msk.f32.gmra.mrb[28].mxu0 %vm118_vm1, %v46_v22 }
  0x44   :  { %5991 = vmatprep.mubr.msk.f32.mxu0 %vm7254_vm0, %v11211_v4 }
  0x47   :  { %5992 = vmatmul.mubr.msk.f32.gmra.mrb[30].mxu0 %vm118_vm1, %v47_v23 }
  0x48   :  { %5994 = vmatprep.mubr.msk.f32.mxu0 %vm7254_vm0, %v11211_v4 }
  0x4b   :  { %5995 = vmatmul.mubr.msk.f32.gmra.mrb[32].mxu0 %vm118_vm1, %v48_v24 }
  0x4c   :  { %5997 = vmatprep.mubr.msk.f32.mxu0 %vm7254_vm0, %v11211_v4 }
  0x4f   :  { %5998 = vmatmul.mubr.msk.f32.gmra.mrb[34].mxu0 %vm118_vm1, %v49_v25 }
  0x50   :  { %6000 = vmatprep.mubr.msk.f32.mxu0 %vm7254_vm0, %v11211_v4 }
  0x53   :  { %6001 = vmatmul.mubr.msk.f32.gmra.mrb[36].mxu0 %vm118_vm1, %v50_v26 }
  0x54   :  { %6003 = vmatprep.mubr.msk.f32.mxu0 %vm7254_vm0, %v11211_v4 }
  0x57   :  { %6004 = vmatmul.mubr.msk.f32.gmra.mrb[38].mxu0 %vm118_vm1, %v51_v27 }
  0x58   :  { %6006 = vmatprep.mubr.msk.f32.mxu0 %vm7254_vm0, %v11211_v4 }
  0x5b   :  { %6007 = vmatmul.mubr.msk.f32.gmra.mrb[40].mxu0 %vm118_vm1, %v52_v28  ;;  %v89_v28 = vld [vmem:[%s11200_s0 + $0x1c8] sm:$0xff] }
  0x5c   :  { %6009 = vmatprep.mubr.msk.f32.mxu0 %vm7254_vm0, %v11211_v4 }
  0x5f   :  { %6010 = vmatmul.mubr.msk.f32.gmra.mrb[42].mxu0 %vm118_vm1, %v53_v29 }
  0x60   :  { %6012 = vmatprep.mubr.msk.f32.mxu0 %vm7254_vm0, %v11211_v4 }
  0x63   :  { %6013 = vmatmul.mubr.msk.f32.gmra.mrb[44].mxu0 %vm118_vm1, %v54_v30 }
  0x64   :  { %6015 = vmatprep.mubr.msk.f32.mxu0 %vm7254_vm0, %v11211_v4 }
  0x67   :  { %6016 = vmatmul.mubr.msk.f32.gmra.mrb[46].mxu0 %vm118_vm1, %v55_v31 }
  0x68   :  { %6018 = vmatprep.mubr.msk.f32.mxu0 %vm7254_vm0, %v11211_v4 }
  0x6b   :  { %6019 = vmatmul.mubr.msk.f32.gmra.mrb[48].mxu0 %vm118_vm1, %v56_v32 }
  0x6c   :  { %6021 = vmatprep.mubr.msk.f32.mxu0 %vm7254_vm0, %v11211_v4 }
  0x6f   :  { %6022 = vmatmul.mubr.msk.f32.gmra.mrb[50].mxu0 %vm118_vm1, %v57_v33 }
  0x70   :  { %6024 = vmatprep.mubr.msk.f32.mxu0 %vm7254_vm0, %v11211_v4 }
  0x73   :  { %6025 = vmatmul.mubr.msk.f32.gmra.mrb[52].mxu0 %vm118_vm1, %v58_v34 }
  0x74   :  { %6027 = vmatprep.mubr.msk.f32.mxu0 %vm7254_vm0, %v11211_v4 }
  0x77   :  { %6028 = vmatmul.mubr.msk.f32.gmra.mrb[54].mxu0 %vm118_vm1, %v59_v35  ;;  %v90_v35 = vld [vmem:[%s11200_s0 + $0x1d0] sm:$0xff] }
  0x78   :  { %6030 = vmatprep.mubr.msk.f32.mxu0 %vm7254_vm0, %v11211_v4 }
  0x7b   :  { %6031 = vmatmul.mubr.msk.f32.gmra.mrb[56].mxu0 %vm118_vm1, %v60_v36 }
  0x7c   :  { %6033 = vmatprep.mubr.msk.f32.mxu0 %vm7254_vm0, %v11211_v4 }
  0x7f   :  { %6034 = vmatmul.mubr.msk.f32.gmra.mrb[58].mxu0 %vm118_vm1, %v61_v37 }
  0x80   :  { %6036 = vmatprep.mubr.msk.f32.mxu0 %vm7254_vm0, %v11211_v4 }
  0x83   :  { %6037 = vmatmul.mubr.msk.f32.gmra.mrb[60].mxu0 %vm118_vm1, %v62_v38 }
  0x84   :  { %6039 = vmatprep.mubr.msk.f32.mxu0 %vm7254_vm0, %v11211_v4 }
  0x87   :  { %6040 = vmatmul.mubr.msk.f32.gmra.mrb[62].mxu0 %vm118_vm1, %v63_v39 }
  0x88   :  { %6042 = vmatprep.mubr.msk.f32.mxu0 %vm7254_vm0, %v11211_v4 }
  0x8b   :  { %6043 = vmatmul.mubr.msk.f32.gmra.mrb[64].mxu0 %vm118_vm1, %v64_v40 }
  0x8c   :  { %6045 = vmatprep.mubr.msk.f32.mxu0 %vm7254_vm0, %v11211_v4 }
  0x8f   :  { %6046 = vmatmul.mubr.msk.f32.gmra.mrb[66].mxu0 %vm118_vm1, %v65_v41 }
  0x90   :  { %6048 = vmatprep.mubr.msk.f32.mxu0 %vm7254_vm0, %v11211_v4 }
  0x93   :  { %6049 = vmatmul.mubr.msk.f32.gmra.mrb[68].mxu0 %vm118_vm1, %v66_v42  ;;  %v91_v42 = vld [vmem:[%s11200_s0 + $0x1d8] sm:$0xff] }
  0x94   :  { %6051 = vmatprep.mubr.msk.f32.mxu0 %vm7254_vm0, %v11211_v4 }
  0x97   :  { %6052 = vmatmul.mubr.msk.f32.gmra.mrb[70].mxu0 %vm118_vm1, %v67_v43 }
  0x98   :  { %6054 = vmatprep.mubr.msk.f32.mxu0 %vm7254_vm0, %v11211_v4 }
  0x9b   :  { %6055 = vmatmul.mubr.msk.f32.gmra.mrb[72].mxu0 %vm118_vm1, %v68_v44 }
  0x9c   :  { %6057 = vmatprep.mubr.msk.f32.mxu0 %vm7254_vm0, %v11211_v4 }
  0x9f   :  { %6058 = vmatmul.mubr.msk.f32.gmra.mrb[74].mxu0 %vm118_vm1, %v69_v45  ;;  %v1911_v45 = vld [vmem:[%s11203_s3] sm:$0xff] }
  0xa0   :  { %6060 = vmatprep.mubr.msk.f32.mxu0 %vm7254_vm0, %v11211_v4 }
  0xa3   :  { %6061 = vmatmul.mubr.msk.f32.gmra.mrb[76].mxu0 %vm118_vm1, %v70_v46  ;;  %v1912_v46 = vld [vmem:[%s11203_s3 + $0x8] sm:$0xff] }
  0xa4   :  { %6063 = vmatprep.mubr.msk.f32.mxu0 %vm7254_vm0, %v11211_v4 }
  0xa7   :  { %6064 = vmatmul.mubr.msk.f32.gmra.mrb[78].mxu0 %vm118_vm1, %v71_v47 }
  0xa8   :  { %6066 = vmatprep.mubr.msk.f32.mxu0 %vm7254_vm0, %v11211_v4 }
  0xab   :  { %6067 = vmatmul.mubr.msk.f32.gmra.mrb[80].mxu0 %vm118_vm1, %v72_v48  ;;  %v6901_v48 = vpack.c.bf16 %v1912_v46, %v1911_v45 }
  0xac   :  { %6069 = vmatprep.mubr.msk.f32.mxu0 %vm7254_vm0, %v11211_v4 }
  0xad   :  { %6902 = vmatpush3.bf16.msra.mxu1 %v6901_v48 }
  0xae   :  { %6903 = vmatprep.subr.bf16.mxu1 %v11209_v0 }
  0xaf   :  { %6070 = vmatmul.mubr.msk.f32.gmra.mrb[82].mxu0 %vm118_vm1, %v73_v49 }
  0xb0   :  { %6072 = vmatprep.mubr.msk.f32.mxu0 %vm7254_vm0, %v11211_v4 }
  0xb3   :  { %6073 = vmatmul.mubr.msk.f32.gmra.mrb[84].mxu0 %vm118_vm1, %v74_v50 }
  0xb4   :  { %6075 = vmatprep.mubr.msk.f32.mxu0 %vm7254_vm0, %v11211_v4 }
  0xb7   :  { %6076 = vmatmul.mubr.msk.f32.gmra.mrb[86].mxu0 %vm118_vm1, %v75_v51 }
  0xb8   :  { %6078 = vmatprep.mubr.msk.f32.mxu0 %vm7254_vm0, %v11211_v4 }
  0xbb   :  { %6079 = vmatmul.mubr.msk.f32.gmra.mrb[88].mxu0 %vm118_vm1, %v76_v55  ;;  %v1913_v55 = vld [vmem:[%s11203_s3 + $0x10] sm:$0xff] }
  0xbc   :  { %6081 = vmatprep.mubr.msk.f32.mxu0 %vm7254_vm0, %v11211_v4 }
  0xbf   :  { %6082 = vmatmul.mubr.msk.f32.gmra.mrb[90].mxu0 %vm118_vm1, %v77_v56  ;;  %v1914_v56 = vld [vmem:[%s11203_s3 + $0x18] sm:$0xff] }
  0xc0   :  { %6084 = vmatprep.mubr.msk.f32.mxu0 %vm7254_vm0, %v11211_v4 }
  0xc3   :  { %6085 = vmatmul.mubr.msk.f32.gmra.mrb[92].mxu0 %vm118_vm1, %v78_v57 }
  0xc4   :  { %6087 = vmatprep.mubr.msk.f32.mxu0 %vm7254_vm0, %v11211_v4 }
  0xc7   :  { %6088 = vmatmul.mubr.msk.f32.gmra.mrb[94].mxu0 %vm118_vm1, %v79_v58  ;;  %v6904_v58 = vpack.c.bf16 %v1914_v56, %v1913_v55 }
  0xc8   :  { %6090 = vmatprep.mubr.msk.f32.mxu0 %vm7254_vm0, %v11211_v4 }
  0xc9   :  { %6905 = vmatpush3.bf16.msra.mxu1 %v6904_v58 }
  0xca   :  { %6906 = vmatprep.subr.bf16.mxu1 %v11209_v0 }
  0xcb   :  { %6091 = vmatmul.mubr.msk.f32.gmra.mrb[96].mxu0 %vm118_vm1, %v80_v59 }
  0xcc   :  { %6093 = vmatprep.mubr.msk.f32.mxu0 %vm7254_vm0, %v11211_v4 }
  0xcf   :  { %6094 = vmatmul.mubr.msk.f32.gmra.mrb[98].mxu0 %vm118_vm1, %v81_v60 }
  0xd0   :  { %6096 = vmatprep.mubr.msk.f32.mxu0 %vm7254_vm0, %v11211_v4 }
  0xd3   :  { %6097 = vmatmul.mubr.msk.f32.gmra.mrb[100].mxu0 %vm118_vm1, %v82_v61 }
  0xd4   :  { %6099 = vmatprep.mubr.msk.f32.mxu0 %vm7254_vm0, %v11211_v4 }
  0xd7   :  { %6100 = vmatmul.mubr.msk.f32.gmra.mrb[102].mxu0 %vm118_vm1, %v83_v62  ;;  %v93_v62 = vld [vmem:[%s11200_s0 + $0x1e8] sm:$0xff] }
  0xd8   :  { %6102 = vmatprep.mubr.msk.f32.mxu0 %vm7254_vm0, %v11211_v4 }
  0xdb   :  { %6103 = vmatmul.mubr.msk.f32.gmra.mrb[104].mxu0 %vm118_vm1, %v84_v63 }
  0xdc   :  { %6105 = vmatprep.mubr.msk.f32.mxu0 %vm7254_vm0, %v11211_v4 }
  0xde   :  { %v410_v3 = vpop.f32.mrb[0].mxu0 }
  0xdf   :  { %v7660_v5 = vadd.f32 %v7652_v1, %v410_v3  ;;  %v5948_v6 = vpop.f32.mrb[1].mxu0  ;;  %6106 = vmatmul.mubr.msk.f32.gmra.mrb[106].mxu0 %vm118_vm1, %v85_v2  ;;  %v1915_v3 = vld [vmem:[%s11203_s3 + $0x20] sm:$0xff] }
  0xe0   :  { %6108 = vmatprep.mubr.msk.f32.mxu0 %vm7254_vm0, %v11211_v4  ;;  %v1916_v6 = vld [vmem:[%s11203_s3 + $0x28] sm:$0xff] }
  0xe1   :  { %11283 = vst [vmem:[#allocation2_spill] sm:$0xff] %v7660_v5  ;;  %v785_v8 = vsel %vm784_vm2, %v7660_v5, 0.0  ;;  %v1086_v9 = vmul.f32 %v7660_v5, %v7660_v5 }
  0xe2   :  { %786 = vadd.xlane.f32.xlu0 %v785_v8  ;;  %v415_v10 = vpop.f32.mrb[2].mxu0  ;;  %v6907_v8 = vpack.c.bf16 %v1916_v6, %v1915_v3 }
  0xe3   :  { %v7673_v11 = vadd.f32 %v7652_v1, %v415_v10  ;;  %v5951_v12 = vpop.f32.mrb[3].mxu0  ;;  %6109 = vmatmul.mubr.msk.f32.gmra.mrb[108].mxu0 %vm118_vm1, %v86_v7  ;;  %v1161_v14 = vsel %vm784_vm2, %v1086_v9, 0.0 }
  0xe4   :  { %6111 = vmatprep.mubr.msk.f32.mxu0 %vm7254_vm0, %v11211_v4  ;;  %6908 = vmatpush3.bf16.msra.mxu1 %v6907_v8 }
  0xe5   :  { %11284 = vst [vmem:[#allocation3_spill] sm:$0xff] %v7673_v11  ;;  %v788_v15 = vsel %vm784_vm2, %v7673_v11, 0.0  ;;  %v1087_v16 = vmul.f32 %v7673_v11, %v7673_v11  ;;  %6909 = vmatprep.subr.bf16.mxu1 %v11209_v0 }
  0xe6   :  { %1162 = vadd.xlane.f32.xlu0 %v1161_v14  ;;  %789 = vadd.xlane.f32.xlu1 %v788_v15  ;;  %v420_v17 = vpop.f32.mrb[4].mxu0 }
  0xe7   :  { %v7687_v18 = vadd.f32 %v7652_v1, %v420_v17  ;;  %6112 = vmatmul.mubr.msk.f32.gmra.mrb[110].mxu0 %vm118_vm1, %v87_v13  ;;  %v5954_v19 = vpop.f32.mrb[5].mxu0  ;;  %v1164_v21 = vsel %vm784_vm2, %v1087_v16, 0.0  ;;  %v94_v13 = vld [vmem:[%s11200_s0 + $0x1f0] sm:$0xff]  ;;  %v1918_v17 = vld [vmem:[%s11203_s3 + $0x38] sm:$0xff] }
  0xe8   :  { %6114 = vmatprep.mubr.msk.f32.mxu0 %vm7254_vm0, %v11211_v4  ;;  %v1917_v16 = vld [vmem:[%s11203_s3 + $0x30] sm:$0xff] }
  0xe9   :  { %11285 = vst [vmem:[#allocation4_spill] sm:$0xff] %v7687_v18  ;;  %v791_v22 = vsel %vm784_vm2, %v7687_v18, 0.0  ;;  %v1088_v23 = vmul.f32 %v7687_v18, %v7687_v18 }
  0xea   :  { %1165 = vadd.xlane.f32.xlu1 %v1164_v21  ;;  %792 = vadd.xlane.f32.xlu0 %v791_v22  ;;  %v425_v24 = vpop.f32.mrb[6].mxu0  ;;  %v2669_v21 = vld [vmem:[%s11201_s5 + $0x18] sm:$0xff]  ;;  %v6910_v22 = vpack.c.bf16 %v1918_v17, %v1917_v16  ;;  %v101_v16 = vld [vmem:[%s11200_s0 + $0x228] sm:$0xff] }
  0xeb   :  { %v7701_v25 = vadd.f32 %v7652_v1, %v425_v24  ;;  %6115 = vmatmul.mubr.msk.f32.gmra.mrb[112].mxu0 %vm118_vm1, %v88_v20  ;;  %v5957_v26 = vpop.f32.mrb[7].mxu0  ;;  %v1167_v27 = vsel %vm784_vm2, %v1088_v23, 0.0  ;;  %v2668_v20 = vld [vmem:[%s11201_s5 + $0x10] sm:$0xff] }
  0xec   :  { %6117 = vmatprep.mubr.msk.f32.mxu0 %vm7254_vm0, %v11211_v4  ;;  %6911 = vmatpush3.bf16.msra.mxu1 %v6910_v22 }
  0xed   :  { %11286 = vst [vmem:[#allocation5_spill] sm:$0xff] %v7701_v25  ;;  %v794_v29 = vsel %vm784_vm2, %v7701_v25, 0.0  ;;  %v1089_v30 = vmul.f32 %v7701_v25, %v7701_v25  ;;  %6936 = vmatprep.subr.bf16.mxu1 %v11209_v0 }
  0xee   :  { %1168 = vadd.xlane.f32.xlu1 %v1167_v27  ;;  %795 = vadd.xlane.f32.xlu0 %v794_v29  ;;  %v430_v31 = vpop.f32.mrb[8].mxu0  ;;  %v6916_v27 = vpack.c.bf16 %v2669_v21, %v2668_v20 }
  0xef   :  { %v7715_v32 = vadd.f32 %v7652_v1, %v430_v31  ;;  %6118 = vmatmul.mubr.msk.f32.gmra.mrb[114].mxu0 %vm118_vm1, %v89_v28  ;;  %v5960_v33 = vpop.f32.mrb[9].mxu0  ;;  %v1170_v34 = vsel %vm784_vm2, %v1089_v30, 0.0  ;;  %v95_v28 = vld [vmem:[%s11200_s0 + $0x1f8] sm:$0xff] }
  0xf0   :  { %6120 = vmatprep.mubr.msk.f32.mxu0 %vm7254_vm0, %v11211_v4  ;;  %6917 = vmatpush3.bf16.msra.mxu0 %v6916_v27 }
  0xf1   :  { %11287 = vst [vmem:[#allocation6_spill] sm:$0xff] %v7715_v32  ;;  %v797_v36 = vsel %vm784_vm2, %v7715_v32, 0.0  ;;  %v1090_v37 = vmul.f32 %v7715_v32, %v7715_v32  ;;  %6918 = vmatprep.subr.bf16.mxu0 %v11209_v0 }
  0xf2   :  { %1171 = vadd.xlane.f32.xlu1 %v1170_v34  ;;  %798 = vadd.xlane.f32.xlu0 %v797_v36  ;;  %v435_v38 = vpop.f32.mrb[10].mxu0  ;;  %v96_v36 = vld [vmem:[%s11200_s0 + $0x200] sm:$0xff] }
  0xf3   :  { %v7729_v39 = vadd.f32 %v7652_v1, %v435_v38  ;;  %6121 = vmatmul.mubr.msk.f32.gmra.mrb[116].mxu0 %vm118_vm1, %v90_v35  ;;  %v5963_v40 = vpop.f32.mrb[11].mxu0  ;;  %v1173_v41 = vsel %vm784_vm2, %v1090_v37, 0.0 }
  0xf4   :  { %6123 = vmatprep.mubr.msk.f32.mxu0 %vm7254_vm0, %v11211_v4 }
  0xf5   :  { %11288 = vst [vmem:[#allocation7_spill] sm:$0xff] %v7729_v39  ;;  %v800_v43 = vsel %vm784_vm2, %v7729_v39, 0.0  ;;  %v1091_v44 = vmul.f32 %v7729_v39, %v7729_v39 }
  0xf6   :  { %1174 = vadd.xlane.f32.xlu1 %v1173_v41  ;;  %801 = vadd.xlane.f32.xlu0 %v800_v43  ;;  %v440_v47 = vpop.f32.mrb[12].mxu0 }
  0xf7   :  { %v7749_v49 = vadd.f32 %v7652_v1, %v440_v47  ;;  %6124 = vmatmul.mubr.msk.f32.gmra.mrb[118].mxu0 %vm118_vm1, %v91_v42  ;;  %v5966_v50 = vpop.f32.mrb[13].mxu0  ;;  %v1176_v51 = vsel %vm784_vm2, %v1091_v44, 0.0  ;;  %v97_v44 = vld [vmem:[%s11200_s0 + $0x208] sm:$0xff] }
  0xf8   :  { %6126 = vmatprep.mubr.msk.f32.mxu0 %vm7254_vm0, %v11211_v4 }
  0xf9   :  { %v803_v53 = vsel %vm784_vm2, %v7749_v49, 0.0  ;;  %v1092_v54 = vmul.f32 %v7749_v49, %v7749_v49 }
  0xfa   :  { %1177 = vadd.xlane.f32.xlu1 %v1176_v51  ;;  %804 = vadd.xlane.f32.xlu0 %v803_v53  ;;  %v445_v57 = vpop.f32.mrb[14].mxu0 }
  0xfb   :  { %v7770_v59 = vadd.f32 %v7652_v1, %v445_v57  ;;  %6127 = vmatmul.mubr.msk.f32.gmra.mrb[120].mxu0 %vm118_vm1, %v92_v52  ;;  %v5969_v60 = vpop.f32.mrb[15].mxu0  ;;  %v1179_v61 = vsel %vm784_vm2, %v1092_v54, 0.0  ;;  %v98_v52 = vld [vmem:[%s11200_s0 + $0x210] sm:$0xff] }
  0xfc   :  { %6129 = vmatprep.mubr.msk.f32.mxu0 %vm7254_vm0, %v11211_v4  ;;  %v99_v60 = vld [vmem:[%s11200_s0 + $0x218] sm:$0xff] }
  0xfd   :  { %11289 = vst [vmem:[#allocation8_spill] sm:$0xff] %v7770_v59  ;;  %v806_v63 = vsel %vm784_vm2, %v7770_v59, 0.0  ;;  %v1093_v2 = vmul.f32 %v7770_v59, %v7770_v59 }
  0xfe   :  { %1180 = vadd.xlane.f32.xlu1 %v1179_v61  ;;  %807 = vadd.xlane.f32.xlu0 %v806_v63  ;;  %v450_v7 = vpop.f32.mrb[16].mxu0 }
  0xff   :  { %v7791_v9 = vadd.f32 %v7652_v1, %v450_v7  ;;  %6130 = vmatmul.mubr.msk.f32.gmra.mrb[122].mxu0 %vm118_vm1, %v93_v62  ;;  %v5972_v10 = vpop.f32.mrb[17].mxu0  ;;  %v1182_v12 = vsel %vm784_vm2, %v1093_v2, 0.0  ;;  %v100_v7 = vld [vmem:[%s11200_s0 + $0x220] sm:$0xff] }
 0x100   :  { %6132 = vmatprep.mubr.msk.f32.mxu0 %vm7254_vm0, %v11211_v4 }
 0x101   :  { %11290 = vst [vmem:[#allocation9_spill] sm:$0xff] %v7791_v9  ;;  %v809_v14 = vsel %vm784_vm2, %v7791_v9, 0.0  ;;  %v1094_v15 = vmul.f32 %v7791_v9, %v7791_v9 }
 0x102   :  { %1183 = vadd.xlane.f32.xlu1 %v1182_v12  ;;  %810 = vadd.xlane.f32.xlu0 %v809_v14  ;;  %v455_v19 = vpop.f32.mrb[18].mxu0 }
 0x103   :  { %v7818_v23 = vadd.f32 %v7652_v1, %v455_v19  ;;  %6133 = vmatmul.mubr.msk.f32.gmra.mrb[124].mxu0 %vm118_vm1, %v94_v13  ;;  %v5975_v24 = vpop.f32.mrb[19].mxu0  ;;  %v1185_v26 = vsel %vm784_vm2, %v1094_v15, 0.0 }
 0x104   :  { %6135 = vmatprep.mubr.msk.f32.mxu0 %vm7254_vm0, %v11211_v4 }
 0x105   :  { %11291 = vst [vmem:[#allocation10_spill] sm:$0xff] %v7818_v23  ;;  %v812_v29 = vsel %vm784_vm2, %v7818_v23, 0.0  ;;  %v1095_v30 = vmul.f32 %v7818_v23, %v7818_v23 }
 0x106   :  { %1186 = vadd.xlane.f32.xlu1 %v1185_v26  ;;  %813 = vadd.xlane.f32.xlu0 %v812_v29  ;;  %v460_v31 = vpop.f32.mrb[20].mxu0  ;;  %v102_v26 = vld [vmem:[%s11200_s0 + $0x230] sm:$0xff] }
 0x107   :  { %v7833_v33 = vadd.f32 %v7652_v1, %v460_v31  ;;  %6136 = vmatmul.mubr.msk.f32.gmra.mrb[126].mxu0 %vm118_vm1, %v95_v28  ;;  %v5978_v34 = vpop.f32.mrb[21].mxu0  ;;  %v1188_v35 = vsel %vm784_vm2, %v1095_v30, 0.0 }
 0x108   :  { %6138 = vmatprep.mubr.msk.f32.mxu0 %vm7254_vm0, %v11211_v4 }
 0x109   :  { %11292 = vst [vmem:[#allocation11_spill] sm:$0xff] %v7833_v33  ;;  %v815_v37 = vsel %vm784_vm2, %v7833_v33, 0.0  ;;  %v1096_v38 = vmul.f32 %v7833_v33, %v7833_v33 }
 0x10a   :  { %1189 = vadd.xlane.f32.xlu1 %v1188_v35  ;;  %816 = vadd.xlane.f32.xlu0 %v815_v37  ;;  %v465_v40 = vpop.f32.mrb[22].mxu0  ;;  %v103_v35 = vld [vmem:[%s11200_s0 + $0x238] sm:$0xff] }
 0x10b   :  { %v7848_v41 = vadd.f32 %v7652_v1, %v465_v40  ;;  %6139 = vmatmul.mubr.msk.f32.gmra.mrb[128].mxu0 %vm118_vm1, %v96_v36  ;;  %v5981_v42 = vpop.f32.mrb[23].mxu0  ;;  %v1191_v43 = vsel %vm784_vm2, %v1096_v38, 0.0 }
 0x10c   :  { %6141 = vmatprep.mubr.msk.f32.mxu0 %vm7254_vm0, %v11211_v4 }
 0x10d   :  { %11293 = vst [vmem:[#allocation12_spill] sm:$0xff] %v7848_v41  ;;  %v818_v45 = vsel %vm784_vm2, %v7848_v41, 0.0  ;;  %v1097_v46 = vmul.f32 %v7848_v41, %v7848_v41 }
 0x10e   :  { %1192 = vadd.xlane.f32.xlu1 %v1191_v43  ;;  %819 = vadd.xlane.f32.xlu0 %v818_v45  ;;  %v470_v47 = vpop.f32.mrb[24].mxu0 }
 0x10f   :  { %v7862_v48 = vadd.f32 %v7652_v1, %v470_v47  ;;  %6142 = vmatmul.mubr.msk.f32.gmra.mrb[130].mxu0 %vm118_vm1, %v97_v44  ;;  %v5984_v50 = vpop.f32.mrb[25].mxu0  ;;  %v1194_v51 = vsel %vm784_vm2, %v1097_v46, 0.0  ;;  %v104_v44 = vld [vmem:[%s11200_s0 + $0x240] sm:$0xff] }
 0x110   :  { %6144 = vmatprep.mubr.msk.f32.mxu0 %vm7254_vm0, %v11211_v4 }
 0x111   :  { %11294 = vst [vmem:[#allocation13_spill] sm:$0xff] %v7862_v48  ;;  %v821_v53 = vsel %vm784_vm2, %v7862_v48, 0.0  ;;  %v1098_v54 = vmul.f32 %v7862_v48, %v7862_v48 }
 0x112   :  { %1195 = vadd.xlane.f32.xlu1 %v1194_v51  ;;  %822 = vadd.xlane.f32.xlu0 %v821_v53  ;;  %v475_v55 = vpop.f32.mrb[26].mxu0  ;;  %v105_v53 = vld [vmem:[%s11200_s0 + $0x248] sm:$0xff] }
 0x113   :  { %v7876_v56 = vadd.f32 %v7652_v1, %v475_v55  ;;  %6145 = vmatmul.mubr.msk.f32.gmra.mrb[132].mxu0 %vm118_vm1, %v98_v52  ;;  %v5987_v57 = vpop.f32.mrb[27].mxu0  ;;  %v1197_v58 = vsel %vm784_vm2, %v1098_v54, 0.0 }
 0x114   :  { %6147 = vmatprep.mubr.msk.f32.mxu0 %vm7254_vm0, %v11211_v4 }
 0x115   :  { %11295 = vst [vmem:[#allocation14_spill] sm:$0xff] %v7876_v56  ;;  %v824_v61 = vsel %vm784_vm2, %v7876_v56, 0.0  ;;  %v1099_v62 = vmul.f32 %v7876_v56, %v7876_v56 }
 0x116   :  { %1198 = vadd.xlane.f32.xlu1 %v1197_v58  ;;  %825 = vadd.xlane.f32.xlu0 %v824_v61  ;;  %v480_v63 = vpop.f32.mrb[28].mxu0 }
 0x117   :  { %v7890_v2 = vadd.f32 %v7652_v1, %v480_v63  ;;  %6148 = vmatmul.mubr.msk.f32.gmra.mrb[134].mxu0 %vm118_vm1, %v99_v60  ;;  %v5990_v3 = vpop.f32.mrb[29].mxu0  ;;  %v1200_v6 = vsel %vm784_vm2, %v1099_v62, 0.0  ;;  %v106_v62 = vld [vmem:[%s11200_s0 + $0x250] sm:$0xff] }
 0x118   :  { %6150 = vmatprep.mubr.msk.f32.mxu0 %vm7254_vm0, %v11211_v4 }
 0x119   :  { %11296 = vst [vmem:[#allocation15_spill] sm:$0xff] %v7890_v2  ;;  %v827_v8 = vsel %vm784_vm2, %v7890_v2, 0.0  ;;  %v1100_v10 = vmul.f32 %v7890_v2, %v7890_v2 }
 0x11a   :  { %1201 = vadd.xlane.f32.xlu1 %v1200_v6  ;;  %828 = vadd.xlane.f32.xlu0 %v827_v8  ;;  %v485_v12 = vpop.f32.mrb[30].mxu0 }
 0x11b   :  { %v7904_v13 = vadd.f32 %v7652_v1, %v485_v12  ;;  %6151 = vmatmul.mubr.msk.f32.gmra.mrb[136].mxu0 %vm118_vm1, %v100_v7  ;;  %v5993_v14 = vpop.f32.mrb[31].mxu0  ;;  %v1203_v15 = vsel %vm784_vm2, %v1100_v10, 0.0 }
 0x11c   :  { %6153 = vmatprep.mubr.msk.f32.mxu0 %vm7254_vm0, %v11211_v4 }
 0x11d   :  { %11297 = vst [vmem:[#allocation16_spill] sm:$0xff] %v7904_v13  ;;  %v830_v17 = vsel %vm784_vm2, %v7904_v13, 0.0  ;;  %v1101_v19 = vmul.f32 %v7904_v13, %v7904_v13 }
 0x11e   :  { %1204 = vadd.xlane.f32.xlu1 %v1203_v15  ;;  %831 = vadd.xlane.f32.xlu0 %v830_v17  ;;  %v490_v20 = vpop.f32.mrb[32].mxu0 }
 0x11f   :  { %v7918_v21 = vadd.f32 %v7652_v1, %v490_v20  ;;  %6154 = vmatmul.mubr.msk.f32.gmra.mrb[138].mxu0 %vm118_vm1, %v101_v16  ;;  %v5996_v22 = vpop.f32.mrb[33].mxu0  ;;  %v1206_v24 = vsel %vm784_vm2, %v1101_v19, 0.0 }
 0x120   :  { %6156 = vmatprep.mubr.msk.f32.mxu0 %vm7254_vm0, %v11211_v4 }
 0x121   :  { %11298 = vst [vmem:[#allocation17_spill] sm:$0xff] %v7918_v21  ;;  %v833_v27 = vsel %vm784_vm2, %v7918_v21, 0.0  ;;  %v1102_v28 = vmul.f32 %v7918_v21, %v7918_v21 }
 0x122   :  { %1207 = vadd.xlane.f32.xlu1 %v1206_v24  ;;  %834 = vadd.xlane.f32.xlu0 %v833_v27  ;;  %v495_v29 = vpop.f32.mrb[34].mxu0 }
 0x123   :  { %v7932_v30 = vadd.f32 %v7652_v1, %v495_v29  ;;  %6157 = vmatmul.mubr.msk.f32.gmra.mrb[140].mxu0 %vm118_vm1, %v102_v26  ;;  %v5999_v31 = vpop.f32.mrb[35].mxu0  ;;  %v1209_v34 = vsel %vm784_vm2, %v1102_v28, 0.0 }
 0x124   :  { %6159 = vmatprep.mubr.msk.f32.mxu0 %vm7254_vm0, %v11211_v4 }
 0x125   :  { %11299 = vst [vmem:[#allocation18_spill] sm:$0xff] %v7932_v30  ;;  %v836_v36 = vsel %vm784_vm2, %v7932_v30, 0.0  ;;  %v1103_v37 = vmul.f32 %v7932_v30, %v7932_v30 }
 0x126   :  { %1210 = vadd.xlane.f32.xlu1 %v1209_v34  ;;  %837 = vadd.xlane.f32.xlu0 %v836_v36  ;;  %v500_v38 = vpop.f32.mrb[36].mxu0 }
 0x127   :  { %v7946_v40 = vadd.f32 %v7652_v1, %v500_v38  ;;  %6160 = vmatmul.mubr.msk.f32.gmra.mrb[142].mxu0 %vm118_vm1, %v103_v35  ;;  %v6002_v42 = vpop.f32.mrb[37].mxu0  ;;  %v1212_v43 = vsel %vm784_vm2, %v1103_v37, 0.0 }
 0x128   :  { %6162 = vmatprep.mubr.msk.f32.mxu0 %vm7254_vm0, %v11211_v4 }
 0x129   :  { %11300 = vst [vmem:[#allocation19_spill] sm:$0xff] %v7946_v40  ;;  %v839_v45 = vsel %vm784_vm2, %v7946_v40, 0.0  ;;  %v1104_v46 = vmul.f32 %v7946_v40, %v7946_v40 }
 0x12a   :  { %1213 = vadd.xlane.f32.xlu1 %v1212_v43  ;;  %840 = vadd.xlane.f32.xlu0 %v839_v45  ;;  %v505_v47 = vpop.f32.mrb[38].mxu0 }
 0x12b   :  { %v7960_v50 = vadd.f32 %v7652_v1, %v505_v47  ;;  %6163 = vmatmul.mubr.msk.f32.gmra.mrb[144].mxu0 %vm118_vm1, %v104_v44  ;;  %v6005_v51 = vpop.f32.mrb[39].mxu0  ;;  %v1215_v52 = vsel %vm784_vm2, %v1104_v46, 0.0 }
 0x12c   :  { %6165 = vmatprep.mubr.msk.f32.mxu0 %vm7254_vm0, %v11211_v4 }
 0x12d   :  { %11301 = vst [vmem:[#allocation20_spill] sm:$0xff] %v7960_v50  ;;  %v842_v54 = vsel %vm784_vm2, %v7960_v50, 0.0  ;;  %v1105_v55 = vmul.f32 %v7960_v50, %v7960_v50 }
 0x12e   :  { %1216 = vadd.xlane.f32.xlu1 %v1215_v52  ;;  %843 = vadd.xlane.f32.xlu0 %v842_v54  ;;  %v510_v57 = vpop.f32.mrb[40].mxu0 }
 0x12f   :  { %v7974_v58 = vadd.f32 %v7652_v1, %v510_v57  ;;  %6166 = vmatmul.mubr.msk.f32.gmra.mrb[146].mxu0 %vm118_vm1, %v105_v53  ;;  %v6008_v60 = vpop.f32.mrb[41].mxu0  ;;  %v1218_v61 = vsel %vm784_vm2, %v1105_v55, 0.0 }
 0x130   :  { %6168 = vmatprep.mubr.msk.f32.mxu0 %vm7254_vm0, %v11211_v4 }
 0x131   :  { %11302 = vst [vmem:[#allocation21_spill] sm:$0xff] %v7974_v58  ;;  %v845_v63 = vsel %vm784_vm2, %v7974_v58, 0.0  ;;  %v1106_v3 = vmul.f32 %v7974_v58, %v7974_v58 }
 0x132   :  { %1219 = vadd.xlane.f32.xlu1 %v1218_v61  ;;  %846 = vadd.xlane.f32.xlu0 %v845_v63  ;;  %v515_v6 = vpop.f32.mrb[42].mxu0 }
 0x133   :  { %v7988_v7 = vadd.f32 %v7652_v1, %v515_v6  ;;  %6169 = vmatmul.mubr.msk.f32.gmra.mrb[148].mxu0 %vm118_vm1, %v106_v62  ;;  %v6011_v8 = vpop.f32.mrb[43].mxu0  ;;  %v1221_v10 = vsel %vm784_vm2, %v1106_v3, 0.0 }
 0x134   :  { %6428 = vmatprep.mubr.msk.f32.mxu0 %vm7254_vm0, %v11211_v4 }
 0x135   :  { %11303 = vst [vmem:[#allocation22_spill] sm:$0xff] %v7988_v7  ;;  %v848_v12 = vsel %vm784_vm2, %v7988_v7, 0.0  ;;  %v1107_v14 = vmul.f32 %v7988_v7, %v7988_v7 }
 0x136   :  { %1222 = vadd.xlane.f32.xlu1 %v1221_v10  ;;  %849 = vadd.xlane.f32.xlu0 %v848_v12  ;;  %v520_v15 = vpop.f32.mrb[44].mxu0  ;;  %v2670_v12 = vld [vmem:[%s11201_s5 + $0x20] sm:$0xff] }
 0x137   :  { %v7999_v16 = vadd.f32 %v7652_v1, %v520_v15  ;;  %v6014_v17 = vpop.f32.mrb[45].mxu0  ;;  %v1224_v19 = vsel %vm784_vm2, %v1107_v14, 0.0  ;;  %v2671_v14 = vld [vmem:[%s11201_s5 + $0x28] sm:$0xff] }
 0x139   :  { %11304 = vst [vmem:[#allocation23_spill] sm:$0xff] %v7999_v16  ;;  %v851_v20 = vsel %vm784_vm2, %v7999_v16, 0.0  ;;  %v1108_v22 = vmul.f32 %v7999_v16, %v7999_v16 }
 0x13a   :  { %1225 = vadd.xlane.f32.xlu1 %v1224_v19  ;;  %852 = vadd.xlane.f32.xlu0 %v851_v20  ;;  %v525_v24 = vpop.f32.mrb[46].mxu0  ;;  %v6919_v20 = vpack.c.bf16 %v2671_v14, %v2670_v12 }
 0x13b   :  { %v8007_v26 = vadd.f32 %v7652_v1, %v525_v24  ;;  %v6017_v27 = vpop.f32.mrb[47].mxu0  ;;  %v1227_v28 = vsel %vm784_vm2, %v1108_v22, 0.0 }
 0x13c   :  { %6920 = vmatpush3.bf16.msra.mxu0 %v6919_v20 }
 0x13d   :  { %11305 = vst [vmem:[#allocation24_spill] sm:$0xff] %v8007_v26  ;;  %v854_v29 = vsel %vm784_vm2, %v8007_v26, 0.0  ;;  %v1109_v31 = vmul.f32 %v8007_v26, %v8007_v26  ;;  %6921 = vmatprep.subr.bf16.mxu0 %v11209_v0 }
 0x13e   :  { %1228 = vadd.xlane.f32.xlu1 %v1227_v28  ;;  %855 = vadd.xlane.f32.xlu0 %v854_v29  ;;  %v530_v34 = vpop.f32.mrb[48].mxu0 }
 0x13f   :  { %v8015_v35 = vadd.f32 %v7652_v1, %v530_v34  ;;  %v6020_v36 = vpop.f32.mrb[49].mxu0  ;;  %v1230_v37 = vsel %vm784_vm2, %v1109_v31, 0.0 }
 0x141   :  { %11306 = vst [vmem:[#allocation25_spill] sm:$0xff] %v8015_v35  ;;  %v857_v38 = vsel %vm784_vm2, %v8015_v35, 0.0  ;;  %v1110_v42 = vmul.f32 %v8015_v35, %v8015_v35 }
 0x142   :  { %1231 = vadd.xlane.f32.xlu1 %v1230_v37  ;;  %858 = vadd.xlane.f32.xlu0 %v857_v38  ;;  %v535_v43 = vpop.f32.mrb[50].mxu0 }
 0x143   :  { %v8023_v44 = vadd.f32 %v7652_v1, %v535_v43  ;;  %v6023_v45 = vpop.f32.mrb[51].mxu0  ;;  %v1233_v46 = vsel %vm784_vm2, %v1110_v42, 0.0 }
 0x145   :  { %11307 = vst [vmem:[#allocation26_spill] sm:$0xff] %v8023_v44  ;;  %v860_v47 = vsel %vm784_vm2, %v8023_v44, 0.0  ;;  %v1111_v51 = vmul.f32 %v8023_v44, %v8023_v44 }
 0x146   :  { %1234 = vadd.xlane.f32.xlu1 %v1233_v46  ;;  %861 = vadd.xlane.f32.xlu0 %v860_v47  ;;  %v540_v52 = vpop.f32.mrb[52].mxu0 }
 0x147   :  { %v8031_v53 = vadd.f32 %v7652_v1, %v540_v52  ;;  %v6026_v54 = vpop.f32.mrb[53].mxu0  ;;  %v1236_v55 = vsel %vm784_vm2, %v1111_v51, 0.0 }
 0x149   :  { %11308 = vst [vmem:[#allocation27_spill] sm:$0xff] %v8031_v53  ;;  %v863_v57 = vsel %vm784_vm2, %v8031_v53, 0.0  ;;  %v1112_v60 = vmul.f32 %v8031_v53, %v8031_v53 }
 0x14a   :  { %1237 = vadd.xlane.f32.xlu1 %v1236_v55  ;;  %864 = vadd.xlane.f32.xlu0 %v863_v57  ;;  %v545_v61 = vpop.f32.mrb[54].mxu0 }
 0x14b   :  { %v8039_v62 = vadd.f32 %v7652_v1, %v545_v61  ;;  %v6029_v63 = vpop.f32.mrb[55].mxu0  ;;  %v1239_v3 = vsel %vm784_vm2, %v1112_v60, 0.0 }
 0x14d   :  { %11309 = vst [vmem:[#allocation28_spill] sm:$0xff] %v8039_v62  ;;  %v866_v6 = vsel %vm784_vm2, %v8039_v62, 0.0  ;;  %v1113_v8 = vmul.f32 %v8039_v62, %v8039_v62 }
 0x14e   :  { %1240 = vadd.xlane.f32.xlu1 %v1239_v3  ;;  %867 = vadd.xlane.f32.xlu0 %v866_v6  ;;  %v550_v10 = vpop.f32.mrb[56].mxu0 }
 0x14f   :  { %v8053_v15 = vadd.f32 %v7652_v1, %v550_v10  ;;  %v6032_v17 = vpop.f32.mrb[57].mxu0  ;;  %v1242_v19 = vsel %vm784_vm2, %v1113_v8, 0.0 }
 0x151   :  { %11310 = vst [vmem:[#allocation29_spill] sm:$0xff] %v8053_v15  ;;  %v869_v22 = vsel %vm784_vm2, %v8053_v15, 0.0  ;;  %v1114_v24 = vmul.f32 %v8053_v15, %v8053_v15 }
 0x152   :  { %1243 = vadd.xlane.f32.xlu1 %v1242_v19  ;;  %870 = vadd.xlane.f32.xlu0 %v869_v22  ;;  %v555_v27 = vpop.f32.mrb[58].mxu0 }
 0x153   :  { %v8061_v28 = vadd.f32 %v7652_v1, %v555_v27  ;;  %v6035_v29 = vpop.f32.mrb[59].mxu0  ;;  %v1245_v31 = vsel %vm784_vm2, %v1114_v24, 0.0 }
 0x155   :  { %11311 = vst [vmem:[#allocation30_spill] sm:$0xff] %v8061_v28  ;;  %v872_v34 = vsel %vm784_vm2, %v8061_v28, 0.0  ;;  %v1115_v36 = vmul.f32 %v8061_v28, %v8061_v28 }
 0x156   :  { %1246 = vadd.xlane.f32.xlu1 %v1245_v31  ;;  %873 = vadd.xlane.f32.xlu0 %v872_v34  ;;  %v560_v37 = vpop.f32.mrb[60].mxu0 }
 0x157   :  { %v8070_v38 = vadd.f32 %v7652_v1, %v560_v37  ;;  %v6038_v42 = vpop.f32.mrb[61].mxu0  ;;  %v1248_v43 = vsel %vm784_vm2, %v1115_v36, 0.0 }
 0x159   :  { %11312 = vst [vmem:[#allocation31_spill] sm:$0xff] %v8070_v38  ;;  %v875_v45 = vsel %vm784_vm2, %v8070_v38, 0.0  ;;  %v1116_v46 = vmul.f32 %v8070_v38, %v8070_v38 }
 0x15a   :  { %1249 = vadd.xlane.f32.xlu1 %v1248_v43  ;;  %876 = vadd.xlane.f32.xlu0 %v875_v45  ;;  %v565_v47 = vpop.f32.mrb[62].mxu0 }
 0x15b   :  { %v8078_v51 = vadd.f32 %v7652_v1, %v565_v47  ;;  %v6041_v52 = vpop.f32.mrb[63].mxu0  ;;  %v1251_v54 = vsel %vm784_vm2, %v1116_v46, 0.0 }
 0x15d   :  { %11313 = vst [vmem:[#allocation32_spill] sm:$0xff] %v8078_v51  ;;  %v878_v55 = vsel %vm784_vm2, %v8078_v51, 0.0  ;;  %v1117_v57 = vmul.f32 %v8078_v51, %v8078_v51 }
 0x15e   :  { %1252 = vadd.xlane.f32.xlu1 %v1251_v54  ;;  %879 = vadd.xlane.f32.xlu0 %v878_v55  ;;  %v570_v60 = vpop.f32.mrb[64].mxu0 }
 0x15f   :  { %v8086_v61 = vadd.f32 %v7652_v1, %v570_v60  ;;  %v6044_v63 = vpop.f32.mrb[65].mxu0  ;;  %v1254_v3 = vsel %vm784_vm2, %v1117_v57, 0.0 }
 0x161   :  { %11314 = vst [vmem:[#allocation33_spill] sm:$0xff] %v8086_v61  ;;  %v881_v6 = vsel %vm784_vm2, %v8086_v61, 0.0  ;;  %v1118_v8 = vmul.f32 %v8086_v61, %v8086_v61 }
 0x162   :  { %1255 = vadd.xlane.f32.xlu1 %v1254_v3  ;;  %882 = vadd.xlane.f32.xlu0 %v881_v6  ;;  %v575_v10 = vpop.f32.mrb[66].mxu0 }
 0x163   :  { %v8094_v12 = vadd.f32 %v7652_v1, %v575_v10  ;;  %v6047_v14 = vpop.f32.mrb[67].mxu0  ;;  %v1257_v17 = vsel %vm784_vm2, %v1118_v8, 0.0 }
 0x165   :  { %11315 = vst [vmem:[#allocation34_spill] sm:$0xff] %v8094_v12  ;;  %v884_v19 = vsel %vm784_vm2, %v8094_v12, 0.0  ;;  %v1119_v20 = vmul.f32 %v8094_v12, %v8094_v12 }
 0x166   :  { %1258 = vadd.xlane.f32.xlu1 %v1257_v17  ;;  %885 = vadd.xlane.f32.xlu0 %v884_v19  ;;  %v580_v22 = vpop.f32.mrb[68].mxu0 }
 0x167   :  { %v8102_v24 = vadd.f32 %v7652_v1, %v580_v22  ;;  %v6050_v27 = vpop.f32.mrb[69].mxu0  ;;  %v1260_v29 = vsel %vm784_vm2, %v1119_v20, 0.0 }
 0x169   :  { %v887_v31 = vsel %vm784_vm2, %v8102_v24, 0.0  ;;  %v1120_v34 = vmul.f32 %v8102_v24, %v8102_v24 }
 0x16a   :  { %1261 = vadd.xlane.f32.xlu1 %v1260_v29  ;;  %888 = vadd.xlane.f32.xlu0 %v887_v31  ;;  %v585_v36 = vpop.f32.mrb[70].mxu0 }
 0x16b   :  { %v8110_v37 = vadd.f32 %v7652_v1, %v585_v36  ;;  %v6053_v42 = vpop.f32.mrb[71].mxu0  ;;  %v1263_v43 = vsel %vm784_vm2, %v1120_v34, 0.0 }
 0x16d   :  { %v890_v45 = vsel %vm784_vm2, %v8110_v37, 0.0  ;;  %v1121_v46 = vmul.f32 %v8110_v37, %v8110_v37 }
 0x16e   :  { %1264 = vadd.xlane.f32.xlu1 %v1263_v43  ;;  %891 = vadd.xlane.f32.xlu0 %v890_v45  ;;  %v590_v47 = vpop.f32.mrb[72].mxu0 }
 0x16f   :  { %v8118_v52 = vadd.f32 %v7652_v1, %v590_v47  ;;  %v787_v54 = vpop.xlane.xlu0 %786  ;;  %v6056_v55 = vpop.f32.mrb[73].mxu0  ;;  %v1266_v57 = vsel %vm784_vm2, %v1121_v46, 0.0 }
 0x170   :  { %v8121_v60 = vmul.f32 0.015625, %v787_v54 }
 0x171   :  { %v893_v63 = vsel %vm784_vm2, %v8118_v52, 0.0  ;;  %v1122_v3 = vmul.f32 %v8118_v52, %v8118_v52 }
 0x172   :  { %1267 = vadd.xlane.f32.xlu1 %v1266_v57  ;;  %894 = vadd.xlane.f32.xlu0 %v893_v63  ;;  %v595_v6 = vpop.f32.mrb[74].mxu0  ;;  %v1461_v19 = vmul.f32 %v8121_v60, %v8121_v60 }
 0x173   :  { %v8128_v8 = vadd.f32 %v7652_v1, %v595_v6  ;;  %v1163_v10 = vpop.xlane.xlu0 %1162  ;;  %v790_v14 = vpop.xlane.xlu1 %789  ;;  %v1269_v17 = vsel %vm784_vm2, %v1122_v3, 0.0 }
 0x174   :  { %v1386_v20 = vmul.f32 0.015625, %v1163_v10  ;;  %v8133_v22 = vmul.f32 0.015625, %v790_v14  ;;  %v6059_v27 = vpop.f32.mrb[75].mxu0 }
 0x175   :  { %v896_v29 = vsel %vm784_vm2, %v8128_v8, 0.0  ;;  %v1123_v31 = vmul.f32 %v8128_v8, %v8128_v8 }
 0x176   :  { %v1536_v34 = vsub.f32 %v1386_v20, %v1461_v19  ;;  %1270 = vadd.xlane.f32.xlu1 %v1269_v17  ;;  %897 = vadd.xlane.f32.xlu0 %v896_v29  ;;  %v600_v36 = vpop.f32.mrb[76].mxu0  ;;  %v1462_v54 = vmul.f32 %v8133_v22, %v8133_v22 }
 0x177   :  { %v8140_v42 = vadd.f32 %v7652_v1, %v600_v36  ;;  %v1166_v43 = vpop.xlane.xlu1 %1165  ;;  %v793_v45 = vpop.xlane.xlu0 %792  ;;  %v1272_v46 = vsel %vm784_vm2, %v1123_v31, 0.0 }
 0x178   :  { %v1611_v47 = vadd.f32 1e-05, %v1536_v34  ;;  %v1387_v55 = vmul.f32 0.015625, %v1166_v43  ;;  %v8145_v57 = vmul.f32 0.015625, %v793_v45  ;;  %v6062_v63 = vpop.f32.mrb[77].mxu0 }
 0x179   :  { %v899_v3 = vsel %vm784_vm2, %v8140_v42, 0.0  ;;  %v1124_v6 = vmul.f32 %v8140_v42, %v8140_v42 }
 0x17a   :  { %6947 = vrsqrt.f32 %v1611_v47  ;;  %v1537_v10 = vsub.f32 %v1387_v55, %v1462_v54  ;;  %v1463_v14 = vmul.f32 %v8145_v57, %v8145_v57  ;;  %1273 = vadd.xlane.f32.xlu1 %v1272_v46  ;;  %900 = vadd.xlane.f32.xlu0 %v899_v3  ;;  %v605_v17 = vpop.f32.mrb[78].mxu0 }
 0x17b   :  { %v8154_v19 = vadd.f32 %v7652_v1, %v605_v17  ;;  %v1169_v20 = vpop.xlane.xlu1 %1168  ;;  %v796_v27 = vpop.xlane.xlu0 %795  ;;  %v1275_v29 = vsel %vm784_vm2, %v1124_v6, 0.0 }
 0x17c   :  { %v1612_v31 = vadd.f32 1e-05, %v1537_v10  ;;  %v1388_v34 = vmul.f32 0.015625, %v1169_v20  ;;  %v8157_v36 = vmul.f32 0.015625, %v796_v27  ;;  %v6065_v43 = vpop.f32.mrb[79].mxu0 }
 0x17d   :  { %v902_v45 = vsel %vm784_vm2, %v8154_v19, 0.0  ;;  %v1125_v46 = vmul.f32 %v8154_v19, %v8154_v19 }
 0x17e   :  { %6949 = vrsqrt.f32 %v1612_v31  ;;  %v1538_v47 = vsub.f32 %v1388_v34, %v1463_v14  ;;  %v1464_v54 = vmul.f32 %v8157_v36, %v8157_v36  ;;  %1276 = vadd.xlane.f32.xlu1 %v1275_v29  ;;  %903 = vadd.xlane.f32.xlu0 %v902_v45  ;;  %v610_v55 = vpop.f32.mrb[80].mxu0 }
 0x17f   :  { %v8166_v63 = vadd.f32 %v7652_v1, %v610_v55  ;;  %v1172_v3 = vpop.xlane.xlu1 %1171  ;;  %v799_v6 = vpop.xlane.xlu0 %798  ;;  %v1278_v10 = vsel %vm784_vm2, %v1125_v46, 0.0  ;;  %v1761_v46 = vsub.f32 %v7660_v5, %v8121_v60 }
 0x180   :  { %v1613_v17 = vadd.f32 1e-05, %v1538_v47  ;;  %v1389_v20 = vmul.f32 0.015625, %v1172_v3  ;;  %v8169_v27 = vmul.f32 0.015625, %v799_v6  ;;  %v6068_v43 = vpop.f32.mrb[81].mxu0 }
 0x181   :  { %v905_v14 = vsel %vm784_vm2, %v8166_v63, 0.0  ;;  %v1126_v29 = vmul.f32 %v8166_v63, %v8166_v63 }
 0x182   :  { %6951 = vrsqrt.f32 %v1613_v17  ;;  %v1539_v31 = vsub.f32 %v1389_v20, %v1464_v54  ;;  %v1465_v34 = vmul.f32 %v8169_v27, %v8169_v27  ;;  %1279 = vadd.xlane.f32.xlu1 %v1278_v10  ;;  %906 = vadd.xlane.f32.xlu0 %v905_v14  ;;  %v615_v45 = vpop.f32.mrb[82].mxu0 }
 0x183   :  { %v8180_v47 = vadd.f32 %v7652_v1, %v615_v45  ;;  %v1175_v55 = vpop.xlane.xlu1 %1174  ;;  %v802_v3 = vpop.xlane.xlu0 %801  ;;  %v1281_v6 = vsel %vm784_vm2, %v1126_v29, 0.0 }
 0x184   :  { %v6948_v43 = vpop.eup %6947  ;;  %v1614_v0 = vadd.f32 1e-05, %v1539_v31  ;;  %v1390_v17 = vmul.f32 0.015625, %v1175_v55  ;;  %v8183_v54 = vmul.f32 0.015625, %v802_v3  ;;  %v6071_v20 = vpop.f32.mrb[83].mxu0  ;;  %v1762_v31 = vsub.f32 %v7673_v11, %v8133_v22 }
 0x185   :  { %v908_v10 = vsel %vm784_vm2, %v8180_v47, 0.0  ;;  %v1836_v14 = vmul.f32 %v6948_v43, %v1761_v46  ;;  %v1127_v60 = vmul.f32 %v8180_v47, %v8180_v47 }
 0x186   :  { %6953 = vrsqrt.f32 %v1614_v0  ;;  %v1540_v45 = vsub.f32 %v1390_v17, %v1465_v34  ;;  %v1466_v4 = vmul.f32 %v8183_v54, %v8183_v54  ;;  %1282 = vadd.xlane.f32.xlu1 %v1281_v6  ;;  %909 = vadd.xlane.f32.xlu0 %v908_v10  ;;  %v620_v29 = vpop.f32.mrb[84].mxu0  ;;  %v11316_v10 = vmov 0.0  }
 0x187   :  { %v8194_v55 = vadd.f32 %v7652_v1, %v620_v29  ;;  %6188 = vmatmul.mubr.msk.f32.vlgmr.msra.gmra.mrb[0].mxu1 %vm784_vm2, %v1836_v14  ;;  %v1178_v46 = vpop.xlane.xlu1 %1177  ;;  %v805_v3 = vpop.xlane.xlu0 %804  ;;  %v1284_v43 = vsel %vm784_vm2, %v1127_v60, 0.0 }
 0x188   :  { %v6950_v0 = vpop.eup %6949  ;;  %v1615_v34 = vadd.f32 1e-05, %v1540_v45  ;;  %v1391_v17 = vmul.f32 0.015625, %v1178_v46  ;;  %v8198_v20 = vmul.f32 0.015625, %v805_v3  ;;  %v6074_v6 = vpop.f32.mrb[85].mxu0  ;;  %6190 = vmatprep.mubr.msk.f32.mxu1 %vm7254_vm0, %v11316_v10  ;;  %v1763_v46 = vsub.f32 %v7687_v18, %v8145_v57 }
 0x189   :  { %v911_v22 = vsel %vm784_vm2, %v8194_v55, 0.0  ;;  %v1837_v29 = vmul.f32 %v6950_v0, %v1762_v31  ;;  %v1128_v14 = vmul.f32 %v8194_v55, %v8194_v55 }
 0x18a   :  { %6955 = vrsqrt.f32 %v1615_v34  ;;  %v1541_v5 = vsub.f32 %v1391_v17, %v1466_v4  ;;  %v1467_v60 = vmul.f32 %v8198_v20, %v8198_v20  ;;  %1285 = vadd.xlane.f32.xlu1 %v1284_v43  ;;  %912 = vadd.xlane.f32.xlu0 %v911_v22  ;;  %v625_v45 = vpop.f32.mrb[86].mxu0 }
 0x18b   :  { %v8211_v3 = vadd.f32 %v7652_v1, %v625_v45  ;;  %6191 = vmatmul.mubr.msk.f32.gmra.mrb[2].mxu1 %vm784_vm2, %v1837_v29  ;;  %v1181_v31 = vpop.xlane.xlu1 %1180  ;;  %v808_v0 = vpop.xlane.xlu0 %807  ;;  %v1287_v6 = vsel %vm784_vm2, %v1128_v14, 0.0  ;;  %v1764_v45 = vsub.f32 %v7701_v25, %v8157_v36 }
 0x18c   :  { %v6952_v34 = vpop.eup %6951  ;;  %v1616_v4 = vadd.f32 1e-05, %v1541_v5  ;;  %v1392_v17 = vmul.f32 0.015625, %v1181_v31  ;;  %v8215_v11 = vmul.f32 0.015625, %v808_v0  ;;  %v6077_v43 = vpop.f32.mrb[87].mxu0  ;;  %6193 = vmatprep.mubr.msk.f32.mxu1 %vm7254_vm0, %v11316_v10 }
 0x18d   :  { %v914_v57 = vsel %vm784_vm2, %v8211_v3, 0.0  ;;  %v1838_v1 = vmul.f32 %v6952_v34, %v1763_v46  ;;  %v1129_v22 = vmul.f32 %v8211_v3, %v8211_v3  ;;  %v8230_v31 = vld [vmem:[%s11202_s2] ss:$0 sm:$0xff] }
 0x18e   :  { %6957 = vrsqrt.f32 %v1616_v4  ;;  %v1542_v29 = vsub.f32 %v1392_v17, %v1467_v60  ;;  %v1468_v14 = vmul.f32 %v8215_v11, %v8215_v11  ;;  %1288 = vadd.xlane.f32.xlu1 %v1287_v6  ;;  %915 = vadd.xlane.f32.xlu0 %v914_v57  ;;  %v630_v5 = vpop.f32.mrb[88].mxu0 }
 0x18f   :  { %v8233_v46 = vadd.f32 %v8230_v31, %v630_v5  ;;  %6194 = vmatmul.mubr.msk.f32.gmra.mrb[4].mxu1 %vm784_vm2, %v1838_v1  ;;  %v1184_v60 = vpop.xlane.xlu1 %1183  ;;  %v811_v0 = vpop.xlane.xlu0 %810  ;;  %v1290_v34 = vsel %vm784_vm2, %v1129_v22, 0.0 }
 0x190   :  { %v6954_v6 = vpop.eup %6953  ;;  %v1617_v4 = vadd.f32 1e-05, %v1542_v29  ;;  %v1393_v17 = vmul.f32 0.015625, %v1184_v60  ;;  %v8237_v43 = vmul.f32 0.015625, %v811_v0  ;;  %v6080_v36 = vpop.f32.mrb[89].mxu0  ;;  %6196 = vmatprep.mubr.msk.f32.mxu1 %vm7254_vm0, %v11316_v10  ;;  %v1765_v60 = vsub.f32 %v7715_v32, %v8169_v27 }
 0x191   :  { %v917_v57 = vsel %vm784_vm2, %v8233_v46, 0.0  ;;  %v1839_v5 = vmul.f32 %v6954_v6, %v1764_v45  ;;  %v1130_v1 = vmul.f32 %v8233_v46, %v8233_v46 }
 0x192   :  { %6959 = vrsqrt.f32 %v1617_v4  ;;  %v1543_v25 = vsub.f32 %v1393_v17, %v1468_v14  ;;  %v1469_v22 = vmul.f32 %v8237_v43, %v8237_v43  ;;  %1291 = vadd.xlane.f32.xlu1 %v1290_v34  ;;  %918 = vadd.xlane.f32.xlu0 %v917_v57  ;;  %v635_v29 = vpop.f32.mrb[90].mxu0 }
 0x193   :  { %v8250_v0 = vadd.f32 %v8230_v31, %v635_v29  ;;  %6197 = vmatmul.mubr.msk.f32.gmra.mrb[6].mxu1 %vm784_vm2, %v1839_v5  ;;  %v1187_v45 = vpop.xlane.xlu1 %1186  ;;  %v814_v6 = vpop.xlane.xlu0 %813  ;;  %v1293_v36 = vsel %vm784_vm2, %v1130_v1, 0.0 }
 0x194   :  { %v6956_v4 = vpop.eup %6955  ;;  %v1618_v14 = vadd.f32 1e-05, %v1543_v25  ;;  %v1394_v17 = vmul.f32 0.015625, %v1187_v45  ;;  %v8254_v18 = vmul.f32 0.015625, %v814_v6  ;;  %v6083_v34 = vpop.f32.mrb[91].mxu0  ;;  %6199 = vmatprep.mubr.msk.f32.mxu1 %vm7254_vm0, %v11316_v10  ;;  %v1766_v45 = vsub.f32 %v7729_v39, %v8183_v54 }
 0x195   :  { %11317 = vst [vmem:[#allocation35_spill] sm:$0xff] %v8250_v0  ;;  %v920_v27 = vsel %vm784_vm2, %v8250_v0, 0.0  ;;  %v1840_v57 = vmul.f32 %v6956_v4, %v1765_v60  ;;  %v1131_v5 = vmul.f32 %v8250_v0, %v8250_v0 }
 0x196   :  { %6961 = vrsqrt.f32 %v1618_v14  ;;  %v1544_v29 = vsub.f32 %v1394_v17, %v1469_v22  ;;  %v1470_v1 = vmul.f32 %v8254_v18, %v8254_v18  ;;  %1294 = vadd.xlane.f32.xlu1 %v1293_v36  ;;  %921 = vadd.xlane.f32.xlu0 %v920_v27  ;;  %v640_v25 = vpop.f32.mrb[92].mxu0 }
 0x197   :  { %v8267_v6 = vadd.f32 %v8230_v31, %v640_v25  ;;  %6200 = vmatmul.mubr.msk.f32.gmra.mrb[8].mxu1 %vm784_vm2, %v1840_v57  ;;  %v1190_v60 = vpop.xlane.xlu1 %1189  ;;  %v817_v4 = vpop.xlane.xlu0 %816  ;;  %v1296_v34 = vsel %vm784_vm2, %v1131_v5, 0.0 }
 0x198   :  { %v6958_v14 = vpop.eup %6957  ;;  %v1619_v22 = vadd.f32 1e-05, %v1544_v29  ;;  %v1395_v17 = vmul.f32 0.015625, %v1190_v60  ;;  %v8271_v32 = vmul.f32 0.015625, %v817_v4  ;;  %v6086_v36 = vpop.f32.mrb[93].mxu0  ;;  %6202 = vmatprep.mubr.msk.f32.mxu1 %vm7254_vm0, %v11316_v10  ;;  %v2672_v60 = vld [vmem:[%s11201_s5 + $0x30] sm:$0xff] }
 0x199   :  { %11318 = vst [vmem:[#allocation36_spill] sm:$0xff] %v8267_v6  ;;  %v923_v54 = vsel %vm784_vm2, %v8267_v6, 0.0  ;;  %v1841_v27 = vmul.f32 %v6958_v14, %v1766_v45  ;;  %v1132_v57 = vmul.f32 %v8267_v6, %v8267_v6  ;;  %v2673_v4 = vld [vmem:[%s11201_s5 + $0x38] sm:$0xff]  ;;  %v1767_v45 = vsub.f32 %v7749_v49, %v8198_v20 }
 0x19a   :  { %6963 = vrsqrt.f32 %v1619_v22  ;;  %v1545_v25 = vsub.f32 %v1395_v17, %v1470_v1  ;;  %v1471_v5 = vmul.f32 %v8271_v32, %v8271_v32  ;;  %1297 = vadd.xlane.f32.xlu1 %v1296_v34  ;;  %924 = vadd.xlane.f32.xlu0 %v923_v54  ;;  %v645_v29 = vpop.f32.mrb[94].mxu0  ;;  %v6922_v17 = vpack.c.bf16 %v2673_v4, %v2672_v60 }
 0x19b   :  { %v8290_v14 = vadd.f32 %v8230_v31, %v645_v29  ;;  %6203 = vmatmul.mubr.msk.f32.gmra.mrb[10].mxu1 %vm784_vm2, %v1841_v27  ;;  %v1193_v1 = vpop.xlane.xlu1 %1192  ;;  %v820_v34 = vpop.xlane.xlu0 %819  ;;  %v1299_v22 = vsel %vm784_vm2, %v1132_v57, 0.0 }
 0x19c   :  { %v6960_v36 = vpop.eup %6959  ;;  %v1620_v54 = vadd.f32 1e-05, %v1545_v25  ;;  %v1396_v39 = vmul.f32 0.015625, %v1193_v1  ;;  %v8294_v6 = vmul.f32 0.015625, %v820_v34  ;;  %v6089_v0 = vpop.f32.mrb[95].mxu0  ;;  %6205 = vmatprep.mubr.msk.f32.mxu1 %vm7254_vm0, %v11316_v10  ;;  %6923 = vmatpush3.bf16.msra.mxu0 %v6922_v17  ;;  %v11320_v17 = vmov 0.0|0.0  }
 0x19d   :  { %11319 = vst [vmem:[#allocation37_spill] sm:$0xff] %v8290_v14  ;;  %v926_v20 = vsel %vm784_vm2, %v8290_v14, 0.0  ;;  %v1842_v29 = vmul.f32 %v6960_v36, %v1767_v45  ;;  %v1133_v27 = vmul.f32 %v8290_v14, %v8290_v14  ;;  %v1768_v0 = vsub.f32 %v7770_v59, %v8215_v11  ;;  %6924 = vmatprep.subr.bf16.mxu0 %v11320_v17 }
 0x19e   :  { %6965 = vrsqrt.f32 %v1620_v54  ;;  %v1546_v57 = vsub.f32 %v1396_v39, %v1471_v5  ;;  %v1472_v25 = vmul.f32 %v8294_v6, %v8294_v6  ;;  %1300 = vadd.xlane.f32.xlu1 %v1299_v22  ;;  %927 = vadd.xlane.f32.xlu0 %v926_v20  ;;  %v650_v60 = vpop.f32.mrb[96].mxu0 }
 0x19f   :  { %v8307_v4 = vadd.f32 %v8230_v31, %v650_v60  ;;  %6206 = vmatmul.mubr.msk.f32.gmra.mrb[12].mxu1 %vm784_vm2, %v1842_v29  ;;  %v1196_v45 = vpop.xlane.xlu1 %1195  ;;  %v823_v1 = vpop.xlane.xlu0 %822  ;;  %v1302_v34 = vsel %vm784_vm2, %v1133_v27, 0.0 }
 0x1a0   :  { %v6962_v39 = vpop.eup %6961  ;;  %v1621_v5 = vadd.f32 1e-05, %v1546_v57  ;;  %v1397_v36 = vmul.f32 0.015625, %v1196_v45  ;;  %v8312_v22 = vmul.f32 0.015625, %v823_v1  ;;  %v6092_v54 = vpop.f32.mrb[97].mxu0  ;;  %6208 = vmatprep.mubr.msk.f32.mxu1 %vm7254_vm0, %v11316_v10  ;;  %v1769_v45 = vsub.f32 %v7791_v9, %v8237_v43 }
 0x1a1   :  { %v929_v11 = vsel %vm784_vm2, %v8307_v4, 0.0  ;;  %v1843_v20 = vmul.f32 %v6962_v39, %v1768_v0  ;;  %v1134_v29 = vmul.f32 %v8307_v4, %v8307_v4 }
 0x1a2   :  { %6967 = vrsqrt.f32 %v1621_v5  ;;  %v1547_v27 = vsub.f32 %v1397_v36, %v1472_v25  ;;  %v1473_v60 = vmul.f32 %v8312_v22, %v8312_v22  ;;  %1303 = vadd.xlane.f32.xlu1 %v1302_v34  ;;  %930 = vadd.xlane.f32.xlu0 %v929_v11  ;;  %v655_v57 = vpop.f32.mrb[98].mxu0 }
 0x1a3   :  { %v8325_v1 = vadd.f32 %v8230_v31, %v655_v57  ;;  %6209 = vmatmul.mubr.msk.f32.gmra.mrb[14].mxu1 %vm784_vm2, %v1843_v20  ;;  %v1199_v0 = vpop.xlane.xlu1 %1198  ;;  %v826_v39 = vpop.xlane.xlu0 %825  ;;  %v1305_v54 = vsel %vm784_vm2, %v1134_v29, 0.0 }
 0x1a4   :  { %v6964_v5 = vpop.eup %6963  ;;  %v1622_v25 = vadd.f32 1e-05, %v1547_v27  ;;  %v1398_v36 = vmul.f32 0.015625, %v1199_v0  ;;  %v8329_v59 = vmul.f32 0.015625, %v826_v39  ;;  %v6095_v34 = vpop.f32.mrb[99].mxu0  ;;  %6211 = vmatprep.mubr.msk.f32.mxu1 %vm7254_vm0, %v11316_v10  ;;  %v1770_v0 = vsub.f32 %v7818_v23, %v8254_v18 }
 0x1a5   :  { %v932_v43 = vsel %vm784_vm2, %v8325_v1, 0.0  ;;  %v1844_v11 = vmul.f32 %v6964_v5, %v1769_v45  ;;  %v1135_v20 = vmul.f32 %v8325_v1, %v8325_v1 }
 0x1a6   :  { %6969 = vrsqrt.f32 %v1622_v25  ;;  %v1548_v57 = vsub.f32 %v1398_v36, %v1473_v60  ;;  %v1474_v29 = vmul.f32 %v8329_v59, %v8329_v59  ;;  %1306 = vadd.xlane.f32.xlu1 %v1305_v54  ;;  %933 = vadd.xlane.f32.xlu0 %v932_v43  ;;  %v660_v27 = vpop.f32.mrb[100].mxu0 }
 0x1a7   :  { %v8342_v39 = vadd.f32 %v8230_v31, %v660_v27  ;;  %6212 = vmatmul.mubr.msk.f32.gmra.mrb[16].mxu1 %vm784_vm2, %v1844_v11  ;;  %v1202_v45 = vpop.xlane.xlu1 %1201  ;;  %v829_v5 = vpop.xlane.xlu0 %828  ;;  %v1308_v34 = vsel %vm784_vm2, %v1135_v20, 0.0 }
 0x1a8   :  { %v6966_v25 = vpop.eup %6965  ;;  %v1623_v60 = vadd.f32 1e-05, %v1548_v57  ;;  %v1399_v36 = vmul.f32 0.015625, %v1202_v45  ;;  %v8346_v9 = vmul.f32 0.015625, %v829_v5  ;;  %v6098_v54 = vpop.f32.mrb[101].mxu0  ;;  %6214 = vmatprep.mubr.msk.f32.mxu1 %vm7254_vm0, %v11316_v10  ;;  %v1771_v45 = vsub.f32 %v7833_v33, %v8271_v32 }
 0x1a9   :  { %v935_v18 = vsel %vm784_vm2, %v8342_v39, 0.0  ;;  %v1845_v43 = vmul.f32 %v6966_v25, %v1770_v0  ;;  %v1136_v11 = vmul.f32 %v8342_v39, %v8342_v39 }
 0x1aa   :  { %6971 = vrsqrt.f32 %v1623_v60  ;;  %v1549_v27 = vsub.f32 %v1399_v36, %v1474_v29  ;;  %v1475_v20 = vmul.f32 %v8346_v9, %v8346_v9  ;;  %1309 = vadd.xlane.f32.xlu1 %v1308_v34  ;;  %936 = vadd.xlane.f32.xlu0 %v935_v18  ;;  %v665_v57 = vpop.f32.mrb[102].mxu0 }
 0x1ab   :  { %v8359_v5 = vadd.f32 %v8230_v31, %v665_v57  ;;  %6215 = vmatmul.mubr.msk.f32.gmra.mrb[18].mxu1 %vm784_vm2, %v1845_v43  ;;  %v1205_v0 = vpop.xlane.xlu1 %1204  ;;  %v832_v25 = vpop.xlane.xlu0 %831  ;;  %v1311_v54 = vsel %vm784_vm2, %v1136_v11, 0.0 }
 0x1ac   :  { %v6968_v60 = vpop.eup %6967  ;;  %v1624_v29 = vadd.f32 1e-05, %v1549_v27  ;;  %v1400_v36 = vmul.f32 0.015625, %v1205_v0  ;;  %v8363_v23 = vmul.f32 0.015625, %v832_v25  ;;  %v6101_v34 = vpop.f32.mrb[103].mxu0  ;;  %6217 = vmatprep.mubr.msk.f32.mxu1 %vm7254_vm0, %v11316_v10  ;;  %v1772_v0 = vsub.f32 %v7848_v41, %v8294_v6 }
 0x1ad   :  { %11321 = vst [vmem:[#allocation38_spill] sm:$0xff] %v8359_v5  ;;  %v938_v32 = vsel %vm784_vm2, %v8359_v5, 0.0  ;;  %v1846_v18 = vmul.f32 %v6968_v60, %v1771_v45  ;;  %v1137_v43 = vmul.f32 %v8359_v5, %v8359_v5 }
 0x1ae   :  { %6973 = vrsqrt.f32 %v1624_v29  ;;  %v1550_v57 = vsub.f32 %v1400_v36, %v1475_v20  ;;  %v1476_v11 = vmul.f32 %v8363_v23, %v8363_v23  ;;  %1312 = vadd.xlane.f32.xlu1 %v1311_v54  ;;  %939 = vadd.xlane.f32.xlu0 %v938_v32  ;;  %v670_v27 = vpop.f32.mrb[104].mxu0 }
 0x1af   :  { %v8376_v25 = vadd.f32 %v8230_v31, %v670_v27  ;;  %6218 = vmatmul.mubr.msk.f32.gmra.mrb[20].mxu1 %vm784_vm2, %v1846_v18  ;;  %v1208_v45 = vpop.xlane.xlu1 %1207  ;;  %v835_v60 = vpop.xlane.xlu0 %834  ;;  %v1314_v34 = vsel %vm784_vm2, %v1137_v43, 0.0 }
 0x1b0   :  { %v6970_v29 = vpop.eup %6969  ;;  %v1625_v20 = vadd.f32 1e-05, %v1550_v57  ;;  %v1401_v36 = vmul.f32 0.015625, %v1208_v45  ;;  %v8380_v33 = vmul.f32 0.015625, %v835_v60  ;;  %v6104_v54 = vpop.f32.mrb[105].mxu0  ;;  %6220 = vmatprep.mubr.msk.f32.mxu1 %vm7254_vm0, %v11316_v10  ;;  %v1773_v45 = vsub.f32 %v7862_v48, %v8312_v22 }
 0x1b1   :  { %11322 = vst [vmem:[#allocation39_spill] sm:$0xff] %v8376_v25  ;;  %v941_v6 = vsel %vm784_vm2, %v8376_v25, 0.0  ;;  %v1847_v32 = vmul.f32 %v6970_v29, %v1772_v0  ;;  %v1138_v18 = vmul.f32 %v8376_v25, %v8376_v25 }
 0x1b2   :  { %6975 = vrsqrt.f32 %v1625_v20  ;;  %v1551_v27 = vsub.f32 %v1401_v36, %v1476_v11  ;;  %v1477_v43 = vmul.f32 %v8380_v33, %v8380_v33  ;;  %1315 = vadd.xlane.f32.xlu1 %v1314_v34  ;;  %942 = vadd.xlane.f32.xlu0 %v941_v6  ;;  %v675_v57 = vpop.f32.mrb[106].mxu0 }
 0x1b3   :  { %v8393_v60 = vadd.f32 %v8230_v31, %v675_v57  ;;  %6221 = vmatmul.mubr.msk.f32.gmra.mrb[22].mxu1 %vm784_vm2, %v1847_v32  ;;  %v1211_v0 = vpop.xlane.xlu1 %1210  ;;  %v838_v29 = vpop.xlane.xlu0 %837  ;;  %v1317_v54 = vsel %vm784_vm2, %v1138_v18, 0.0 }
 0x1b4   :  { %v6972_v20 = vpop.eup %6971  ;;  %v1626_v11 = vadd.f32 1e-05, %v1551_v27  ;;  %v1402_v36 = vmul.f32 0.015625, %v1211_v0  ;;  %v8397_v41 = vmul.f32 0.015625, %v838_v29  ;;  %v6107_v34 = vpop.f32.mrb[107].mxu0  ;;  %6223 = vmatprep.mubr.msk.f32.mxu1 %vm7254_vm0, %v11316_v10  ;;  %v1774_v0 = vsub.f32 %v7876_v56, %v8329_v59 }
 0x1b5   :  { %11323 = vst [vmem:[#allocation40_spill] sm:$0xff] %v8393_v60  ;;  %v944_v22 = vsel %vm784_vm2, %v8393_v60, 0.0  ;;  %v1848_v6 = vmul.f32 %v6972_v20, %v1773_v45  ;;  %v1139_v32 = vmul.f32 %v8393_v60, %v8393_v60 }
 0x1b6   :  { %6977 = vrsqrt.f32 %v1626_v11  ;;  %v1552_v57 = vsub.f32 %v1402_v36, %v1477_v43  ;;  %v1478_v18 = vmul.f32 %v8397_v41, %v8397_v41  ;;  %1318 = vadd.xlane.f32.xlu1 %v1317_v54  ;;  %945 = vadd.xlane.f32.xlu0 %v944_v22  ;;  %v680_v27 = vpop.f32.mrb[108].mxu0 }
 0x1b7   :  { %v8410_v29 = vadd.f32 %v8230_v31, %v680_v27  ;;  %6224 = vmatmul.mubr.msk.f32.gmra.mrb[24].mxu1 %vm784_vm2, %v1848_v6  ;;  %v1214_v45 = vpop.xlane.xlu1 %1213  ;;  %v841_v20 = vpop.xlane.xlu0 %840  ;;  %v1320_v34 = vsel %vm784_vm2, %v1139_v32, 0.0 }
 0x1b8   :  { %v6974_v11 = vpop.eup %6973  ;;  %v1627_v43 = vadd.f32 1e-05, %v1552_v57  ;;  %v1403_v36 = vmul.f32 0.015625, %v1214_v45  ;;  %v8414_v48 = vmul.f32 0.015625, %v841_v20  ;;  %v6110_v54 = vpop.f32.mrb[109].mxu0  ;;  %6226 = vmatprep.mubr.msk.f32.mxu1 %vm7254_vm0, %v11316_v10  ;;  %v1775_v45 = vsub.f32 %v7890_v2, %v8346_v9 }
 0x1b9   :  { %v947_v59 = vsel %vm784_vm2, %v8410_v29, 0.0  ;;  %v1849_v22 = vmul.f32 %v6974_v11, %v1774_v0  ;;  %v1140_v6 = vmul.f32 %v8410_v29, %v8410_v29 }
 0x1ba   :  { %6979 = vrsqrt.f32 %v1627_v43  ;;  %v1553_v27 = vsub.f32 %v1403_v36, %v1478_v18  ;;  %v1479_v32 = vmul.f32 %v8414_v48, %v8414_v48  ;;  %1321 = vadd.xlane.f32.xlu1 %v1320_v34  ;;  %948 = vadd.xlane.f32.xlu0 %v947_v59  ;;  %v685_v57 = vpop.f32.mrb[110].mxu0 }
 0x1bb   :  { %v8427_v20 = vadd.f32 %v8230_v31, %v685_v57  ;;  %6227 = vmatmul.mubr.msk.f32.gmra.mrb[26].mxu1 %vm784_vm2, %v1849_v22  ;;  %v1217_v0 = vpop.xlane.xlu1 %1216  ;;  %v844_v11 = vpop.xlane.xlu0 %843  ;;  %v1323_v54 = vsel %vm784_vm2, %v1140_v6, 0.0 }
 0x1bc   :  { %v6976_v43 = vpop.eup %6975  ;;  %v1628_v18 = vadd.f32 1e-05, %v1553_v27  ;;  %v1404_v36 = vmul.f32 0.015625, %v1217_v0  ;;  %v8431_v56 = vmul.f32 0.015625, %v844_v11  ;;  %v6113_v34 = vpop.f32.mrb[111].mxu0  ;;  %6229 = vmatprep.mubr.msk.f32.mxu1 %vm7254_vm0, %v11316_v10  ;;  %v1776_v0 = vsub.f32 %v7904_v13, %v8363_v23 }
 0x1bd   :  { %v950_v9 = vsel %vm784_vm2, %v8427_v20, 0.0  ;;  %v1850_v59 = vmul.f32 %v6976_v43, %v1775_v45  ;;  %v1141_v22 = vmul.f32 %v8427_v20, %v8427_v20 }
 0x1be   :  { %6981 = vrsqrt.f32 %v1628_v18  ;;  %v1554_v57 = vsub.f32 %v1404_v36, %v1479_v32  ;;  %v1480_v6 = vmul.f32 %v8431_v56, %v8431_v56  ;;  %1324 = vadd.xlane.f32.xlu1 %v1323_v54  ;;  %951 = vadd.xlane.f32.xlu0 %v950_v9  ;;  %v690_v27 = vpop.f32.mrb[112].mxu0 }
 0x1bf   :  { %v8444_v11 = vadd.f32 %v8230_v31, %v690_v27  ;;  %6230 = vmatmul.mubr.msk.f32.gmra.mrb[28].mxu1 %vm784_vm2, %v1850_v59  ;;  %v1220_v45 = vpop.xlane.xlu1 %1219  ;;  %v847_v43 = vpop.xlane.xlu0 %846  ;;  %v1326_v34 = vsel %vm784_vm2, %v1141_v22, 0.0 }
 0x1c0   :  { %v6978_v18 = vpop.eup %6977  ;;  %v1629_v32 = vadd.f32 1e-05, %v1554_v57  ;;  %v1405_v36 = vmul.f32 0.015625, %v1220_v45  ;;  %v8448_v2 = vmul.f32 0.015625, %v847_v43  ;;  %v6116_v54 = vpop.f32.mrb[113].mxu0  ;;  %6232 = vmatprep.mubr.msk.f32.mxu1 %vm7254_vm0, %v11316_v10  ;;  %v1777_v45 = vsub.f32 %v7918_v21, %v8380_v33 }
 0x1c1   :  { %v953_v23 = vsel %vm784_vm2, %v8444_v11, 0.0  ;;  %v1851_v9 = vmul.f32 %v6978_v18, %v1776_v0  ;;  %v1142_v59 = vmul.f32 %v8444_v11, %v8444_v11 }
 0x1c2   :  { %6983 = vrsqrt.f32 %v1629_v32  ;;  %v1555_v27 = vsub.f32 %v1405_v36, %v1480_v6  ;;  %v1481_v22 = vmul.f32 %v8448_v2, %v8448_v2  ;;  %1327 = vadd.xlane.f32.xlu1 %v1326_v34  ;;  %954 = vadd.xlane.f32.xlu0 %v953_v23  ;;  %v695_v57 = vpop.f32.mrb[114].mxu0 }
 0x1c3   :  { %v8461_v43 = vadd.f32 %v8230_v31, %v695_v57  ;;  %6233 = vmatmul.mubr.msk.f32.gmra.mrb[30].mxu1 %vm784_vm2, %v1851_v9  ;;  %v1223_v0 = vpop.xlane.xlu1 %1222  ;;  %v850_v18 = vpop.xlane.xlu0 %849  ;;  %v1329_v54 = vsel %vm784_vm2, %v1142_v59, 0.0 }
 0x1c4   :  { %v6980_v32 = vpop.eup %6979  ;;  %v1630_v6 = vadd.f32 1e-05, %v1555_v27  ;;  %v1406_v36 = vmul.f32 0.015625, %v1223_v0  ;;  %v8465_v13 = vmul.f32 0.015625, %v850_v18  ;;  %v6119_v34 = vpop.f32.mrb[115].mxu0  ;;  %6235 = vmatprep.mubr.msk.f32.mxu1 %vm7254_vm0, %v11316_v10  ;;  %v1778_v0 = vsub.f32 %v7932_v30, %v8397_v41 }
 0x1c5   :  { %v956_v33 = vsel %vm784_vm2, %v8461_v43, 0.0  ;;  %v1852_v23 = vmul.f32 %v6980_v32, %v1777_v45  ;;  %v1143_v9 = vmul.f32 %v8461_v43, %v8461_v43 }
 0x1c6   :  { %6985 = vrsqrt.f32 %v1630_v6  ;;  %v1556_v57 = vsub.f32 %v1406_v36, %v1481_v22  ;;  %v1482_v59 = vmul.f32 %v8465_v13, %v8465_v13  ;;  %1330 = vadd.xlane.f32.xlu1 %v1329_v54  ;;  %957 = vadd.xlane.f32.xlu0 %v956_v33  ;;  %v700_v27 = vpop.f32.mrb[116].mxu0 }
 0x1c7   :  { %v8478_v18 = vadd.f32 %v8230_v31, %v700_v27  ;;  %6236 = vmatmul.mubr.msk.f32.gmra.mrb[32].mxu1 %vm784_vm2, %v1852_v23  ;;  %v1226_v45 = vpop.xlane.xlu1 %1225  ;;  %v853_v32 = vpop.xlane.xlu0 %852  ;;  %v1332_v34 = vsel %vm784_vm2, %v1143_v9, 0.0 }
 0x1c8   :  { %v6982_v6 = vpop.eup %6981  ;;  %v1631_v22 = vadd.f32 1e-05, %v1556_v57  ;;  %v1407_v36 = vmul.f32 0.015625, %v1226_v45  ;;  %v8482_v21 = vmul.f32 0.015625, %v853_v32  ;;  %v6122_v54 = vpop.f32.mrb[117].mxu0  ;;  %6238 = vmatprep.mubr.msk.f32.mxu1 %vm7254_vm0, %v11316_v10  ;;  %v1779_v45 = vsub.f32 %v7946_v40, %v8414_v48 }
 0x1c9   :  { %v959_v41 = vsel %vm784_vm2, %v8478_v18, 0.0  ;;  %v1853_v33 = vmul.f32 %v6982_v6, %v1778_v0  ;;  %v1144_v23 = vmul.f32 %v8478_v18, %v8478_v18 }
 0x1ca   :  { %6987 = vrsqrt.f32 %v1631_v22  ;;  %v1557_v27 = vsub.f32 %v1407_v36, %v1482_v59  ;;  %v1483_v9 = vmul.f32 %v8482_v21, %v8482_v21  ;;  %1333 = vadd.xlane.f32.xlu1 %v1332_v34  ;;  %960 = vadd.xlane.f32.xlu0 %v959_v41  ;;  %v705_v57 = vpop.f32.mrb[118].mxu0 }
 0x1cb   :  { %v8495_v32 = vadd.f32 %v8230_v31, %v705_v57  ;;  %6239 = vmatmul.mubr.msk.f32.gmra.mrb[34].mxu1 %vm784_vm2, %v1853_v33  ;;  %v1229_v0 = vpop.xlane.xlu1 %1228  ;;  %v856_v6 = vpop.xlane.xlu0 %855  ;;  %v1335_v54 = vsel %vm784_vm2, %v1144_v23, 0.0 }
 0x1cc   :  { %v6984_v22 = vpop.eup %6983  ;;  %v1632_v59 = vadd.f32 1e-05, %v1557_v27  ;;  %v1408_v36 = vmul.f32 0.015625, %v1229_v0  ;;  %v8499_v30 = vmul.f32 0.015625, %v856_v6  ;;  %v6125_v34 = vpop.f32.mrb[119].mxu0  ;;  %6241 = vmatprep.mubr.msk.f32.mxu1 %vm7254_vm0, %v11316_v10  ;;  %v1780_v0 = vsub.f32 %v7960_v50, %v8431_v56 }
 0x1cd   :  { %v962_v48 = vsel %vm784_vm2, %v8495_v32, 0.0  ;;  %v1854_v41 = vmul.f32 %v6984_v22, %v1779_v45  ;;  %v1145_v33 = vmul.f32 %v8495_v32, %v8495_v32 }
 0x1ce   :  { %6989 = vrsqrt.f32 %v1632_v59  ;;  %v1558_v57 = vsub.f32 %v1408_v36, %v1483_v9  ;;  %v1484_v23 = vmul.f32 %v8499_v30, %v8499_v30  ;;  %1336 = vadd.xlane.f32.xlu1 %v1335_v54  ;;  %963 = vadd.xlane.f32.xlu0 %v962_v48  ;;  %v710_v27 = vpop.f32.mrb[120].mxu0 }
 0x1cf   :  { %v8512_v6 = vadd.f32 %v8230_v31, %v710_v27  ;;  %6242 = vmatmul.mubr.msk.f32.gmra.mrb[36].mxu1 %vm784_vm2, %v1854_v41  ;;  %v1232_v45 = vpop.xlane.xlu1 %1231  ;;  %v859_v22 = vpop.xlane.xlu0 %858  ;;  %v1338_v34 = vsel %vm784_vm2, %v1145_v33, 0.0 }
 0x1d0   :  { %v6986_v59 = vpop.eup %6985  ;;  %v1633_v9 = vadd.f32 1e-05, %v1558_v57  ;;  %v1409_v36 = vmul.f32 0.015625, %v1232_v45  ;;  %v8516_v40 = vmul.f32 0.015625, %v859_v22  ;;  %v6128_v54 = vpop.f32.mrb[121].mxu0  ;;  %6244 = vmatprep.mubr.msk.f32.mxu1 %vm7254_vm0, %v11316_v10  ;;  %v1781_v45 = vsub.f32 %v7974_v58, %v8448_v2 }
 0x1d1   :  { %v965_v56 = vsel %vm784_vm2, %v8512_v6, 0.0  ;;  %v1855_v48 = vmul.f32 %v6986_v59, %v1780_v0  ;;  %v1146_v41 = vmul.f32 %v8512_v6, %v8512_v6 }
 0x1d2   :  { %6991 = vrsqrt.f32 %v1633_v9  ;;  %v1559_v27 = vsub.f32 %v1409_v36, %v1484_v23  ;;  %v1485_v33 = vmul.f32 %v8516_v40, %v8516_v40  ;;  %1339 = vadd.xlane.f32.xlu1 %v1338_v34  ;;  %966 = vadd.xlane.f32.xlu0 %v965_v56  ;;  %v715_v57 = vpop.f32.mrb[122].mxu0 }
 0x1d3   :  { %v8529_v22 = vadd.f32 %v8230_v31, %v715_v57  ;;  %6245 = vmatmul.mubr.msk.f32.gmra.mrb[38].mxu1 %vm784_vm2, %v1855_v48  ;;  %v1235_v0 = vpop.xlane.xlu1 %1234  ;;  %v862_v59 = vpop.xlane.xlu0 %861  ;;  %v1341_v54 = vsel %vm784_vm2, %v1146_v41, 0.0 }
 0x1d4   :  { %v6988_v9 = vpop.eup %6987  ;;  %v1634_v23 = vadd.f32 1e-05, %v1559_v27  ;;  %v1410_v36 = vmul.f32 0.015625, %v1235_v0  ;;  %v8533_v50 = vmul.f32 0.015625, %v862_v59  ;;  %v6131_v34 = vpop.f32.mrb[123].mxu0  ;;  %6247 = vmatprep.mubr.msk.f32.mxu1 %vm7254_vm0, %v11316_v10  ;;  %v1782_v0 = vsub.f32 %v7988_v7, %v8465_v13 }
 0x1d5   :  { %v968_v2 = vsel %vm784_vm2, %v8529_v22, 0.0  ;;  %v1856_v56 = vmul.f32 %v6988_v9, %v1781_v45  ;;  %v1147_v48 = vmul.f32 %v8529_v22, %v8529_v22 }
 0x1d6   :  { %6993 = vrsqrt.f32 %v1634_v23  ;;  %v1560_v57 = vsub.f32 %v1410_v36, %v1485_v33  ;;  %v1486_v41 = vmul.f32 %v8533_v50, %v8533_v50  ;;  %1342 = vadd.xlane.f32.xlu1 %v1341_v54  ;;  %969 = vadd.xlane.f32.xlu0 %v968_v2  ;;  %v720_v27 = vpop.f32.mrb[124].mxu0 }
 0x1d7   :  { %v8546_v59 = vadd.f32 %v8230_v31, %v720_v27  ;;  %6248 = vmatmul.mubr.msk.f32.gmra.mrb[40].mxu1 %vm784_vm2, %v1856_v56  ;;  %v1238_v45 = vpop.xlane.xlu1 %1237  ;;  %v865_v9 = vpop.xlane.xlu0 %864  ;;  %v1344_v34 = vsel %vm784_vm2, %v1147_v48, 0.0 }
 0x1d8   :  { %v6990_v23 = vpop.eup %6989  ;;  %v1635_v33 = vadd.f32 1e-05, %v1560_v57  ;;  %v1411_v36 = vmul.f32 0.015625, %v1238_v45  ;;  %v8550_v58 = vmul.f32 0.015625, %v865_v9  ;;  %v6134_v54 = vpop.f32.mrb[125].mxu0  ;;  %6250 = vmatprep.mubr.msk.f32.mxu1 %vm7254_vm0, %v11316_v10  ;;  %v1783_v45 = vsub.f32 %v7999_v16, %v8482_v21 }
 0x1d9   :  { %v971_v13 = vsel %vm784_vm2, %v8546_v59, 0.0  ;;  %v1857_v2 = vmul.f32 %v6990_v23, %v1782_v0  ;;  %v1148_v56 = vmul.f32 %v8546_v59, %v8546_v59 }
 0x1da   :  { %6995 = vrsqrt.f32 %v1635_v33  ;;  %v1561_v27 = vsub.f32 %v1411_v36, %v1486_v41  ;;  %v1487_v48 = vmul.f32 %v8550_v58, %v8550_v58  ;;  %1345 = vadd.xlane.f32.xlu1 %v1344_v34  ;;  %972 = vadd.xlane.f32.xlu0 %v971_v13  ;;  %v725_v57 = vpop.f32.mrb[126].mxu0 }
 0x1db   :  { %v8563_v9 = vadd.f32 %v8230_v31, %v725_v57  ;;  %6251 = vmatmul.mubr.msk.f32.gmra.mrb[42].mxu1 %vm784_vm2, %v1857_v2  ;;  %v1241_v0 = vpop.xlane.xlu1 %1240  ;;  %v868_v23 = vpop.xlane.xlu0 %867  ;;  %v1347_v54 = vsel %vm784_vm2, %v1148_v56, 0.0 }
 0x1dc   :  { %v6992_v33 = vpop.eup %6991  ;;  %v1636_v41 = vadd.f32 1e-05, %v1561_v27  ;;  %v1412_v36 = vmul.f32 0.015625, %v1241_v0  ;;  %v8567_v7 = vmul.f32 0.015625, %v868_v23  ;;  %v6137_v34 = vpop.f32.mrb[127].mxu0  ;;  %6253 = vmatprep.mubr.msk.f32.mxu1 %vm7254_vm0, %v11316_v10  ;;  %v1784_v0 = vsub.f32 %v8007_v26, %v8499_v30 }
 0x1dd   :  { %v974_v21 = vsel %vm784_vm2, %v8563_v9, 0.0  ;;  %v1858_v13 = vmul.f32 %v6992_v33, %v1783_v45  ;;  %v1149_v2 = vmul.f32 %v8563_v9, %v8563_v9 }
 0x1de   :  { %6997 = vrsqrt.f32 %v1636_v41  ;;  %v1562_v57 = vsub.f32 %v1412_v36, %v1487_v48  ;;  %v1488_v56 = vmul.f32 %v8567_v7, %v8567_v7  ;;  %1348 = vadd.xlane.f32.xlu1 %v1347_v54  ;;  %975 = vadd.xlane.f32.xlu0 %v974_v21  ;;  %v730_v27 = vpop.f32.mrb[128].mxu0 }
 0x1df   :  { %v8580_v23 = vadd.f32 %v8230_v31, %v730_v27  ;;  %6254 = vmatmul.mubr.msk.f32.gmra.mrb[44].mxu1 %vm784_vm2, %v1858_v13  ;;  %v1244_v45 = vpop.xlane.xlu1 %1243  ;;  %v871_v33 = vpop.xlane.xlu0 %870  ;;  %v1350_v34 = vsel %vm784_vm2, %v1149_v2, 0.0 }
 0x1e0   :  { %v6994_v41 = vpop.eup %6993  ;;  %v1637_v48 = vadd.f32 1e-05, %v1562_v57  ;;  %v1413_v36 = vmul.f32 0.015625, %v1244_v45  ;;  %v8584_v16 = vmul.f32 0.015625, %v871_v33  ;;  %v6140_v54 = vpop.f32.mrb[129].mxu0  ;;  %6256 = vmatprep.mubr.msk.f32.mxu1 %vm7254_vm0, %v11316_v10  ;;  %v1785_v45 = vsub.f32 %v8015_v35, %v8516_v40 }
 0x1e1   :  { %11324 = vst [vmem:[#allocation41_spill] sm:$0xff] %v8580_v23  ;;  %v977_v30 = vsel %vm784_vm2, %v8580_v23, 0.0  ;;  %v1859_v21 = vmul.f32 %v6994_v41, %v1784_v0  ;;  %v1150_v13 = vmul.f32 %v8580_v23, %v8580_v23 }
 0x1e2   :  { %6999 = vrsqrt.f32 %v1637_v48  ;;  %v1563_v27 = vsub.f32 %v1413_v36, %v1488_v56  ;;  %v1489_v2 = vmul.f32 %v8584_v16, %v8584_v16  ;;  %1351 = vadd.xlane.f32.xlu1 %v1350_v34  ;;  %978 = vadd.xlane.f32.xlu0 %v977_v30  ;;  %v735_v57 = vpop.f32.mrb[130].mxu0 }
 0x1e3   :  { %v8597_v33 = vadd.f32 %v8230_v31, %v735_v57  ;;  %6257 = vmatmul.mubr.msk.f32.gmra.mrb[46].mxu1 %vm784_vm2, %v1859_v21  ;;  %v1247_v0 = vpop.xlane.xlu1 %1246  ;;  %v874_v41 = vpop.xlane.xlu0 %873  ;;  %v1353_v54 = vsel %vm784_vm2, %v1150_v13, 0.0 }
 0x1e4   :  { %v6996_v48 = vpop.eup %6995  ;;  %v1638_v56 = vadd.f32 1e-05, %v1563_v27  ;;  %v1414_v36 = vmul.f32 0.015625, %v1247_v0  ;;  %v8601_v26 = vmul.f32 0.015625, %v874_v41  ;;  %v6143_v34 = vpop.f32.mrb[131].mxu0  ;;  %6259 = vmatprep.mubr.msk.f32.mxu1 %vm7254_vm0, %v11316_v10  ;;  %v1786_v0 = vsub.f32 %v8023_v44, %v8533_v50 }
 0x1e5   :  { %11325 = vst [vmem:[#allocation42_spill] sm:$0xff] %v8597_v33  ;;  %v980_v40 = vsel %vm784_vm2, %v8597_v33, 0.0  ;;  %v1860_v30 = vmul.f32 %v6996_v48, %v1785_v45  ;;  %v1151_v21 = vmul.f32 %v8597_v33, %v8597_v33 }
 0x1e6   :  { %7001 = vrsqrt.f32 %v1638_v56  ;;  %v1564_v57 = vsub.f32 %v1414_v36, %v1489_v2  ;;  %v1490_v13 = vmul.f32 %v8601_v26, %v8601_v26  ;;  %1354 = vadd.xlane.f32.xlu1 %v1353_v54  ;;  %981 = vadd.xlane.f32.xlu0 %v980_v40  ;;  %v740_v27 = vpop.f32.mrb[132].mxu0 }
 0x1e7   :  { %v8614_v41 = vadd.f32 %v8230_v31, %v740_v27  ;;  %6260 = vmatmul.mubr.msk.f32.gmra.mrb[48].mxu1 %vm784_vm2, %v1860_v30  ;;  %v1250_v45 = vpop.xlane.xlu1 %1249  ;;  %v877_v48 = vpop.xlane.xlu0 %876  ;;  %v1356_v34 = vsel %vm784_vm2, %v1151_v21, 0.0 }
 0x1e8   :  { %v6998_v56 = vpop.eup %6997  ;;  %v1639_v2 = vadd.f32 1e-05, %v1564_v57  ;;  %v1415_v36 = vmul.f32 0.015625, %v1250_v45  ;;  %v8618_v35 = vmul.f32 0.015625, %v877_v48  ;;  %v6146_v54 = vpop.f32.mrb[133].mxu0  ;;  %6262 = vmatprep.mubr.msk.f32.mxu1 %vm7254_vm0, %v11316_v10  ;;  %v1787_v45 = vsub.f32 %v8031_v53, %v8550_v58 }
 0x1e9   :  { %11326 = vst [vmem:[#allocation43_spill] sm:$0xff] %v8614_v41  ;;  %v983_v50 = vsel %vm784_vm2, %v8614_v41, 0.0  ;;  %v1861_v40 = vmul.f32 %v6998_v56, %v1786_v0  ;;  %v1152_v30 = vmul.f32 %v8614_v41, %v8614_v41 }
 0x1ea   :  { %7003 = vrsqrt.f32 %v1639_v2  ;;  %v1565_v27 = vsub.f32 %v1415_v36, %v1490_v13  ;;  %v1491_v21 = vmul.f32 %v8618_v35, %v8618_v35  ;;  %1357 = vadd.xlane.f32.xlu1 %v1356_v34  ;;  %984 = vadd.xlane.f32.xlu0 %v983_v50  ;;  %v745_v57 = vpop.f32.mrb[134].mxu0 }
 0x1eb   :  { %v8631_v48 = vadd.f32 %v8230_v31, %v745_v57  ;;  %6263 = vmatmul.mubr.msk.f32.gmra.mrb[50].mxu1 %vm784_vm2, %v1861_v40  ;;  %v1253_v0 = vpop.xlane.xlu1 %1252  ;;  %v880_v56 = vpop.xlane.xlu0 %879  ;;  %v1359_v54 = vsel %vm784_vm2, %v1152_v30, 0.0 }
 0x1ec   :  { %v7000_v2 = vpop.eup %6999  ;;  %v1640_v13 = vadd.f32 1e-05, %v1565_v27  ;;  %v1416_v36 = vmul.f32 0.015625, %v1253_v0  ;;  %v8635_v44 = vmul.f32 0.015625, %v880_v56  ;;  %v6149_v34 = vpop.f32.mrb[135].mxu0  ;;  %6265 = vmatprep.mubr.msk.f32.mxu1 %vm7254_vm0, %v11316_v10  ;;  %v1788_v0 = vsub.f32 %v8039_v62, %v8567_v7 }
 0x1ed   :  { %11327 = vst [vmem:[#allocation44_spill] sm:$0xff] %v8631_v48  ;;  %v986_v58 = vsel %vm784_vm2, %v8631_v48, 0.0  ;;  %v1862_v50 = vmul.f32 %v7000_v2, %v1787_v45  ;;  %v1153_v40 = vmul.f32 %v8631_v48, %v8631_v48 }
 0x1ee   :  { %7005 = vrsqrt.f32 %v1640_v13  ;;  %v1566_v57 = vsub.f32 %v1416_v36, %v1491_v21  ;;  %v1492_v30 = vmul.f32 %v8635_v44, %v8635_v44  ;;  %1360 = vadd.xlane.f32.xlu1 %v1359_v54  ;;  %987 = vadd.xlane.f32.xlu0 %v986_v58  ;;  %v750_v27 = vpop.f32.mrb[136].mxu0 }
 0x1ef   :  { %v8648_v56 = vadd.f32 %v8230_v31, %v750_v27  ;;  %6266 = vmatmul.mubr.msk.f32.gmra.mrb[52].mxu1 %vm784_vm2, %v1862_v50  ;;  %v1256_v45 = vpop.xlane.xlu1 %1255  ;;  %v883_v2 = vpop.xlane.xlu0 %882  ;;  %v1362_v34 = vsel %vm784_vm2, %v1153_v40, 0.0  ;;  %v1789_v27 = vsub.f32 %v8053_v15, %v8584_v16 }
 0x1f0   :  { %v7002_v13 = vpop.eup %7001  ;;  %v1641_v21 = vadd.f32 1e-05, %v1566_v57  ;;  %v1417_v36 = vmul.f32 0.015625, %v1256_v45  ;;  %v8652_v53 = vmul.f32 0.015625, %v883_v2  ;;  %v6152_v54 = vpop.f32.mrb[137].mxu0  ;;  %6268 = vmatprep.mubr.msk.f32.mxu1 %vm7254_vm0, %v11316_v10 }
 0x1f1   :  { %11328 = vst [vmem:[#allocation45_spill] sm:$0xff] %v8648_v56  ;;  %v989_v7 = vsel %vm784_vm2, %v8648_v56, 0.0  ;;  %v1863_v31 = vmul.f32 %v7002_v13, %v1788_v0  ;;  %v1154_v58 = vmul.f32 %v8648_v56, %v8648_v56  ;;  %v8667_v45 = vld [vmem:[%s11202_s2] ss:$0 sm:$0xff] }
 0x1f2   :  { %7007 = vrsqrt.f32 %v1641_v21  ;;  %v1567_v50 = vsub.f32 %v1417_v36, %v1492_v30  ;;  %v1493_v40 = vmul.f32 %v8652_v53, %v8652_v53  ;;  %1363 = vadd.xlane.f32.xlu1 %v1362_v34  ;;  %990 = vadd.xlane.f32.xlu0 %v989_v7  ;;  %v755_v57 = vpop.f32.mrb[138].mxu0 }
 0x1f3   :  { %v8670_v0 = vadd.f32 %v8667_v45, %v755_v57  ;;  %6269 = vmatmul.mubr.msk.f32.gmra.mrb[54].mxu1 %vm784_vm2, %v1863_v31  ;;  %v1259_v30 = vpop.xlane.xlu1 %1258  ;;  %v886_v2 = vpop.xlane.xlu0 %885  ;;  %v1365_v13 = vsel %vm784_vm2, %v1154_v58, 0.0 }
 0x1f4   :  { %v7004_v34 = vpop.eup %7003  ;;  %v1642_v21 = vadd.f32 1e-05, %v1567_v50  ;;  %v1418_v36 = vmul.f32 0.015625, %v1259_v30  ;;  %v8674_v54 = vmul.f32 0.015625, %v886_v2  ;;  %v6155_v16 = vpop.f32.mrb[139].mxu0  ;;  %6271 = vmatprep.mubr.msk.f32.mxu1 %vm7254_vm0, %v11316_v10  ;;  %v1790_v30 = vsub.f32 %v8061_v28, %v8601_v26 }
 0x1f5   :  { %11329 = vst [vmem:[#allocation46_spill] sm:$0xff] %v8670_v0  ;;  %v992_v7 = vsel %vm784_vm2, %v8670_v0, 0.0  ;;  %v1864_v57 = vmul.f32 %v7004_v34, %v1789_v27  ;;  %v1155_v31 = vmul.f32 %v8670_v0, %v8670_v0 }
 0x1f6   :  { %7009 = vrsqrt.f32 %v1642_v21  ;;  %v1568_v15 = vsub.f32 %v1418_v36, %v1493_v40  ;;  %v1494_v58 = vmul.f32 %v8674_v54, %v8674_v54  ;;  %1366 = vadd.xlane.f32.xlu1 %v1365_v13  ;;  %993 = vadd.xlane.f32.xlu0 %v992_v7  ;;  %v760_v50 = vpop.f32.mrb[140].mxu0 }
 0x1f7   :  { %v8687_v2 = vadd.f32 %v8667_v45, %v760_v50  ;;  %6272 = vmatmul.mubr.msk.f32.gmra.mrb[56].mxu1 %vm784_vm2, %v1864_v57  ;;  %v1262_v27 = vpop.xlane.xlu1 %1261  ;;  %v889_v34 = vpop.xlane.xlu0 %888  ;;  %v1368_v16 = vsel %vm784_vm2, %v1155_v31, 0.0 }
 0x1f8   :  { %v7006_v21 = vpop.eup %7005  ;;  %v1643_v40 = vadd.f32 1e-05, %v1568_v15  ;;  %v1419_v36 = vmul.f32 0.015625, %v1262_v27  ;;  %v8691_v62 = vmul.f32 0.015625, %v889_v34  ;;  %v6158_v13 = vpop.f32.mrb[141].mxu0  ;;  %6274 = vmatprep.mubr.msk.f32.mxu1 %vm7254_vm0, %v11316_v10  ;;  %v1791_v27 = vsub.f32 %v8070_v38, %v8618_v35 }
 0x1f9   :  { %11330 = vst [vmem:[#allocation47_spill] sm:$0xff] %v8687_v2  ;;  %v995_v26 = vsel %vm784_vm2, %v8687_v2, 0.0  ;;  %v1865_v7 = vmul.f32 %v7006_v21, %v1790_v30  ;;  %v1156_v57 = vmul.f32 %v8687_v2, %v8687_v2 }
 0x1fa   :  { %7011 = vrsqrt.f32 %v1643_v40  ;;  %v1569_v50 = vsub.f32 %v1419_v36, %v1494_v58  ;;  %v1495_v31 = vmul.f32 %v8691_v62, %v8691_v62  ;;  %1369 = vadd.xlane.f32.xlu1 %v1368_v16  ;;  %996 = vadd.xlane.f32.xlu0 %v995_v26  ;;  %v765_v15 = vpop.f32.mrb[142].mxu0 }
 0x1fb   :  { %v8704_v34 = vadd.f32 %v8667_v45, %v765_v15  ;;  %6275 = vmatmul.mubr.msk.f32.gmra.mrb[58].mxu1 %vm784_vm2, %v1865_v7  ;;  %v1265_v30 = vpop.xlane.xlu1 %1264  ;;  %v892_v21 = vpop.xlane.xlu0 %891  ;;  %v1371_v13 = vsel %vm784_vm2, %v1156_v57, 0.0 }
 0x1fc   :  { %v7008_v40 = vpop.eup %7007  ;;  %v1644_v58 = vadd.f32 1e-05, %v1569_v50  ;;  %v1420_v36 = vmul.f32 0.015625, %v1265_v30  ;;  %v8708_v28 = vmul.f32 0.015625, %v892_v21  ;;  %v6161_v16 = vpop.f32.mrb[143].mxu0  ;;  %6277 = vmatprep.mubr.msk.f32.mxu1 %vm7254_vm0, %v11316_v10  ;;  %v1792_v30 = vsub.f32 %v8078_v51, %v8635_v44 }
 0x1fd   :  { %11331 = vst [vmem:[#allocation48_spill] sm:$0xff] %v8704_v34  ;;  %v998_v35 = vsel %vm784_vm2, %v8704_v34, 0.0  ;;  %v1866_v26 = vmul.f32 %v7008_v40, %v1791_v27  ;;  %v1157_v7 = vmul.f32 %v8704_v34, %v8704_v34 }
 0x1fe   :  { %7013 = vrsqrt.f32 %v1644_v58  ;;  %v1570_v15 = vsub.f32 %v1420_v36, %v1495_v31  ;;  %v1496_v57 = vmul.f32 %v8708_v28, %v8708_v28  ;;  %1372 = vadd.xlane.f32.xlu1 %v1371_v13  ;;  %999 = vadd.xlane.f32.xlu0 %v998_v35  ;;  %v770_v50 = vpop.f32.mrb[144].mxu0 }
 0x1ff   :  { %v8721_v21 = vadd.f32 %v8667_v45, %v770_v50  ;;  %6278 = vmatmul.mubr.msk.f32.gmra.mrb[60].mxu1 %vm784_vm2, %v1866_v26  ;;  %v1268_v27 = vpop.xlane.xlu1 %1267  ;;  %v895_v40 = vpop.xlane.xlu0 %894  ;;  %v1374_v16 = vsel %vm784_vm2, %v1157_v7, 0.0 }
 0x200   :  { %v7010_v58 = vpop.eup %7009  ;;  %v1645_v31 = vadd.f32 1e-05, %v1570_v15  ;;  %v1421_v36 = vmul.f32 0.015625, %v1268_v27  ;;  %v8725_v38 = vmul.f32 0.015625, %v895_v40  ;;  %v6164_v13 = vpop.f32.mrb[145].mxu0  ;;  %6280 = vmatprep.mubr.msk.f32.mxu1 %vm7254_vm0, %v11316_v10  ;;  %v1793_v27 = vsub.f32 %v8086_v61, %v8652_v53 }
 0x201   :  { %11332 = vst [vmem:[#allocation49_spill] sm:$0xff] %v8721_v21  ;;  %v1001_v44 = vsel %vm784_vm2, %v8721_v21, 0.0  ;;  %v1867_v35 = vmul.f32 %v7010_v58, %v1792_v30  ;;  %v1158_v26 = vmul.f32 %v8721_v21, %v8721_v21 }
 0x202   :  { %7015 = vrsqrt.f32 %v1645_v31  ;;  %v1571_v50 = vsub.f32 %v1421_v36, %v1496_v57  ;;  %v1497_v7 = vmul.f32 %v8725_v38, %v8725_v38  ;;  %1375 = vadd.xlane.f32.xlu1 %v1374_v16  ;;  %1002 = vadd.xlane.f32.xlu0 %v1001_v44  ;;  %v775_v15 = vpop.f32.mrb[146].mxu0 }
 0x203   :  { %v8738_v40 = vadd.f32 %v8667_v45, %v775_v15  ;;  %6281 = vmatmul.mubr.msk.f32.gmra.mrb[62].mxu1 %vm784_vm2, %v1867_v35  ;;  %v1271_v30 = vpop.xlane.xlu1 %1270  ;;  %v898_v58 = vpop.xlane.xlu0 %897  ;;  %v1377_v13 = vsel %vm784_vm2, %v1158_v26, 0.0 }
 0x204   :  { %v7012_v31 = vpop.eup %7011  ;;  %v1646_v57 = vadd.f32 1e-05, %v1571_v50  ;;  %v1422_v36 = vmul.f32 0.015625, %v1271_v30  ;;  %v8742_v51 = vmul.f32 0.015625, %v898_v58  ;;  %v6167_v16 = vpop.f32.mrb[147].mxu0  ;;  %6283 = vmatprep.mubr.msk.f32.mxu1 %vm7254_vm0, %v11316_v10  ;;  %v1794_v30 = vsub.f32 %v8094_v12, %v8674_v54 }
 0x205   :  { %11333 = vst [vmem:[#allocation50_spill] sm:$0xff] %v8738_v40  ;;  %v1004_v53 = vsel %vm784_vm2, %v8738_v40, 0.0  ;;  %v1868_v44 = vmul.f32 %v7012_v31, %v1793_v27  ;;  %v1159_v35 = vmul.f32 %v8738_v40, %v8738_v40 }
 0x206   :  { %7017 = vrsqrt.f32 %v1646_v57  ;;  %v1572_v15 = vsub.f32 %v1422_v36, %v1497_v7  ;;  %v1498_v26 = vmul.f32 %v8742_v51, %v8742_v51  ;;  %1378 = vadd.xlane.f32.xlu1 %v1377_v13  ;;  %1005 = vadd.xlane.f32.xlu0 %v1004_v53  ;;  %v780_v50 = vpop.f32.mrb[148].mxu0 }
 0x207   :  { %v8755_v58 = vadd.f32 %v8667_v45, %v780_v50  ;;  %6284 = vmatmul.mubr.msk.f32.gmra.mrb[64].mxu1 %vm784_vm2, %v1868_v44  ;;  %v1274_v27 = vpop.xlane.xlu1 %1273  ;;  %v901_v31 = vpop.xlane.xlu0 %900  ;;  %v1380_v16 = vsel %vm784_vm2, %v1159_v35, 0.0 }
 0x208   :  { %v7014_v57 = vpop.eup %7013  ;;  %v1647_v7 = vadd.f32 1e-05, %v1572_v15  ;;  %v1423_v36 = vmul.f32 0.015625, %v1274_v27  ;;  %v8759_v61 = vmul.f32 0.015625, %v901_v31  ;;  %6286 = vmatprep.mubr.msk.f32.mxu1 %vm7254_vm0, %v11316_v10  ;;  %v6170_v13 = vpop.f32.mrb[149].mxu0  ;;  %v1795_v15 = vsub.f32 %v8102_v24, %v8691_v62 }
 0x209   :  { %11334 = vst [vmem:[#allocation51_spill] sm:$0xff] %v8755_v58  ;;  %v1007_v54 = vsel %vm784_vm2, %v8755_v58, 0.0  ;;  %v1869_v45 = vmul.f32 %v7014_v57, %v1794_v30  ;;  %v1160_v53 = vmul.f32 %v8755_v58, %v8755_v58 }
 0x20a   :  { %7019 = vrsqrt.f32 %v1647_v7  ;;  %v1573_v44 = vsub.f32 %v1423_v36, %v1498_v26  ;;  %v1499_v35 = vmul.f32 %v8759_v61, %v8759_v61  ;;  %1381 = vadd.xlane.f32.xlu1 %v1380_v16  ;;  %1008 = vadd.xlane.f32.xlu0 %v1007_v54  ;;  %v1796_v7 = vsub.f32 %v8110_v37, %v8708_v28 }
 0x20b   :  { %6287 = vmatmul.mubr.msk.f32.gmra.mrb[66].mxu1 %vm784_vm2, %v1869_v45  ;;  %v1277_v50 = vpop.xlane.xlu1 %1276  ;;  %v904_v27 = vpop.xlane.xlu0 %903  ;;  %v1383_v31 = vsel %vm784_vm2, %v1160_v53, 0.0  ;;  %v1797_v28 = vsub.f32 %v8118_v52, %v8725_v38  ;;  %v1798_v38 = vsub.f32 %v8128_v8, %v8742_v51  ;;  %v1799_v51 = vsub.f32 %v8140_v42, %v8759_v61 }
 0x20c   :  { %v7016_v30 = vpop.eup %7015  ;;  %v1648_v57 = vadd.f32 1e-05, %v1573_v44  ;;  %v1424_v13 = vmul.f32 0.015625, %v1277_v50  ;;  %v8773_v12 = vmul.f32 0.015625, %v904_v27  ;;  %6289 = vmatprep.mubr.msk.f32.mxu1 %vm7254_vm0, %v11316_v10 }
 0x20d   :  { %v1870_v26 = vmul.f32 %v7016_v30, %v1795_v15 }
 0x20e   :  { %7021 = vrsqrt.f32 %v1648_v57  ;;  %v1574_v16 = vsub.f32 %v1424_v13, %v1499_v35  ;;  %v1500_v62 = vmul.f32 %v8773_v12, %v8773_v12  ;;  %1384 = vadd.xlane.f32.xlu1 %v1383_v31  ;;  %v1800_v61 = vsub.f32 %v8154_v19, %v8773_v12 }
 0x20f   :  { %6290 = vmatmul.mubr.msk.f32.gmra.mrb[68].mxu1 %vm784_vm2, %v1870_v26  ;;  %v1280_v36 = vpop.xlane.xlu1 %1279  ;;  %v907_v54 = vpop.xlane.xlu0 %906 }
 0x210   :  { %v7018_v45 = vpop.eup %7017  ;;  %v1649_v53 = vadd.f32 1e-05, %v1574_v16  ;;  %v1425_v44 = vmul.f32 0.015625, %v1280_v36  ;;  %v8782_v50 = vmul.f32 0.015625, %v907_v54  ;;  %6292 = vmatprep.mubr.msk.f32.mxu1 %vm7254_vm0, %v11316_v10 }
 0x211   :  { %v1871_v35 = vmul.f32 %v7018_v45, %v1796_v7 }
 0x212   :  { %7023 = vrsqrt.f32 %v1649_v53  ;;  %v1575_v15 = vsub.f32 %v1425_v44, %v1500_v62  ;;  %v1501_v27 = vmul.f32 %v8782_v50, %v8782_v50  ;;  %v1801_v12 = vsub.f32 %v8166_v63, %v8782_v50 }
 0x213   :  { %6293 = vmatmul.mubr.msk.f32.gmra.mrb[70].mxu1 %vm784_vm2, %v1871_v35  ;;  %v1283_v31 = vpop.xlane.xlu1 %1282  ;;  %v910_v30 = vpop.xlane.xlu0 %909 }
 0x214   :  { %v7020_v57 = vpop.eup %7019  ;;  %v1650_v13 = vadd.f32 1e-05, %v1575_v15  ;;  %v1426_v26 = vmul.f32 0.015625, %v1283_v31  ;;  %v8791_v16 = vmul.f32 0.015625, %v910_v30  ;;  %6295 = vmatprep.mubr.msk.f32.mxu1 %vm7254_vm0, %v11316_v10 }
 0x215   :  { %v1872_v7 = vmul.f32 %v7020_v57, %v1797_v28 }
 0x216   :  { %7025 = vrsqrt.f32 %v1650_v13  ;;  %v1576_v62 = vsub.f32 %v1426_v26, %v1501_v27  ;;  %v1502_v36 = vmul.f32 %v8791_v16, %v8791_v16  ;;  %v1802_v50 = vsub.f32 %v8180_v47, %v8791_v16 }
 0x217   :  { %6296 = vmatmul.mubr.msk.f32.gmra.mrb[72].mxu1 %vm784_vm2, %v1872_v7  ;;  %v1286_v54 = vpop.xlane.xlu1 %1285  ;;  %v913_v45 = vpop.xlane.xlu0 %912 }
 0x218   :  { %v7022_v53 = vpop.eup %7021  ;;  %v1651_v44 = vadd.f32 1e-05, %v1576_v62  ;;  %v1427_v35 = vmul.f32 0.015625, %v1286_v54  ;;  %v8800_v15 = vmul.f32 0.015625, %v913_v45  ;;  %6298 = vmatprep.mubr.msk.f32.mxu1 %vm7254_vm0, %v11316_v10 }
 0x219   :  { %v1873_v28 = vmul.f32 %v7022_v53, %v1798_v38 }
 0x21a   :  { %7027 = vrsqrt.f32 %v1651_v44  ;;  %v1577_v27 = vsub.f32 %v1427_v35, %v1502_v36  ;;  %v1503_v31 = vmul.f32 %v8800_v15, %v8800_v15  ;;  %v1803_v16 = vsub.f32 %v8194_v55, %v8800_v15 }
 0x21b   :  { %6299 = vmatmul.mubr.msk.f32.gmra.mrb[74].mxu1 %vm784_vm2, %v1873_v28  ;;  %v1289_v30 = vpop.xlane.xlu1 %1288  ;;  %v916_v57 = vpop.xlane.xlu0 %915 }
 0x21c   :  { %v7024_v13 = vpop.eup %7023  ;;  %v1652_v26 = vadd.f32 1e-05, %v1577_v27  ;;  %v1428_v7 = vmul.f32 0.015625, %v1289_v30  ;;  %v8809_v62 = vmul.f32 0.015625, %v916_v57  ;;  %6301 = vmatprep.mubr.msk.f32.mxu1 %vm7254_vm0, %v11316_v10 }
 0x21d   :  { %v1874_v38 = vmul.f32 %v7024_v13, %v1799_v51 }
 0x21e   :  { %7029 = vrsqrt.f32 %v1652_v26  ;;  %v1578_v36 = vsub.f32 %v1428_v7, %v1503_v31  ;;  %v1504_v54 = vmul.f32 %v8809_v62, %v8809_v62  ;;  %v1804_v15 = vsub.f32 %v8211_v3, %v8809_v62 }
 0x21f   :  { %6302 = vmatmul.mubr.msk.f32.gmra.mrb[76].mxu1 %vm784_vm2, %v1874_v38  ;;  %v1292_v45 = vpop.xlane.xlu1 %1291  ;;  %v919_v53 = vpop.xlane.xlu0 %918 }
 0x220   :  { %v7026_v44 = vpop.eup %7025  ;;  %v1653_v35 = vadd.f32 1e-05, %v1578_v36  ;;  %v1429_v28 = vmul.f32 0.015625, %v1292_v45  ;;  %v8818_v27 = vmul.f32 0.015625, %v919_v53  ;;  %6304 = vmatprep.mubr.msk.f32.mxu1 %vm7254_vm0, %v11316_v10 }
 0x221   :  { %v1875_v51 = vmul.f32 %v7026_v44, %v1800_v61 }
 0x222   :  { %7031 = vrsqrt.f32 %v1653_v35  ;;  %v1579_v31 = vsub.f32 %v1429_v28, %v1504_v54  ;;  %v1505_v30 = vmul.f32 %v8818_v27, %v8818_v27  ;;  %v1805_v62 = vsub.f32 %v8233_v46, %v8818_v27  ;;  %v11335_v27 = vld [vmem:[#allocation35_spill] sm:$0xff] }
 0x223   :  { %6305 = vmatmul.mubr.msk.f32.gmra.mrb[78].mxu1 %vm784_vm2, %v1875_v51  ;;  %v1295_v57 = vpop.xlane.xlu1 %1294  ;;  %v922_v13 = vpop.xlane.xlu0 %921 }
 0x224   :  { %v7028_v26 = vpop.eup %7027  ;;  %v1654_v7 = vadd.f32 1e-05, %v1579_v31  ;;  %v1430_v38 = vmul.f32 0.015625, %v1295_v57  ;;  %v8827_v36 = vmul.f32 0.015625, %v922_v13  ;;  %6307 = vmatprep.mubr.msk.f32.mxu1 %vm7254_vm0, %v11316_v10 }
 0x225   :  { %v1876_v61 = vmul.f32 %v7028_v26, %v1801_v12 }
 0x226   :  { %7033 = vrsqrt.f32 %v1654_v7  ;;  %v1580_v54 = vsub.f32 %v1430_v38, %v1505_v30  ;;  %v1506_v45 = vmul.f32 %v8827_v36, %v8827_v36 }
 0x227   :  { %6308 = vmatmul.mubr.msk.f32.gmra.mrb[80].mxu1 %vm784_vm2, %v1876_v61  ;;  %v1298_v53 = vpop.xlane.xlu1 %1297  ;;  %v925_v44 = vpop.xlane.xlu0 %924 }
 0x228   :  { %v7030_v35 = vpop.eup %7029  ;;  %v1655_v28 = vadd.f32 1e-05, %v1580_v54  ;;  %v1431_v51 = vmul.f32 0.015625, %v1298_v53  ;;  %v8836_v31 = vmul.f32 0.015625, %v925_v44  ;;  %6310 = vmatprep.mubr.msk.f32.mxu1 %vm7254_vm0, %v11316_v10 }
 0x229   :  { %v1877_v12 = vmul.f32 %v7030_v35, %v1802_v50 }
 0x22a   :  { %7035 = vrsqrt.f32 %v1655_v28  ;;  %v1581_v30 = vsub.f32 %v1431_v51, %v1506_v45  ;;  %v1507_v57 = vmul.f32 %v8836_v31, %v8836_v31 }
 0x22b   :  { %6311 = vmatmul.mubr.msk.f32.gmra.mrb[82].mxu1 %vm784_vm2, %v1877_v12  ;;  %v1301_v13 = vpop.xlane.xlu1 %1300  ;;  %v928_v26 = vpop.xlane.xlu0 %927 }
 0x22c   :  { %v7032_v7 = vpop.eup %7031  ;;  %v1656_v38 = vadd.f32 1e-05, %v1581_v30  ;;  %v1432_v61 = vmul.f32 0.015625, %v1301_v13  ;;  %v8845_v54 = vmul.f32 0.015625, %v928_v26  ;;  %6313 = vmatprep.mubr.msk.f32.mxu1 %vm7254_vm0, %v11316_v10 }
 0x22d   :  { %v1878_v50 = vmul.f32 %v7032_v7, %v1803_v16 }
 0x22e   :  { %7037 = vrsqrt.f32 %v1656_v38  ;;  %v1582_v45 = vsub.f32 %v1432_v61, %v1507_v57  ;;  %v1508_v53 = vmul.f32 %v8845_v54, %v8845_v54 }
 0x22f   :  { %6314 = vmatmul.mubr.msk.f32.gmra.mrb[84].mxu1 %vm784_vm2, %v1878_v50  ;;  %v1304_v44 = vpop.xlane.xlu1 %1303  ;;  %v931_v35 = vpop.xlane.xlu0 %930 }
 0x230   :  { %v7034_v28 = vpop.eup %7033  ;;  %v1657_v51 = vadd.f32 1e-05, %v1582_v45  ;;  %v1433_v12 = vmul.f32 0.015625, %v1304_v44  ;;  %v8854_v30 = vmul.f32 0.015625, %v931_v35  ;;  %6316 = vmatprep.mubr.msk.f32.mxu1 %vm7254_vm0, %v11316_v10  ;;  %v1806_v35 = vsub.f32 %v11335_v27, %v8827_v36  ;;  %v4546_v36 = vld [vmem:[%s11204_s7] sm:$0xff] }
 0x231   :  { %v1879_v16 = vmul.f32 %v7034_v28, %v1804_v15 }
 0x232   :  { %7039 = vrsqrt.f32 %v1657_v51  ;;  %v1583_v57 = vsub.f32 %v1433_v12, %v1508_v53  ;;  %v1509_v13 = vmul.f32 %v8854_v30, %v8854_v30 }
 0x233   :  { %6317 = vmatmul.mubr.msk.f32.gmra.mrb[86].mxu1 %vm784_vm2, %v1879_v16  ;;  %v1307_v26 = vpop.xlane.xlu1 %1306  ;;  %v934_v7 = vpop.xlane.xlu0 %933 }
 0x234   :  { %v7036_v38 = vpop.eup %7035  ;;  %v1658_v61 = vadd.f32 1e-05, %v1583_v57  ;;  %v1434_v50 = vmul.f32 0.015625, %v1307_v26  ;;  %v8863_v45 = vmul.f32 0.015625, %v934_v7  ;;  %6319 = vmatprep.mubr.msk.f32.mxu1 %vm7254_vm0, %v11316_v10 }
 0x235   :  { %v1880_v15 = vmul.f32 %v7036_v38, %v1805_v62  ;;  %v4547_v38 = vld [vmem:[%s11204_s7 + $0x8] sm:$0xff] }
 0x236   :  { %7041 = vrsqrt.f32 %v1658_v61  ;;  %v1584_v53 = vsub.f32 %v1434_v50, %v1509_v13  ;;  %v1510_v44 = vmul.f32 %v8863_v45, %v8863_v45  ;;  %v11336_v61 = vld [vmem:[#allocation36_spill] sm:$0xff] }
 0x237   :  { %6320 = vmatmul.mubr.msk.f32.gmra.mrb[88].mxu1 %vm784_vm2, %v1880_v15  ;;  %v1310_v28 = vpop.xlane.xlu1 %1309  ;;  %v937_v51 = vpop.xlane.xlu0 %936  ;;  %v1807_v50 = vsub.f32 %v11336_v61, %v8836_v31 }
 0x238   :  { %v7038_v12 = vpop.eup %7037  ;;  %v1659_v16 = vadd.f32 1e-05, %v1584_v53  ;;  %v1435_v57 = vmul.f32 0.015625, %v1310_v28  ;;  %v8872_v26 = vmul.f32 0.015625, %v937_v51  ;;  %6322 = vmatprep.mubr.msk.f32.mxu1 %vm7254_vm0, %v11316_v10 }
 0x239   :  { %v1881_v62 = vmul.f32 %v7038_v12, %v1806_v35  ;;  %v8887_v35 = vpack.c.bf16 %v4547_v38, %v4546_v36 }
 0x23a   :  { %7043 = vrsqrt.f32 %v1659_v16  ;;  %v1585_v13 = vsub.f32 %v1435_v57, %v1510_v44  ;;  %v1511_v7 = vmul.f32 %v8872_v26, %v8872_v26 }
 0x23b   :  { %6323 = vmatmul.mubr.msk.f32.gmra.mrb[90].mxu1 %vm784_vm2, %v1881_v62  ;;  %v1313_v15 = vpop.xlane.xlu1 %1312  ;;  %v940_v53 = vpop.xlane.xlu0 %939  ;;  %v1808_v62 = vsub.f32 %v8290_v14, %v8845_v54  ;;  %v1809_v54 = vsub.f32 %v8307_v4, %v8854_v30  ;;  %v1810_v30 = vsub.f32 %v8325_v1, %v8863_v45  ;;  %v1811_v45 = vsub.f32 %v8342_v39, %v8872_v26 }
 0x23c   :  { %v7040_v44 = vpop.eup %7039  ;;  %v1660_v28 = vadd.f32 1e-05, %v1585_v13  ;;  %v1436_v51 = vmul.f32 0.015625, %v1313_v15  ;;  %v8889_v12 = vmul.f32 0.015625, %v940_v53  ;;  %6325 = vmatprep.mubr.msk.f32.mxu1 %vm7254_vm0, %v11316_v10  ;;  %6940 = vmatpush3.bf16.msra.mxu1 %v8887_v35 }
 0x23d   :  { %v1882_v16 = vmul.f32 %v7040_v44, %v1807_v50  ;;  %6937 = vmatprep.subr.bf16.mxu1 %v11320_v17 }
 0x23e   :  { %7045 = vrsqrt.f32 %v1660_v28  ;;  %v1586_v57 = vsub.f32 %v1436_v51, %v1511_v7  ;;  %v1512_v31 = vmul.f32 %v8889_v12, %v8889_v12  ;;  %v1812_v26 = vsub.f32 %v8359_v5, %v8889_v12 }
 0x23f   :  { %6326 = vmatmul.mubr.msk.f32.gmra.mrb[92].mxu1 %vm784_vm2, %v1882_v16  ;;  %v1316_v13 = vpop.xlane.xlu1 %1315  ;;  %v943_v36 = vpop.xlane.xlu0 %942 }
 0x240   :  { %v7042_v38 = vpop.eup %7041  ;;  %v1661_v15 = vadd.f32 1e-05, %v1586_v57  ;;  %v1437_v53 = vmul.f32 0.015625, %v1316_v13  ;;  %v8900_v50 = vmul.f32 0.015625, %v943_v36  ;;  %6328 = vmatprep.mubr.msk.f32.mxu1 %vm7254_vm0, %v11316_v10 }
 0x241   :  { %v1883_v7 = vmul.f32 %v7042_v38, %v1808_v62 }
 0x242   :  { %7047 = vrsqrt.f32 %v1661_v15  ;;  %v1587_v44 = vsub.f32 %v1437_v53, %v1512_v31  ;;  %v1513_v28 = vmul.f32 %v8900_v50, %v8900_v50  ;;  %v1813_v12 = vsub.f32 %v8376_v25, %v8900_v50 }
 0x243   :  { %6329 = vmatmul.mubr.msk.f32.gmra.mrb[94].mxu1 %vm784_vm2, %v1883_v7  ;;  %v1319_v51 = vpop.xlane.xlu1 %1318  ;;  %v946_v16 = vpop.xlane.xlu0 %945 }
 0x244   :  { %v7044_v57 = vpop.eup %7043  ;;  %v1662_v13 = vadd.f32 1e-05, %v1587_v44  ;;  %v1438_v36 = vmul.f32 0.015625, %v1319_v51  ;;  %v8909_v14 = vmul.f32 0.015625, %v946_v16  ;;  %6331 = vmatprep.mubr.msk.f32.mxu1 %vm7254_vm0, %v11316_v10 }
 0x245   :  { %v1884_v62 = vmul.f32 %v7044_v57, %v1809_v54 }
 0x246   :  { %7049 = vrsqrt.f32 %v1662_v13  ;;  %v1588_v31 = vsub.f32 %v1438_v36, %v1513_v28  ;;  %v1514_v38 = vmul.f32 %v8909_v14, %v8909_v14  ;;  %v1814_v50 = vsub.f32 %v8393_v60, %v8909_v14 }
 0x247   :  { %6332 = vmatmul.mubr.msk.f32.gmra.mrb[96].mxu1 %vm784_vm2, %v1884_v62  ;;  %v1322_v15 = vpop.xlane.xlu1 %1321  ;;  %v949_v53 = vpop.xlane.xlu0 %948 }
 0x248   :  { %v7046_v7 = vpop.eup %7045  ;;  %v1663_v44 = vadd.f32 1e-05, %v1588_v31  ;;  %v1439_v51 = vmul.f32 0.015625, %v1322_v15  ;;  %v8918_v16 = vmul.f32 0.015625, %v949_v53  ;;  %6334 = vmatprep.mubr.msk.f32.mxu1 %vm7254_vm0, %v11316_v10 }
 0x249   :  { %v1885_v54 = vmul.f32 %v7046_v7, %v1810_v30 }
 0x24a   :  { %7051 = vrsqrt.f32 %v1663_v44  ;;  %v1589_v28 = vsub.f32 %v1439_v51, %v1514_v38  ;;  %v1515_v57 = vmul.f32 %v8918_v16, %v8918_v16 }
 0x24b   :  { %6335 = vmatmul.mubr.msk.f32.gmra.mrb[98].mxu1 %vm784_vm2, %v1885_v54  ;;  %v1325_v13 = vpop.xlane.xlu1 %1324  ;;  %v952_v36 = vpop.xlane.xlu0 %951 }
 0x24c   :  { %v7048_v62 = vpop.eup %7047  ;;  %v1664_v31 = vadd.f32 1e-05, %v1589_v28  ;;  %v1440_v15 = vmul.f32 0.015625, %v1325_v13  ;;  %v8927_v53 = vmul.f32 0.015625, %v952_v36  ;;  %6337 = vmatprep.mubr.msk.f32.mxu1 %vm7254_vm0, %v11316_v10 }
 0x24d   :  { %v1886_v30 = vmul.f32 %v7048_v62, %v1811_v45 }
 0x24e   :  { %7053 = vrsqrt.f32 %v1664_v31  ;;  %v1590_v38 = vsub.f32 %v1440_v15, %v1515_v57  ;;  %v1516_v7 = vmul.f32 %v8927_v53, %v8927_v53 }
 0x24f   :  { %6338 = vmatmul.mubr.msk.f32.gmra.mrb[100].mxu1 %vm784_vm2, %v1886_v30  ;;  %v1328_v44 = vpop.xlane.xlu1 %1327  ;;  %v955_v51 = vpop.xlane.xlu0 %954 }
 0x250   :  { %v7050_v54 = vpop.eup %7049  ;;  %v1665_v28 = vadd.f32 1e-05, %v1590_v38  ;;  %v1441_v13 = vmul.f32 0.015625, %v1328_v44  ;;  %v8936_v36 = vmul.f32 0.015625, %v955_v51  ;;  %6340 = vmatprep.mubr.msk.f32.mxu1 %vm7254_vm0, %v11316_v10 }
 0x251   :  { %v1887_v45 = vmul.f32 %v7050_v54, %v1812_v26 }
 0x252   :  { %7055 = vrsqrt.f32 %v1665_v28  ;;  %v1591_v57 = vsub.f32 %v1441_v13, %v1516_v7  ;;  %v1517_v62 = vmul.f32 %v8936_v36, %v8936_v36 }
 0x253   :  { %6341 = vmatmul.mubr.msk.f32.gmra.mrb[102].mxu1 %vm784_vm2, %v1887_v45  ;;  %v1331_v31 = vpop.xlane.xlu1 %1330  ;;  %v958_v15 = vpop.xlane.xlu0 %957 }
 0x254   :  { %v7052_v30 = vpop.eup %7051  ;;  %v1666_v38 = vadd.f32 1e-05, %v1591_v57  ;;  %v1442_v44 = vmul.f32 0.015625, %v1331_v31  ;;  %v8945_v51 = vmul.f32 0.015625, %v958_v15  ;;  %6343 = vmatprep.mubr.msk.f32.mxu1 %vm7254_vm0, %v11316_v10 }
 0x255   :  { %v1888_v26 = vmul.f32 %v7052_v30, %v1813_v12  ;;  %v8959_v12 = vld [vmem:[%s11205_s4] ss:$0 sm:$0xff] }
 0x256   :  { %7057 = vrsqrt.f32 %v1666_v38  ;;  %v1592_v7 = vsub.f32 %v1442_v44, %v1517_v62  ;;  %v1518_v54 = vmul.f32 %v8945_v51, %v8945_v51  ;;  %v1815_v44 = vsub.f32 %v8410_v29, %v8918_v16 }
 0x257   :  { %6344 = vmatmul.mubr.msk.f32.gmra.mrb[104].mxu1 %vm784_vm2, %v1888_v26  ;;  %v1334_v28 = vpop.xlane.xlu1 %1333  ;;  %v961_v13 = vpop.xlane.xlu0 %960 }
 0x258   :  { %v7054_v45 = vpop.eup %7053  ;;  %v1667_v57 = vadd.f32 1e-05, %v1592_v7  ;;  %v1443_v31 = vmul.f32 0.015625, %v1334_v28  ;;  %v8954_v15 = vmul.f32 0.015625, %v961_v13  ;;  %6346 = vmatprep.mubr.msk.f32.mxu1 %vm7254_vm0, %v11316_v10 }
 0x259   :  { %v1889_v62 = vmul.f32 %v7054_v45, %v1814_v50 }
 0x25a   :  { %7059 = vrsqrt.f32 %v1667_v57  ;;  %v1593_v14 = vsub.f32 %v1443_v31, %v1518_v54  ;;  %v1519_v30 = vmul.f32 %v8954_v15, %v8954_v15  ;;  %v2217_v38 = vpop.f32.mrb[0].mxu1  ;;  %v1816_v31 = vsub.f32 %v8427_v20, %v8927_v53 }
 0x25b   :  { %v2218_v26 = vadd.f32 %v8959_v12, %v2217_v38  ;;  %v6189_v7 = vpop.f32.mrb[1].mxu1  ;;  %6347 = vmatmul.mubr.msk.f32.gmra.mrb[106].mxu1 %vm784_vm2, %v1889_v62  ;;  %v1337_v28 = vpop.xlane.xlu1 %1336 }
 0x25c   :  { %v7056_v13 = vpop.eup %7055  ;;  %v1668_v60 = vadd.f32 1e-05, %v1593_v14  ;;  %v1444_v25 = vmul.f32 0.015625, %v1337_v28  ;;  %v964_v5 = vpop.xlane.xlu0 %963  ;;  %6349 = vmatprep.mubr.msk.f32.mxu1 %vm7254_vm0, %v11316_v10 }
 0x25d   :  { %v2591_v54 = vmax.f32 %v2218_v26, 0.0  ;;  %v8971_v50 = vmul.f32 0.015625, %v964_v5  ;;  %v1890_v45 = vmul.f32 %v7056_v13, %v1815_v44 }
 0x25e   :  { %7061 = vrsqrt.f32 %v1668_v60  ;;  %v1594_v57 = vsub.f32 %v1444_v25, %v1519_v30  ;;  %v2222_v16 = vpop.f32.mrb[2].mxu1 }
 0x25f   :  { %v1520_v62 = vmul.f32 %v8971_v50, %v8971_v50  ;;  %v2223_v14 = vadd.f32 %v8959_v12, %v2222_v16  ;;  %v6192_v38 = vpop.f32.mrb[3].mxu1  ;;  %6350 = vmatmul.mubr.msk.f32.gmra.mrb[108].mxu1 %vm784_vm2, %v1890_v45  ;;  %6429 = vmatmul.mubr.msk.f32.vlgmr.msra.gmra.mrb[150].mxu0 %vm784_vm2, %v2591_v54  ;;  %v1340_v26 = vpop.xlane.xlu1 %1339  ;;  %v1817_v54 = vsub.f32 %v8444_v11, %v8936_v36 }
 0x260   :  { %v7058_v5 = vpop.eup %7057  ;;  %v1669_v7 = vadd.f32 1e-05, %v1594_v57  ;;  %v1445_v44 = vmul.f32 0.015625, %v1340_v26  ;;  %v967_v60 = vpop.xlane.xlu0 %966  ;;  %6352 = vmatprep.mubr.msk.f32.mxu1 %vm7254_vm0, %v11316_v10  ;;  %6431 = vmatprep.mubr.msk.f32.mxu0 %vm7254_vm0, %v11316_v10 }
 0x261   :  { %v2592_v25 = vmax.f32 %v2223_v14, 0.0  ;;  %v8984_v53 = vmul.f32 0.015625, %v967_v60  ;;  %v1891_v30 = vmul.f32 %v7058_v5, %v1816_v31  ;;  %6926 = vmatpush3.bf16.msra.mxu0 %v8887_v35  ;;  %v1818_v60 = vsub.f32 %v8461_v43, %v8945_v51 }
 0x262   :  { %7063 = vrsqrt.f32 %v1669_v7  ;;  %v1595_v28 = vsub.f32 %v1445_v44, %v1520_v62  ;;  %v2227_v13 = vpop.f32.mrb[4].mxu1  ;;  %6927 = vmatprep.subr.bf16.mxu0 %v11320_v17 }
 0x263   :  { %v1521_v45 = vmul.f32 %v8984_v53, %v8984_v53  ;;  %v2228_v57 = vadd.f32 %v8959_v12, %v2227_v13  ;;  %v6195_v16 = vpop.f32.mrb[5].mxu1  ;;  %6353 = vmatmul.mubr.msk.f32.gmra.mrb[110].mxu1 %vm784_vm2, %v1891_v30  ;;  %6432 = vmatmul.mubr.msk.f32.gmra.mrb[152].mxu0 %vm784_vm2, %v2592_v25  ;;  %v1343_v31 = vpop.xlane.xlu1 %1342 }
 0x264   :  { %v7060_v35 = vpop.eup %7059  ;;  %v1670_v14 = vadd.f32 1e-05, %v1595_v28  ;;  %v1446_v62 = vmul.f32 0.015625, %v1343_v31  ;;  %v970_v38 = vpop.xlane.xlu0 %969  ;;  %6355 = vmatprep.mubr.msk.f32.mxu1 %vm7254_vm0, %v11316_v10  ;;  %6434 = vmatprep.mubr.msk.f32.mxu0 %vm7254_vm0, %v11316_v10 }
 0x265   :  { %v2593_v36 = vmax.f32 %v2228_v57, 0.0  ;;  %v8999_v26 = vmul.f32 0.015625, %v970_v38  ;;  %v1892_v5 = vmul.f32 %v7060_v35, %v1817_v54  ;;  %v1819_v38 = vsub.f32 %v8478_v18, %v8954_v15 }
 0x266   :  { %7065 = vrsqrt.f32 %v1670_v14  ;;  %v1596_v7 = vsub.f32 %v1446_v62, %v1521_v45  ;;  %v2232_v44 = vpop.f32.mrb[6].mxu1 }
 0x267   :  { %v1522_v25 = vmul.f32 %v8999_v26, %v8999_v26  ;;  %v2233_v30 = vadd.f32 %v8959_v12, %v2232_v44  ;;  %v6198_v28 = vpop.f32.mrb[7].mxu1  ;;  %6356 = vmatmul.mubr.msk.f32.gmra.mrb[112].mxu1 %vm784_vm2, %v1892_v5  ;;  %6435 = vmatmul.mubr.msk.f32.gmra.mrb[154].mxu0 %vm784_vm2, %v2593_v36  ;;  %v1346_v13 = vpop.xlane.xlu1 %1345 }
 0x268   :  { %v7062_v57 = vpop.eup %7061  ;;  %v1671_v16 = vadd.f32 1e-05, %v1596_v7  ;;  %v1447_v54 = vmul.f32 0.015625, %v1346_v13  ;;  %v973_v31 = vpop.xlane.xlu0 %972  ;;  %6358 = vmatprep.mubr.msk.f32.mxu1 %vm7254_vm0, %v11316_v10  ;;  %6437 = vmatprep.mubr.msk.f32.mxu0 %vm7254_vm0, %v11316_v10 }
 0x269   :  { %v2594_v51 = vmax.f32 %v2233_v30, 0.0  ;;  %v9012_v45 = vmul.f32 0.015625, %v973_v31  ;;  %v1893_v35 = vmul.f32 %v7062_v57, %v1818_v60  ;;  %v1820_v31 = vsub.f32 %v8495_v32, %v8971_v50 }
 0x26a   :  { %7067 = vrsqrt.f32 %v1671_v16  ;;  %v1597_v14 = vsub.f32 %v1447_v54, %v1522_v25  ;;  %v2237_v62 = vpop.f32.mrb[8].mxu1 }
 0x26b   :  { %v1523_v36 = vmul.f32 %v9012_v45, %v9012_v45  ;;  %v2238_v5 = vadd.f32 %v8959_v12, %v2237_v62  ;;  %v6201_v7 = vpop.f32.mrb[9].mxu1  ;;  %6359 = vmatmul.mubr.msk.f32.gmra.mrb[114].mxu1 %vm784_vm2, %v1893_v35  ;;  %6438 = vmatmul.mubr.msk.f32.gmra.mrb[156].mxu0 %vm784_vm2, %v2594_v51  ;;  %v1349_v44 = vpop.xlane.xlu1 %1348 }
 0x26c   :  { %v7064_v30 = vpop.eup %7063  ;;  %v1672_v28 = vadd.f32 1e-05, %v1597_v14  ;;  %v1448_v60 = vmul.f32 0.015625, %v1349_v44  ;;  %v976_v13 = vpop.xlane.xlu0 %975  ;;  %6361 = vmatprep.mubr.msk.f32.mxu1 %vm7254_vm0, %v11316_v10  ;;  %6440 = vmatprep.mubr.msk.f32.mxu0 %vm7254_vm0, %v11316_v10 }
 0x26d   :  { %v2595_v15 = vmax.f32 %v2238_v5, 0.0  ;;  %v9025_v25 = vmul.f32 0.015625, %v976_v13  ;;  %v1894_v57 = vmul.f32 %v7064_v30, %v1819_v38  ;;  %v1821_v13 = vsub.f32 %v8512_v6, %v8984_v53 }
 0x26e   :  { %7069 = vrsqrt.f32 %v1672_v28  ;;  %v1598_v16 = vsub.f32 %v1448_v60, %v1523_v36  ;;  %v2242_v54 = vpop.f32.mrb[10].mxu1 }
 0x26f   :  { %v1524_v51 = vmul.f32 %v9025_v25, %v9025_v25  ;;  %v2243_v35 = vadd.f32 %v8959_v12, %v2242_v54  ;;  %v6204_v14 = vpop.f32.mrb[11].mxu1  ;;  %6362 = vmatmul.mubr.msk.f32.gmra.mrb[116].mxu1 %vm784_vm2, %v1894_v57  ;;  %6441 = vmatmul.mubr.msk.f32.gmra.mrb[158].mxu0 %vm784_vm2, %v2595_v15  ;;  %v1352_v62 = vpop.xlane.xlu1 %1351 }
 0x270   :  { %v7066_v5 = vpop.eup %7065  ;;  %v1673_v7 = vadd.f32 1e-05, %v1598_v16  ;;  %v1449_v38 = vmul.f32 0.015625, %v1352_v62  ;;  %v979_v44 = vpop.xlane.xlu0 %978  ;;  %6364 = vmatprep.mubr.msk.f32.mxu1 %vm7254_vm0, %v11316_v10  ;;  %6443 = vmatprep.mubr.msk.f32.mxu0 %vm7254_vm0, %v11316_v10 }
 0x271   :  { %v2596_v50 = vmax.f32 %v2243_v35, 0.0  ;;  %v9038_v36 = vmul.f32 0.015625, %v979_v44  ;;  %v1895_v30 = vmul.f32 %v7066_v5, %v1820_v31  ;;  %v1822_v44 = vsub.f32 %v8529_v22, %v8999_v26 }
 0x272   :  { %7071 = vrsqrt.f32 %v1673_v7  ;;  %v1599_v28 = vsub.f32 %v1449_v38, %v1524_v51  ;;  %v2247_v60 = vpop.f32.mrb[12].mxu1 }
 0x273   :  { %v1525_v15 = vmul.f32 %v9038_v36, %v9038_v36  ;;  %v2248_v57 = vadd.f32 %v8959_v12, %v2247_v60  ;;  %v6207_v16 = vpop.f32.mrb[13].mxu1  ;;  %6365 = vmatmul.mubr.msk.f32.gmra.mrb[118].mxu1 %vm784_vm2, %v1895_v30  ;;  %6444 = vmatmul.mubr.msk.f32.gmra.mrb[160].mxu0 %vm784_vm2, %v2596_v50  ;;  %v1355_v54 = vpop.xlane.xlu1 %1354 }
 0x274   :  { %v7068_v35 = vpop.eup %7067  ;;  %v1674_v14 = vadd.f32 1e-05, %v1599_v28  ;;  %v1450_v31 = vmul.f32 0.015625, %v1355_v54  ;;  %v982_v62 = vpop.xlane.xlu0 %981  ;;  %6367 = vmatprep.mubr.msk.f32.mxu1 %vm7254_vm0, %v11316_v10  ;;  %6446 = vmatprep.mubr.msk.f32.mxu0 %vm7254_vm0, %v11316_v10 }
 0x275   :  { %v2597_v53 = vmax.f32 %v2248_v57, 0.0  ;;  %v9051_v51 = vmul.f32 0.015625, %v982_v62  ;;  %v1896_v5 = vmul.f32 %v7068_v35, %v1821_v13  ;;  %v1823_v62 = vsub.f32 %v8546_v59, %v9012_v45 }
 0x276   :  { %7073 = vrsqrt.f32 %v1674_v14  ;;  %v1600_v7 = vsub.f32 %v1450_v31, %v1525_v15  ;;  %v2252_v38 = vpop.f32.mrb[14].mxu1 }
 0x277   :  { %v1526_v50 = vmul.f32 %v9051_v51, %v9051_v51  ;;  %v2253_v30 = vadd.f32 %v8959_v12, %v2252_v38  ;;  %v6210_v28 = vpop.f32.mrb[15].mxu1  ;;  %6368 = vmatmul.mubr.msk.f32.gmra.mrb[120].mxu1 %vm784_vm2, %v1896_v5  ;;  %6447 = vmatmul.mubr.msk.f32.gmra.mrb[162].mxu0 %vm784_vm2, %v2597_v53  ;;  %v1358_v60 = vpop.xlane.xlu1 %1357 }
 0x278   :  { %v7070_v57 = vpop.eup %7069  ;;  %v1675_v16 = vadd.f32 1e-05, %v1600_v7  ;;  %v1451_v13 = vmul.f32 0.015625, %v1358_v60  ;;  %v985_v54 = vpop.xlane.xlu0 %984  ;;  %6370 = vmatprep.mubr.msk.f32.mxu1 %vm7254_vm0, %v11316_v10  ;;  %6449 = vmatprep.mubr.msk.f32.mxu0 %vm7254_vm0, %v11316_v10 }
 0x279   :  { %v2598_v26 = vmax.f32 %v2253_v30, 0.0  ;;  %v9064_v15 = vmul.f32 0.015625, %v985_v54  ;;  %v1897_v35 = vmul.f32 %v7070_v57, %v1822_v44  ;;  %v1824_v54 = vsub.f32 %v8563_v9, %v9025_v25 }
 0x27a   :  { %7075 = vrsqrt.f32 %v1675_v16  ;;  %v1601_v14 = vsub.f32 %v1451_v13, %v1526_v50  ;;  %v2257_v31 = vpop.f32.mrb[16].mxu1 }
 0x27b   :  { %v1527_v53 = vmul.f32 %v9064_v15, %v9064_v15  ;;  %v2258_v5 = vadd.f32 %v8959_v12, %v2257_v31  ;;  %v6213_v7 = vpop.f32.mrb[17].mxu1  ;;  %6371 = vmatmul.mubr.msk.f32.gmra.mrb[122].mxu1 %vm784_vm2, %v1897_v35  ;;  %6450 = vmatmul.mubr.msk.f32.gmra.mrb[164].mxu0 %vm784_vm2, %v2598_v26  ;;  %v1361_v38 = vpop.xlane.xlu1 %1360 }
 0x27c   :  { %v7072_v30 = vpop.eup %7071  ;;  %v1676_v28 = vadd.f32 1e-05, %v1601_v14  ;;  %v1452_v44 = vmul.f32 0.015625, %v1361_v38  ;;  %v988_v60 = vpop.xlane.xlu0 %987  ;;  %6373 = vmatprep.mubr.msk.f32.mxu1 %vm7254_vm0, %v11316_v10  ;;  %6452 = vmatprep.mubr.msk.f32.mxu0 %vm7254_vm0, %v11316_v10 }
 0x27d   :  { %v2599_v45 = vmax.f32 %v2258_v5, 0.0  ;;  %v9077_v50 = vmul.f32 0.015625, %v988_v60  ;;  %v1898_v57 = vmul.f32 %v7072_v30, %v1823_v62  ;;  %v1825_v60 = vsub.f32 %v8580_v23, %v9038_v36 }
 0x27e   :  { %7077 = vrsqrt.f32 %v1676_v28  ;;  %v1602_v16 = vsub.f32 %v1452_v44, %v1527_v53  ;;  %v2262_v13 = vpop.f32.mrb[18].mxu1 }
 0x27f   :  { %v1528_v26 = vmul.f32 %v9077_v50, %v9077_v50  ;;  %v2263_v35 = vadd.f32 %v8959_v12, %v2262_v13  ;;  %v6216_v14 = vpop.f32.mrb[19].mxu1  ;;  %6374 = vmatmul.mubr.msk.f32.gmra.mrb[124].mxu1 %vm784_vm2, %v1898_v57  ;;  %6453 = vmatmul.mubr.msk.f32.gmra.mrb[166].mxu0 %vm784_vm2, %v2599_v45  ;;  %v1364_v31 = vpop.xlane.xlu1 %1363 }
 0x280   :  { %v7074_v5 = vpop.eup %7073  ;;  %v1677_v7 = vadd.f32 1e-05, %v1602_v16  ;;  %v1453_v62 = vmul.f32 0.015625, %v1364_v31  ;;  %v991_v38 = vpop.xlane.xlu0 %990  ;;  %6376 = vmatprep.mubr.msk.f32.mxu1 %vm7254_vm0, %v11316_v10  ;;  %6455 = vmatprep.mubr.msk.f32.mxu0 %vm7254_vm0, %v11316_v10 }
 0x281   :  { %v2600_v25 = vmax.f32 %v2263_v35, 0.0  ;;  %v9090_v53 = vmul.f32 0.015625, %v991_v38  ;;  %v1899_v30 = vmul.f32 %v7074_v5, %v1824_v54 }
 0x282   :  { %7079 = vrsqrt.f32 %v1677_v7  ;;  %v1603_v28 = vsub.f32 %v1453_v62, %v1528_v26  ;;  %v2267_v44 = vpop.f32.mrb[20].mxu1  ;;  %v4548_v7 = vld [vmem:[%s11204_s7 + $0x10] sm:$0xff]  ;;  %v4549_v62 = vld [vmem:[%s11204_s7 + $0x18] sm:$0xff] }
 0x283   :  { %v1529_v45 = vmul.f32 %v9090_v53, %v9090_v53  ;;  %v2268_v57 = vadd.f32 %v8959_v12, %v2267_v44  ;;  %v6219_v16 = vpop.f32.mrb[21].mxu1  ;;  %6377 = vmatmul.mubr.msk.f32.gmra.mrb[126].mxu1 %vm784_vm2, %v1899_v30  ;;  %6456 = vmatmul.mubr.msk.f32.gmra.mrb[168].mxu0 %vm784_vm2, %v2600_v25  ;;  %v1367_v13 = vpop.xlane.xlu1 %1366  ;;  %v6928_v30 = vpack.c.bf16 %v4549_v62, %v4548_v7 }
 0x284   :  { %v7076_v35 = vpop.eup %7075  ;;  %v1678_v14 = vadd.f32 1e-05, %v1603_v28  ;;  %v1454_v54 = vmul.f32 0.015625, %v1367_v13  ;;  %v994_v31 = vpop.xlane.xlu0 %993  ;;  %6379 = vmatprep.mubr.msk.f32.mxu1 %vm7254_vm0, %v11316_v10  ;;  %6458 = vmatprep.mubr.msk.f32.mxu0 %vm7254_vm0, %v11316_v10  ;;  %v1826_v28 = vsub.f32 %v8597_v33, %v9051_v51  ;;  %v1827_v7 = vsub.f32 %v8614_v41, %v9064_v15 }
 0x285   :  { %v2601_v36 = vmax.f32 %v2268_v57, 0.0  ;;  %v9103_v26 = vmul.f32 0.015625, %v994_v31  ;;  %v1900_v5 = vmul.f32 %v7076_v35, %v1825_v60  ;;  %6941 = vmatpush3.bf16.msra.mxu1 %v6928_v30  ;;  %6929 = vmatpush3.bf16.msra.mxu0 %v6928_v30 }
 0x286   :  { %7081 = vrsqrt.f32 %v1678_v14  ;;  %v1604_v38 = vsub.f32 %v1454_v54, %v1529_v45  ;;  %v2272_v25 = vpop.f32.mrb[22].mxu1  ;;  %6938 = vmatprep.subr.bf16.mxu1 %v11320_v17  ;;  %6930 = vmatprep.subr.bf16.mxu0 %v11320_v17 }
 0x287   :  { %v1530_v44 = vmul.f32 %v9103_v26, %v9103_v26  ;;  %v2273_v60 = vadd.f32 %v8959_v12, %v2272_v25  ;;  %v6222_v57 = vpop.f32.mrb[23].mxu1  ;;  %6380 = vmatmul.mubr.msk.f32.gmra.mrb[128].mxu1 %vm784_vm2, %v1900_v5  ;;  %6459 = vmatmul.mubr.msk.f32.gmra.mrb[170].mxu0 %vm784_vm2, %v2601_v36  ;;  %v1370_v16 = vpop.xlane.xlu1 %1369 }
 0x288   :  { %v7078_v13 = vpop.eup %7077  ;;  %v1679_v35 = vadd.f32 1e-05, %v1604_v38  ;;  %v1455_v14 = vmul.f32 0.015625, %v1370_v16  ;;  %v997_v45 = vpop.xlane.xlu0 %996  ;;  %6382 = vmatprep.mubr.msk.f32.mxu1 %vm7254_vm0, %v11316_v10  ;;  %6461 = vmatprep.mubr.msk.f32.mxu0 %vm7254_vm0, %v11316_v10 }
 0x289   :  { %v2602_v51 = vmax.f32 %v2273_v60, 0.0  ;;  %v9122_v54 = vmul.f32 0.015625, %v997_v45  ;;  %v1901_v31 = vmul.f32 %v7078_v13, %v1826_v28  ;;  %v1828_v45 = vsub.f32 %v8631_v48, %v9077_v50 }
 0x28a   :  { %7083 = vrsqrt.f32 %v1679_v35  ;;  %v1605_v5 = vsub.f32 %v1455_v14, %v1530_v44  ;;  %v2277_v36 = vpop.f32.mrb[24].mxu1 }
 0x28b   :  { %v1531_v62 = vmul.f32 %v9122_v54, %v9122_v54  ;;  %v2278_v38 = vadd.f32 %v8959_v12, %v2277_v36  ;;  %v6225_v25 = vpop.f32.mrb[25].mxu1  ;;  %6383 = vmatmul.mubr.msk.f32.gmra.mrb[130].mxu1 %vm784_vm2, %v1901_v31  ;;  %6462 = vmatmul.mubr.msk.f32.gmra.mrb[172].mxu0 %vm784_vm2, %v2602_v51  ;;  %v1373_v30 = vpop.xlane.xlu1 %1372 }
 0x28c   :  { %v7080_v28 = vpop.eup %7079  ;;  %v1680_v44 = vadd.f32 1e-05, %v1605_v5  ;;  %v1456_v60 = vmul.f32 0.015625, %v1373_v30  ;;  %v1000_v57 = vpop.xlane.xlu0 %999  ;;  %6385 = vmatprep.mubr.msk.f32.mxu1 %vm7254_vm0, %v11316_v10  ;;  %6464 = vmatprep.mubr.msk.f32.mxu0 %vm7254_vm0, %v11316_v10 }
 0x28d   :  { %v2603_v15 = vmax.f32 %v2278_v38, 0.0  ;;  %v9137_v16 = vmul.f32 0.015625, %v1000_v57  ;;  %v1902_v13 = vmul.f32 %v7080_v28, %v1827_v7  ;;  %v1829_v57 = vsub.f32 %v8648_v56, %v9090_v53 }
 0x28e   :  { %7085 = vrsqrt.f32 %v1680_v44  ;;  %v1606_v35 = vsub.f32 %v1456_v60, %v1531_v62  ;;  %v2282_v14 = vpop.f32.mrb[26].mxu1 }
 0x28f   :  { %v1532_v51 = vmul.f32 %v9137_v16, %v9137_v16  ;;  %v2283_v31 = vadd.f32 %v8959_v12, %v2282_v14  ;;  %v6228_v5 = vpop.f32.mrb[27].mxu1  ;;  %6386 = vmatmul.mubr.msk.f32.gmra.mrb[132].mxu1 %vm784_vm2, %v1902_v13  ;;  %6465 = vmatmul.mubr.msk.f32.gmra.mrb[174].mxu0 %vm784_vm2, %v2603_v15  ;;  %v1376_v36 = vpop.xlane.xlu1 %1375 }
 0x290   :  { %v7082_v38 = vpop.eup %7081  ;;  %v1681_v25 = vadd.f32 1e-05, %v1606_v35  ;;  %v1457_v7 = vmul.f32 0.015625, %v1376_v36  ;;  %v1003_v30 = vpop.xlane.xlu0 %1002  ;;  %6388 = vmatprep.mubr.msk.f32.mxu1 %vm7254_vm0, %v11316_v10  ;;  %6467 = vmatprep.mubr.msk.f32.mxu0 %vm7254_vm0, %v11316_v10 }
 0x291   :  { %v2604_v50 = vmax.f32 %v2283_v31, 0.0  ;;  %v9150_v62 = vmul.f32 0.015625, %v1003_v30  ;;  %v1903_v28 = vmul.f32 %v7082_v38, %v1828_v45  ;;  %v1830_v30 = vsub.f32 %v8670_v0, %v9103_v26 }
 0x292   :  { %7087 = vrsqrt.f32 %v1681_v25  ;;  %v1607_v44 = vsub.f32 %v1457_v7, %v1532_v51  ;;  %v2287_v60 = vpop.f32.mrb[28].mxu1 }
 0x293   :  { %v1533_v15 = vmul.f32 %v9150_v62, %v9150_v62  ;;  %v2288_v13 = vadd.f32 %v8959_v12, %v2287_v60  ;;  %v6231_v35 = vpop.f32.mrb[29].mxu1  ;;  %6389 = vmatmul.mubr.msk.f32.gmra.mrb[134].mxu1 %vm784_vm2, %v1903_v28  ;;  %6468 = vmatmul.mubr.msk.f32.gmra.mrb[176].mxu0 %vm784_vm2, %v2604_v50  ;;  %v1379_v14 = vpop.xlane.xlu1 %1378 }
 0x294   :  { %v7084_v31 = vpop.eup %7083  ;;  %v1682_v5 = vadd.f32 1e-05, %v1607_v44  ;;  %v1458_v45 = vmul.f32 0.015625, %v1379_v14  ;;  %v1006_v36 = vpop.xlane.xlu0 %1005  ;;  %6391 = vmatprep.mubr.msk.f32.mxu1 %vm7254_vm0, %v11316_v10  ;;  %6470 = vmatprep.mubr.msk.f32.mxu0 %vm7254_vm0, %v11316_v10 }
 0x295   :  { %v2605_v53 = vmax.f32 %v2288_v13, 0.0  ;;  %v9163_v51 = vmul.f32 0.015625, %v1006_v36  ;;  %v1904_v38 = vmul.f32 %v7084_v31, %v1829_v57  ;;  %v1831_v36 = vsub.f32 %v8687_v2, %v9122_v54 }
 0x296   :  { %7089 = vrsqrt.f32 %v1682_v5  ;;  %v1608_v25 = vsub.f32 %v1458_v45, %v1533_v15  ;;  %v2292_v7 = vpop.f32.mrb[30].mxu1 }
 0x297   :  { %v1534_v50 = vmul.f32 %v9163_v51, %v9163_v51  ;;  %v2293_v28 = vadd.f32 %v8959_v12, %v2292_v7  ;;  %v6234_v44 = vpop.f32.mrb[31].mxu1  ;;  %6392 = vmatmul.mubr.msk.f32.gmra.mrb[136].mxu1 %vm784_vm2, %v1904_v38  ;;  %6471 = vmatmul.mubr.msk.f32.gmra.mrb[178].mxu0 %vm784_vm2, %v2605_v53  ;;  %v1382_v60 = vpop.xlane.xlu1 %1381 }
 0x298   :  { %v7086_v13 = vpop.eup %7085  ;;  %v1683_v35 = vadd.f32 1e-05, %v1608_v25  ;;  %v1459_v57 = vmul.f32 0.015625, %v1382_v60  ;;  %v1009_v14 = vpop.xlane.xlu0 %1008  ;;  %6394 = vmatprep.mubr.msk.f32.mxu1 %vm7254_vm0, %v11316_v10  ;;  %6473 = vmatprep.mubr.msk.f32.mxu0 %vm7254_vm0, %v11316_v10 }
 0x299   :  { %v2606_v26 = vmax.f32 %v2293_v28, 0.0  ;;  %v9176_v15 = vmul.f32 0.015625, %v1009_v14  ;;  %v1905_v31 = vmul.f32 %v7086_v13, %v1830_v30 }
 0x29a   :  { %7091 = vrsqrt.f32 %v1683_v35  ;;  %v1609_v5 = vsub.f32 %v1459_v57, %v1534_v50  ;;  %v2297_v45 = vpop.f32.mrb[32].mxu1  ;;  %v1832_v35 = vsub.f32 %v8704_v34, %v9137_v16  ;;  %v1833_v16 = vsub.f32 %v8721_v21, %v9150_v62 }
 0x29b   :  { %v1535_v53 = vmul.f32 %v9176_v15, %v9176_v15  ;;  %v2298_v38 = vadd.f32 %v8959_v12, %v2297_v45  ;;  %v6237_v25 = vpop.f32.mrb[33].mxu1  ;;  %6395 = vmatmul.mubr.msk.f32.gmra.mrb[138].mxu1 %vm784_vm2, %v1905_v31  ;;  %6474 = vmatmul.mubr.msk.f32.gmra.mrb[180].mxu0 %vm784_vm2, %v2606_v26  ;;  %v1385_v7 = vpop.xlane.xlu1 %1384  ;;  %v1834_v62 = vsub.f32 %v8738_v40, %v9163_v51 }
 0x29c   :  { %v7088_v28 = vpop.eup %7087  ;;  %v1684_v44 = vadd.f32 1e-05, %v1609_v5  ;;  %v1460_v30 = vmul.f32 0.015625, %v1385_v7  ;;  %6397 = vmatprep.mubr.msk.f32.mxu1 %vm7254_vm0, %v11316_v10  ;;  %6476 = vmatprep.mubr.msk.f32.mxu0 %vm7254_vm0, %v11316_v10  ;;  %v1835_v51 = vsub.f32 %v8755_v58, %v9176_v15 }
 0x29d   :  { %v2607_v54 = vmax.f32 %v2298_v38, 0.0  ;;  %v1906_v50 = vmul.f32 %v7088_v28, %v1831_v36 }
 0x29e   :  { %7093 = vrsqrt.f32 %v1684_v44  ;;  %v1610_v60 = vsub.f32 %v1460_v30, %v1535_v53  ;;  %v2302_v13 = vpop.f32.mrb[34].mxu1 }
 0x29f   :  { %v2303_v57 = vadd.f32 %v8959_v12, %v2302_v13  ;;  %v6240_v14 = vpop.f32.mrb[35].mxu1  ;;  %6398 = vmatmul.mubr.msk.f32.gmra.mrb[140].mxu1 %vm784_vm2, %v1906_v50  ;;  %6477 = vmatmul.mubr.msk.f32.gmra.mrb[182].mxu0 %vm784_vm2, %v2607_v54 }
 0x2a0   :  { %v7090_v26 = vpop.eup %7089  ;;  %v1685_v31 = vadd.f32 1e-05, %v1610_v60  ;;  %6400 = vmatprep.mubr.msk.f32.mxu1 %vm7254_vm0, %v11316_v10  ;;  %6479 = vmatprep.mubr.msk.f32.mxu0 %vm7254_vm0, %v11316_v10 }
 0x2a1   :  { %v2608_v5 = vmax.f32 %v2303_v57, 0.0  ;;  %v1907_v45 = vmul.f32 %v7090_v26, %v1832_v35 }
 0x2a2   :  { %7095 = vrsqrt.f32 %v1685_v31  ;;  %v2307_v36 = vpop.f32.mrb[36].mxu1 }
 0x2a3   :  { %v2308_v53 = vadd.f32 %v8959_v12, %v2307_v36  ;;  %v6243_v38 = vpop.f32.mrb[37].mxu1  ;;  %6401 = vmatmul.mubr.msk.f32.gmra.mrb[142].mxu1 %vm784_vm2, %v1907_v45  ;;  %6480 = vmatmul.mubr.msk.f32.gmra.mrb[184].mxu0 %vm784_vm2, %v2608_v5 }
 0x2a4   :  { %v7092_v25 = vpop.eup %7091  ;;  %6403 = vmatprep.mubr.msk.f32.mxu1 %vm7254_vm0, %v11316_v10  ;;  %6482 = vmatprep.mubr.msk.f32.mxu0 %vm7254_vm0, %v11316_v10 }
 0x2a5   :  { %v2609_v7 = vmax.f32 %v2308_v53, 0.0  ;;  %v1908_v28 = vmul.f32 %v7092_v25, %v1833_v16 }
 0x2a6   :  { %v2312_v44 = vpop.f32.mrb[38].mxu1 }
 0x2a7   :  { %v2313_v30 = vadd.f32 %v8959_v12, %v2312_v44  ;;  %v6246_v54 = vpop.f32.mrb[39].mxu1  ;;  %6404 = vmatmul.mubr.msk.f32.gmra.mrb[144].mxu1 %vm784_vm2, %v1908_v28  ;;  %6483 = vmatmul.mubr.msk.f32.gmra.mrb[186].mxu0 %vm784_vm2, %v2609_v7 }
 0x2a8   :  { %v7094_v50 = vpop.eup %7093  ;;  %6406 = vmatprep.mubr.msk.f32.mxu1 %vm7254_vm0, %v11316_v10  ;;  %6485 = vmatprep.mubr.msk.f32.mxu0 %vm7254_vm0, %v11316_v10 }
 0x2a9   :  { %v2610_v60 = vmax.f32 %v2313_v30, 0.0  ;;  %v1909_v13 = vmul.f32 %v7094_v50, %v1834_v62 }
 0x2aa   :  { %v2317_v35 = vpop.f32.mrb[40].mxu1 }
 0x2ab   :  { %v2318_v57 = vadd.f32 %v8959_v12, %v2317_v35  ;;  %v6249_v14 = vpop.f32.mrb[41].mxu1  ;;  %6407 = vmatmul.mubr.msk.f32.gmra.mrb[146].mxu1 %vm784_vm2, %v1909_v13  ;;  %6486 = vmatmul.mubr.msk.f32.gmra.mrb[188].mxu0 %vm784_vm2, %v2610_v60 }
 0x2ac   :  { %v7096_v26 = vpop.eup %7095  ;;  %6409 = vmatprep.mubr.msk.f32.mxu1 %vm7254_vm0, %v11316_v10  ;;  %6488 = vmatprep.mubr.msk.f32.mxu0 %vm7254_vm0, %v11316_v10 }
 0x2ad   :  { %v2611_v31 = vmax.f32 %v2318_v57, 0.0  ;;  %v1910_v5 = vmul.f32 %v7096_v26, %v1835_v51 }
 0x2ae   :  { %v2322_v45 = vpop.f32.mrb[42].mxu1 }
 0x2af   :  { %v2323_v36 = vadd.f32 %v8959_v12, %v2322_v45  ;;  %v6252_v15 = vpop.f32.mrb[43].mxu1  ;;  %6410 = vmatmul.mubr.msk.f32.gmra.mrb[148].mxu1 %vm784_vm2, %v1910_v5  ;;  %6489 = vmatmul.mubr.msk.f32.gmra.mrb[190].mxu0 %vm784_vm2, %v2611_v31 }
 0x2b0   :  { %6491 = vmatprep.mubr.msk.f32.mxu0 %vm7254_vm0, %v11316_v10  ;;  %6672 = vmatprep.mubr.msk.f32.mxu1 %vm7254_vm0, %v11316_v10 }
 0x2b1   :  { %v2612_v16 = vmax.f32 %v2323_v36, 0.0 }
 0x2b2   :  { %v2327_v53 = vpop.f32.mrb[44].mxu1 }
 0x2b3   :  { %v2328_v38 = vadd.f32 %v8959_v12, %v2327_v53  ;;  %v6255_v25 = vpop.f32.mrb[45].mxu1  ;;  %6492 = vmatmul.mubr.msk.f32.gmra.mrb[192].mxu0 %vm784_vm2, %v2612_v16 }
 0x2b4   :  { %6494 = vmatprep.mubr.msk.f32.mxu0 %vm7254_vm0, %v11316_v10 }
 0x2b5   :  { %v2613_v7 = vmax.f32 %v2328_v38, 0.0 }
 0x2b6   :  { %v2332_v28 = vpop.f32.mrb[46].mxu1 }
 0x2b7   :  { %v2333_v44 = vadd.f32 %v8959_v12, %v2332_v28  ;;  %v6258_v62 = vpop.f32.mrb[47].mxu1  ;;  %6495 = vmatmul.mubr.msk.f32.gmra.mrb[194].mxu0 %vm784_vm2, %v2613_v7 }
 0x2b8   :  { %6497 = vmatprep.mubr.msk.f32.mxu0 %vm7254_vm0, %v11316_v10  ;;  %v4551_v62 = vld [vmem:[%s11204_s7 + $0x28] sm:$0xff] }
 0x2b9   :  { %v2614_v30 = vmax.f32 %v2333_v44, 0.0  ;;  %v4550_v44 = vld [vmem:[%s11204_s7 + $0x20] sm:$0xff] }
 0x2ba   :  { %v2337_v54 = vpop.f32.mrb[48].mxu1 }
 0x2bb   :  { %v2338_v50 = vadd.f32 %v8959_v12, %v2337_v54  ;;  %v6261_v60 = vpop.f32.mrb[49].mxu1  ;;  %6498 = vmatmul.mubr.msk.f32.gmra.mrb[196].mxu0 %vm784_vm2, %v2614_v30  ;;  %v6931_v54 = vpack.c.bf16 %v4551_v62, %v4550_v44 }
 0x2bc   :  { %6500 = vmatprep.mubr.msk.f32.mxu0 %vm7254_vm0, %v11316_v10 }
 0x2bd   :  { %v2615_v13 = vmax.f32 %v2338_v50, 0.0  ;;  %6942 = vmatpush3.bf16.msra.mxu1 %v6931_v54  ;;  %6932 = vmatpush3.bf16.msra.mxu0 %v6931_v54 }
 0x2be   :  { %v2342_v35 = vpop.f32.mrb[50].mxu1  ;;  %6939 = vmatprep.subr.bf16.mxu1 %v11320_v17  ;;  %6933 = vmatprep.subr.bf16.mxu0 %v11320_v17 }
 0x2bf   :  { %v2343_v51 = vadd.f32 %v8959_v12, %v2342_v35  ;;  %v6264_v57 = vpop.f32.mrb[51].mxu1  ;;  %6501 = vmatmul.mubr.msk.f32.gmra.mrb[198].mxu0 %vm784_vm2, %v2615_v13 }
 0x2c0   :  { %6503 = vmatprep.mubr.msk.f32.mxu0 %vm7254_vm0, %v11316_v10 }
 0x2c1   :  { %v2616_v14 = vmax.f32 %v2343_v51, 0.0 }
 0x2c2   :  { %v2347_v26 = vpop.f32.mrb[52].mxu1 }
 0x2c3   :  { %v2348_v31 = vadd.f32 %v8959_v12, %v2347_v26  ;;  %v6267_v5 = vpop.f32.mrb[53].mxu1  ;;  %6504 = vmatmul.mubr.msk.f32.gmra.mrb[200].mxu0 %vm784_vm2, %v2616_v14 }
 0x2c4   :  { %6506 = vmatprep.mubr.msk.f32.mxu0 %vm7254_vm0, %v11316_v10 }
 0x2c5   :  { %v2617_v45 = vmax.f32 %v2348_v31, 0.0 }
 0x2c6   :  { %v2352_v36 = vpop.f32.mrb[54].mxu1 }
 0x2c7   :  { %v2353_v15 = vadd.f32 %v8959_v12, %v2352_v36  ;;  %v6270_v16 = vpop.f32.mrb[55].mxu1  ;;  %6507 = vmatmul.mubr.msk.f32.gmra.mrb[202].mxu0 %vm784_vm2, %v2617_v45 }
 0x2c8   :  { %6509 = vmatprep.mubr.msk.f32.mxu0 %vm7254_vm0, %v11316_v10 }
 0x2c9   :  { %v2618_v53 = vmax.f32 %v2353_v15, 0.0 }
 0x2ca   :  { %v2357_v38 = vpop.f32.mrb[56].mxu1 }
 0x2cb   :  { %v2358_v25 = vadd.f32 %v8959_v12, %v2357_v38  ;;  %v6273_v7 = vpop.f32.mrb[57].mxu1  ;;  %6510 = vmatmul.mubr.msk.f32.gmra.mrb[204].mxu0 %vm784_vm2, %v2618_v53 }
 0x2cc   :  { %6512 = vmatprep.mubr.msk.f32.mxu0 %vm7254_vm0, %v11316_v10 }
 0x2cd   :  { %v2619_v28 = vmax.f32 %v2358_v25, 0.0 }
 0x2ce   :  { %v2362_v30 = vpop.f32.mrb[58].mxu1 }
 0x2cf   :  { %v2363_v50 = vadd.f32 %v8959_v12, %v2362_v30  ;;  %v6276_v60 = vpop.f32.mrb[59].mxu1  ;;  %6513 = vmatmul.mubr.msk.f32.gmra.mrb[206].mxu0 %vm784_vm2, %v2619_v28 }
 0x2d0   :  { %6515 = vmatprep.mubr.msk.f32.mxu0 %vm7254_vm0, %v11316_v10 }
 0x2d1   :  { %v2620_v13 = vmax.f32 %v2363_v50, 0.0 }
 0x2d2   :  { %v2367_v35 = vpop.f32.mrb[60].mxu1 }
 0x2d3   :  { %v2368_v51 = vadd.f32 %v8959_v12, %v2367_v35  ;;  %v6279_v57 = vpop.f32.mrb[61].mxu1  ;;  %6516 = vmatmul.mubr.msk.f32.gmra.mrb[208].mxu0 %vm784_vm2, %v2620_v13 }
 0x2d4   :  { %6518 = vmatprep.mubr.msk.f32.mxu0 %vm7254_vm0, %v11316_v10 }
 0x2d5   :  { %v2621_v14 = vmax.f32 %v2368_v51, 0.0 }
 0x2d6   :  { %v2372_v26 = vpop.f32.mrb[62].mxu1 }
 0x2d7   :  { %v2373_v31 = vadd.f32 %v8959_v12, %v2372_v26  ;;  %v6282_v5 = vpop.f32.mrb[63].mxu1  ;;  %6519 = vmatmul.mubr.msk.f32.gmra.mrb[210].mxu0 %vm784_vm2, %v2621_v14 }
 0x2d8   :  { %6521 = vmatprep.mubr.msk.f32.mxu0 %vm7254_vm0, %v11316_v10 }
 0x2d9   :  { %v2622_v45 = vmax.f32 %v2373_v31, 0.0 }
 0x2da   :  { %v2377_v17 = vpop.f32.mrb[64].mxu1 }
 0x2db   :  { %v2378_v36 = vadd.f32 %v8959_v12, %v2377_v17  ;;  %v6285_v15 = vpop.f32.mrb[65].mxu1  ;;  %6522 = vmatmul.mubr.msk.f32.gmra.mrb[212].mxu0 %vm784_vm2, %v2622_v45 }
 0x2dc   :  { %6524 = vmatprep.mubr.msk.f32.mxu0 %vm7254_vm0, %v11316_v10 }
 0x2dd   :  { %v2623_v16 = vmax.f32 %v2378_v36, 0.0 }
 0x2de   :  { %v2382_v53 = vpop.f32.mrb[66].mxu1 }
 0x2df   :  { %v2383_v38 = vadd.f32 %v8959_v12, %v2382_v53  ;;  %v6288_v25 = vpop.f32.mrb[67].mxu1  ;;  %6525 = vmatmul.mubr.msk.f32.gmra.mrb[214].mxu0 %vm784_vm2, %v2623_v16 }
 0x2e0   :  { %6527 = vmatprep.mubr.msk.f32.mxu0 %vm7254_vm0, %v11316_v10 }
 0x2e1   :  { %v2624_v7 = vmax.f32 %v2383_v38, 0.0 }
 0x2e2   :  { %v2387_v28 = vpop.f32.mrb[68].mxu1 }
 0x2e3   :  { %v2388_v44 = vadd.f32 %v8959_v12, %v2387_v28  ;;  %v6291_v62 = vpop.f32.mrb[69].mxu1  ;;  %6528 = vmatmul.mubr.msk.f32.gmra.mrb[216].mxu0 %vm784_vm2, %v2624_v7 }
 0x2e4   :  { %6530 = vmatprep.mubr.msk.f32.mxu0 %vm7254_vm0, %v11316_v10 }
 0x2e5   :  { %v2625_v30 = vmax.f32 %v2388_v44, 0.0 }
 0x2e6   :  { %v2392_v54 = vpop.f32.mrb[70].mxu1 }
 0x2e7   :  { %v2393_v50 = vadd.f32 %v8959_v12, %v2392_v54  ;;  %v6294_v60 = vpop.f32.mrb[71].mxu1  ;;  %6531 = vmatmul.mubr.msk.f32.gmra.mrb[218].mxu0 %vm784_vm2, %v2625_v30 }
 0x2e8   :  { %6533 = vmatprep.mubr.msk.f32.mxu0 %vm7254_vm0, %v11316_v10 }
 0x2e9   :  { %v2626_v13 = vmax.f32 %v2393_v50, 0.0 }
 0x2ea   :  { %v2397_v35 = vpop.f32.mrb[72].mxu1 }
 0x2eb   :  { %v2398_v51 = vadd.f32 %v8959_v12, %v2397_v35  ;;  %v6297_v57 = vpop.f32.mrb[73].mxu1  ;;  %6534 = vmatmul.mubr.msk.f32.gmra.mrb[220].mxu0 %vm784_vm2, %v2626_v13 }
 0x2ec   :  { %6536 = vmatprep.mubr.msk.f32.mxu0 %vm7254_vm0, %v11316_v10 }
 0x2ed   :  { %v2627_v14 = vmax.f32 %v2398_v51, 0.0  ;;  %v9323_v51 = vld [vmem:[%s11205_s4] ss:$0 sm:$0xff] }
 0x2ee   :  { %v2402_v26 = vpop.f32.mrb[74].mxu1 }
 0x2ef   :  { %v2403_v31 = vadd.f32 %v8959_v12, %v2402_v26  ;;  %v6300_v5 = vpop.f32.mrb[75].mxu1  ;;  %6537 = vmatmul.mubr.msk.f32.gmra.mrb[222].mxu0 %vm784_vm2, %v2627_v14 }
 0x2f0   :  { %6539 = vmatprep.mubr.msk.f32.mxu0 %vm7254_vm0, %v11316_v10 }
 0x2f1   :  { %v2628_v45 = vmax.f32 %v2403_v31, 0.0 }
 0x2f2   :  { %v2407_v17 = vpop.f32.mrb[76].mxu1 }
 0x2f3   :  { %v2408_v36 = vadd.f32 %v8959_v12, %v2407_v17  ;;  %v6303_v15 = vpop.f32.mrb[77].mxu1  ;;  %6540 = vmatmul.mubr.msk.f32.gmra.mrb[224].mxu0 %vm784_vm2, %v2628_v45 }
 0x2f4   :  { %6542 = vmatprep.mubr.msk.f32.mxu0 %vm7254_vm0, %v11316_v10 }
 0x2f5   :  { %v2629_v16 = vmax.f32 %v2408_v36, 0.0 }
 0x2f6   :  { %v2412_v53 = vpop.f32.mrb[78].mxu1 }
 0x2f7   :  { %v2413_v38 = vadd.f32 %v8959_v12, %v2412_v53  ;;  %v6306_v25 = vpop.f32.mrb[79].mxu1  ;;  %6543 = vmatmul.mubr.msk.f32.gmra.mrb[226].mxu0 %vm784_vm2, %v2629_v16 }
 0x2f8   :  { %6545 = vmatprep.mubr.msk.f32.mxu0 %vm7254_vm0, %v11316_v10 }
 0x2f9   :  { %v2630_v7 = vmax.f32 %v2413_v38, 0.0 }
 0x2fa   :  { %v2417_v28 = vpop.f32.mrb[80].mxu1 }
 0x2fb   :  { %v2418_v44 = vadd.f32 %v8959_v12, %v2417_v28  ;;  %v6309_v62 = vpop.f32.mrb[81].mxu1  ;;  %6546 = vmatmul.mubr.msk.f32.gmra.mrb[228].mxu0 %vm784_vm2, %v2630_v7 }
 0x2fc   :  { %6548 = vmatprep.mubr.msk.f32.mxu0 %vm7254_vm0, %v11316_v10 }
 0x2fd   :  { %v2631_v30 = vmax.f32 %v2418_v44, 0.0 }
 0x2fe   :  { %v2422_v54 = vpop.f32.mrb[82].mxu1 }
 0x2ff   :  { %v2423_v50 = vadd.f32 %v8959_v12, %v2422_v54  ;;  %v6312_v60 = vpop.f32.mrb[83].mxu1  ;;  %6549 = vmatmul.mubr.msk.f32.gmra.mrb[230].mxu0 %vm784_vm2, %v2631_v30 }
 0x300   :  { %6551 = vmatprep.mubr.msk.f32.mxu0 %vm7254_vm0, %v11316_v10 }
 0x301   :  { %v2632_v13 = vmax.f32 %v2423_v50, 0.0 }
 0x302   :  { %v2427_v35 = vpop.f32.mrb[84].mxu1 }
 0x303   :  { %v2428_v57 = vadd.f32 %v9323_v51, %v2427_v35  ;;  %v6315_v14 = vpop.f32.mrb[85].mxu1  ;;  %6552 = vmatmul.mubr.msk.f32.gmra.mrb[232].mxu0 %vm784_vm2, %v2632_v13  ;;  %v4552_v35 = vld [vmem:[%s11204_s7 + $0x30] sm:$0xff] }
 0x304   :  { %6554 = vmatprep.mubr.msk.f32.mxu0 %vm7254_vm0, %v11316_v10 }
 0x305   :  { %v2633_v12 = vmax.f32 %v2428_v57, 0.0  ;;  %v4553_v57 = vld [vmem:[%s11204_s7 + $0x38] sm:$0xff] }
 0x306   :  { %v2432_v26 = vpop.f32.mrb[86].mxu1 }
 0x307   :  { %v2433_v31 = vadd.f32 %v9323_v51, %v2432_v26  ;;  %v6318_v5 = vpop.f32.mrb[87].mxu1  ;;  %6555 = vmatmul.mubr.msk.f32.gmra.mrb[234].mxu0 %vm784_vm2, %v2633_v12  ;;  %v6934_v12 = vpack.c.bf16 %v4553_v57, %v4552_v35 }
 0x308   :  { %6557 = vmatprep.mubr.msk.f32.mxu0 %vm7254_vm0, %v11316_v10 }
 0x309   :  { %v2634_v45 = vmax.f32 %v2433_v31, 0.0  ;;  %6943 = vmatpush3.bf16.msra.mxu1 %v6934_v12  ;;  %6935 = vmatpush3.bf16.msra.mxu0 %v6934_v12 }
 0x30a   :  { %v2437_v17 = vpop.f32.mrb[88].mxu1 }
 0x30b   :  { %v2438_v36 = vadd.f32 %v9323_v51, %v2437_v17  ;;  %v6321_v15 = vpop.f32.mrb[89].mxu1  ;;  %6558 = vmatmul.mubr.msk.f32.gmra.mrb[236].mxu0 %vm784_vm2, %v2634_v45 }
 0x30c   :  { %6560 = vmatprep.mubr.msk.f32.mxu0 %vm7254_vm0, %v11316_v10 }
 0x30d   :  { %v2635_v16 = vmax.f32 %v2438_v36, 0.0 }
 0x30e   :  { %v2442_v53 = vpop.f32.mrb[90].mxu1 }
 0x30f   :  { %v2443_v38 = vadd.f32 %v9323_v51, %v2442_v53  ;;  %v6324_v25 = vpop.f32.mrb[91].mxu1  ;;  %6561 = vmatmul.mubr.msk.f32.gmra.mrb[238].mxu0 %vm784_vm2, %v2635_v16 }
 0x310   :  { %6563 = vmatprep.mubr.msk.f32.mxu0 %vm7254_vm0, %v11316_v10 }
 0x311   :  { %v2636_v7 = vmax.f32 %v2443_v38, 0.0 }
 0x312   :  { %v2447_v28 = vpop.f32.mrb[92].mxu1 }
 0x313   :  { %v2448_v44 = vadd.f32 %v9323_v51, %v2447_v28  ;;  %v6327_v62 = vpop.f32.mrb[93].mxu1  ;;  %6564 = vmatmul.mubr.msk.f32.gmra.mrb[240].mxu0 %vm784_vm2, %v2636_v7 }
 0x314   :  { %6566 = vmatprep.mubr.msk.f32.mxu0 %vm7254_vm0, %v11316_v10 }
 0x315   :  { %v2637_v30 = vmax.f32 %v2448_v44, 0.0 }
 0x316   :  { %v2452_v54 = vpop.f32.mrb[94].mxu1 }
 0x317   :  { %v2453_v50 = vadd.f32 %v9323_v51, %v2452_v54  ;;  %v6330_v60 = vpop.f32.mrb[95].mxu1  ;;  %6567 = vmatmul.mubr.msk.f32.gmra.mrb[242].mxu0 %vm784_vm2, %v2637_v30 }
 0x318   :  { %6569 = vmatprep.mubr.msk.f32.mxu0 %vm7254_vm0, %v11316_v10 }
 0x319   :  { %v2638_v13 = vmax.f32 %v2453_v50, 0.0 }
 0x31a   :  { %v2457_v14 = vpop.f32.mrb[96].mxu1 }
 0x31b   :  { %v2458_v26 = vadd.f32 %v9323_v51, %v2457_v14  ;;  %v6333_v31 = vpop.f32.mrb[97].mxu1  ;;  %6570 = vmatmul.mubr.msk.f32.gmra.mrb[244].mxu0 %vm784_vm2, %v2638_v13 }
 0x31c   :  { %6572 = vmatprep.mubr.msk.f32.mxu0 %vm7254_vm0, %v11316_v10 }
 0x31d   :  { %v2639_v5 = vmax.f32 %v2458_v26, 0.0 }
 0x31e   :  { %v2462_v45 = vpop.f32.mrb[98].mxu1 }
 0x31f   :  { %v2463_v17 = vadd.f32 %v9323_v51, %v2462_v45  ;;  %v6336_v36 = vpop.f32.mrb[99].mxu1  ;;  %6573 = vmatmul.mubr.msk.f32.gmra.mrb[246].mxu0 %vm784_vm2, %v2639_v5 }
 0x320   :  { %6575 = vmatprep.mubr.msk.f32.mxu0 %vm7254_vm0, %v11316_v10  ;;  %v9388_v36 = vld [vmem:[%s11206_s6] ss:$0 sm:$0xff] }
 0x321   :  { %v2640_v15 = vmax.f32 %v2463_v17, 0.0 }
 0x322   :  { %v2467_v16 = vpop.f32.mrb[100].mxu1 }
 0x323   :  { %v2468_v53 = vadd.f32 %v9323_v51, %v2467_v16  ;;  %v6339_v38 = vpop.f32.mrb[101].mxu1  ;;  %6576 = vmatmul.mubr.msk.f32.gmra.mrb[248].mxu0 %vm784_vm2, %v2640_v15 }
 0x324   :  { %6578 = vmatprep.mubr.msk.f32.mxu0 %vm7254_vm0, %v11316_v10 }
 0x325   :  { %v2641_v25 = vmax.f32 %v2468_v53, 0.0 }
 0x326   :  { %v2472_v7 = vpop.f32.mrb[102].mxu1 }
 0x327   :  { %v2473_v28 = vadd.f32 %v9323_v51, %v2472_v7  ;;  %v6342_v44 = vpop.f32.mrb[103].mxu1  ;;  %6579 = vmatmul.mubr.msk.f32.gmra.mrb[250].mxu0 %vm784_vm2, %v2641_v25 }
 0x328   :  { %6581 = vmatprep.mubr.msk.f32.mxu0 %vm7254_vm0, %v11316_v10  ;;  %v11338_v44 = vld [vmem:[#allocation3_spill] sm:$0xff] }
 0x329   :  { %v2642_v62 = vmax.f32 %v2473_v28, 0.0 }
 0x32a   :  { %v2477_v30 = vpop.f32.mrb[104].mxu1 }
 0x32b   :  { %v2478_v54 = vadd.f32 %v9323_v51, %v2477_v30  ;;  %v6345_v50 = vpop.f32.mrb[105].mxu1  ;;  %6582 = vmatmul.mubr.msk.f32.gmra.mrb[252].mxu0 %vm784_vm2, %v2642_v62 }
 0x32c   :  { %6584 = vmatprep.mubr.msk.f32.mxu0 %vm7254_vm0, %v11316_v10 }
 0x32d   :  { %v2643_v60 = vmax.f32 %v2478_v54, 0.0 }
 0x32e   :  { %v2482_v13 = vpop.f32.mrb[106].mxu1 }
 0x32f   :  { %v2483_v35 = vadd.f32 %v9323_v51, %v2482_v13  ;;  %v6348_v57 = vpop.f32.mrb[107].mxu1  ;;  %6585 = vmatmul.mubr.msk.f32.gmra.mrb[254].mxu0 %vm784_vm2, %v2643_v60 }
 0x330   :  { %6587 = vmatprep.mubr.msk.f32.mxu0 %vm7254_vm0, %v11316_v10 }
 0x331   :  { %v2644_v14 = vmax.f32 %v2483_v35, 0.0 }
 0x332   :  { %v2487_v12 = vpop.f32.mrb[108].mxu1  ;;  %v9379_v26 = vpop.f32.mrb[150].mxu0 }
 0x333   :  { %11337 = vst [vmem:[#allocation35_spill] sm:$0xff] %v9379_v26  ;;  %v2488_v31 = vadd.f32 %v9323_v51, %v2487_v12  ;;  %v6351_v5 = vpop.f32.mrb[109].mxu1  ;;  %v6430_v45 = vpop.f32.mrb[151].mxu0  ;;  %6588 = vmatmul.mubr.msk.f32.gmra.mrb[0].mxu0 %vm784_vm2, %v2644_v14 }
 0x334   :  { %6590 = vmatprep.mubr.msk.f32.mxu0 %vm7254_vm0, %v11316_v10 }
 0x335   :  { %v2645_v17 = vmax.f32 %v2488_v31, 0.0  ;;  %v11339_v31 = vld [vmem:[#allocation4_spill] sm:$0xff] }
 0x336   :  { %v2492_v15 = vpop.f32.mrb[110].mxu1  ;;  %v2977_v16 = vpop.f32.mrb[152].mxu0 }
 0x337   :  { %v2493_v53 = vadd.f32 %v9323_v51, %v2492_v15  ;;  %v2978_v38 = vadd.f32 %v9388_v36, %v2977_v16  ;;  %v6354_v25 = vpop.f32.mrb[111].mxu1  ;;  %v6433_v7 = vpop.f32.mrb[153].mxu0  ;;  %6591 = vmatmul.mubr.msk.f32.gmra.mrb[2].mxu0 %vm784_vm2, %v2645_v17 }
 0x338   :  { %6593 = vmatprep.mubr.msk.f32.mxu0 %vm7254_vm0, %v11316_v10 }
 0x339   :  { %v2646_v28 = vmax.f32 %v2493_v53, 0.0  ;;  %v9396_v62 = vadd.f32 %v2978_v38, %v11338_v44 }
 0x33a   :  { %v2497_v30 = vpop.f32.mrb[112].mxu1  ;;  %v2982_v54 = vpop.f32.mrb[154].mxu0 }
 0x33b   :  { %v2498_v50 = vadd.f32 %v9323_v51, %v2497_v30  ;;  %v2983_v60 = vadd.f32 %v9388_v36, %v2982_v54  ;;  %v6357_v13 = vpop.f32.mrb[113].mxu1  ;;  %v6436_v35 = vpop.f32.mrb[155].mxu0  ;;  %6594 = vmatmul.mubr.msk.f32.gmra.mrb[4].mxu0 %vm784_vm2, %v2646_v28  ;;  %v3424_v57 = vsel %vm784_vm2, %v9396_v62, 0.0  ;;  %v3722_v14 = vmul.f32 %v9396_v62, %v9396_v62  ;;  %v11340_v30 = vld [vmem:[#allocation5_spill] sm:$0xff] }
 0x33c   :  { %3425 = vadd.xlane.f32.xlu0 %v3424_v57  ;;  %6596 = vmatprep.mubr.msk.f32.mxu0 %vm7254_vm0, %v11316_v10 }
 0x33d   :  { %v2647_v12 = vmax.f32 %v2498_v50, 0.0  ;;  %v9408_v5 = vadd.f32 %v2983_v60, %v11339_v31  ;;  %v3799_v45 = vsel %vm784_vm2, %v3722_v14, 0.0 }
 0x33e   :  { %v2502_v17 = vpop.f32.mrb[114].mxu1  ;;  %3800 = vadd.xlane.f32.xlu1 %v3799_v45  ;;  %v2987_v15 = vpop.f32.mrb[156].mxu0 }
 0x33f   :  { %v2503_v16 = vadd.f32 %v9323_v51, %v2502_v17  ;;  %v2988_v53 = vadd.f32 %v9388_v36, %v2987_v15  ;;  %v6360_v38 = vpop.f32.mrb[115].mxu1  ;;  %v6439_v25 = vpop.f32.mrb[157].mxu0  ;;  %6597 = vmatmul.mubr.msk.f32.gmra.mrb[6].mxu0 %vm784_vm2, %v2647_v12  ;;  %v3427_v7 = vsel %vm784_vm2, %v9408_v5, 0.0  ;;  %v3723_v28 = vmul.f32 %v9408_v5, %v9408_v5  ;;  %v11341_v15 = vld [vmem:[#allocation6_spill] sm:$0xff] }
 0x340   :  { %3428 = vadd.xlane.f32.xlu0 %v3427_v7  ;;  %6599 = vmatprep.mubr.msk.f32.mxu0 %vm7254_vm0, %v11316_v10 }
 0x341   :  { %v2648_v44 = vmax.f32 %v2503_v16, 0.0  ;;  %v9421_v54 = vadd.f32 %v2988_v53, %v11340_v30  ;;  %v3802_v50 = vsel %vm784_vm2, %v3723_v28, 0.0 }
 0x342   :  { %v2507_v60 = vpop.f32.mrb[116].mxu1  ;;  %3803 = vadd.xlane.f32.xlu1 %v3802_v50  ;;  %v2992_v13 = vpop.f32.mrb[158].mxu0 }
 0x343   :  { %v2508_v35 = vadd.f32 %v9323_v51, %v2507_v60  ;;  %v2993_v57 = vadd.f32 %v9388_v36, %v2992_v13  ;;  %v6363_v14 = vpop.f32.mrb[117].mxu1  ;;  %v6442_v12 = vpop.f32.mrb[159].mxu0  ;;  %6600 = vmatmul.mubr.msk.f32.gmra.mrb[8].mxu0 %vm784_vm2, %v2648_v44  ;;  %v3430_v31 = vsel %vm784_vm2, %v9421_v54, 0.0  ;;  %v3724_v45 = vmul.f32 %v9421_v54, %v9421_v54 }
 0x344   :  { %3431 = vadd.xlane.f32.xlu0 %v3430_v31  ;;  %6602 = vmatprep.mubr.msk.f32.mxu0 %vm7254_vm0, %v11316_v10 }
 0x345   :  { %v2649_v17 = vmax.f32 %v2508_v35, 0.0  ;;  %v9434_v16 = vadd.f32 %v2993_v57, %v11341_v15  ;;  %v3805_v53 = vsel %vm784_vm2, %v3724_v45, 0.0  ;;  %v11342_v35 = vld [vmem:[#allocation7_spill] sm:$0xff] }
 0x346   :  { %v2512_v38 = vpop.f32.mrb[118].mxu1  ;;  %3806 = vadd.xlane.f32.xlu1 %v3805_v53  ;;  %v2997_v25 = vpop.f32.mrb[160].mxu0 }
 0x347   :  { %v2513_v7 = vadd.f32 %v9323_v51, %v2512_v38  ;;  %v2998_v28 = vadd.f32 %v9388_v36, %v2997_v25  ;;  %v6366_v44 = vpop.f32.mrb[119].mxu1  ;;  %v6445_v30 = vpop.f32.mrb[161].mxu0  ;;  %6603 = vmatmul.mubr.msk.f32.gmra.mrb[10].mxu0 %vm784_vm2, %v2649_v17  ;;  %v3433_v50 = vsel %vm784_vm2, %v9434_v16, 0.0  ;;  %v3725_v60 = vmul.f32 %v9434_v16, %v9434_v16 }
 0x348   :  { %3434 = vadd.xlane.f32.xlu0 %v3433_v50  ;;  %6605 = vmatprep.mubr.msk.f32.mxu0 %vm7254_vm0, %v11316_v10 }
 0x349   :  { %v2650_v13 = vmax.f32 %v2513_v7, 0.0  ;;  %v9447_v57 = vadd.f32 %v2998_v28, %v11342_v35  ;;  %v3808_v14 = vsel %vm784_vm2, %v3725_v60, 0.0 }
 0x34a   :  { %v2517_v12 = vpop.f32.mrb[120].mxu1  ;;  %3809 = vadd.xlane.f32.xlu1 %v3808_v14  ;;  %v3002_v31 = vpop.f32.mrb[162].mxu0 }
 0x34b   :  { %v2518_v45 = vadd.f32 %v9323_v51, %v2517_v12  ;;  %v3003_v17 = vadd.f32 %v9388_v36, %v3002_v31  ;;  %v6369_v15 = vpop.f32.mrb[121].mxu1  ;;  %v6448_v53 = vpop.f32.mrb[163].mxu0  ;;  %6606 = vmatmul.mubr.msk.f32.gmra.mrb[12].mxu0 %vm784_vm2, %v2650_v13  ;;  %v3436_v38 = vsel %vm784_vm2, %v9447_v57, 0.0  ;;  %v3726_v25 = vmul.f32 %v9447_v57, %v9447_v57 }
 0x34c   :  { %3437 = vadd.xlane.f32.xlu0 %v3436_v38  ;;  %6608 = vmatprep.mubr.msk.f32.mxu0 %vm7254_vm0, %v11316_v10 }
 0x34d   :  { %v2651_v7 = vmax.f32 %v2518_v45, 0.0  ;;  %v9460_v28 = vadd.f32 %v3003_v17, %v7749_v49  ;;  %v3811_v44 = vsel %vm784_vm2, %v3726_v25, 0.0  ;;  %v11343_v45 = vld [vmem:[#allocation8_spill] sm:$0xff] }
 0x34e   :  { %v2522_v30 = vpop.f32.mrb[122].mxu1  ;;  %3812 = vadd.xlane.f32.xlu1 %v3811_v44  ;;  %v3007_v50 = vpop.f32.mrb[164].mxu0 }
 0x34f   :  { %v2523_v60 = vadd.f32 %v9323_v51, %v2522_v30  ;;  %v3008_v13 = vadd.f32 %v9388_v36, %v3007_v50  ;;  %v6372_v35 = vpop.f32.mrb[123].mxu1  ;;  %v6451_v14 = vpop.f32.mrb[165].mxu0  ;;  %6609 = vmatmul.mubr.msk.f32.gmra.mrb[14].mxu0 %vm784_vm2, %v2651_v7  ;;  %v3439_v12 = vsel %vm784_vm2, %v9460_v28, 0.0  ;;  %v3727_v49 = vmul.f32 %v9460_v28, %v9460_v28 }
 0x350   :  { %3440 = vadd.xlane.f32.xlu0 %v3439_v12  ;;  %6611 = vmatprep.mubr.msk.f32.mxu0 %vm7254_vm0, %v11316_v10  ;;  %v11344_v35 = vld [vmem:[#allocation9_spill] sm:$0xff] }
 0x351   :  { %v2652_v31 = vmax.f32 %v2523_v60, 0.0  ;;  %v9473_v17 = vadd.f32 %v3008_v13, %v11343_v45  ;;  %v3814_v15 = vsel %vm784_vm2, %v3727_v49, 0.0 }
 0x352   :  { %v2527_v53 = vpop.f32.mrb[124].mxu1  ;;  %3815 = vadd.xlane.f32.xlu1 %v3814_v15  ;;  %v3012_v38 = vpop.f32.mrb[166].mxu0 }
 0x353   :  { %v2528_v25 = vadd.f32 %v9323_v51, %v2527_v53  ;;  %v3013_v7 = vadd.f32 %v9388_v36, %v3012_v38  ;;  %v6375_v44 = vpop.f32.mrb[125].mxu1  ;;  %v6454_v30 = vpop.f32.mrb[167].mxu0  ;;  %6612 = vmatmul.mubr.msk.f32.gmra.mrb[16].mxu0 %vm784_vm2, %v2652_v31  ;;  %v3442_v50 = vsel %vm784_vm2, %v9473_v17, 0.0  ;;  %v3728_v60 = vmul.f32 %v9473_v17, %v9473_v17 }
 0x354   :  { %3443 = vadd.xlane.f32.xlu0 %v3442_v50  ;;  %6614 = vmatprep.mubr.msk.f32.mxu0 %vm7254_vm0, %v11316_v10  ;;  %v11345_v30 = vld [vmem:[#allocation10_spill] sm:$0xff] }
 0x355   :  { %v2653_v13 = vmax.f32 %v2528_v25, 0.0  ;;  %v9486_v14 = vadd.f32 %v3013_v7, %v11344_v35  ;;  %v3817_v12 = vsel %vm784_vm2, %v3728_v60, 0.0 }
 0x356   :  { %v2532_v49 = vpop.f32.mrb[126].mxu1  ;;  %3818 = vadd.xlane.f32.xlu1 %v3817_v12  ;;  %v3017_v45 = vpop.f32.mrb[168].mxu0 }
 0x357   :  { %v2533_v31 = vadd.f32 %v9323_v51, %v2532_v49  ;;  %v3018_v15 = vadd.f32 %v9388_v36, %v3017_v45  ;;  %v6378_v53 = vpop.f32.mrb[127].mxu1  ;;  %v6457_v38 = vpop.f32.mrb[169].mxu0  ;;  %6615 = vmatmul.mubr.msk.f32.gmra.mrb[18].mxu0 %vm784_vm2, %v2653_v13  ;;  %v3445_v44 = vsel %vm784_vm2, %v9486_v14, 0.0  ;;  %v3729_v25 = vmul.f32 %v9486_v14, %v9486_v14 }
 0x358   :  { %3446 = vadd.xlane.f32.xlu0 %v3445_v44  ;;  %6617 = vmatprep.mubr.msk.f32.mxu0 %vm7254_vm0, %v11316_v10  ;;  %v11346_v44 = vld [vmem:[#allocation11_spill] sm:$0xff] }
 0x359   :  { %v2654_v7 = vmax.f32 %v2533_v31, 0.0  ;;  %v9499_v50 = vadd.f32 %v3018_v15, %v11345_v30  ;;  %v3820_v60 = vsel %vm784_vm2, %v3729_v25, 0.0 }
 0x35a   :  { %v2537_v35 = vpop.f32.mrb[128].mxu1  ;;  %3821 = vadd.xlane.f32.xlu1 %v3820_v60  ;;  %v3022_v12 = vpop.f32.mrb[170].mxu0 }
 0x35b   :  { %v2538_v13 = vadd.f32 %v9323_v51, %v2537_v35  ;;  %v3023_v49 = vadd.f32 %v9388_v36, %v3022_v12  ;;  %v6381_v45 = vpop.f32.mrb[129].mxu1  ;;  %v6460_v53 = vpop.f32.mrb[171].mxu0  ;;  %6618 = vmatmul.mubr.msk.f32.gmra.mrb[20].mxu0 %vm784_vm2, %v2654_v7  ;;  %v3448_v38 = vsel %vm784_vm2, %v9499_v50, 0.0  ;;  %v3730_v31 = vmul.f32 %v9499_v50, %v9499_v50 }
 0x35c   :  { %3449 = vadd.xlane.f32.xlu0 %v3448_v38  ;;  %6620 = vmatprep.mubr.msk.f32.mxu0 %vm7254_vm0, %v11316_v10 }
 0x35d   :  { %v2655_v15 = vmax.f32 %v2538_v13, 0.0  ;;  %v9512_v25 = vadd.f32 %v3023_v49, %v11346_v44  ;;  %v3823_v30 = vsel %vm784_vm2, %v3730_v31, 0.0  ;;  %v11347_v31 = vld [vmem:[#allocation12_spill] sm:$0xff] }
 0x35e   :  { %v2542_v60 = vpop.f32.mrb[130].mxu1  ;;  %3824 = vadd.xlane.f32.xlu1 %v3823_v30  ;;  %v3027_v35 = vpop.f32.mrb[172].mxu0 }
 0x35f   :  { %v2543_v7 = vadd.f32 %v9323_v51, %v2542_v60  ;;  %v3028_v12 = vadd.f32 %v9388_v36, %v3027_v35  ;;  %v6384_v45 = vpop.f32.mrb[131].mxu1  ;;  %v6463_v53 = vpop.f32.mrb[173].mxu0  ;;  %6621 = vmatmul.mubr.msk.f32.gmra.mrb[22].mxu0 %vm784_vm2, %v2655_v15  ;;  %v3451_v38 = vsel %vm784_vm2, %v9512_v25, 0.0  ;;  %v3731_v13 = vmul.f32 %v9512_v25, %v9512_v25 }
 0x360   :  { %3452 = vadd.xlane.f32.xlu0 %v3451_v38  ;;  %6623 = vmatprep.mubr.msk.f32.mxu0 %vm7254_vm0, %v11316_v10 }
 0x361   :  { %v2656_v49 = vmax.f32 %v2543_v7, 0.0  ;;  %v9525_v44 = vadd.f32 %v3028_v12, %v11347_v31  ;;  %v3826_v30 = vsel %vm784_vm2, %v3731_v13, 0.0  ;;  %v11348_v13 = vld [vmem:[#allocation13_spill] sm:$0xff] }
 0x362   :  { %v2547_v60 = vpop.f32.mrb[132].mxu1  ;;  %3827 = vadd.xlane.f32.xlu1 %v3826_v30  ;;  %v3032_v35 = vpop.f32.mrb[174].mxu0 }
 0x363   :  { %v2548_v15 = vadd.f32 %v9323_v51, %v2547_v60  ;;  %v3033_v45 = vadd.f32 %v9388_v36, %v3032_v35  ;;  %v6387_v53 = vpop.f32.mrb[133].mxu1  ;;  %v6466_v58 = vpop.f32.mrb[175].mxu0  ;;  %6624 = vmatmul.mubr.msk.f32.gmra.mrb[24].mxu0 %vm784_vm2, %v2656_v49  ;;  %v3454_v38 = vsel %vm784_vm2, %v9525_v44, 0.0  ;;  %v3732_v7 = vmul.f32 %v9525_v44, %v9525_v44 }
 0x364   :  { %3455 = vadd.xlane.f32.xlu0 %v3454_v38  ;;  %6626 = vmatprep.mubr.msk.f32.mxu0 %vm7254_vm0, %v11316_v10 }
 0x365   :  { %v2657_v12 = vmax.f32 %v2548_v15, 0.0  ;;  %v9538_v31 = vadd.f32 %v3033_v45, %v11348_v13  ;;  %v3829_v30 = vsel %vm784_vm2, %v3732_v7, 0.0  ;;  %v11349_v7 = vld [vmem:[#allocation14_spill] sm:$0xff] }
 0x366   :  { %v2552_v60 = vpop.f32.mrb[134].mxu1  ;;  %3830 = vadd.xlane.f32.xlu1 %v3829_v30  ;;  %v3037_v58 = vpop.f32.mrb[176].mxu0 }
 0x367   :  { %v2553_v49 = vadd.f32 %v9323_v51, %v2552_v60  ;;  %v3038_v35 = vadd.f32 %v9388_v36, %v3037_v58  ;;  %v6390_v53 = vpop.f32.mrb[135].mxu1  ;;  %v6469_v40 = vpop.f32.mrb[177].mxu0  ;;  %6627 = vmatmul.mubr.msk.f32.gmra.mrb[26].mxu0 %vm784_vm2, %v2657_v12  ;;  %v3457_v38 = vsel %vm784_vm2, %v9538_v31, 0.0  ;;  %v3733_v15 = vmul.f32 %v9538_v31, %v9538_v31 }
 0x368   :  { %3458 = vadd.xlane.f32.xlu0 %v3457_v38  ;;  %6629 = vmatprep.mubr.msk.f32.mxu0 %vm7254_vm0, %v11316_v10 }
 0x369   :  { %v2658_v45 = vmax.f32 %v2553_v49, 0.0  ;;  %v9551_v13 = vadd.f32 %v3038_v35, %v11349_v7  ;;  %v3832_v30 = vsel %vm784_vm2, %v3733_v15, 0.0  ;;  %v11350_v15 = vld [vmem:[#allocation15_spill] sm:$0xff] }
 0x36a   :  { %v2557_v60 = vpop.f32.mrb[136].mxu1  ;;  %3833 = vadd.xlane.f32.xlu1 %v3832_v30  ;;  %v3042_v40 = vpop.f32.mrb[178].mxu0 }
 0x36b   :  { %v2558_v12 = vadd.f32 %v9323_v51, %v2557_v60  ;;  %v3043_v58 = vadd.f32 %v9388_v36, %v3042_v40  ;;  %v6393_v53 = vpop.f32.mrb[137].mxu1  ;;  %v6472_v26 = vpop.f32.mrb[179].mxu0  ;;  %6630 = vmatmul.mubr.msk.f32.gmra.mrb[28].mxu0 %vm784_vm2, %v2658_v45  ;;  %v3460_v38 = vsel %vm784_vm2, %v9551_v13, 0.0  ;;  %v3734_v49 = vmul.f32 %v9551_v13, %v9551_v13 }
 0x36c   :  { %3461 = vadd.xlane.f32.xlu0 %v3460_v38  ;;  %6632 = vmatprep.mubr.msk.f32.mxu0 %vm7254_vm0, %v11316_v10 }
 0x36d   :  { %v2659_v35 = vmax.f32 %v2558_v12, 0.0  ;;  %v9564_v7 = vadd.f32 %v3043_v58, %v11350_v15  ;;  %v3835_v30 = vsel %vm784_vm2, %v3734_v49, 0.0  ;;  %v11351_v49 = vld [vmem:[#allocation16_spill] sm:$0xff] }
 0x36e   :  { %v2562_v60 = vpop.f32.mrb[138].mxu1  ;;  %3836 = vadd.xlane.f32.xlu1 %v3835_v30  ;;  %v3047_v26 = vpop.f32.mrb[180].mxu0 }
 0x36f   :  { %v2563_v45 = vadd.f32 %v9323_v51, %v2562_v60  ;;  %v3048_v40 = vadd.f32 %v9388_v36, %v3047_v26  ;;  %v6396_v53 = vpop.f32.mrb[139].mxu1  ;;  %v6475_v21 = vpop.f32.mrb[181].mxu0  ;;  %6633 = vmatmul.mubr.msk.f32.gmra.mrb[30].mxu0 %vm784_vm2, %v2659_v35  ;;  %v3463_v38 = vsel %vm784_vm2, %v9564_v7, 0.0  ;;  %v3735_v12 = vmul.f32 %v9564_v7, %v9564_v7 }
 0x370   :  { %3464 = vadd.xlane.f32.xlu0 %v3463_v38  ;;  %6635 = vmatprep.mubr.msk.f32.mxu0 %vm7254_vm0, %v11316_v10 }
 0x371   :  { %v2660_v58 = vmax.f32 %v2563_v45, 0.0  ;;  %v9577_v15 = vadd.f32 %v3048_v40, %v11351_v49  ;;  %v3838_v30 = vsel %vm784_vm2, %v3735_v12, 0.0  ;;  %v11352_v12 = vld [vmem:[#allocation17_spill] sm:$0xff] }
 0x372   :  { %v2567_v60 = vpop.f32.mrb[140].mxu1  ;;  %3839 = vadd.xlane.f32.xlu1 %v3838_v30  ;;  %v3052_v21 = vpop.f32.mrb[182].mxu0 }
 0x373   :  { %v2568_v35 = vadd.f32 %v9323_v51, %v2567_v60  ;;  %v3053_v26 = vadd.f32 %v9388_v36, %v3052_v21  ;;  %v6399_v53 = vpop.f32.mrb[141].mxu1  ;;  %v6478_v34 = vpop.f32.mrb[183].mxu0  ;;  %6636 = vmatmul.mubr.msk.f32.gmra.mrb[32].mxu0 %vm784_vm2, %v2660_v58  ;;  %v3466_v38 = vsel %vm784_vm2, %v9577_v15, 0.0  ;;  %v3736_v45 = vmul.f32 %v9577_v15, %v9577_v15 }
 0x374   :  { %3467 = vadd.xlane.f32.xlu0 %v3466_v38  ;;  %6638 = vmatprep.mubr.msk.f32.mxu0 %vm7254_vm0, %v11316_v10 }
 0x375   :  { %v2661_v40 = vmax.f32 %v2568_v35, 0.0  ;;  %v9590_v49 = vadd.f32 %v3053_v26, %v11352_v12  ;;  %v3841_v30 = vsel %vm784_vm2, %v3736_v45, 0.0  ;;  %v11353_v45 = vld [vmem:[#allocation18_spill] sm:$0xff] }
 0x376   :  { %v2572_v60 = vpop.f32.mrb[142].mxu1  ;;  %3842 = vadd.xlane.f32.xlu1 %v3841_v30  ;;  %v3057_v34 = vpop.f32.mrb[184].mxu0 }
 0x377   :  { %v2573_v58 = vadd.f32 %v9323_v51, %v2572_v60  ;;  %v3058_v21 = vadd.f32 %v9388_v36, %v3057_v34  ;;  %v6402_v53 = vpop.f32.mrb[143].mxu1  ;;  %v6481_v2 = vpop.f32.mrb[185].mxu0  ;;  %6639 = vmatmul.mubr.msk.f32.gmra.mrb[34].mxu0 %vm784_vm2, %v2661_v40  ;;  %v3469_v38 = vsel %vm784_vm2, %v9590_v49, 0.0  ;;  %v3737_v35 = vmul.f32 %v9590_v49, %v9590_v49 }
 0x378   :  { %3470 = vadd.xlane.f32.xlu0 %v3469_v38  ;;  %6641 = vmatprep.mubr.msk.f32.mxu0 %vm7254_vm0, %v11316_v10 }
 0x379   :  { %v2662_v26 = vmax.f32 %v2573_v58, 0.0  ;;  %v9603_v12 = vadd.f32 %v3058_v21, %v11353_v45  ;;  %v3844_v30 = vsel %vm784_vm2, %v3737_v35, 0.0  ;;  %v11354_v35 = vld [vmem:[#allocation19_spill] sm:$0xff] }
 0x37a   :  { %v2577_v60 = vpop.f32.mrb[144].mxu1  ;;  %3845 = vadd.xlane.f32.xlu1 %v3844_v30  ;;  %v3062_v2 = vpop.f32.mrb[186].mxu0 }
 0x37b   :  { %v2578_v40 = vadd.f32 %v9323_v51, %v2577_v60  ;;  %v3063_v34 = vadd.f32 %v9388_v36, %v3062_v2  ;;  %v6405_v53 = vpop.f32.mrb[145].mxu1  ;;  %v6484_v0 = vpop.f32.mrb[187].mxu0  ;;  %6642 = vmatmul.mubr.msk.f32.gmra.mrb[36].mxu0 %vm784_vm2, %v2662_v26  ;;  %v3472_v38 = vsel %vm784_vm2, %v9603_v12, 0.0  ;;  %v3738_v58 = vmul.f32 %v9603_v12, %v9603_v12 }
 0x37c   :  { %3473 = vadd.xlane.f32.xlu0 %v3472_v38  ;;  %6644 = vmatprep.mubr.msk.f32.mxu0 %vm7254_vm0, %v11316_v10 }
 0x37d   :  { %v2663_v21 = vmax.f32 %v2578_v40, 0.0  ;;  %v9616_v45 = vadd.f32 %v3063_v34, %v11354_v35  ;;  %v3847_v30 = vsel %vm784_vm2, %v3738_v58, 0.0  ;;  %v11355_v58 = vld [vmem:[#allocation20_spill] sm:$0xff] }
 0x37e   :  { %v2582_v60 = vpop.f32.mrb[146].mxu1  ;;  %3848 = vadd.xlane.f32.xlu1 %v3847_v30  ;;  %v3067_v0 = vpop.f32.mrb[188].mxu0 }
 0x37f   :  { %v2583_v26 = vadd.f32 %v9323_v51, %v2582_v60  ;;  %v3068_v2 = vadd.f32 %v9388_v36, %v3067_v0  ;;  %v6408_v53 = vpop.f32.mrb[147].mxu1  ;;  %v6487_v56 = vpop.f32.mrb[189].mxu0  ;;  %6645 = vmatmul.mubr.msk.f32.gmra.mrb[38].mxu0 %vm784_vm2, %v2663_v21  ;;  %v3475_v38 = vsel %vm784_vm2, %v9616_v45, 0.0  ;;  %v3739_v40 = vmul.f32 %v9616_v45, %v9616_v45 }
 0x380   :  { %3476 = vadd.xlane.f32.xlu0 %v3475_v38  ;;  %6647 = vmatprep.mubr.msk.f32.mxu0 %vm7254_vm0, %v11316_v10 }
 0x381   :  { %v2664_v34 = vmax.f32 %v2583_v26, 0.0  ;;  %v9629_v35 = vadd.f32 %v3068_v2, %v11355_v58  ;;  %v3850_v30 = vsel %vm784_vm2, %v3739_v40, 0.0  ;;  %v11356_v40 = vld [vmem:[#allocation21_spill] sm:$0xff] }
 0x382   :  { %v2587_v60 = vpop.f32.mrb[148].mxu1  ;;  %3851 = vadd.xlane.f32.xlu1 %v3850_v30  ;;  %v3072_v56 = vpop.f32.mrb[190].mxu0 }
 0x383   :  { %v2588_v21 = vadd.f32 %v9323_v51, %v2587_v60  ;;  %v3073_v0 = vadd.f32 %v9388_v36, %v3072_v56  ;;  %v6411_v53 = vpop.f32.mrb[149].mxu1  ;;  %v6490_v48 = vpop.f32.mrb[191].mxu0  ;;  %6648 = vmatmul.mubr.msk.f32.gmra.mrb[40].mxu0 %vm784_vm2, %v2664_v34  ;;  %v3478_v38 = vsel %vm784_vm2, %v9629_v35, 0.0  ;;  %v3740_v26 = vmul.f32 %v9629_v35, %v9629_v35 }
 0x384   :  { %3479 = vadd.xlane.f32.xlu0 %v3478_v38  ;;  %6650 = vmatprep.mubr.msk.f32.mxu0 %vm7254_vm0, %v11316_v10 }
 0x385   :  { %v2665_v2 = vmax.f32 %v2588_v21, 0.0  ;;  %v9642_v58 = vadd.f32 %v3073_v0, %v11356_v40  ;;  %v3853_v51 = vsel %vm784_vm2, %v3740_v26, 0.0  ;;  %v11357_v21 = vld [vmem:[#allocation22_spill] sm:$0xff] }
 0x386   :  { %3854 = vadd.xlane.f32.xlu1 %v3853_v51  ;;  %v3077_v48 = vpop.f32.mrb[192].mxu0 }
 0x387   :  { %v3078_v34 = vadd.f32 %v9388_v36, %v3077_v48  ;;  %v6493_v30 = vpop.f32.mrb[193].mxu0  ;;  %6651 = vmatmul.mubr.msk.f32.gmra.mrb[42].mxu0 %vm784_vm2, %v2665_v2  ;;  %v3481_v60 = vsel %vm784_vm2, %v9642_v58, 0.0  ;;  %v3741_v56 = vmul.f32 %v9642_v58, %v9642_v58  ;;  %v11358_v48 = vld [vmem:[#allocation23_spill] sm:$0xff] }
 0x388   :  { %3482 = vadd.xlane.f32.xlu0 %v3481_v60  ;;  %6669 = vmatprep.mubr.msk.f32.mxu0 %vm7254_vm0, %v11316_v10 }
 0x389   :  { %v9654_v0 = vadd.f32 %v3078_v34, %v11357_v21  ;;  %v3856_v53 = vsel %vm784_vm2, %v3741_v56, 0.0 }
 0x38a   :  { %3857 = vadd.xlane.f32.xlu1 %v3856_v53  ;;  %v3082_v38 = vpop.f32.mrb[194].mxu0 }
 0x38b   :  { %v3083_v26 = vadd.f32 %v9388_v36, %v3082_v38  ;;  %v6496_v2 = vpop.f32.mrb[195].mxu0  ;;  %v3484_v40 = vsel %vm784_vm2, %v9654_v0, 0.0  ;;  %v3742_v51 = vmul.f32 %v9654_v0, %v9654_v0 }
 0x38c   :  { %3485 = vadd.xlane.f32.xlu0 %v3484_v40  ;;  %v11359_v2 = vld [vmem:[#allocation24_spill] sm:$0xff] }
 0x38d   :  { %v9663_v30 = vadd.f32 %v3083_v26, %v11358_v48  ;;  %v3859_v34 = vsel %vm784_vm2, %v3742_v51, 0.0 }
 0x38e   :  { %3860 = vadd.xlane.f32.xlu1 %v3859_v34  ;;  %v3087_v60 = vpop.f32.mrb[196].mxu0 }
 0x38f   :  { %v3088_v56 = vadd.f32 %v9388_v36, %v3087_v60  ;;  %v6499_v21 = vpop.f32.mrb[197].mxu0  ;;  %v3487_v53 = vsel %vm784_vm2, %v9663_v30, 0.0  ;;  %v3743_v38 = vmul.f32 %v9663_v30, %v9663_v30 }
 0x390   :  { %3488 = vadd.xlane.f32.xlu0 %v3487_v53  ;;  %v11360_v21 = vld [vmem:[#allocation25_spill] sm:$0xff] }
 0x391   :  { %v9672_v41 = vadd.f32 %v3088_v56, %v11359_v2  ;;  %v3862_v26 = vsel %vm784_vm2, %v3743_v38, 0.0 }
 0x392   :  { %3863 = vadd.xlane.f32.xlu1 %v3862_v26  ;;  %v3092_v40 = vpop.f32.mrb[198].mxu0 }
 0x393   :  { %v3093_v51 = vadd.f32 %v9388_v36, %v3092_v40  ;;  %v6502_v48 = vpop.f32.mrb[199].mxu0  ;;  %v3490_v34 = vsel %vm784_vm2, %v9672_v41, 0.0  ;;  %v3744_v60 = vmul.f32 %v9672_v41, %v9672_v41 }
 0x394   :  { %3491 = vadd.xlane.f32.xlu0 %v3490_v34  ;;  %v11362_v48 = vld [vmem:[#allocation26_spill] sm:$0xff] }
 0x395   :  { %v9681_v33 = vadd.f32 %v3093_v51, %v11360_v21  ;;  %v3865_v56 = vsel %vm784_vm2, %v3744_v60, 0.0 }
 0x396   :  { %3866 = vadd.xlane.f32.xlu1 %v3865_v56  ;;  %v3097_v53 = vpop.f32.mrb[200].mxu0 }
 0x397   :  { %11361 = vst [vmem:[#allocation36_spill] sm:$0xff] %v9681_v33  ;;  %v3098_v38 = vadd.f32 %v9388_v36, %v3097_v53  ;;  %v6505_v2 = vpop.f32.mrb[201].mxu0  ;;  %v3493_v26 = vsel %vm784_vm2, %v9681_v33, 0.0  ;;  %v3745_v40 = vmul.f32 %v9681_v33, %v9681_v33 }
 0x398   :  { %3494 = vadd.xlane.f32.xlu0 %v3493_v26  ;;  %v11364_v2 = vld [vmem:[#allocation27_spill] sm:$0xff] }
 0x399   :  { %v9690_v23 = vadd.f32 %v3098_v38, %v11362_v48  ;;  %v3868_v51 = vsel %vm784_vm2, %v3745_v40, 0.0 }
 0x39a   :  { %3869 = vadd.xlane.f32.xlu1 %v3868_v51  ;;  %v3102_v34 = vpop.f32.mrb[202].mxu0 }
 0x39b   :  { %11363 = vst [vmem:[#allocation3_spill] sm:$0xff] %v9690_v23  ;;  %v3103_v60 = vadd.f32 %v9388_v36, %v3102_v34  ;;  %v6508_v21 = vpop.f32.mrb[203].mxu0  ;;  %v3496_v56 = vsel %vm784_vm2, %v9690_v23, 0.0  ;;  %v3746_v53 = vmul.f32 %v9690_v23, %v9690_v23 }
 0x39c   :  { %3497 = vadd.xlane.f32.xlu0 %v3496_v56  ;;  %v11366_v21 = vld [vmem:[#allocation28_spill] sm:$0xff] }
 0x39d   :  { %v9699_v33 = vadd.f32 %v3103_v60, %v11364_v2  ;;  %v3871_v38 = vsel %vm784_vm2, %v3746_v53, 0.0 }
 0x39e   :  { %3872 = vadd.xlane.f32.xlu1 %v3871_v38  ;;  %v3107_v26 = vpop.f32.mrb[204].mxu0 }
 0x39f   :  { %11365 = vst [vmem:[#allocation4_spill] sm:$0xff] %v9699_v33  ;;  %v3108_v40 = vadd.f32 %v9388_v36, %v3107_v26  ;;  %v6511_v48 = vpop.f32.mrb[205].mxu0  ;;  %v3499_v51 = vsel %vm784_vm2, %v9699_v33, 0.0  ;;  %v3747_v34 = vmul.f32 %v9699_v33, %v9699_v33 }
 0x3a0   :  { %3500 = vadd.xlane.f32.xlu0 %v3499_v51  ;;  %v11368_v48 = vld [vmem:[#allocation29_spill] sm:$0xff] }
 0x3a1   :  { %v9708_v23 = vadd.f32 %v3108_v40, %v11366_v21  ;;  %v3874_v60 = vsel %vm784_vm2, %v3747_v34, 0.0 }
 0x3a2   :  { %3875 = vadd.xlane.f32.xlu1 %v3874_v60  ;;  %v3112_v56 = vpop.f32.mrb[206].mxu0 }
 0x3a3   :  { %11367 = vst [vmem:[#allocation5_spill] sm:$0xff] %v9708_v23  ;;  %v3113_v53 = vadd.f32 %v9388_v36, %v3112_v56  ;;  %v6514_v2 = vpop.f32.mrb[207].mxu0  ;;  %v3502_v38 = vsel %vm784_vm2, %v9708_v23, 0.0  ;;  %v3748_v26 = vmul.f32 %v9708_v23, %v9708_v23 }
 0x3a4   :  { %3503 = vadd.xlane.f32.xlu0 %v3502_v38  ;;  %v11370_v2 = vld [vmem:[#allocation30_spill] sm:$0xff] }
 0x3a5   :  { %v9717_v33 = vadd.f32 %v3113_v53, %v11368_v48  ;;  %v3877_v40 = vsel %vm784_vm2, %v3748_v26, 0.0 }
 0x3a6   :  { %3878 = vadd.xlane.f32.xlu1 %v3877_v40  ;;  %v3117_v51 = vpop.f32.mrb[208].mxu0 }
 0x3a7   :  { %11369 = vst [vmem:[#allocation6_spill] sm:$0xff] %v9717_v33  ;;  %v3118_v34 = vadd.f32 %v9388_v36, %v3117_v51  ;;  %v6517_v21 = vpop.f32.mrb[209].mxu0  ;;  %v3505_v60 = vsel %vm784_vm2, %v9717_v33, 0.0  ;;  %v3749_v56 = vmul.f32 %v9717_v33, %v9717_v33 }
 0x3a8   :  { %3506 = vadd.xlane.f32.xlu0 %v3505_v60  ;;  %v11372_v21 = vld [vmem:[#allocation31_spill] sm:$0xff] }
 0x3a9   :  { %v9726_v23 = vadd.f32 %v3118_v34, %v11370_v2  ;;  %v3880_v53 = vsel %vm784_vm2, %v3749_v56, 0.0 }
 0x3aa   :  { %3881 = vadd.xlane.f32.xlu1 %v3880_v53  ;;  %v3122_v38 = vpop.f32.mrb[210].mxu0 }
 0x3ab   :  { %11371 = vst [vmem:[#allocation7_spill] sm:$0xff] %v9726_v23  ;;  %v3123_v26 = vadd.f32 %v9388_v36, %v3122_v38  ;;  %v6520_v48 = vpop.f32.mrb[211].mxu0  ;;  %v3508_v40 = vsel %vm784_vm2, %v9726_v23, 0.0  ;;  %v3750_v51 = vmul.f32 %v9726_v23, %v9726_v23 }
 0x3ac   :  { %3509 = vadd.xlane.f32.xlu0 %v3508_v40  ;;  %v11374_v48 = vld [vmem:[#allocation32_spill] sm:$0xff] }
 0x3ad   :  { %v9735_v33 = vadd.f32 %v3123_v26, %v11372_v21  ;;  %v3883_v34 = vsel %vm784_vm2, %v3750_v51, 0.0 }
 0x3ae   :  { %3884 = vadd.xlane.f32.xlu1 %v3883_v34  ;;  %v3127_v60 = vpop.f32.mrb[212].mxu0 }
 0x3af   :  { %11373 = vst [vmem:[#allocation8_spill] sm:$0xff] %v9735_v33  ;;  %v3128_v56 = vadd.f32 %v9388_v36, %v3127_v60  ;;  %v6523_v2 = vpop.f32.mrb[213].mxu0  ;;  %v3511_v53 = vsel %vm784_vm2, %v9735_v33, 0.0  ;;  %v3751_v38 = vmul.f32 %v9735_v33, %v9735_v33 }
 0x3b0   :  { %3512 = vadd.xlane.f32.xlu0 %v3511_v53  ;;  %v11376_v2 = vld [vmem:[#allocation33_spill] sm:$0xff] }
 0x3b1   :  { %v9744_v23 = vadd.f32 %v3128_v56, %v11374_v48  ;;  %v3886_v26 = vsel %vm784_vm2, %v3751_v38, 0.0 }
 0x3b2   :  { %3887 = vadd.xlane.f32.xlu1 %v3886_v26  ;;  %v3132_v40 = vpop.f32.mrb[214].mxu0 }
 0x3b3   :  { %11375 = vst [vmem:[#allocation9_spill] sm:$0xff] %v9744_v23  ;;  %v3133_v51 = vadd.f32 %v9388_v36, %v3132_v40  ;;  %v6526_v21 = vpop.f32.mrb[215].mxu0  ;;  %v3514_v34 = vsel %vm784_vm2, %v9744_v23, 0.0  ;;  %v3752_v60 = vmul.f32 %v9744_v23, %v9744_v23 }
 0x3b4   :  { %3515 = vadd.xlane.f32.xlu0 %v3514_v34  ;;  %v11378_v21 = vld [vmem:[#allocation34_spill] sm:$0xff] }
 0x3b5   :  { %v9753_v33 = vadd.f32 %v3133_v51, %v11376_v2  ;;  %v3889_v56 = vsel %vm784_vm2, %v3752_v60, 0.0 }
 0x3b6   :  { %3890 = vadd.xlane.f32.xlu1 %v3889_v56  ;;  %v3137_v53 = vpop.f32.mrb[216].mxu0 }
 0x3b7   :  { %11377 = vst [vmem:[#allocation10_spill] sm:$0xff] %v9753_v33  ;;  %v3138_v38 = vadd.f32 %v9388_v36, %v3137_v53  ;;  %v6529_v48 = vpop.f32.mrb[217].mxu0  ;;  %v3517_v26 = vsel %vm784_vm2, %v9753_v33, 0.0  ;;  %v3753_v40 = vmul.f32 %v9753_v33, %v9753_v33 }
 0x3b8   :  { %3518 = vadd.xlane.f32.xlu0 %v3517_v26 }
 0x3b9   :  { %v9762_v23 = vadd.f32 %v3138_v38, %v11378_v21  ;;  %v3892_v51 = vsel %vm784_vm2, %v3753_v40, 0.0 }
 0x3ba   :  { %3893 = vadd.xlane.f32.xlu1 %v3892_v51  ;;  %v3142_v34 = vpop.f32.mrb[218].mxu0 }
 0x3bb   :  { %11379 = vst [vmem:[#allocation11_spill] sm:$0xff] %v9762_v23  ;;  %v3143_v60 = vadd.f32 %v9388_v36, %v3142_v34  ;;  %v6532_v2 = vpop.f32.mrb[219].mxu0  ;;  %v3520_v56 = vsel %vm784_vm2, %v9762_v23, 0.0  ;;  %v3754_v53 = vmul.f32 %v9762_v23, %v9762_v23 }
 0x3bc   :  { %3521 = vadd.xlane.f32.xlu0 %v3520_v56 }
 0x3bd   :  { %v9771_v48 = vadd.f32 %v3143_v60, %v8102_v24  ;;  %v3895_v38 = vsel %vm784_vm2, %v3754_v53, 0.0 }
 0x3be   :  { %3896 = vadd.xlane.f32.xlu1 %v3895_v38  ;;  %v3147_v26 = vpop.f32.mrb[220].mxu0 }
 0x3bf   :  { %11380 = vst [vmem:[#allocation12_spill] sm:$0xff] %v9771_v48  ;;  %v3148_v40 = vadd.f32 %v9388_v36, %v3147_v26  ;;  %v6535_v21 = vpop.f32.mrb[221].mxu0  ;;  %v3523_v51 = vsel %vm784_vm2, %v9771_v48, 0.0  ;;  %v3755_v34 = vmul.f32 %v9771_v48, %v9771_v48 }
 0x3c0   :  { %3524 = vadd.xlane.f32.xlu0 %v3523_v51 }
 0x3c1   :  { %v9780_v2 = vadd.f32 %v3148_v40, %v8110_v37  ;;  %v3898_v24 = vsel %vm784_vm2, %v3755_v34, 0.0 }
 0x3c2   :  { %3899 = vadd.xlane.f32.xlu1 %v3898_v24  ;;  %v3152_v60 = vpop.f32.mrb[222].mxu0 }
 0x3c3   :  { %11381 = vst [vmem:[#allocation13_spill] sm:$0xff] %v9780_v2  ;;  %v3153_v56 = vadd.f32 %v9388_v36, %v3152_v60  ;;  %v6538_v53 = vpop.f32.mrb[223].mxu0  ;;  %v3526_v38 = vsel %vm784_vm2, %v9780_v2, 0.0  ;;  %v3756_v26 = vmul.f32 %v9780_v2, %v9780_v2 }
 0x3c4   :  { %3527 = vadd.xlane.f32.xlu0 %v3526_v38 }
 0x3c5   :  { %v9789_v21 = vadd.f32 %v3153_v56, %v8118_v52  ;;  %v3901_v37 = vsel %vm784_vm2, %v3756_v26, 0.0 }
 0x3c6   :  { %3902 = vadd.xlane.f32.xlu1 %v3901_v37  ;;  %v3157_v40 = vpop.f32.mrb[224].mxu0 }
 0x3c7   :  { %11382 = vst [vmem:[#allocation14_spill] sm:$0xff] %v9789_v21  ;;  %v3158_v51 = vadd.f32 %v9388_v36, %v3157_v40  ;;  %v6541_v34 = vpop.f32.mrb[225].mxu0  ;;  %v3529_v24 = vsel %vm784_vm2, %v9789_v21, 0.0  ;;  %v3757_v60 = vmul.f32 %v9789_v21, %v9789_v21 }
 0x3c8   :  { %3530 = vadd.xlane.f32.xlu0 %v3529_v24 }
 0x3c9   :  { %v9798_v53 = vadd.f32 %v3158_v51, %v8128_v8  ;;  %v3426_v38 = vpop.xlane.xlu0 %3425  ;;  %v3904_v52 = vsel %vm784_vm2, %v3757_v60, 0.0 }
 0x3ca   :  { %v9801_v56 = vmul.f32 0.015625, %v3426_v38  ;;  %3905 = vadd.xlane.f32.xlu1 %v3904_v52  ;;  %v3162_v26 = vpop.f32.mrb[226].mxu0 }
 0x3cb   :  { %11383 = vst [vmem:[#allocation15_spill] sm:$0xff] %v9798_v53  ;;  %v3163_v37 = vadd.f32 %v9388_v36, %v3162_v26  ;;  %v3801_v40 = vpop.xlane.xlu1 %3800  ;;  %v6544_v34 = vpop.f32.mrb[227].mxu0  ;;  %v3532_v2 = vsel %vm784_vm2, %v9798_v53, 0.0  ;;  %v3758_v24 = vmul.f32 %v9798_v53, %v9798_v53 }
 0x3cc   :  { %v4097_v8 = vmul.f32 %v9801_v56, %v9801_v56  ;;  %v4022_v51 = vmul.f32 0.015625, %v3801_v40  ;;  %3533 = vadd.xlane.f32.xlu0 %v3532_v2 }
 0x3cd   :  { %v9811_v60 = vadd.f32 %v3163_v37, %v8140_v42  ;;  %v3429_v38 = vpop.xlane.xlu0 %3428  ;;  %v3907_v52 = vsel %vm784_vm2, %v3758_v24, 0.0 }
 0x3ce   :  { %v4172_v26 = vsub.f32 %v4022_v51, %v4097_v8  ;;  %v9814_v21 = vmul.f32 0.015625, %v3429_v38  ;;  %3908 = vadd.xlane.f32.xlu1 %v3907_v52  ;;  %v3167_v34 = vpop.f32.mrb[228].mxu0 }
 0x3cf   :  { %11384 = vst [vmem:[#allocation16_spill] sm:$0xff] %v9811_v60  ;;  %v3168_v48 = vadd.f32 %v9388_v36, %v3167_v34  ;;  %v3804_v23 = vpop.xlane.xlu1 %3803  ;;  %v6547_v53 = vpop.f32.mrb[229].mxu0  ;;  %v3535_v33 = vsel %vm784_vm2, %v9811_v60, 0.0  ;;  %v3759_v2 = vmul.f32 %v9811_v60, %v9811_v60 }
 0x3d0   :  { %v4247_v42 = vadd.f32 1e-05, %v4172_v26  ;;  %v4098_v37 = vmul.f32 %v9814_v21, %v9814_v21  ;;  %v4023_v40 = vmul.f32 0.015625, %v3804_v23  ;;  %3536 = vadd.xlane.f32.xlu0 %v3535_v33 }
 0x3d1   :  { %v9824_v24 = vadd.f32 %v3168_v48, %v8154_v19  ;;  %v3432_v8 = vpop.xlane.xlu0 %3431  ;;  %v3910_v51 = vsel %vm784_vm2, %v3759_v2, 0.0 }
 0x3d2   :  { %7097 = vrsqrt.f32 %v4247_v42  ;;  %v4173_v53 = vsub.f32 %v4023_v40, %v4098_v37  ;;  %v9827_v38 = vmul.f32 0.015625, %v3432_v8  ;;  %3911 = vadd.xlane.f32.xlu1 %v3910_v51  ;;  %v3172_v52 = vpop.f32.mrb[230].mxu0 }
 0x3d3   :  { %11385 = vst [vmem:[#allocation17_spill] sm:$0xff] %v9824_v24  ;;  %v3173_v34 = vadd.f32 %v9388_v36, %v3172_v52  ;;  %v3807_v26 = vpop.xlane.xlu1 %3806  ;;  %v6550_v60 = vpop.f32.mrb[231].mxu0  ;;  %v3538_v23 = vsel %vm784_vm2, %v9824_v24, 0.0  ;;  %v3760_v19 = vmul.f32 %v9824_v24, %v9824_v24 }
 0x3d4   :  { %v4248_v33 = vadd.f32 1e-05, %v4173_v53  ;;  %v4099_v48 = vmul.f32 %v9827_v38, %v9827_v38  ;;  %v4024_v2 = vmul.f32 0.015625, %v3807_v26  ;;  %3539 = vadd.xlane.f32.xlu0 %v3538_v23 }
 0x3d5   :  { %v9837_v42 = vadd.f32 %v3173_v34, %v8166_v63  ;;  %v3435_v37 = vpop.xlane.xlu0 %3434  ;;  %v3913_v40 = vsel %vm784_vm2, %v3760_v19, 0.0 }
 0x3d6   :  { %7099 = vrsqrt.f32 %v4248_v33  ;;  %v4174_v60 = vsub.f32 %v4024_v2, %v4099_v48  ;;  %v9840_v8 = vmul.f32 0.015625, %v3435_v37  ;;  %3914 = vadd.xlane.f32.xlu1 %v3913_v40  ;;  %v3177_v51 = vpop.f32.mrb[232].mxu0  ;;  %v4397_v40 = vsub.f32 %v9396_v62, %v9801_v56 }
 0x3d7   :  { %11386 = vst [vmem:[#allocation18_spill] sm:$0xff] %v9837_v42  ;;  %v3178_v52 = vadd.f32 %v9388_v36, %v3177_v51  ;;  %v3810_v53 = vpop.xlane.xlu1 %3809  ;;  %v6553_v24 = vpop.f32.mrb[233].mxu0  ;;  %v3541_v26 = vsel %vm784_vm2, %v9837_v42, 0.0  ;;  %v3761_v63 = vmul.f32 %v9837_v42, %v9837_v42 }
 0x3d8   :  { %v4249_v34 = vadd.f32 1e-05, %v4174_v60  ;;  %v4100_v23 = vmul.f32 %v9840_v8, %v9840_v8  ;;  %v4025_v19 = vmul.f32 0.015625, %v3810_v53  ;;  %3542 = vadd.xlane.f32.xlu0 %v3541_v26  ;;  %v9860_v60 = vld [vmem:[%s11206_s6] ss:$0 sm:$0xff] }
 0x3d9   :  { %v9850_v33 = vadd.f32 %v3178_v52, %v8180_v47  ;;  %v3438_v48 = vpop.xlane.xlu0 %3437  ;;  %v3916_v36 = vsel %vm784_vm2, %v3761_v63, 0.0 }
 0x3da   :  { %7101 = vrsqrt.f32 %v4249_v34  ;;  %v4175_v24 = vsub.f32 %v4025_v19, %v4100_v23  ;;  %v9853_v2 = vmul.f32 0.015625, %v3438_v48  ;;  %3917 = vadd.xlane.f32.xlu1 %v3916_v36  ;;  %v3182_v37 = vpop.f32.mrb[234].mxu0 }
 0x3db   :  { %11387 = vst [vmem:[#allocation19_spill] sm:$0xff] %v9850_v33  ;;  %v3183_v47 = vadd.f32 %v9860_v60, %v3182_v37  ;;  %v3813_v51 = vpop.xlane.xlu1 %3812  ;;  %v6556_v52 = vpop.f32.mrb[235].mxu0  ;;  %v3544_v53 = vsel %vm784_vm2, %v9850_v33, 0.0  ;;  %v3762_v26 = vmul.f32 %v9850_v33, %v9850_v33 }
 0x3dc   :  { %v7098_v63 = vpop.eup %7097  ;;  %v4250_v34 = vadd.f32 1e-05, %v4175_v24  ;;  %v4101_v62 = vmul.f32 %v9853_v2, %v9853_v2  ;;  %v4026_v56 = vmul.f32 0.015625, %v3813_v51  ;;  %3545 = vadd.xlane.f32.xlu0 %v3544_v53  ;;  %v4398_v24 = vsub.f32 %v9408_v5, %v9814_v21 }
 0x3dd   :  { %v4472_v23 = vmul.f32 %v7098_v63, %v4397_v40  ;;  %v9870_v19 = vadd.f32 %v3183_v47, %v8194_v55  ;;  %v3441_v48 = vpop.xlane.xlu0 %3440  ;;  %v3919_v36 = vsel %vm784_vm2, %v3762_v26, 0.0 }
 0x3de   :  { %7103 = vrsqrt.f32 %v4250_v34  ;;  %v4176_v37 = vsub.f32 %v4026_v56, %v4101_v62  ;;  %v9873_v52 = vmul.f32 0.015625, %v3441_v48  ;;  %3920 = vadd.xlane.f32.xlu1 %v3919_v36  ;;  %v3187_v33 = vpop.f32.mrb[236].mxu0  ;;  %v4399_v36 = vsub.f32 %v9421_v54, %v9827_v38 }
 0x3df   :  { %v3188_v42 = vadd.f32 %v9860_v60, %v3187_v33  ;;  %6673 = vmatmul.mubr.msk.f32.vlgmr.msra.gmra.mrb[150].mxu1 %vm784_vm2, %v4472_v23  ;;  %v3816_v40 = vpop.xlane.xlu1 %3815  ;;  %v6559_v51 = vpop.f32.mrb[237].mxu0  ;;  %v3547_v55 = vsel %vm784_vm2, %v9870_v19, 0.0  ;;  %v3763_v47 = vmul.f32 %v9870_v19, %v9870_v19 }
 0x3e0   :  { %v7100_v53 = vpop.eup %7099  ;;  %v4251_v26 = vadd.f32 1e-05, %v4176_v37  ;;  %v4102_v63 = vmul.f32 %v9873_v52, %v9873_v52  ;;  %v4027_v34 = vmul.f32 0.015625, %v3816_v40  ;;  %3548 = vadd.xlane.f32.xlu0 %v3547_v55  ;;  %6675 = vmatprep.mubr.msk.f32.mxu1 %vm7254_vm0, %v11316_v10 }
 0x3e1   :  { %v9888_v5 = vadd.f32 %v3188_v42, %v8211_v3  ;;  %v3444_v21 = vpop.xlane.xlu0 %3443  ;;  %v3922_v33 = vsel %vm784_vm2, %v3763_v47, 0.0  ;;  %v4473_v62 = vmul.f32 %v7100_v53, %v4398_v24 }
 0x3e2   :  { %7105 = vrsqrt.f32 %v4251_v26  ;;  %v4177_v56 = vsub.f32 %v4027_v34, %v4102_v63  ;;  %v9891_v23 = vmul.f32 0.015625, %v3444_v21  ;;  %3923 = vadd.xlane.f32.xlu1 %v3922_v33  ;;  %v3192_v48 = vpop.f32.mrb[238].mxu0 }
 0x3e3   :  { %v3193_v37 = vadd.f32 %v9860_v60, %v3192_v48  ;;  %6676 = vmatmul.mubr.msk.f32.gmra.mrb[152].mxu1 %vm784_vm2, %v4473_v62  ;;  %v3819_v40 = vpop.xlane.xlu1 %3818  ;;  %v6562_v3 = vpop.f32.mrb[239].mxu0  ;;  %v3550_v42 = vsel %vm784_vm2, %v9888_v5, 0.0  ;;  %v3764_v24 = vmul.f32 %v9888_v5, %v9888_v5  ;;  %v4400_v62 = vsub.f32 %v9434_v16, %v9840_v8 }
 0x3e4   :  { %v7102_v51 = vpop.eup %7101  ;;  %v4252_v55 = vadd.f32 1e-05, %v4177_v56  ;;  %v4103_v47 = vmul.f32 %v9891_v23, %v9891_v23  ;;  %v4028_v53 = vmul.f32 0.015625, %v3819_v40  ;;  %3551 = vadd.xlane.f32.xlu0 %v3550_v42  ;;  %6678 = vmatprep.mubr.msk.f32.mxu1 %vm7254_vm0, %v11316_v10 }
 0x3e5   :  { %v9906_v54 = vadd.f32 %v3193_v37, %v8233_v46  ;;  %v3447_v38 = vpop.xlane.xlu0 %3446  ;;  %v3925_v26 = vsel %vm784_vm2, %v3764_v24, 0.0  ;;  %v4474_v63 = vmul.f32 %v7102_v51, %v4399_v36 }
 0x3e6   :  { %7107 = vrsqrt.f32 %v4252_v55  ;;  %v4178_v34 = vsub.f32 %v4028_v53, %v4103_v47  ;;  %v9909_v21 = vmul.f32 0.015625, %v3447_v38  ;;  %3926 = vadd.xlane.f32.xlu1 %v3925_v26  ;;  %v3197_v33 = vpop.f32.mrb[240].mxu0  ;;  %v4401_v26 = vsub.f32 %v9447_v57, %v9853_v2 }
 0x3e7   :  { %v3198_v56 = vadd.f32 %v9860_v60, %v3197_v33  ;;  %6679 = vmatmul.mubr.msk.f32.gmra.mrb[154].mxu1 %vm784_vm2, %v4474_v63  ;;  %v3822_v48 = vpop.xlane.xlu1 %3821  ;;  %v6565_v46 = vpop.f32.mrb[241].mxu0  ;;  %v3553_v37 = vsel %vm784_vm2, %v9906_v54, 0.0  ;;  %v3765_v36 = vmul.f32 %v9906_v54, %v9906_v54 }
 0x3e8   :  { %v7104_v40 = vpop.eup %7103  ;;  %v4253_v3 = vadd.f32 1e-05, %v4178_v34  ;;  %v4104_v42 = vmul.f32 %v9909_v21, %v9909_v21  ;;  %v4029_v24 = vmul.f32 0.015625, %v3822_v48  ;;  %3554 = vadd.xlane.f32.xlu0 %v3553_v37  ;;  %6681 = vmatprep.mubr.msk.f32.mxu1 %vm7254_vm0, %v11316_v10 }
 0x3e9   :  { %v9924_v16 = vadd.f32 %v3198_v56, %v11335_v27  ;;  %v3450_v8 = vpop.xlane.xlu0 %3449  ;;  %v3928_v51 = vsel %vm784_vm2, %v3765_v36, 0.0  ;;  %v4475_v55 = vmul.f32 %v7104_v40, %v4400_v62 }
 0x3ea   :  { %7109 = vrsqrt.f32 %v4253_v3  ;;  %v4179_v47 = vsub.f32 %v4029_v24, %v4104_v42  ;;  %v9927_v53 = vmul.f32 0.015625, %v3450_v8  ;;  %3929 = vadd.xlane.f32.xlu1 %v3928_v51  ;;  %v3202_v38 = vpop.f32.mrb[242].mxu0  ;;  %v4402_v8 = vsub.f32 %v9460_v28, %v9873_v52  ;;  %v11388_v28 = vld [vmem:[#allocation37_spill] sm:$0xff] }
 0x3eb   :  { %v3203_v63 = vadd.f32 %v9860_v60, %v3202_v38  ;;  %6682 = vmatmul.mubr.msk.f32.gmra.mrb[156].mxu1 %vm784_vm2, %v4475_v55  ;;  %v3825_v34 = vpop.xlane.xlu1 %3824  ;;  %v6568_v27 = vpop.f32.mrb[243].mxu0  ;;  %v3556_v33 = vsel %vm784_vm2, %v9924_v16, 0.0  ;;  %v3766_v62 = vmul.f32 %v9924_v16, %v9924_v16 }
 0x3ec   :  { %v7106_v56 = vpop.eup %7105  ;;  %v4254_v48 = vadd.f32 1e-05, %v4179_v47  ;;  %v4105_v46 = vmul.f32 %v9927_v53, %v9927_v53  ;;  %v4030_v37 = vmul.f32 0.015625, %v3825_v34  ;;  %3557 = vadd.xlane.f32.xlu0 %v3556_v33  ;;  %6684 = vmatprep.mubr.msk.f32.mxu1 %vm7254_vm0, %v11316_v10 }
 0x3ed   :  { %v9942_v57 = vadd.f32 %v3203_v63, %v11336_v61  ;;  %v3453_v2 = vpop.xlane.xlu0 %3452  ;;  %v3931_v36 = vsel %vm784_vm2, %v3766_v62, 0.0  ;;  %v4476_v40 = vmul.f32 %v7106_v56, %v4401_v26 }
 0x3ee   :  { %7111 = vrsqrt.f32 %v4254_v48  ;;  %v4180_v3 = vsub.f32 %v4030_v37, %v4105_v46  ;;  %v9945_v42 = vmul.f32 0.015625, %v3453_v2  ;;  %3932 = vadd.xlane.f32.xlu1 %v3931_v36  ;;  %v3207_v24 = vpop.f32.mrb[244].mxu0  ;;  %v4403_v2 = vsub.f32 %v9473_v17, %v9891_v23 }
 0x3ef   :  { %v3208_v51 = vadd.f32 %v9860_v60, %v3207_v24  ;;  %6685 = vmatmul.mubr.msk.f32.gmra.mrb[158].mxu1 %vm784_vm2, %v4476_v40  ;;  %v3828_v55 = vpop.xlane.xlu1 %3827  ;;  %v6571_v61 = vpop.f32.mrb[245].mxu0  ;;  %v3559_v47 = vsel %vm784_vm2, %v9942_v57, 0.0  ;;  %v3767_v38 = vmul.f32 %v9942_v57, %v9942_v57 }
 0x3f0   :  { %v7108_v26 = vpop.eup %7107  ;;  %v4255_v63 = vadd.f32 1e-05, %v4180_v3  ;;  %v4106_v34 = vmul.f32 %v9945_v42, %v9945_v42  ;;  %v4031_v27 = vmul.f32 0.015625, %v3828_v55  ;;  %3560 = vadd.xlane.f32.xlu0 %v3559_v47  ;;  %6687 = vmatprep.mubr.msk.f32.mxu1 %vm7254_vm0, %v11316_v10 }
 0x3f1   :  { %v9960_v52 = vadd.f32 %v3208_v51, %v11388_v28  ;;  %v3456_v33 = vpop.xlane.xlu0 %3455  ;;  %v3934_v62 = vsel %vm784_vm2, %v3767_v38, 0.0  ;;  %v4477_v56 = vmul.f32 %v7108_v26, %v4402_v8  ;;  %v4404_v28 = vsub.f32 %v9486_v14, %v9909_v21 }
 0x3f2   :  { %7113 = vrsqrt.f32 %v4255_v63  ;;  %v4181_v48 = vsub.f32 %v4031_v27, %v4106_v34  ;;  %v9963_v46 = vmul.f32 0.015625, %v3456_v33  ;;  %3935 = vadd.xlane.f32.xlu1 %v3934_v62  ;;  %v3212_v37 = vpop.f32.mrb[246].mxu0 }
 0x3f3   :  { %v3213_v36 = vadd.f32 %v9860_v60, %v3212_v37  ;;  %6688 = vmatmul.mubr.msk.f32.gmra.mrb[160].mxu1 %vm784_vm2, %v4477_v56  ;;  %v3831_v40 = vpop.xlane.xlu1 %3830  ;;  %v6574_v3 = vpop.f32.mrb[247].mxu0  ;;  %v3562_v24 = vsel %vm784_vm2, %v9960_v52, 0.0  ;;  %v3768_v8 = vmul.f32 %v9960_v52, %v9960_v52 }
 0x3f4   :  { %v7110_v51 = vpop.eup %7109  ;;  %v4256_v55 = vadd.f32 1e-05, %v4181_v48  ;;  %v4107_v61 = vmul.f32 %v9963_v46, %v9963_v46  ;;  %v4032_v47 = vmul.f32 0.015625, %v3831_v40  ;;  %3563 = vadd.xlane.f32.xlu0 %v3562_v24  ;;  %6690 = vmatprep.mubr.msk.f32.mxu1 %vm7254_vm0, %v11316_v10 }
 0x3f5   :  { %v9978_v17 = vadd.f32 %v3213_v36, %v8307_v4  ;;  %v3459_v23 = vpop.xlane.xlu0 %3458  ;;  %v3937_v38 = vsel %vm784_vm2, %v3768_v8, 0.0  ;;  %v4478_v26 = vmul.f32 %v7110_v51, %v4403_v2 }
 0x3f6   :  { %7115 = vrsqrt.f32 %v4256_v55  ;;  %v4182_v63 = vsub.f32 %v4032_v47, %v4107_v61  ;;  %v9981_v34 = vmul.f32 0.015625, %v3459_v23  ;;  %3938 = vadd.xlane.f32.xlu1 %v3937_v38  ;;  %v3217_v27 = vpop.f32.mrb[248].mxu0  ;;  %v4405_v61 = vsub.f32 %v9499_v50, %v9927_v53 }
 0x3f7   :  { %v3218_v33 = vadd.f32 %v9860_v60, %v3217_v27  ;;  %6691 = vmatmul.mubr.msk.f32.gmra.mrb[162].mxu1 %vm784_vm2, %v4478_v26  ;;  %v3834_v62 = vpop.xlane.xlu1 %3833  ;;  %v6577_v4 = vpop.f32.mrb[249].mxu0  ;;  %v3565_v56 = vsel %vm784_vm2, %v9978_v17, 0.0  ;;  %v3769_v48 = vmul.f32 %v9978_v17, %v9978_v17 }
 0x3f8   :  { %v7112_v37 = vpop.eup %7111  ;;  %v4257_v2 = vadd.f32 1e-05, %v4182_v63  ;;  %v4108_v36 = vmul.f32 %v9981_v34, %v9981_v34  ;;  %v4033_v40 = vmul.f32 0.015625, %v3834_v62  ;;  %3566 = vadd.xlane.f32.xlu0 %v3565_v56  ;;  %6693 = vmatprep.mubr.msk.f32.mxu1 %vm7254_vm0, %v11316_v10 }
 0x3f9   :  { %v9996_v14 = vadd.f32 %v3218_v33, %v8325_v1  ;;  %v3462_v21 = vpop.xlane.xlu0 %3461  ;;  %v3940_v3 = vsel %vm784_vm2, %v3769_v48, 0.0  ;;  %v4479_v24 = vmul.f32 %v7112_v37, %v4404_v28 }
 0x3fa   :  { %7117 = vrsqrt.f32 %v4257_v2  ;;  %v4183_v8 = vsub.f32 %v4033_v40, %v4108_v36  ;;  %v9999_v51 = vmul.f32 0.015625, %v3462_v21  ;;  %3941 = vadd.xlane.f32.xlu1 %v3940_v3  ;;  %v3222_v55 = vpop.f32.mrb[250].mxu0  ;;  %v4406_v2 = vsub.f32 %v9512_v25, %v9945_v42  ;;  %v11389_v25 = vld [vmem:[#allocation38_spill] sm:$0xff] }
 0x3fb   :  { %v3223_v47 = vadd.f32 %v9860_v60, %v3222_v55  ;;  %6694 = vmatmul.mubr.msk.f32.gmra.mrb[164].mxu1 %vm784_vm2, %v4479_v24  ;;  %v3837_v23 = vpop.xlane.xlu1 %3836  ;;  %v6580_v1 = vpop.f32.mrb[251].mxu0  ;;  %v3568_v38 = vsel %vm784_vm2, %v9996_v14, 0.0  ;;  %v3770_v26 = vmul.f32 %v9996_v14, %v9996_v14 }
 0x3fc   :  { %v7114_v63 = vpop.eup %7113  ;;  %v4258_v27 = vadd.f32 1e-05, %v4183_v8  ;;  %v4109_v28 = vmul.f32 %v9999_v51, %v9999_v51  ;;  %v4034_v33 = vmul.f32 0.015625, %v3837_v23  ;;  %3569 = vadd.xlane.f32.xlu0 %v3568_v38  ;;  %6696 = vmatprep.mubr.msk.f32.mxu1 %vm7254_vm0, %v11316_v10 }
 0x3fd   :  { %v10014_v50 = vadd.f32 %v3223_v47, %v8342_v39  ;;  %v3465_v53 = vpop.xlane.xlu0 %3464  ;;  %v3943_v62 = vsel %vm784_vm2, %v3770_v26, 0.0  ;;  %v4480_v4 = vmul.f32 %v7114_v63, %v4405_v61 }
 0x3fe   :  { %7119 = vrsqrt.f32 %v4258_v27  ;;  %v4184_v56 = vsub.f32 %v4034_v33, %v4109_v28  ;;  %v10017_v48 = vmul.f32 0.015625, %v3465_v53  ;;  %3944 = vadd.xlane.f32.xlu1 %v3943_v62  ;;  %v3227_v37 = vpop.f32.mrb[252].mxu0  ;;  %v4407_v27 = vsub.f32 %v9525_v44, %v9963_v46  ;;  %v11390_v44 = vld [vmem:[#allocation39_spill] sm:$0xff] }
 0x3ff   :  { %v3228_v36 = vadd.f32 %v9860_v60, %v3227_v37  ;;  %6697 = vmatmul.mubr.msk.f32.gmra.mrb[166].mxu1 %vm784_vm2, %v4480_v4  ;;  %v3840_v40 = vpop.xlane.xlu1 %3839  ;;  %v6583_v39 = vpop.f32.mrb[253].mxu0  ;;  %v3571_v21 = vsel %vm784_vm2, %v10014_v50, 0.0  ;;  %v3771_v3 = vmul.f32 %v10014_v50, %v10014_v50 }
 0x400   :  { %v7116_v24 = vpop.eup %7115  ;;  %v4259_v8 = vadd.f32 1e-05, %v4184_v56  ;;  %v4110_v55 = vmul.f32 %v10017_v48, %v10017_v48  ;;  %v4035_v61 = vmul.f32 0.015625, %v3840_v40  ;;  %3572 = vadd.xlane.f32.xlu0 %v3571_v21  ;;  %6699 = vmatprep.mubr.msk.f32.mxu1 %vm7254_vm0, %v11316_v10 }
 0x401   :  { %v10032_v42 = vadd.f32 %v3228_v36, %v11389_v25  ;;  %v3468_v47 = vpop.xlane.xlu0 %3467  ;;  %v3946_v23 = vsel %vm784_vm2, %v3771_v3, 0.0  ;;  %v4481_v1 = vmul.f32 %v7116_v24, %v4406_v2 }
 0x402   :  { %7121 = vrsqrt.f32 %v4259_v8  ;;  %v4185_v38 = vsub.f32 %v4035_v61, %v4110_v55  ;;  %v10035_v26 = vmul.f32 0.015625, %v3468_v47  ;;  %3947 = vadd.xlane.f32.xlu1 %v3946_v23  ;;  %v3232_v63 = vpop.f32.mrb[254].mxu0  ;;  %v4408_v55 = vsub.f32 %v9538_v31, %v9981_v34  ;;  %v11391_v31 = vld [vmem:[#allocation40_spill] sm:$0xff] }
 0x403   :  { %v3233_v28 = vadd.f32 %v9860_v60, %v3232_v63  ;;  %6700 = vmatmul.mubr.msk.f32.gmra.mrb[168].mxu1 %vm784_vm2, %v4481_v1  ;;  %v3843_v33 = vpop.xlane.xlu1 %3842  ;;  %v6586_v53 = vpop.f32.mrb[255].mxu0  ;;  %v3574_v62 = vsel %vm784_vm2, %v10032_v42, 0.0  ;;  %v3772_v4 = vmul.f32 %v10032_v42, %v10032_v42 }
 0x404   :  { %v7118_v56 = vpop.eup %7117  ;;  %v4260_v37 = vadd.f32 1e-05, %v4185_v38  ;;  %v4111_v2 = vmul.f32 %v10035_v26, %v10035_v26  ;;  %v4036_v36 = vmul.f32 0.015625, %v3843_v33  ;;  %3575 = vadd.xlane.f32.xlu0 %v3574_v62  ;;  %6702 = vmatprep.mubr.msk.f32.mxu1 %vm7254_vm0, %v11316_v10 }
 0x405   :  { %v10050_v46 = vadd.f32 %v3233_v28, %v11390_v44  ;;  %v3471_v40 = vpop.xlane.xlu0 %3470  ;;  %v3949_v39 = vsel %vm784_vm2, %v3772_v4, 0.0  ;;  %v4482_v21 = vmul.f32 %v7118_v56, %v4407_v27 }
 0x406   :  { %7123 = vrsqrt.f32 %v4260_v37  ;;  %v4186_v3 = vsub.f32 %v4036_v36, %v4111_v2  ;;  %v10053_v24 = vmul.f32 0.015625, %v3471_v40  ;;  %3950 = vadd.xlane.f32.xlu1 %v3949_v39  ;;  %v3237_v8 = vpop.f32.mrb[0].mxu0  ;;  %v4409_v2 = vsub.f32 %v9551_v13, %v9999_v51 }
 0x407   :  { %v3238_v61 = vadd.f32 %v9860_v60, %v3237_v8  ;;  %6703 = vmatmul.mubr.msk.f32.gmra.mrb[170].mxu1 %vm784_vm2, %v4482_v21  ;;  %v3846_v25 = vpop.xlane.xlu1 %3845  ;;  %v6589_v47 = vpop.f32.mrb[1].mxu0  ;;  %v3577_v23 = vsel %vm784_vm2, %v10050_v46, 0.0  ;;  %v3773_v1 = vmul.f32 %v10050_v46, %v10050_v46 }
 0x408   :  { %v7120_v38 = vpop.eup %7119  ;;  %v4261_v63 = vadd.f32 1e-05, %v4186_v3  ;;  %v4112_v27 = vmul.f32 %v10053_v24, %v10053_v24  ;;  %v4037_v28 = vmul.f32 0.015625, %v3846_v25  ;;  %3578 = vadd.xlane.f32.xlu0 %v3577_v23  ;;  %6705 = vmatprep.mubr.msk.f32.mxu1 %vm7254_vm0, %v11316_v10 }
 0x409   :  { %v10068_v34 = vadd.f32 %v3238_v61, %v11391_v31  ;;  %v3474_v33 = vpop.xlane.xlu0 %3473  ;;  %v3952_v53 = vsel %vm784_vm2, %v3773_v1, 0.0  ;;  %v4483_v62 = vmul.f32 %v7120_v38, %v4408_v55 }
 0x40a   :  { %7125 = vrsqrt.f32 %v4261_v63  ;;  %v4187_v4 = vsub.f32 %v4037_v28, %v4112_v27  ;;  %v10071_v56 = vmul.f32 0.015625, %v3474_v33  ;;  %3953 = vadd.xlane.f32.xlu1 %v3952_v53  ;;  %v3242_v37 = vpop.f32.mrb[2].mxu0  ;;  %v4410_v63 = vsub.f32 %v9564_v7, %v10017_v48 }
 0x40b   :  { %v3243_v36 = vadd.f32 %v9860_v60, %v3242_v37  ;;  %6706 = vmatmul.mubr.msk.f32.gmra.mrb[172].mxu1 %vm784_vm2, %v4483_v62  ;;  %v3849_v44 = vpop.xlane.xlu1 %3848  ;;  %v6592_v40 = vpop.f32.mrb[3].mxu0  ;;  %v3580_v39 = vsel %vm784_vm2, %v10068_v34, 0.0  ;;  %v3774_v21 = vmul.f32 %v10068_v34, %v10068_v34 }
 0x40c   :  { %v7122_v3 = vpop.eup %7121  ;;  %v4262_v8 = vadd.f32 1e-05, %v4187_v4  ;;  %v4113_v55 = vmul.f32 %v10071_v56, %v10071_v56  ;;  %v4038_v61 = vmul.f32 0.015625, %v3849_v44  ;;  %3581 = vadd.xlane.f32.xlu0 %v3580_v39  ;;  %6708 = vmatprep.mubr.msk.f32.mxu1 %vm7254_vm0, %v11316_v10 }
 0x40d   :  { %v10086_v13 = vadd.f32 %v3243_v36, %v8410_v29  ;;  %v3477_v51 = vpop.xlane.xlu0 %3476  ;;  %v3955_v25 = vsel %vm784_vm2, %v3774_v21, 0.0  ;;  %v4484_v47 = vmul.f32 %v7122_v3, %v4409_v2  ;;  %v4411_v21 = vsub.f32 %v9577_v15, %v10035_v26 }
 0x40e   :  { %7127 = vrsqrt.f32 %v4262_v8  ;;  %v4188_v23 = vsub.f32 %v4038_v61, %v4113_v55  ;;  %v10089_v1 = vmul.f32 0.015625, %v3477_v51  ;;  %3956 = vadd.xlane.f32.xlu1 %v3955_v25  ;;  %v3247_v38 = vpop.f32.mrb[4].mxu0 }
 0x40f   :  { %v3248_v27 = vadd.f32 %v9860_v60, %v3247_v38  ;;  %6709 = vmatmul.mubr.msk.f32.gmra.mrb[174].mxu1 %vm784_vm2, %v4484_v47  ;;  %v3852_v28 = vpop.xlane.xlu1 %3851  ;;  %v6595_v29 = vpop.f32.mrb[5].mxu0  ;;  %v3583_v31 = vsel %vm784_vm2, %v10086_v13, 0.0  ;;  %v3775_v33 = vmul.f32 %v10086_v13, %v10086_v13 }
 0x410   :  { %v7124_v53 = vpop.eup %7123  ;;  %v4263_v62 = vadd.f32 1e-05, %v4188_v23  ;;  %v4114_v4 = vmul.f32 %v10089_v1, %v10089_v1  ;;  %v4039_v37 = vmul.f32 0.015625, %v3852_v28  ;;  %3584 = vadd.xlane.f32.xlu0 %v3583_v31  ;;  %6711 = vmatprep.mubr.msk.f32.mxu1 %vm7254_vm0, %v11316_v10  ;;  %v4412_v31 = vsub.f32 %v9590_v49, %v10053_v24 }
 0x411   :  { %v10104_v7 = vadd.f32 %v3248_v27, %v8427_v20  ;;  %v3480_v48 = vpop.xlane.xlu0 %3479  ;;  %v3958_v2 = vsel %vm784_vm2, %v3775_v33, 0.0  ;;  %v4485_v36 = vmul.f32 %v7124_v53, %v4410_v63 }
 0x412   :  { %7129 = vrsqrt.f32 %v4263_v62  ;;  %v4189_v44 = vsub.f32 %v4039_v37, %v4114_v4  ;;  %v10107_v40 = vmul.f32 0.015625, %v3480_v48  ;;  %3959 = vadd.xlane.f32.xlu1 %v3958_v2  ;;  %v3252_v39 = vpop.f32.mrb[6].mxu0 }
 0x413   :  { %v3253_v3 = vadd.f32 %v9860_v60, %v3252_v39  ;;  %6712 = vmatmul.mubr.msk.f32.gmra.mrb[176].mxu1 %vm784_vm2, %v4485_v36  ;;  %v3855_v8 = vpop.xlane.xlu1 %3854  ;;  %v6598_v20 = vpop.f32.mrb[7].mxu0  ;;  %v3586_v55 = vsel %vm784_vm2, %v10104_v7, 0.0  ;;  %v3776_v61 = vmul.f32 %v10104_v7, %v10104_v7 }
 0x414   :  { %v7126_v51 = vpop.eup %7125  ;;  %v4264_v25 = vadd.f32 1e-05, %v4189_v44  ;;  %v4115_v47 = vmul.f32 %v10107_v40, %v10107_v40  ;;  %v4040_v23 = vmul.f32 0.015625, %v3855_v8  ;;  %3587 = vadd.xlane.f32.xlu0 %v3586_v55  ;;  %6714 = vmatprep.mubr.msk.f32.mxu1 %vm7254_vm0, %v11316_v10  ;;  %v4413_v20 = vsub.f32 %v9603_v12, %v10071_v56 }
 0x415   :  { %v10122_v15 = vadd.f32 %v3253_v3, %v8444_v11  ;;  %v3483_v26 = vpop.xlane.xlu0 %3482  ;;  %v3961_v38 = vsel %vm784_vm2, %v3776_v61, 0.0  ;;  %v4486_v63 = vmul.f32 %v7126_v51, %v4411_v21 }
 0x416   :  { %7131 = vrsqrt.f32 %v4264_v25  ;;  %v4190_v27 = vsub.f32 %v4040_v23, %v4115_v47  ;;  %v10125_v28 = vmul.f32 0.015625, %v3483_v26  ;;  %3962 = vadd.xlane.f32.xlu1 %v3961_v38  ;;  %v3257_v29 = vpop.f32.mrb[8].mxu0 }
 0x417   :  { %v3258_v33 = vadd.f32 %v9860_v60, %v3257_v29  ;;  %6715 = vmatmul.mubr.msk.f32.gmra.mrb[178].mxu1 %vm784_vm2, %v4486_v63  ;;  %v3858_v53 = vpop.xlane.xlu1 %3857  ;;  %v6601_v11 = vpop.f32.mrb[9].mxu0  ;;  %v3589_v62 = vsel %vm784_vm2, %v10122_v15, 0.0  ;;  %v3777_v4 = vmul.f32 %v10122_v15, %v10122_v15 }
 0x418   :  { %v7128_v37 = vpop.eup %7127  ;;  %v4265_v48 = vadd.f32 1e-05, %v4190_v27  ;;  %v4116_v2 = vmul.f32 %v10125_v28, %v10125_v28  ;;  %v4041_v36 = vmul.f32 0.015625, %v3858_v53  ;;  %3590 = vadd.xlane.f32.xlu0 %v3589_v62  ;;  %6717 = vmatprep.mubr.msk.f32.mxu1 %vm7254_vm0, %v11316_v10  ;;  %v4414_v53 = vsub.f32 %v9616_v45, %v10089_v1 }
 0x419   :  { %v10140_v49 = vadd.f32 %v3258_v33, %v8461_v43  ;;  %v3486_v24 = vpop.xlane.xlu0 %3485  ;;  %v3964_v44 = vsel %vm784_vm2, %v3777_v4, 0.0  ;;  %v4487_v39 = vmul.f32 %v7128_v37, %v4412_v31 }
 0x41a   :  { %7133 = vrsqrt.f32 %v4265_v48  ;;  %v4191_v21 = vsub.f32 %v4041_v36, %v4116_v2  ;;  %v10143_v3 = vmul.f32 0.015625, %v3486_v24  ;;  %3965 = vadd.xlane.f32.xlu1 %v3964_v44  ;;  %v3262_v8 = vpop.f32.mrb[10].mxu0 }
 0x41b   :  { %v3263_v55 = vadd.f32 %v9860_v60, %v3262_v8  ;;  %6718 = vmatmul.mubr.msk.f32.gmra.mrb[180].mxu1 %vm784_vm2, %v4487_v39  ;;  %v3861_v61 = vpop.xlane.xlu1 %3860  ;;  %v6604_v43 = vpop.f32.mrb[11].mxu0  ;;  %v3592_v51 = vsel %vm784_vm2, %v10140_v49, 0.0  ;;  %v3778_v25 = vmul.f32 %v10140_v49, %v10140_v49 }
 0x41c   :  { %v7130_v47 = vpop.eup %7129  ;;  %v4266_v23 = vadd.f32 1e-05, %v4191_v21  ;;  %v4117_v26 = vmul.f32 %v10143_v3, %v10143_v3  ;;  %v4042_v38 = vmul.f32 0.015625, %v3861_v61  ;;  %3593 = vadd.xlane.f32.xlu0 %v3592_v51  ;;  %6720 = vmatprep.mubr.msk.f32.mxu1 %vm7254_vm0, %v11316_v10 }
 0x41d   :  { %v10158_v12 = vadd.f32 %v3263_v55, %v8478_v18  ;;  %v3489_v56 = vpop.xlane.xlu0 %3488  ;;  %v3967_v63 = vsel %vm784_vm2, %v3778_v25, 0.0  ;;  %v4488_v27 = vmul.f32 %v7130_v47, %v4413_v20  ;;  %v4415_v55 = vsub.f32 %v9629_v35, %v10107_v40 }
 0x41e   :  { %7135 = vrsqrt.f32 %v4266_v23  ;;  %v4192_v29 = vsub.f32 %v4042_v38, %v4117_v26  ;;  %v10161_v31 = vmul.f32 0.015625, %v3489_v56  ;;  %3968 = vadd.xlane.f32.xlu1 %v3967_v63  ;;  %v3267_v33 = vpop.f32.mrb[12].mxu0 }
 0x41f   :  { %v3268_v11 = vadd.f32 %v9860_v60, %v3267_v33  ;;  %6721 = vmatmul.mubr.msk.f32.gmra.mrb[182].mxu1 %vm784_vm2, %v4488_v27  ;;  %v3864_v62 = vpop.xlane.xlu1 %3863  ;;  %v6607_v18 = vpop.f32.mrb[13].mxu0  ;;  %v3595_v4 = vsel %vm784_vm2, %v10158_v12, 0.0  ;;  %v3779_v37 = vmul.f32 %v10158_v12, %v10158_v12 }
 0x420   :  { %v7132_v48 = vpop.eup %7131  ;;  %v4267_v2 = vadd.f32 1e-05, %v4192_v29  ;;  %v4118_v36 = vmul.f32 %v10161_v31, %v10161_v31  ;;  %v4043_v24 = vmul.f32 0.015625, %v3864_v62  ;;  %3596 = vadd.xlane.f32.xlu0 %v3595_v4  ;;  %6723 = vmatprep.mubr.msk.f32.mxu1 %vm7254_vm0, %v11316_v10 }
 0x421   :  { %v10176_v45 = vadd.f32 %v3268_v11, %v8495_v32  ;;  %v3492_v1 = vpop.xlane.xlu0 %3491  ;;  %v3970_v44 = vsel %vm784_vm2, %v3779_v37, 0.0  ;;  %v4489_v39 = vmul.f32 %v7132_v48, %v4414_v53  ;;  %v4416_v53 = vsub.f32 %v9642_v58, %v10125_v28 }
 0x422   :  { %7137 = vrsqrt.f32 %v4267_v2  ;;  %v4193_v21 = vsub.f32 %v4043_v24, %v4118_v36  ;;  %v10179_v8 = vmul.f32 0.015625, %v3492_v1  ;;  %3971 = vadd.xlane.f32.xlu1 %v3970_v44  ;;  %v3272_v20 = vpop.f32.mrb[14].mxu0 }
 0x423   :  { %v3273_v61 = vadd.f32 %v9860_v60, %v3272_v20  ;;  %6724 = vmatmul.mubr.msk.f32.gmra.mrb[184].mxu1 %vm784_vm2, %v4489_v39  ;;  %v3867_v43 = vpop.xlane.xlu1 %3866  ;;  %v6610_v32 = vpop.f32.mrb[15].mxu0  ;;  %v3598_v51 = vsel %vm784_vm2, %v10176_v45, 0.0  ;;  %v3780_v25 = vmul.f32 %v10176_v45, %v10176_v45  ;;  %v4417_v20 = vsub.f32 %v9654_v0, %v10143_v3 }
 0x424   :  { %v7134_v47 = vpop.eup %7133  ;;  %v4268_v23 = vadd.f32 1e-05, %v4193_v21  ;;  %v4119_v26 = vmul.f32 %v10179_v8, %v10179_v8  ;;  %v4044_v38 = vmul.f32 0.015625, %v3867_v43  ;;  %3599 = vadd.xlane.f32.xlu0 %v3598_v51  ;;  %6726 = vmatprep.mubr.msk.f32.mxu1 %vm7254_vm0, %v11316_v10 }
 0x425   :  { %v10194_v35 = vadd.f32 %v3273_v61, %v8512_v6  ;;  %v3495_v40 = vpop.xlane.xlu0 %3494  ;;  %v3973_v56 = vsel %vm784_vm2, %v3780_v25, 0.0  ;;  %v4490_v63 = vmul.f32 %v7134_v47, %v4415_v55 }
 0x426   :  { %7139 = vrsqrt.f32 %v4268_v23  ;;  %v4194_v27 = vsub.f32 %v4044_v38, %v4119_v26  ;;  %v10197_v29 = vmul.f32 0.015625, %v3495_v40  ;;  %3974 = vadd.xlane.f32.xlu1 %v3973_v56  ;;  %v3277_v33 = vpop.f32.mrb[16].mxu0 }
 0x427   :  { %v3278_v11 = vadd.f32 %v9860_v60, %v3277_v33  ;;  %6727 = vmatmul.mubr.msk.f32.gmra.mrb[186].mxu1 %vm784_vm2, %v4490_v63  ;;  %v3870_v62 = vpop.xlane.xlu1 %3869  ;;  %v6613_v6 = vpop.f32.mrb[17].mxu0  ;;  %v3601_v18 = vsel %vm784_vm2, %v10194_v35, 0.0  ;;  %v3781_v4 = vmul.f32 %v10194_v35, %v10194_v35 }
 0x428   :  { %v7136_v37 = vpop.eup %7135  ;;  %v4269_v48 = vadd.f32 1e-05, %v4194_v27  ;;  %v4120_v2 = vmul.f32 %v10197_v29, %v10197_v29  ;;  %v4045_v36 = vmul.f32 0.015625, %v3870_v62  ;;  %3602 = vadd.xlane.f32.xlu0 %v3601_v18  ;;  %6729 = vmatprep.mubr.msk.f32.mxu1 %vm7254_vm0, %v11316_v10  ;;  %v4418_v27 = vsub.f32 %v9663_v30, %v10161_v31 }
 0x429   :  { %v10212_v58 = vadd.f32 %v3278_v11, %v8529_v22  ;;  %v3498_v28 = vpop.xlane.xlu0 %3497  ;;  %v3976_v24 = vsel %vm784_vm2, %v3781_v4, 0.0  ;;  %v4491_v1 = vmul.f32 %v7136_v37, %v4416_v53 }
 0x42a   :  { %7141 = vrsqrt.f32 %v4269_v48  ;;  %v4195_v44 = vsub.f32 %v4045_v36, %v4120_v2  ;;  %v10215_v39 = vmul.f32 0.015625, %v3498_v28  ;;  %3977 = vadd.xlane.f32.xlu1 %v3976_v24  ;;  %v3282_v21 = vpop.f32.mrb[18].mxu0 }
 0x42b   :  { %v3283_v55 = vadd.f32 %v9860_v60, %v3282_v21  ;;  %6730 = vmatmul.mubr.msk.f32.gmra.mrb[188].mxu1 %vm784_vm2, %v4491_v1  ;;  %v3873_v61 = vpop.xlane.xlu1 %3872  ;;  %v6616_v22 = vpop.f32.mrb[19].mxu0  ;;  %v3604_v43 = vsel %vm784_vm2, %v10212_v58, 0.0  ;;  %v3782_v32 = vmul.f32 %v10212_v58, %v10212_v58  ;;  %v4419_v1 = vsub.f32 %v9672_v41, %v10179_v8  ;;  %v11392_v41 = vld [vmem:[#allocation41_spill] sm:$0xff] }
 0x42c   :  { %v7138_v51 = vpop.eup %7137  ;;  %v4270_v25 = vadd.f32 1e-05, %v4195_v44  ;;  %v4121_v47 = vmul.f32 %v10215_v39, %v10215_v39  ;;  %v4046_v23 = vmul.f32 0.015625, %v3873_v61  ;;  %3605 = vadd.xlane.f32.xlu0 %v3604_v43  ;;  %6732 = vmatprep.mubr.msk.f32.mxu1 %vm7254_vm0, %v11316_v10 }
 0x42d   :  { %v10230_v0 = vadd.f32 %v3283_v55, %v8546_v59  ;;  %v3501_v3 = vpop.xlane.xlu0 %3500  ;;  %v3979_v26 = vsel %vm784_vm2, %v3782_v32, 0.0  ;;  %v4492_v38 = vmul.f32 %v7138_v51, %v4417_v20 }
 0x42e   :  { %7143 = vrsqrt.f32 %v4270_v25  ;;  %v4196_v40 = vsub.f32 %v4046_v23, %v4121_v47  ;;  %v10233_v56 = vmul.f32 0.015625, %v3501_v3  ;;  %3980 = vadd.xlane.f32.xlu1 %v3979_v26  ;;  %v3287_v63 = vpop.f32.mrb[20].mxu0 }
 0x42f   :  { %v3288_v33 = vadd.f32 %v9860_v60, %v3287_v63  ;;  %6733 = vmatmul.mubr.msk.f32.gmra.mrb[190].mxu1 %vm784_vm2, %v4492_v38  ;;  %v3876_v53 = vpop.xlane.xlu1 %3875  ;;  %v6619_v59 = vpop.f32.mrb[21].mxu0  ;;  %v3607_v11 = vsel %vm784_vm2, %v10230_v0, 0.0  ;;  %v3783_v62 = vmul.f32 %v10230_v0, %v10230_v0  ;;  %v11393_v38 = vld [vmem:[#allocation36_spill] sm:$0xff] }
 0x430   :  { %v7140_v6 = vpop.eup %7139  ;;  %v4271_v18 = vadd.f32 1e-05, %v4196_v40  ;;  %v4122_v4 = vmul.f32 %v10233_v56, %v10233_v56  ;;  %v4047_v37 = vmul.f32 0.015625, %v3876_v53  ;;  %3608 = vadd.xlane.f32.xlu0 %v3607_v11  ;;  %6735 = vmatprep.mubr.msk.f32.mxu1 %vm7254_vm0, %v11316_v10  ;;  %v4420_v40 = vsub.f32 %v11393_v38, %v10197_v29 }
 0x431   :  { %v10248_v30 = vadd.f32 %v3288_v33, %v8563_v9  ;;  %v3504_v31 = vpop.xlane.xlu0 %3503  ;;  %v3982_v48 = vsel %vm784_vm2, %v3783_v62, 0.0  ;;  %v4493_v2 = vmul.f32 %v7140_v6, %v4418_v27 }
 0x432   :  { %7145 = vrsqrt.f32 %v4271_v18  ;;  %v4197_v36 = vsub.f32 %v4047_v37, %v4122_v4  ;;  %v10251_v28 = vmul.f32 0.015625, %v3504_v31  ;;  %3983 = vadd.xlane.f32.xlu1 %v3982_v48  ;;  %v3292_v24 = vpop.f32.mrb[22].mxu0 }
 0x433   :  { %v3293_v44 = vadd.f32 %v9860_v60, %v3292_v24  ;;  %6736 = vmatmul.mubr.msk.f32.gmra.mrb[192].mxu1 %vm784_vm2, %v4493_v2  ;;  %v3879_v21 = vpop.xlane.xlu1 %3878  ;;  %v6622_v9 = vpop.f32.mrb[23].mxu0  ;;  %v3610_v20 = vsel %vm784_vm2, %v10248_v30, 0.0  ;;  %v3784_v55 = vmul.f32 %v10248_v30, %v10248_v30  ;;  %v11395_v24 = vld [vmem:[#allocation3_spill] sm:$0xff] }
 0x434   :  { %v7142_v61 = vpop.eup %7141  ;;  %v4272_v22 = vadd.f32 1e-05, %v4197_v36  ;;  %v4123_v43 = vmul.f32 %v10251_v28, %v10251_v28  ;;  %v4048_v32 = vmul.f32 0.015625, %v3879_v21  ;;  %3611 = vadd.xlane.f32.xlu0 %v3610_v20  ;;  %6738 = vmatprep.mubr.msk.f32.mxu1 %vm7254_vm0, %v11316_v10 }
 0x435   :  { %v10266_v8 = vadd.f32 %v3293_v44, %v11392_v41  ;;  %v3507_v51 = vpop.xlane.xlu0 %3506  ;;  %v3985_v25 = vsel %vm784_vm2, %v3784_v55, 0.0  ;;  %v4494_v47 = vmul.f32 %v7142_v61, %v4419_v1  ;;  %v4421_v1 = vsub.f32 %v11395_v24, %v10215_v39  ;;  %v10294_v44 = vld [vmem:[%s11206_s6] ss:$0 sm:$0xff]  ;;  %v11396_v41 = vld [vmem:[#allocation43_spill] sm:$0xff] }
 0x436   :  { %7147 = vrsqrt.f32 %v4272_v22  ;;  %v4198_v23 = vsub.f32 %v4048_v32, %v4123_v43  ;;  %v10269_v3 = vmul.f32 0.015625, %v3507_v51  ;;  %3986 = vadd.xlane.f32.xlu1 %v3985_v25  ;;  %v3297_v26 = vpop.f32.mrb[24].mxu0 }
 0x437   :  { %v3298_v63 = vadd.f32 %v9860_v60, %v3297_v26  ;;  %6739 = vmatmul.mubr.msk.f32.gmra.mrb[194].mxu1 %vm784_vm2, %v4494_v47  ;;  %v3882_v27 = vpop.xlane.xlu1 %3881  ;;  %v6625_v33 = vpop.f32.mrb[25].mxu0  ;;  %v3613_v53 = vsel %vm784_vm2, %v10266_v8, 0.0  ;;  %v3785_v59 = vmul.f32 %v10266_v8, %v10266_v8  ;;  %v11394_v60 = vld [vmem:[#allocation42_spill] sm:$0xff] }
 0x438   :  { %v7144_v11 = vpop.eup %7143  ;;  %v4273_v62 = vadd.f32 1e-05, %v4198_v23  ;;  %v4124_v6 = vmul.f32 %v10269_v3, %v10269_v3  ;;  %v4049_v18 = vmul.f32 0.015625, %v3882_v27  ;;  %3614 = vadd.xlane.f32.xlu0 %v3613_v53  ;;  %6741 = vmatprep.mubr.msk.f32.mxu1 %vm7254_vm0, %v11316_v10 }
 0x439   :  { %v10284_v29 = vadd.f32 %v3298_v63, %v11394_v60  ;;  %v3510_v4 = vpop.xlane.xlu0 %3509  ;;  %v3988_v37 = vsel %vm784_vm2, %v3785_v59, 0.0  ;;  %v4495_v31 = vmul.f32 %v7144_v11, %v4420_v40  ;;  %v11397_v63 = vld [vmem:[#allocation4_spill] sm:$0xff] }
 0x43a   :  { %7149 = vrsqrt.f32 %v4273_v62  ;;  %v4199_v48 = vsub.f32 %v4049_v18, %v4124_v6  ;;  %v10287_v2 = vmul.f32 0.015625, %v3510_v4  ;;  %3989 = vadd.xlane.f32.xlu1 %v3988_v37  ;;  %v3302_v36 = vpop.f32.mrb[26].mxu0  ;;  %v4422_v27 = vsub.f32 %v11397_v63, %v10233_v56  ;;  %v11398_v56 = vld [vmem:[#allocation44_spill] sm:$0xff] }
 0x43b   :  { %v3303_v21 = vadd.f32 %v10294_v44, %v3302_v36  ;;  %6742 = vmatmul.mubr.msk.f32.gmra.mrb[196].mxu1 %vm784_vm2, %v4495_v31  ;;  %v3885_v9 = vpop.xlane.xlu1 %3884  ;;  %v6628_v20 = vpop.f32.mrb[27].mxu0  ;;  %v3616_v55 = vsel %vm784_vm2, %v10284_v29, 0.0  ;;  %v3786_v61 = vmul.f32 %v10284_v29, %v10284_v29 }
 0x43c   :  { %v7146_v22 = vpop.eup %7145  ;;  %v4274_v43 = vadd.f32 1e-05, %v4199_v48  ;;  %v4125_v39 = vmul.f32 %v10287_v2, %v10287_v2  ;;  %v4050_v32 = vmul.f32 0.015625, %v3885_v9  ;;  %3617 = vadd.xlane.f32.xlu0 %v3616_v55  ;;  %6744 = vmatprep.mubr.msk.f32.mxu1 %vm7254_vm0, %v11316_v10  ;;  %v11399_v9 = vld [vmem:[#allocation5_spill] sm:$0xff] }
 0x43d   :  { %v10307_v51 = vadd.f32 %v3303_v21, %v11396_v41  ;;  %v3513_v25 = vpop.xlane.xlu0 %3512  ;;  %v3991_v47 = vsel %vm784_vm2, %v3786_v61, 0.0  ;;  %v4496_v23 = vmul.f32 %v7146_v22, %v4421_v1  ;;  %v4423_v20 = vsub.f32 %v11399_v9, %v10251_v28  ;;  %v11400_v28 = vld [vmem:[#allocation45_spill] sm:$0xff] }
 0x43e   :  { %7151 = vrsqrt.f32 %v4274_v43  ;;  %v4200_v26 = vsub.f32 %v4050_v32, %v4125_v39  ;;  %v10310_v38 = vmul.f32 0.015625, %v3513_v25  ;;  %3992 = vadd.xlane.f32.xlu1 %v3991_v47  ;;  %v3307_v40 = vpop.f32.mrb[28].mxu0 }
 0x43f   :  { %v3308_v33 = vadd.f32 %v10294_v44, %v3307_v40  ;;  %6745 = vmatmul.mubr.msk.f32.gmra.mrb[198].mxu1 %vm784_vm2, %v4496_v23  ;;  %v3888_v53 = vpop.xlane.xlu1 %3887  ;;  %v6631_v59 = vpop.f32.mrb[29].mxu0  ;;  %v3619_v11 = vsel %vm784_vm2, %v10307_v51, 0.0  ;;  %v3787_v62 = vmul.f32 %v10307_v51, %v10307_v51 }
 0x440   :  { %v7148_v6 = vpop.eup %7147  ;;  %v4275_v18 = vadd.f32 1e-05, %v4200_v26  ;;  %v4126_v60 = vmul.f32 %v10310_v38, %v10310_v38  ;;  %v4051_v4 = vmul.f32 0.015625, %v3888_v53  ;;  %3620 = vadd.xlane.f32.xlu0 %v3619_v11  ;;  %6747 = vmatprep.mubr.msk.f32.mxu1 %vm7254_vm0, %v11316_v10  ;;  %v11401_v59 = vld [vmem:[#allocation6_spill] sm:$0xff] }
 0x441   :  { %v10325_v37 = vadd.f32 %v3308_v33, %v11398_v56  ;;  %v3516_v31 = vpop.xlane.xlu0 %3515  ;;  %v3994_v48 = vsel %vm784_vm2, %v3787_v62, 0.0  ;;  %v4497_v36 = vmul.f32 %v7148_v6, %v4422_v27  ;;  %v4424_v11 = vsub.f32 %v11401_v59, %v10269_v3  ;;  %v11402_v3 = vld [vmem:[#allocation46_spill] sm:$0xff] }
 0x442   :  { %7153 = vrsqrt.f32 %v4275_v18  ;;  %v4201_v24 = vsub.f32 %v4051_v4, %v4126_v60  ;;  %v10328_v1 = vmul.f32 0.015625, %v3516_v31  ;;  %3995 = vadd.xlane.f32.xlu1 %v3994_v48  ;;  %v3312_v21 = vpop.f32.mrb[30].mxu0 }
 0x443   :  { %v3313_v55 = vadd.f32 %v10294_v44, %v3312_v21  ;;  %6748 = vmatmul.mubr.msk.f32.gmra.mrb[200].mxu1 %vm784_vm2, %v4497_v36  ;;  %v3891_v61 = vpop.xlane.xlu1 %3890  ;;  %v6634_v22 = vpop.f32.mrb[31].mxu0  ;;  %v3622_v43 = vsel %vm784_vm2, %v10325_v37, 0.0  ;;  %v3788_v39 = vmul.f32 %v10325_v37, %v10325_v37 }
 0x444   :  { %v7150_v32 = vpop.eup %7149  ;;  %v4276_v41 = vadd.f32 1e-05, %v4201_v24  ;;  %v4127_v25 = vmul.f32 %v10328_v1, %v10328_v1  ;;  %v4052_v47 = vmul.f32 0.015625, %v3891_v61  ;;  %3623 = vadd.xlane.f32.xlu0 %v3622_v43  ;;  %6750 = vmatprep.mubr.msk.f32.mxu1 %vm7254_vm0, %v11316_v10  ;;  %v11403_v43 = vld [vmem:[#allocation7_spill] sm:$0xff] }
 0x445   :  { %v10343_v23 = vadd.f32 %v3313_v55, %v11400_v28  ;;  %v3519_v26 = vpop.xlane.xlu0 %3518  ;;  %v3997_v40 = vsel %vm784_vm2, %v3788_v39, 0.0  ;;  %v4498_v63 = vmul.f32 %v7150_v32, %v4423_v20  ;;  %v4425_v39 = vsub.f32 %v11403_v43, %v10287_v2  ;;  %v11404_v2 = vld [vmem:[#allocation47_spill] sm:$0xff] }
 0x446   :  { %7155 = vrsqrt.f32 %v4276_v41  ;;  %v4202_v27 = vsub.f32 %v4052_v47, %v4127_v25  ;;  %v10346_v33 = vmul.f32 0.015625, %v3519_v26  ;;  %3998 = vadd.xlane.f32.xlu1 %v3997_v40  ;;  %v3317_v53 = vpop.f32.mrb[32].mxu0 }
 0x447   :  { %v3318_v62 = vadd.f32 %v10294_v44, %v3317_v53  ;;  %6751 = vmatmul.mubr.msk.f32.gmra.mrb[202].mxu1 %vm784_vm2, %v4498_v63  ;;  %v3894_v6 = vpop.xlane.xlu1 %3893  ;;  %v6637_v18 = vpop.f32.mrb[33].mxu0  ;;  %v3625_v60 = vsel %vm784_vm2, %v10343_v23, 0.0  ;;  %v3789_v4 = vmul.f32 %v10343_v23, %v10343_v23 }
 0x448   :  { %v7152_v56 = vpop.eup %7151  ;;  %v4277_v31 = vadd.f32 1e-05, %v4202_v27  ;;  %v4128_v48 = vmul.f32 %v10346_v33, %v10346_v33  ;;  %v4053_v36 = vmul.f32 0.015625, %v3894_v6  ;;  %3626 = vadd.xlane.f32.xlu0 %v3625_v60  ;;  %6753 = vmatprep.mubr.msk.f32.mxu1 %vm7254_vm0, %v11316_v10 }
 0x449   :  { %v10361_v24 = vadd.f32 %v3318_v62, %v11402_v3  ;;  %v3522_v21 = vpop.xlane.xlu0 %3521  ;;  %v4000_v9 = vsel %vm784_vm2, %v3789_v4, 0.0  ;;  %v4499_v20 = vmul.f32 %v7152_v56, %v4424_v11  ;;  %v11405_v4 = vld [vmem:[#allocation8_spill] sm:$0xff] }
 0x44a   :  { %7157 = vrsqrt.f32 %v4277_v31  ;;  %v4203_v55 = vsub.f32 %v4053_v36, %v4128_v48  ;;  %v10364_v61 = vmul.f32 0.015625, %v3522_v21  ;;  %4001 = vadd.xlane.f32.xlu1 %v4000_v9  ;;  %v3322_v22 = vpop.f32.mrb[34].mxu0  ;;  %v4426_v56 = vsub.f32 %v11405_v4, %v10310_v38  ;;  %v11406_v38 = vld [vmem:[#allocation48_spill] sm:$0xff] }
 0x44b   :  { %v3323_v32 = vadd.f32 %v10294_v44, %v3322_v22  ;;  %6754 = vmatmul.mubr.msk.f32.gmra.mrb[204].mxu1 %vm784_vm2, %v4499_v20  ;;  %v3897_v41 = vpop.xlane.xlu1 %3896  ;;  %v6640_v25 = vpop.f32.mrb[35].mxu0  ;;  %v3628_v47 = vsel %vm784_vm2, %v10361_v24, 0.0  ;;  %v3790_v28 = vmul.f32 %v10361_v24, %v10361_v24 }
 0x44c   :  { %v7154_v26 = vpop.eup %7153  ;;  %v4278_v40 = vadd.f32 1e-05, %v4203_v55  ;;  %v4129_v63 = vmul.f32 %v10364_v61, %v10364_v61  ;;  %v4054_v27 = vmul.f32 0.015625, %v3897_v41  ;;  %3629 = vadd.xlane.f32.xlu0 %v3628_v47  ;;  %6756 = vmatprep.mubr.msk.f32.mxu1 %vm7254_vm0, %v11316_v10 }
 0x44d   :  { %v10379_v53 = vadd.f32 %v3323_v32, %v11404_v2  ;;  %v3525_v59 = vpop.xlane.xlu0 %3524  ;;  %v4003_v11 = vsel %vm784_vm2, %v3790_v28, 0.0  ;;  %v4500_v62 = vmul.f32 %v7154_v26, %v4425_v39  ;;  %v11407_v26 = vld [vmem:[#allocation9_spill] sm:$0xff] }
 0x44e   :  { %7159 = vrsqrt.f32 %v4278_v40  ;;  %v4204_v6 = vsub.f32 %v4054_v27, %v4129_v63  ;;  %v10382_v18 = vmul.f32 0.015625, %v3525_v59  ;;  %4004 = vadd.xlane.f32.xlu1 %v4003_v11  ;;  %v3327_v60 = vpop.f32.mrb[36].mxu0  ;;  %v4427_v40 = vsub.f32 %v11407_v26, %v10328_v1  ;;  %v11408_v1 = vld [vmem:[#allocation49_spill] sm:$0xff] }
 0x44f   :  { %v3328_v31 = vadd.f32 %v10294_v44, %v3327_v60  ;;  %6757 = vmatmul.mubr.msk.f32.gmra.mrb[206].mxu1 %vm784_vm2, %v4500_v62  ;;  %v3900_v48 = vpop.xlane.xlu1 %3899  ;;  %v6643_v36 = vpop.f32.mrb[37].mxu0  ;;  %v3631_v3 = vsel %vm784_vm2, %v10379_v53, 0.0  ;;  %v3791_v21 = vmul.f32 %v10379_v53, %v10379_v53 }
 0x450   :  { %v7156_v9 = vpop.eup %7155  ;;  %v4279_v20 = vadd.f32 1e-05, %v4204_v6  ;;  %v4130_v55 = vmul.f32 %v10382_v18, %v10382_v18  ;;  %v4055_v22 = vmul.f32 0.015625, %v3900_v48  ;;  %3632 = vadd.xlane.f32.xlu0 %v3631_v3  ;;  %6759 = vmatprep.mubr.msk.f32.mxu1 %vm7254_vm0, %v11316_v10  ;;  %v11409_v3 = vld [vmem:[#allocation35_spill] sm:$0xff] }
 0x451   :  { %v10397_v43 = vadd.f32 %v3328_v31, %v11406_v38  ;;  %v3528_v39 = vpop.xlane.xlu0 %3527  ;;  %v4006_v32 = vsel %vm784_vm2, %v3791_v21, 0.0  ;;  %v4501_v41 = vmul.f32 %v7156_v9, %v4426_v56  ;;  %v2973_v21 = vadd.f32 %v10294_v44, %v11409_v3 }
 0x452   :  { %7161 = vrsqrt.f32 %v4279_v20  ;;  %v4205_v25 = vsub.f32 %v4055_v22, %v4130_v55  ;;  %v10400_v47 = vmul.f32 0.015625, %v3528_v39  ;;  %4007 = vadd.xlane.f32.xlu1 %v4006_v32  ;;  %v3332_v28 = vpop.f32.mrb[38].mxu0  ;;  %v11410_v22 = vld [vmem:[#allocation10_spill] sm:$0xff] }
 0x453   :  { %v3333_v63 = vadd.f32 %v10294_v44, %v3332_v28  ;;  %6760 = vmatmul.mubr.msk.f32.gmra.mrb[208].mxu1 %vm784_vm2, %v4501_v41  ;;  %v3903_v27 = vpop.xlane.xlu1 %3902  ;;  %v6646_v2 = vpop.f32.mrb[39].mxu0  ;;  %v3634_v59 = vsel %vm784_vm2, %v10397_v43, 0.0  ;;  %v3792_v11 = vmul.f32 %v10397_v43, %v10397_v43  ;;  %v4428_v38 = vsub.f32 %v11410_v22, %v10346_v33  ;;  %v11411_v33 = vld [vmem:[#allocation50_spill] sm:$0xff] }
 0x454   :  { %v7158_v62 = vpop.eup %7157  ;;  %v4280_v6 = vadd.f32 1e-05, %v4205_v25  ;;  %v4131_v60 = vmul.f32 %v10400_v47, %v10400_v47  ;;  %v4056_v4 = vmul.f32 0.015625, %v3903_v27  ;;  %3635 = vadd.xlane.f32.xlu0 %v3634_v59  ;;  %6762 = vmatprep.mubr.msk.f32.mxu1 %vm7254_vm0, %v11316_v10 }
 0x455   :  { %v10415_v56 = vadd.f32 %v3333_v63, %v11408_v1  ;;  %v3531_v31 = vpop.xlane.xlu0 %3530  ;;  %v4009_v48 = vsel %vm784_vm2, %v3792_v11, 0.0  ;;  %v4502_v36 = vmul.f32 %v7158_v62, %v4427_v40 }
 0x456   :  { %7163 = vrsqrt.f32 %v4280_v6  ;;  %v4206_v9 = vsub.f32 %v4056_v4, %v4131_v60  ;;  %v10420_v20 = vmul.f32 0.015625, %v3531_v31  ;;  %4010 = vadd.xlane.f32.xlu1 %v4009_v48  ;;  %v3337_v55 = vpop.f32.mrb[40].mxu0  ;;  %v11412_v6 = vld [vmem:[#allocation2_spill] sm:$0xff]  ;;  %v11413_v48 = vld [vmem:[#allocation11_spill] sm:$0xff] }
 0x457   :  { %v3338_v39 = vadd.f32 %v10294_v44, %v3337_v55  ;;  %6763 = vmatmul.mubr.msk.f32.gmra.mrb[210].mxu1 %vm784_vm2, %v4502_v36  ;;  %v3906_v32 = vpop.xlane.xlu1 %3905  ;;  %v6649_v41 = vpop.f32.mrb[41].mxu0  ;;  %v3637_v25 = vsel %vm784_vm2, %v10415_v56, 0.0  ;;  %v3793_v28 = vmul.f32 %v10415_v56, %v10415_v56  ;;  %v10439_v60 = vadd.f32 %v2973_v21, %v11412_v6 }
 0x458   :  { %v7160_v26 = vpop.eup %7159  ;;  %v4281_v40 = vadd.f32 1e-05, %v4206_v9  ;;  %v4132_v63 = vmul.f32 %v10420_v20, %v10420_v20  ;;  %v4057_v27 = vmul.f32 0.015625, %v3906_v32  ;;  %3638 = vadd.xlane.f32.xlu0 %v3637_v25  ;;  %6765 = vmatprep.mubr.msk.f32.mxu1 %vm7254_vm0, %v11316_v10  ;;  %v4429_v36 = vsub.f32 %v11413_v48, %v10364_v61 }
 0x459   :  { %v10435_v2 = vadd.f32 %v3338_v39, %v11411_v33  ;;  %v3534_v59 = vpop.xlane.xlu0 %3533  ;;  %v4012_v11 = vsel %vm784_vm2, %v3793_v28, 0.0  ;;  %v4503_v62 = vmul.f32 %v7160_v26, %v4428_v38 }
 0x45a   :  { %7165 = vrsqrt.f32 %v4281_v40  ;;  %v4207_v4 = vsub.f32 %v4057_v27, %v4132_v63  ;;  %v10441_v1 = vmul.f32 0.015625, %v3534_v59  ;;  %4013 = vadd.xlane.f32.xlu1 %v4012_v11  ;;  %v3342_v31 = vpop.f32.mrb[42].mxu0  ;;  %v11415_v27 = vld [vmem:[#allocation12_spill] sm:$0xff]  ;;  %v3421_v11 = vsel %vm784_vm2, %v10439_v60, 0.0 }
 0x45b   :  { %v3343_v3 = vadd.f32 %v10294_v44, %v3342_v31  ;;  %6766 = vmatmul.mubr.msk.f32.gmra.mrb[212].mxu1 %vm784_vm2, %v4503_v62  ;;  %v3909_v9 = vpop.xlane.xlu1 %3908  ;;  %v6652_v55 = vpop.f32.mrb[43].mxu0  ;;  %v3640_v22 = vsel %vm784_vm2, %v10435_v2, 0.0  ;;  %v3794_v21 = vmul.f32 %v10435_v2, %v10435_v2  ;;  %v11414_v44 = vld [vmem:[#allocation51_spill] sm:$0xff]  ;;  %v4430_v33 = vsub.f32 %v11415_v27, %v10382_v18 }
 0x45c   :  { %v7162_v38 = vpop.eup %7161  ;;  %v4282_v39 = vadd.f32 1e-05, %v4207_v4  ;;  %v4133_v32 = vmul.f32 %v10441_v1, %v10441_v1  ;;  %v4058_v41 = vmul.f32 0.015625, %v3909_v9  ;;  %3641 = vadd.xlane.f32.xlu0 %v3640_v22  ;;  %6768 = vmatprep.mubr.msk.f32.mxu1 %vm7254_vm0, %v11316_v10  ;;  %v3721_v62 = vmul.f32 %v10439_v60, %v10439_v60 }
 0x45d   :  { %v10456_v61 = vadd.f32 %v3343_v3, %v11414_v44  ;;  %v3537_v25 = vpop.xlane.xlu0 %3536  ;;  %v4015_v28 = vsel %vm784_vm2, %v3794_v21, 0.0  ;;  %v4504_v26 = vmul.f32 %v7162_v38, %v4429_v36  ;;  %v11416_v21 = vld [vmem:[#allocation13_spill] sm:$0xff] }
 0x45e   :  { %7167 = vrsqrt.f32 %v4282_v39  ;;  %v4208_v40 = vsub.f32 %v4058_v41, %v4133_v32  ;;  %v10459_v63 = vmul.f32 0.015625, %v3537_v25  ;;  %4016 = vadd.xlane.f32.xlu1 %v4015_v28  ;;  %v4431_v38 = vsub.f32 %v11416_v21, %v10400_v47 }
 0x45f   :  { %6769 = vmatmul.mubr.msk.f32.gmra.mrb[214].mxu1 %vm784_vm2, %v4504_v26  ;;  %v3912_v59 = vpop.xlane.xlu1 %3911  ;;  %v3643_v36 = vsel %vm784_vm2, %v10456_v61, 0.0  ;;  %v3795_v9 = vmul.f32 %v10456_v61, %v10456_v61  ;;  %v3796_v32 = vsel %vm784_vm2, %v3721_v62, 0.0 }
 0x460   :  { %v7164_v6 = vpop.eup %7163  ;;  %v4283_v4 = vadd.f32 1e-05, %v4208_v40  ;;  %v4134_v31 = vmul.f32 %v10459_v63, %v10459_v63  ;;  %v4059_v48 = vmul.f32 0.015625, %v3912_v59  ;;  %3422 = vadd.xlane.f32.xlu0 %v3421_v11  ;;  %6771 = vmatprep.mubr.msk.f32.mxu1 %vm7254_vm0, %v11316_v10  ;;  %v11417_v59 = vld [vmem:[#allocation14_spill] sm:$0xff] }
 0x461   :  { %v3540_v18 = vpop.xlane.xlu0 %3539  ;;  %v4505_v3 = vmul.f32 %v7164_v6, %v4430_v33  ;;  %v4018_v40 = vsel %vm784_vm2, %v3795_v9, 0.0  ;;  %v4432_v11 = vsub.f32 %v11417_v59, %v10420_v20  ;;  %v11418_v20 = vld [vmem:[#allocation15_spill] sm:$0xff] }
 0x462   :  { %7169 = vrsqrt.f32 %v4283_v4  ;;  %v4209_v55 = vsub.f32 %v4059_v48, %v4134_v31  ;;  %v10476_v22 = vmul.f32 0.015625, %v3540_v18  ;;  %3644 = vadd.xlane.f32.xlu1 %v3643_v36 }
 0x463   :  { %6772 = vmatmul.mubr.msk.f32.gmra.mrb[216].mxu1 %vm784_vm2, %v4505_v3  ;;  %v3915_v39 = vpop.xlane.xlu1 %3914 }
 0x464   :  { %v7166_v41 = vpop.eup %7165  ;;  %v4284_v44 = vadd.f32 1e-05, %v4209_v55  ;;  %v4135_v25 = vmul.f32 %v10476_v22, %v10476_v22  ;;  %v4060_v28 = vmul.f32 0.015625, %v3915_v39  ;;  %3797 = vadd.xlane.f32.xlu0 %v3796_v32  ;;  %6774 = vmatprep.mubr.msk.f32.mxu1 %vm7254_vm0, %v11316_v10  ;;  %v4433_v55 = vsub.f32 %v11418_v20, %v10441_v1  ;;  %v11419_v1 = vld [vmem:[#allocation16_spill] sm:$0xff] }
 0x465   :  { %v3543_v26 = vpop.xlane.xlu0 %3542  ;;  %v4506_v27 = vmul.f32 %v7166_v41, %v4431_v38 }
 0x466   :  { %7171 = vrsqrt.f32 %v4284_v44  ;;  %v4210_v47 = vsub.f32 %v4060_v28, %v4135_v25  ;;  %v10487_v33 = vmul.f32 0.015625, %v3543_v26  ;;  %4019 = vadd.xlane.f32.xlu1 %v4018_v40  ;;  %v4434_v40 = vsub.f32 %v11419_v1, %v10459_v63  ;;  %v11420_v63 = vld [vmem:[#allocation17_spill] sm:$0xff] }
 0x467   :  { %6775 = vmatmul.mubr.msk.f32.gmra.mrb[218].mxu1 %vm784_vm2, %v4506_v27  ;;  %v3918_v62 = vpop.xlane.xlu1 %3917 }
 0x468   :  { %v7168_v6 = vpop.eup %7167  ;;  %v4285_v4 = vadd.f32 1e-05, %v4210_v47  ;;  %v4136_v31 = vmul.f32 %v10487_v33, %v10487_v33  ;;  %v4061_v48 = vmul.f32 0.015625, %v3918_v62  ;;  %6777 = vmatprep.mubr.msk.f32.mxu1 %vm7254_vm0, %v11316_v10 }
 0x469   :  { %v3546_v18 = vpop.xlane.xlu0 %3545  ;;  %v4507_v36 = vmul.f32 %v7168_v6, %v4432_v11 }
 0x46a   :  { %7173 = vrsqrt.f32 %v4285_v4  ;;  %v4211_v3 = vsub.f32 %v4061_v48, %v4136_v31  ;;  %v10496_v9 = vmul.f32 0.015625, %v3546_v18  ;;  %v4435_v18 = vsub.f32 %v11420_v63, %v10476_v22  ;;  %v11421_v22 = vld [vmem:[#allocation18_spill] sm:$0xff] }
 0x46b   :  { %6778 = vmatmul.mubr.msk.f32.gmra.mrb[220].mxu1 %vm784_vm2, %v4507_v36  ;;  %v3921_v21 = vpop.xlane.xlu1 %3920 }
 0x46c   :  { %v7170_v38 = vpop.eup %7169  ;;  %v4286_v39 = vadd.f32 1e-05, %v4211_v3  ;;  %v4137_v32 = vmul.f32 %v10496_v9, %v10496_v9  ;;  %v4062_v41 = vmul.f32 0.015625, %v3921_v21  ;;  %6780 = vmatprep.mubr.msk.f32.mxu1 %vm7254_vm0, %v11316_v10 }
 0x46d   :  { %v3549_v44 = vpop.xlane.xlu0 %3548  ;;  %v4508_v25 = vmul.f32 %v7170_v38, %v4433_v55 }
 0x46e   :  { %7175 = vrsqrt.f32 %v4286_v39  ;;  %v4212_v28 = vsub.f32 %v4062_v41, %v4137_v32  ;;  %v10505_v26 = vmul.f32 0.015625, %v3549_v44  ;;  %v4436_v44 = vsub.f32 %v11421_v22, %v10487_v33  ;;  %v11422_v33 = vld [vmem:[#allocation19_spill] sm:$0xff] }
 0x46f   :  { %6781 = vmatmul.mubr.msk.f32.gmra.mrb[222].mxu1 %vm784_vm2, %v4508_v25  ;;  %v3924_v27 = vpop.xlane.xlu1 %3923 }
 0x470   :  { %v7172_v47 = vpop.eup %7171  ;;  %v4287_v59 = vadd.f32 1e-05, %v4212_v28  ;;  %v4138_v11 = vmul.f32 %v10505_v26, %v10505_v26  ;;  %v4063_v62 = vmul.f32 0.015625, %v3924_v27  ;;  %6783 = vmatprep.mubr.msk.f32.mxu1 %vm7254_vm0, %v11316_v10 }
 0x471   :  { %v3552_v6 = vpop.xlane.xlu0 %3551  ;;  %v4509_v4 = vmul.f32 %v7172_v47, %v4434_v40 }
 0x472   :  { %7177 = vrsqrt.f32 %v4287_v59  ;;  %v4213_v31 = vsub.f32 %v4063_v62, %v4138_v11  ;;  %v10514_v48 = vmul.f32 0.015625, %v3552_v6  ;;  %v4437_v6 = vsub.f32 %v11422_v33, %v10496_v9 }
 0x473   :  { %6784 = vmatmul.mubr.msk.f32.gmra.mrb[224].mxu1 %vm784_vm2, %v4509_v4  ;;  %v3927_v36 = vpop.xlane.xlu1 %3926  ;;  %v4438_v9 = vsub.f32 %v9870_v19, %v10505_v26 }
 0x474   :  { %v7174_v3 = vpop.eup %7173  ;;  %v4288_v20 = vadd.f32 1e-05, %v4213_v31  ;;  %v4139_v55 = vmul.f32 %v10514_v48, %v10514_v48  ;;  %v4064_v21 = vmul.f32 0.015625, %v3927_v36  ;;  %6786 = vmatprep.mubr.msk.f32.mxu1 %vm7254_vm0, %v11316_v10  ;;  %v4439_v19 = vsub.f32 %v9888_v5, %v10514_v48 }
 0x475   :  { %v3555_v38 = vpop.xlane.xlu0 %3554  ;;  %v4510_v39 = vmul.f32 %v7174_v3, %v4435_v18 }
 0x476   :  { %7179 = vrsqrt.f32 %v4288_v20  ;;  %v4214_v32 = vsub.f32 %v4064_v21, %v4139_v55  ;;  %v10523_v41 = vmul.f32 0.015625, %v3555_v38 }
 0x477   :  { %6787 = vmatmul.mubr.msk.f32.gmra.mrb[226].mxu1 %vm784_vm2, %v4510_v39  ;;  %v3930_v25 = vpop.xlane.xlu1 %3929 }
 0x478   :  { %v7176_v28 = vpop.eup %7175  ;;  %v4289_v1 = vadd.f32 1e-05, %v4214_v32  ;;  %v4140_v40 = vmul.f32 %v10523_v41, %v10523_v41  ;;  %v4065_v27 = vmul.f32 0.015625, %v3930_v25  ;;  %6789 = vmatprep.mubr.msk.f32.mxu1 %vm7254_vm0, %v11316_v10  ;;  %v4440_v5 = vsub.f32 %v9906_v54, %v10523_v41 }
 0x479   :  { %v3558_v47 = vpop.xlane.xlu0 %3557  ;;  %v4511_v59 = vmul.f32 %v7176_v28, %v4436_v44 }
 0x47a   :  { %7181 = vrsqrt.f32 %v4289_v1  ;;  %v4215_v11 = vsub.f32 %v4065_v27, %v4140_v40  ;;  %v10532_v62 = vmul.f32 0.015625, %v3558_v47 }
 0x47b   :  { %6790 = vmatmul.mubr.msk.f32.gmra.mrb[228].mxu1 %vm784_vm2, %v4511_v59  ;;  %v3933_v4 = vpop.xlane.xlu1 %3932 }
 0x47c   :  { %v7178_v31 = vpop.eup %7177  ;;  %v4290_v63 = vadd.f32 1e-05, %v4215_v11  ;;  %v4141_v18 = vmul.f32 %v10532_v62, %v10532_v62  ;;  %v4066_v36 = vmul.f32 0.015625, %v3933_v4  ;;  %6792 = vmatprep.mubr.msk.f32.mxu1 %vm7254_vm0, %v11316_v10  ;;  %v4441_v54 = vsub.f32 %v9924_v16, %v10532_v62 }
 0x47d   :  { %v3561_v3 = vpop.xlane.xlu0 %3560  ;;  %v4512_v20 = vmul.f32 %v7178_v31, %v4437_v6 }
 0x47e   :  { %7183 = vrsqrt.f32 %v4290_v63  ;;  %v4216_v55 = vsub.f32 %v4066_v36, %v4141_v18  ;;  %v10541_v21 = vmul.f32 0.015625, %v3561_v3 }
 0x47f   :  { %6793 = vmatmul.mubr.msk.f32.gmra.mrb[230].mxu1 %vm784_vm2, %v4512_v20  ;;  %v3936_v38 = vpop.xlane.xlu1 %3935 }
 0x480   :  { %v7180_v39 = vpop.eup %7179  ;;  %v4291_v32 = vadd.f32 1e-05, %v4216_v55  ;;  %v4142_v22 = vmul.f32 %v10541_v21, %v10541_v21  ;;  %v4067_v44 = vmul.f32 0.015625, %v3936_v38  ;;  %6795 = vmatprep.mubr.msk.f32.mxu1 %vm7254_vm0, %v11316_v10  ;;  %v4442_v16 = vsub.f32 %v9942_v57, %v10541_v21 }
 0x481   :  { %v3564_v25 = vpop.xlane.xlu0 %3563  ;;  %v4513_v28 = vmul.f32 %v7180_v39, %v4438_v9 }
 0x482   :  { %7185 = vrsqrt.f32 %v4291_v32  ;;  %v4217_v1 = vsub.f32 %v4067_v44, %v4142_v22  ;;  %v10550_v40 = vmul.f32 0.015625, %v3564_v25 }
 0x483   :  { %6796 = vmatmul.mubr.msk.f32.gmra.mrb[232].mxu1 %vm784_vm2, %v4513_v28  ;;  %v3939_v26 = vpop.xlane.xlu1 %3938 }
 0x484   :  { %v7182_v27 = vpop.eup %7181  ;;  %v4292_v47 = vadd.f32 1e-05, %v4217_v1  ;;  %v4143_v59 = vmul.f32 %v10550_v40, %v10550_v40  ;;  %v4068_v11 = vmul.f32 0.015625, %v3939_v26  ;;  %6798 = vmatprep.mubr.msk.f32.mxu1 %vm7254_vm0, %v11316_v10  ;;  %v4443_v57 = vsub.f32 %v9960_v52, %v10550_v40 }
 0x485   :  { %v3567_v33 = vpop.xlane.xlu0 %3566  ;;  %v4514_v6 = vmul.f32 %v7182_v27, %v4439_v19 }
 0x486   :  { %7187 = vrsqrt.f32 %v4292_v47  ;;  %v4218_v4 = vsub.f32 %v4068_v11, %v4143_v59  ;;  %v10559_v31 = vmul.f32 0.015625, %v3567_v33 }
 0x487   :  { %6799 = vmatmul.mubr.msk.f32.gmra.mrb[234].mxu1 %vm784_vm2, %v4514_v6  ;;  %v3942_v48 = vpop.xlane.xlu1 %3941 }
 0x488   :  { %v7184_v63 = vpop.eup %7183  ;;  %v4293_v18 = vadd.f32 1e-05, %v4218_v4  ;;  %v4144_v36 = vmul.f32 %v10559_v31, %v10559_v31  ;;  %v4069_v3 = vmul.f32 0.015625, %v3942_v48  ;;  %6801 = vmatprep.mubr.msk.f32.mxu1 %vm7254_vm0, %v11316_v10  ;;  %v4444_v52 = vsub.f32 %v9978_v17, %v10559_v31 }
 0x489   :  { %v3570_v20 = vpop.xlane.xlu0 %3569  ;;  %v4515_v55 = vmul.f32 %v7184_v63, %v4440_v5 }
 0x48a   :  { %7189 = vrsqrt.f32 %v4293_v18  ;;  %v4219_v9 = vsub.f32 %v4069_v3, %v4144_v36  ;;  %v10568_v38 = vmul.f32 0.015625, %v3570_v20 }
 0x48b   :  { %6802 = vmatmul.mubr.msk.f32.gmra.mrb[236].mxu1 %vm784_vm2, %v4515_v55  ;;  %v3945_v41 = vpop.xlane.xlu1 %3944 }
 0x48c   :  { %v7186_v39 = vpop.eup %7185  ;;  %v4294_v32 = vadd.f32 1e-05, %v4219_v9  ;;  %v4145_v22 = vmul.f32 %v10568_v38, %v10568_v38  ;;  %v4070_v44 = vmul.f32 0.015625, %v3945_v41  ;;  %6804 = vmatprep.mubr.msk.f32.mxu1 %vm7254_vm0, %v11316_v10  ;;  %v4445_v17 = vsub.f32 %v9996_v14, %v10568_v38 }
 0x48d   :  { %v3573_v25 = vpop.xlane.xlu0 %3572  ;;  %v4516_v28 = vmul.f32 %v7186_v39, %v4441_v54 }
 0x48e   :  { %7191 = vrsqrt.f32 %v4294_v32  ;;  %v4220_v1 = vsub.f32 %v4070_v44, %v4145_v22  ;;  %v10577_v19 = vmul.f32 0.015625, %v3573_v25 }
 0x48f   :  { %6805 = vmatmul.mubr.msk.f32.gmra.mrb[238].mxu1 %vm784_vm2, %v4516_v28  ;;  %v3948_v62 = vpop.xlane.xlu1 %3947 }
 0x490   :  { %v7188_v26 = vpop.eup %7187  ;;  %v4295_v27 = vadd.f32 1e-05, %v4220_v1  ;;  %v4146_v47 = vmul.f32 %v10577_v19, %v10577_v19  ;;  %v4071_v59 = vmul.f32 0.015625, %v3948_v62  ;;  %6807 = vmatprep.mubr.msk.f32.mxu1 %vm7254_vm0, %v11316_v10  ;;  %v4446_v14 = vsub.f32 %v10014_v50, %v10577_v19 }
 0x491   :  { %v3576_v11 = vpop.xlane.xlu0 %3575  ;;  %v4517_v33 = vmul.f32 %v7188_v26, %v4442_v16 }
 0x492   :  { %7193 = vrsqrt.f32 %v4295_v27  ;;  %v4221_v6 = vsub.f32 %v4071_v59, %v4146_v47  ;;  %v10586_v4 = vmul.f32 0.015625, %v3576_v11 }
 0x493   :  { %6808 = vmatmul.mubr.msk.f32.gmra.mrb[240].mxu1 %vm784_vm2, %v4517_v33  ;;  %v3951_v21 = vpop.xlane.xlu1 %3950 }
 0x494   :  { %v7190_v5 = vpop.eup %7189  ;;  %v4296_v48 = vadd.f32 1e-05, %v4221_v6  ;;  %v4147_v63 = vmul.f32 %v10586_v4, %v10586_v4  ;;  %v4072_v18 = vmul.f32 0.015625, %v3951_v21  ;;  %6810 = vmatprep.mubr.msk.f32.mxu1 %vm7254_vm0, %v11316_v10  ;;  %v4447_v50 = vsub.f32 %v10032_v42, %v10586_v4 }
 0x495   :  { %v3579_v36 = vpop.xlane.xlu0 %3578  ;;  %v4518_v3 = vmul.f32 %v7190_v5, %v4443_v57 }
 0x496   :  { %7195 = vrsqrt.f32 %v4296_v48  ;;  %v4222_v20 = vsub.f32 %v4072_v18, %v4147_v63  ;;  %v10595_v55 = vmul.f32 0.015625, %v3579_v36 }
 0x497   :  { %6811 = vmatmul.mubr.msk.f32.gmra.mrb[242].mxu1 %vm784_vm2, %v4518_v3  ;;  %v3954_v40 = vpop.xlane.xlu1 %3953 }
 0x498   :  { %v7192_v9 = vpop.eup %7191  ;;  %v4297_v54 = vadd.f32 1e-05, %v4222_v20  ;;  %v4148_v41 = vmul.f32 %v10595_v55, %v10595_v55  ;;  %v4073_v39 = vmul.f32 0.015625, %v3954_v40  ;;  %6813 = vmatprep.mubr.msk.f32.mxu1 %vm7254_vm0, %v11316_v10  ;;  %v4448_v42 = vsub.f32 %v10050_v46, %v10595_v55 }
 0x499   :  { %v3582_v32 = vpop.xlane.xlu0 %3581  ;;  %v4519_v22 = vmul.f32 %v7192_v9, %v4444_v52 }
 0x49a   :  { %7197 = vrsqrt.f32 %v4297_v54  ;;  %v4223_v44 = vsub.f32 %v4073_v39, %v4148_v41  ;;  %v10604_v25 = vmul.f32 0.015625, %v3582_v32 }
 0x49b   :  { %6814 = vmatmul.mubr.msk.f32.gmra.mrb[244].mxu1 %vm784_vm2, %v4519_v22  ;;  %v3957_v31 = vpop.xlane.xlu1 %3956 }
 0x49c   :  { %v7194_v28 = vpop.eup %7193  ;;  %v4298_v1 = vadd.f32 1e-05, %v4223_v44  ;;  %v4149_v16 = vmul.f32 %v10604_v25, %v10604_v25  ;;  %v4074_v62 = vmul.f32 0.015625, %v3957_v31  ;;  %6816 = vmatprep.mubr.msk.f32.mxu1 %vm7254_vm0, %v11316_v10  ;;  %v4449_v46 = vsub.f32 %v10068_v34, %v10604_v25 }
 0x49d   :  { %v3585_v26 = vpop.xlane.xlu0 %3584  ;;  %v4520_v27 = vmul.f32 %v7194_v28, %v4445_v17 }
 0x49e   :  { %7199 = vrsqrt.f32 %v4298_v1  ;;  %v4224_v47 = vsub.f32 %v4074_v62, %v4149_v16  ;;  %v10613_v59 = vmul.f32 0.015625, %v3585_v26 }
 0x49f   :  { %6817 = vmatmul.mubr.msk.f32.gmra.mrb[246].mxu1 %vm784_vm2, %v4520_v27  ;;  %v3960_v38 = vpop.xlane.xlu1 %3959 }
 0x4a0   :  { %v7196_v11 = vpop.eup %7195  ;;  %v4299_v33 = vadd.f32 1e-05, %v4224_v47  ;;  %v4150_v6 = vmul.f32 %v10613_v59, %v10613_v59  ;;  %v4075_v57 = vmul.f32 0.015625, %v3960_v38  ;;  %6819 = vmatprep.mubr.msk.f32.mxu1 %vm7254_vm0, %v11316_v10  ;;  %v4450_v34 = vsub.f32 %v10086_v13, %v10613_v59 }
 0x4a1   :  { %v3588_v21 = vpop.xlane.xlu0 %3587  ;;  %v4521_v5 = vmul.f32 %v7196_v11, %v4446_v14 }
 0x4a2   :  { %7201 = vrsqrt.f32 %v4299_v33  ;;  %v4225_v48 = vsub.f32 %v4075_v57, %v4150_v6  ;;  %v10622_v63 = vmul.f32 0.015625, %v3588_v21  ;;  %v10659_v21 = vld [vmem:[%s11207_s8] ss:$0 sm:$0xff] }
 0x4a3   :  { %6820 = vmatmul.mubr.msk.f32.gmra.mrb[248].mxu1 %vm784_vm2, %v4521_v5  ;;  %v3963_v19 = vpop.xlane.xlu1 %3962 }
 0x4a4   :  { %v7198_v18 = vpop.eup %7197  ;;  %v4300_v36 = vadd.f32 1e-05, %v4225_v48  ;;  %v4151_v3 = vmul.f32 %v10622_v63, %v10622_v63  ;;  %v4076_v20 = vmul.f32 0.015625, %v3963_v19  ;;  %6822 = vmatprep.mubr.msk.f32.mxu1 %vm7254_vm0, %v11316_v10  ;;  %v4451_v19 = vsub.f32 %v10104_v7, %v10622_v63 }
 0x4a5   :  { %v3591_v52 = vpop.xlane.xlu0 %3590  ;;  %v4522_v40 = vmul.f32 %v7198_v18, %v4447_v50 }
 0x4a6   :  { %7203 = vrsqrt.f32 %v4300_v36  ;;  %v4226_v9 = vsub.f32 %v4076_v20, %v4151_v3  ;;  %v10631_v54 = vmul.f32 0.015625, %v3591_v52 }
 0x4a7   :  { %6823 = vmatmul.mubr.msk.f32.gmra.mrb[250].mxu1 %vm784_vm2, %v4522_v40  ;;  %v3966_v4 = vpop.xlane.xlu1 %3965 }
 0x4a8   :  { %v7200_v41 = vpop.eup %7199  ;;  %v4301_v39 = vadd.f32 1e-05, %v4226_v9  ;;  %v4152_v32 = vmul.f32 %v10631_v54, %v10631_v54  ;;  %v4077_v22 = vmul.f32 0.015625, %v3966_v4  ;;  %6825 = vmatprep.mubr.msk.f32.mxu1 %vm7254_vm0, %v11316_v10 }
 0x4a9   :  { %v3594_v44 = vpop.xlane.xlu0 %3593  ;;  %v4523_v17 = vmul.f32 %v7200_v41, %v4448_v42 }
 0x4aa   :  { %7205 = vrsqrt.f32 %v4301_v39  ;;  %v4227_v31 = vsub.f32 %v4077_v22, %v4152_v32  ;;  %v10640_v28 = vmul.f32 0.015625, %v3594_v44  ;;  %v4452_v39 = vsub.f32 %v10122_v15, %v10631_v54 }
 0x4ab   :  { %6826 = vmatmul.mubr.msk.f32.gmra.mrb[252].mxu1 %vm784_vm2, %v4523_v17  ;;  %v3969_v55 = vpop.xlane.xlu1 %3968 }
 0x4ac   :  { %v7202_v1 = vpop.eup %7201  ;;  %v4302_v16 = vadd.f32 1e-05, %v4227_v31  ;;  %v4153_v62 = vmul.f32 %v10640_v28, %v10640_v28  ;;  %v4078_v26 = vmul.f32 0.015625, %v3969_v55  ;;  %6828 = vmatprep.mubr.msk.f32.mxu1 %vm7254_vm0, %v11316_v10 }
 0x4ad   :  { %v3597_v27 = vpop.xlane.xlu0 %3596  ;;  %v4524_v47 = vmul.f32 %v7202_v1, %v4449_v46 }
 0x4ae   :  { %7207 = vrsqrt.f32 %v4302_v16  ;;  %v4228_v14 = vsub.f32 %v4078_v26, %v4153_v62  ;;  %v10649_v38 = vmul.f32 0.015625, %v3597_v27  ;;  %v4453_v26 = vsub.f32 %v10140_v49, %v10640_v28 }
 0x4af   :  { %6829 = vmatmul.mubr.msk.f32.gmra.mrb[254].mxu1 %vm784_vm2, %v4524_v47  ;;  %v3972_v25 = vpop.xlane.xlu1 %3971 }
 0x4b0   :  { %v7204_v11 = vpop.eup %7203  ;;  %v4303_v33 = vadd.f32 1e-05, %v4228_v14  ;;  %v4154_v6 = vmul.f32 %v10649_v38, %v10649_v38  ;;  %v4079_v57 = vmul.f32 0.015625, %v3972_v25  ;;  %6831 = vmatprep.mubr.msk.f32.mxu1 %vm7254_vm0, %v11316_v10 }
 0x4b1   :  { %v4525_v5 = vmul.f32 %v7204_v11, %v4450_v34  ;;  %v3600_v48 = vpop.xlane.xlu0 %3599 }
 0x4b2   :  { %7209 = vrsqrt.f32 %v4303_v33  ;;  %v4229_v13 = vsub.f32 %v4079_v57, %v4154_v6  ;;  %v10663_v59 = vmul.f32 0.015625, %v3600_v48  ;;  %v4857_v50 = vpop.f32.mrb[150].mxu1  ;;  %v4454_v48 = vsub.f32 %v10158_v12, %v10649_v38 }
 0x4b3   :  { %v4858_v18 = vadd.f32 %v10659_v21, %v4857_v50  ;;  %v6674_v36 = vpop.f32.mrb[151].mxu1  ;;  %6832 = vmatmul.mubr.msk.f32.gmra.mrb[0].mxu1 %vm784_vm2, %v4525_v5  ;;  %v3975_v3 = vpop.xlane.xlu1 %3974 }
 0x4b4   :  { %v7206_v20 = vpop.eup %7205  ;;  %v4304_v52 = vadd.f32 1e-05, %v4229_v13  ;;  %v4155_v40 = vmul.f32 %v10663_v59, %v10663_v59  ;;  %v4080_v9 = vmul.f32 0.015625, %v3975_v3  ;;  %6834 = vmatprep.mubr.msk.f32.mxu1 %vm7254_vm0, %v11316_v10 }
 0x4b5   :  { %v4526_v42 = vmul.f32 %v7206_v20, %v4451_v19  ;;  %5228 = vst.msk [vmem:[%s11208_s9 + $0x8] sm:$0xff] %vm5226_vm3, %v4858_v18  ;;  %v3603_v7 = vpop.xlane.xlu0 %3602 }
 0x4b6   :  { %7211 = vrsqrt.f32 %v4304_v52  ;;  %v4230_v63 = vsub.f32 %v4080_v9, %v4155_v40  ;;  %v10677_v4 = vmul.f32 0.015625, %v3603_v7  ;;  %v4862_v41 = vpop.f32.mrb[152].mxu1 }
 0x4b7   :  { %v4863_v32 = vadd.f32 %v10659_v21, %v4862_v41  ;;  %v6677_v22 = vpop.f32.mrb[153].mxu1  ;;  %6835 = vmatmul.mubr.msk.f32.gmra.mrb[2].mxu1 %vm784_vm2, %v4526_v42  ;;  %v3978_v44 = vpop.xlane.xlu1 %3977  ;;  %v4455_v42 = vsub.f32 %v10176_v45, %v10663_v59 }
 0x4b8   :  { %v7208_v17 = vpop.eup %7207  ;;  %v4305_v31 = vadd.f32 1e-05, %v4230_v63  ;;  %v4156_v46 = vmul.f32 %v10677_v4, %v10677_v4  ;;  %v4081_v55 = vmul.f32 0.015625, %v3978_v44  ;;  %6837 = vmatprep.mubr.msk.f32.mxu1 %vm7254_vm0, %v11316_v10 }
 0x4b9   :  { %v4527_v1 = vmul.f32 %v7208_v17, %v4452_v39  ;;  %5229 = vst.msk [vmem:[%s11208_s9 + $0x10] sm:$0xff] %vm5226_vm3, %v4863_v32  ;;  %v3606_v15 = vpop.xlane.xlu0 %3605 }
 0x4ba   :  { %7213 = vrsqrt.f32 %v4305_v31  ;;  %v4231_v54 = vsub.f32 %v4081_v55, %v4156_v46  ;;  %v10691_v16 = vmul.f32 0.015625, %v3606_v15  ;;  %v4867_v62 = vpop.f32.mrb[154].mxu1  ;;  %v4456_v55 = vsub.f32 %v10194_v35, %v10677_v4 }
 0x4bb   :  { %v4868_v27 = vadd.f32 %v10659_v21, %v4867_v62  ;;  %v6680_v47 = vpop.f32.mrb[155].mxu1  ;;  %6838 = vmatmul.mubr.msk.f32.gmra.mrb[4].mxu1 %vm784_vm2, %v4527_v1  ;;  %v3981_v14 = vpop.xlane.xlu1 %3980 }
 0x4bc   :  { %v7210_v34 = vpop.eup %7209  ;;  %v4306_v25 = vadd.f32 1e-05, %v4231_v54  ;;  %v4157_v11 = vmul.f32 %v10691_v16, %v10691_v16  ;;  %v4082_v33 = vmul.f32 0.015625, %v3981_v14  ;;  %6840 = vmatprep.mubr.msk.f32.mxu1 %vm7254_vm0, %v11316_v10 }
 0x4bd   :  { %v4528_v6 = vmul.f32 %v7210_v34, %v4453_v26  ;;  %5230 = vst.msk [vmem:[%s11208_s9 + $0x18] sm:$0xff] %vm5226_vm3, %v4868_v27  ;;  %v3609_v49 = vpop.xlane.xlu0 %3608 }
 0x4be   :  { %7215 = vrsqrt.f32 %v4306_v25  ;;  %v4232_v28 = vsub.f32 %v4082_v33, %v4157_v11  ;;  %v10705_v57 = vmul.f32 0.015625, %v3609_v49  ;;  %v4872_v5 = vpop.f32.mrb[156].mxu1  ;;  %v4457_v11 = vsub.f32 %v10212_v58, %v10691_v16 }
 0x4bf   :  { %v4873_v13 = vadd.f32 %v10659_v21, %v4872_v5  ;;  %v6683_v50 = vpop.f32.mrb[157].mxu1  ;;  %6841 = vmatmul.mubr.msk.f32.gmra.mrb[6].mxu1 %vm784_vm2, %v4528_v6  ;;  %v3984_v19 = vpop.xlane.xlu1 %3983 }
 0x4c0   :  { %v7212_v18 = vpop.eup %7211  ;;  %v4307_v36 = vadd.f32 1e-05, %v4232_v28  ;;  %v4158_v3 = vmul.f32 %v10705_v57, %v10705_v57  ;;  %v4083_v20 = vmul.f32 0.015625, %v3984_v19  ;;  %6843 = vmatprep.mubr.msk.f32.mxu1 %vm7254_vm0, %v11316_v10 }
 0x4c1   :  { %v4529_v52 = vmul.f32 %v7212_v18, %v4454_v48  ;;  %5231 = vst.msk [vmem:[%s11208_s9 + $0x20] sm:$0xff] %vm5226_vm3, %v4873_v13  ;;  %v3612_v12 = vpop.xlane.xlu0 %3611 }
 0x4c2   :  { %7217 = vrsqrt.f32 %v4307_v36  ;;  %v4233_v38 = vsub.f32 %v4083_v20, %v4158_v3  ;;  %v10719_v40 = vmul.f32 0.015625, %v3612_v12  ;;  %v4877_v9 = vpop.f32.mrb[158].mxu1  ;;  %v4458_v36 = vsub.f32 %v10230_v0, %v10705_v57 }
 0x4c3   :  { %v4878_v7 = vadd.f32 %v10659_v21, %v4877_v9  ;;  %v6686_v63 = vpop.f32.mrb[159].mxu1  ;;  %6844 = vmatmul.mubr.msk.f32.gmra.mrb[8].mxu1 %vm784_vm2, %v4529_v52  ;;  %v3987_v41 = vpop.xlane.xlu1 %3986 }
 0x4c4   :  { %v7214_v39 = vpop.eup %7213  ;;  %v4308_v32 = vadd.f32 1e-05, %v4233_v38  ;;  %v4159_v22 = vmul.f32 %v10719_v40, %v10719_v40  ;;  %v4084_v44 = vmul.f32 0.015625, %v3987_v41  ;;  %6846 = vmatprep.mubr.msk.f32.mxu1 %vm7254_vm0, %v11316_v10 }
 0x4c5   :  { %v4530_v17 = vmul.f32 %v7214_v39, %v4455_v42  ;;  %5232 = vst.msk [vmem:[%s11208_s9 + $0x28] sm:$0xff] %vm5226_vm3, %v4878_v7  ;;  %v3615_v45 = vpop.xlane.xlu0 %3614  ;;  %v4459_v39 = vsub.f32 %v10248_v30, %v10719_v40 }
 0x4c6   :  { %7219 = vrsqrt.f32 %v4308_v32  ;;  %v4234_v59 = vsub.f32 %v4084_v44, %v4159_v22  ;;  %v10733_v31 = vmul.f32 0.015625, %v3615_v45  ;;  %v4882_v46 = vpop.f32.mrb[160].mxu1 }
 0x4c7   :  { %v4883_v1 = vadd.f32 %v10659_v21, %v4882_v46  ;;  %v6689_v15 = vpop.f32.mrb[161].mxu1  ;;  %6847 = vmatmul.mubr.msk.f32.gmra.mrb[10].mxu1 %vm784_vm2, %v4530_v17  ;;  %v3990_v54 = vpop.xlane.xlu1 %3989 }
 0x4c8   :  { %v7216_v62 = vpop.eup %7215  ;;  %v4309_v26 = vadd.f32 1e-05, %v4234_v59  ;;  %v4160_v27 = vmul.f32 %v10733_v31, %v10733_v31  ;;  %v4085_v47 = vmul.f32 0.015625, %v3990_v54  ;;  %6849 = vmatprep.mubr.msk.f32.mxu1 %vm7254_vm0, %v11316_v10  ;;  %v4460_v54 = vsub.f32 %v10266_v8, %v10733_v31 }
 0x4c9   :  { %v4531_v14 = vmul.f32 %v7216_v62, %v4456_v55  ;;  %5233 = vst.msk [vmem:[%s11208_s9 + $0x30] sm:$0xff] %vm5226_vm3, %v4883_v1  ;;  %v3618_v35 = vpop.xlane.xlu0 %3617 }
 0x4ca   :  { %7221 = vrsqrt.f32 %v4309_v26  ;;  %v4235_v4 = vsub.f32 %v4085_v47, %v4160_v27  ;;  %v10747_v34 = vmul.f32 0.015625, %v3618_v35  ;;  %v4887_v25 = vpop.f32.mrb[162].mxu1 }
 0x4cb   :  { %v4888_v33 = vadd.f32 %v10659_v21, %v4887_v25  ;;  %v6692_v6 = vpop.f32.mrb[163].mxu1  ;;  %6850 = vmatmul.mubr.msk.f32.gmra.mrb[12].mxu1 %vm784_vm2, %v4531_v14  ;;  %v3993_v49 = vpop.xlane.xlu1 %3992 }
 0x4cc   :  { %v7218_v28 = vpop.eup %7217  ;;  %v4310_v5 = vadd.f32 1e-05, %v4235_v4  ;;  %v4161_v48 = vmul.f32 %v10747_v34, %v10747_v34  ;;  %v4086_v13 = vmul.f32 0.015625, %v3993_v49  ;;  %6852 = vmatprep.mubr.msk.f32.mxu1 %vm7254_vm0, %v11316_v10  ;;  %v4461_v6 = vsub.f32 %v10284_v29, %v10747_v34 }
 0x4cd   :  { %v4532_v50 = vmul.f32 %v7218_v28, %v4457_v11  ;;  %5234 = vst.msk [vmem:[%s11208_s9 + $0x38] sm:$0xff] %vm5226_vm3, %v4888_v33  ;;  %v3621_v58 = vpop.xlane.xlu0 %3620 }
 0x4ce   :  { %7223 = vrsqrt.f32 %v4310_v5  ;;  %v4236_v16 = vsub.f32 %v4086_v13, %v4161_v48  ;;  %v10761_v19 = vmul.f32 0.015625, %v3621_v58  ;;  %v4892_v18 = vpop.f32.mrb[164].mxu1 }
 0x4cf   :  { %v4893_v3 = vadd.f32 %v10659_v21, %v4892_v18  ;;  %v6695_v20 = vpop.f32.mrb[165].mxu1  ;;  %6853 = vmatmul.mubr.msk.f32.gmra.mrb[14].mxu1 %vm784_vm2, %v4532_v50  ;;  %v3996_v52 = vpop.xlane.xlu1 %3995 }
 0x4d0   :  { %v7220_v12 = vpop.eup %7219  ;;  %v4311_v38 = vadd.f32 1e-05, %v4236_v16  ;;  %v4162_v9 = vmul.f32 %v10761_v19, %v10761_v19  ;;  %v4087_v42 = vmul.f32 0.015625, %v3996_v52  ;;  %6855 = vmatprep.mubr.msk.f32.mxu1 %vm7254_vm0, %v11316_v10 }
 0x4d1   :  { %v4533_v7 = vmul.f32 %v7220_v12, %v4458_v36  ;;  %5235 = vst.msk [vmem:[%s11208_s9 + $0x40] sm:$0xff] %vm5226_vm3, %v4893_v3  ;;  %v3624_v0 = vpop.xlane.xlu0 %3623  ;;  %v4462_v3 = vsub.f32 %v10307_v51, %v10761_v19 }
 0x4d2   :  { %7225 = vrsqrt.f32 %v4311_v38  ;;  %v4237_v57 = vsub.f32 %v4087_v42, %v4162_v9  ;;  %v10775_v63 = vmul.f32 0.015625, %v3624_v0  ;;  %v4897_v41 = vpop.f32.mrb[166].mxu1 }
 0x4d3   :  { %v4898_v32 = vadd.f32 %v10659_v21, %v4897_v41  ;;  %v6698_v22 = vpop.f32.mrb[167].mxu1  ;;  %6856 = vmatmul.mubr.msk.f32.gmra.mrb[16].mxu1 %vm784_vm2, %v4533_v7  ;;  %v3999_v44 = vpop.xlane.xlu1 %3998 }
 0x4d4   :  { %v7222_v17 = vpop.eup %7221  ;;  %v4312_v45 = vadd.f32 1e-05, %v4237_v57  ;;  %v4163_v59 = vmul.f32 %v10775_v63, %v10775_v63  ;;  %v4088_v46 = vmul.f32 0.015625, %v3999_v44  ;;  %6858 = vmatprep.mubr.msk.f32.mxu1 %vm7254_vm0, %v11316_v10 }
 0x4d5   :  { %v4534_v55 = vmul.f32 %v7222_v17, %v4459_v39  ;;  %5236 = vst.msk [vmem:[%s11208_s9 + $0x48] sm:$0xff] %vm5226_vm3, %v4898_v32  ;;  %v3627_v30 = vpop.xlane.xlu0 %3626  ;;  %v4463_v39 = vsub.f32 %v10325_v37, %v10775_v63 }
 0x4d6   :  { %7227 = vrsqrt.f32 %v4312_v45  ;;  %v4238_v40 = vsub.f32 %v4088_v46, %v4163_v59  ;;  %v10789_v1 = vmul.f32 0.015625, %v3627_v30  ;;  %v4902_v15 = vpop.f32.mrb[168].mxu1 }
 0x4d7   :  { %v4903_v62 = vadd.f32 %v10659_v21, %v4902_v15  ;;  %v6701_v26 = vpop.f32.mrb[169].mxu1  ;;  %6859 = vmatmul.mubr.msk.f32.gmra.mrb[18].mxu1 %vm784_vm2, %v4534_v55  ;;  %v4002_v27 = vpop.xlane.xlu1 %4001 }
 0x4d8   :  { %v7224_v47 = vpop.eup %7223  ;;  %v4313_v14 = vadd.f32 1e-05, %v4238_v40  ;;  %v4164_v35 = vmul.f32 %v10789_v1, %v10789_v1  ;;  %v4089_v4 = vmul.f32 0.015625, %v4002_v27  ;;  %6861 = vmatprep.mubr.msk.f32.mxu1 %vm7254_vm0, %v11316_v10  ;;  %v4464_v15 = vsub.f32 %v10343_v23, %v10789_v1 }
 0x4d9   :  { %v4535_v25 = vmul.f32 %v7224_v47, %v4460_v54  ;;  %5237 = vst.msk [vmem:[%s11208_s9 + $0x50] sm:$0xff] %vm5226_vm3, %v4903_v62  ;;  %v3630_v8 = vpop.xlane.xlu0 %3629 }
 0x4da   :  { %7229 = vrsqrt.f32 %v4313_v14  ;;  %v4239_v31 = vsub.f32 %v4089_v4, %v4164_v35  ;;  %v10803_v11 = vmul.f32 0.015625, %v3630_v8  ;;  %v4907_v33 = vpop.f32.mrb[170].mxu1 }
 0x4db   :  { %v4908_v49 = vadd.f32 %v10659_v21, %v4907_v33  ;;  %v6704_v28 = vpop.f32.mrb[171].mxu1  ;;  %6862 = vmatmul.mubr.msk.f32.gmra.mrb[20].mxu1 %vm784_vm2, %v4535_v25  ;;  %v4005_v5 = vpop.xlane.xlu1 %4004 }
 0x4dc   :  { %v7226_v48 = vpop.eup %7225  ;;  %v4314_v13 = vadd.f32 1e-05, %v4239_v31  ;;  %v4165_v50 = vmul.f32 %v10803_v11, %v10803_v11  ;;  %v4090_v58 = vmul.f32 0.015625, %v4005_v5  ;;  %6864 = vmatprep.mubr.msk.f32.mxu1 %vm7254_vm0, %v11316_v10  ;;  %v4465_v31 = vsub.f32 %v10361_v24, %v10803_v11 }
 0x4dd   :  { %v4536_v16 = vmul.f32 %v7226_v48, %v4461_v6  ;;  %5238 = vst.msk [vmem:[%s11208_s9 + $0x58] sm:$0xff] %vm5226_vm3, %v4908_v49  ;;  %v3633_v29 = vpop.xlane.xlu0 %3632 }
 0x4de   :  { %7231 = vrsqrt.f32 %v4314_v13  ;;  %v4240_v34 = vsub.f32 %v4090_v58, %v4165_v50  ;;  %v10817_v18 = vmul.f32 0.015625, %v3633_v29  ;;  %v4912_v36 = vpop.f32.mrb[172].mxu1 }
 0x4df   :  { %v4913_v20 = vadd.f32 %v10659_v21, %v4912_v36  ;;  %v6707_v52 = vpop.f32.mrb[173].mxu1  ;;  %6865 = vmatmul.mubr.msk.f32.gmra.mrb[22].mxu1 %vm784_vm2, %v4536_v16  ;;  %v4008_v12 = vpop.xlane.xlu1 %4007 }
 0x4e0   :  { %v7228_v38 = vpop.eup %7227  ;;  %v4315_v9 = vadd.f32 1e-05, %v4240_v34  ;;  %v4166_v42 = vmul.f32 %v10817_v18, %v10817_v18  ;;  %v4091_v7 = vmul.f32 0.015625, %v4008_v12  ;;  %6867 = vmatprep.mubr.msk.f32.mxu1 %vm7254_vm0, %v11316_v10  ;;  %v4466_v29 = vsub.f32 %v10379_v53, %v10817_v18 }
 0x4e1   :  { %v4537_v0 = vmul.f32 %v7228_v38, %v4462_v3  ;;  %5239 = vst.msk [vmem:[%s11208_s9 + $0x60] sm:$0xff] %vm5226_vm3, %v4913_v20  ;;  %v3636_v51 = vpop.xlane.xlu0 %3635 }
 0x4e2   :  { %7233 = vrsqrt.f32 %v4315_v9  ;;  %v4241_v19 = vsub.f32 %v4091_v7, %v4166_v42  ;;  %v10831_v57 = vmul.f32 0.015625, %v3636_v51  ;;  %v4917_v41 = vpop.f32.mrb[174].mxu1 }
 0x4e3   :  { %v4918_v32 = vadd.f32 %v10659_v21, %v4917_v41  ;;  %v6710_v22 = vpop.f32.mrb[175].mxu1  ;;  %6868 = vmatmul.mubr.msk.f32.gmra.mrb[24].mxu1 %vm784_vm2, %v4537_v0  ;;  %v4011_v44 = vpop.xlane.xlu1 %4010 }
 0x4e4   :  { %v7230_v17 = vpop.eup %7229  ;;  %v4316_v45 = vadd.f32 1e-05, %v4241_v19  ;;  %v4167_v59 = vmul.f32 %v10831_v57, %v10831_v57  ;;  %v4092_v46 = vmul.f32 0.015625, %v4011_v44  ;;  %6870 = vmatprep.mubr.msk.f32.mxu1 %vm7254_vm0, %v11316_v10  ;;  %v4467_v7 = vsub.f32 %v10397_v43, %v10831_v57 }
 0x4e5   :  { %v4538_v55 = vmul.f32 %v7230_v17, %v4463_v39  ;;  %5240 = vst.msk [vmem:[%s11208_s9 + $0x68] sm:$0xff] %vm5226_vm3, %v4918_v32  ;;  %v3639_v37 = vpop.xlane.xlu0 %3638 }
 0x4e6   :  { %7235 = vrsqrt.f32 %v4316_v45  ;;  %v4242_v63 = vsub.f32 %v4092_v46, %v4167_v59  ;;  %v10845_v30 = vmul.f32 0.015625, %v3639_v37  ;;  %v4922_v40 = vpop.f32.mrb[176].mxu1 }
 0x4e7   :  { %v4923_v54 = vadd.f32 %v10659_v21, %v4922_v40  ;;  %v6713_v62 = vpop.f32.mrb[177].mxu1  ;;  %6871 = vmatmul.mubr.msk.f32.gmra.mrb[26].mxu1 %vm784_vm2, %v4538_v55  ;;  %v4014_v26 = vpop.xlane.xlu1 %4013 }
 0x4e8   :  { %v7232_v27 = vpop.eup %7231  ;;  %v4317_v47 = vadd.f32 1e-05, %v4242_v63  ;;  %v4168_v14 = vmul.f32 %v10845_v30, %v10845_v30  ;;  %v4093_v35 = vmul.f32 0.015625, %v4014_v26  ;;  %6873 = vmatprep.mubr.msk.f32.mxu1 %vm7254_vm0, %v11316_v10  ;;  %v4468_v45 = vsub.f32 %v10415_v56, %v10845_v30 }
 0x4e9   :  { %v4539_v4 = vmul.f32 %v7232_v27, %v4464_v15  ;;  %5241 = vst.msk [vmem:[%s11208_s9 + $0x70] sm:$0xff] %vm5226_vm3, %v4923_v54  ;;  %v3642_v23 = vpop.xlane.xlu0 %3641 }
 0x4ea   :  { %7237 = vrsqrt.f32 %v4317_v47  ;;  %v4243_v1 = vsub.f32 %v4093_v35, %v4168_v14  ;;  %v10859_v25 = vmul.f32 0.015625, %v3642_v23  ;;  %v4927_v8 = vpop.f32.mrb[178].mxu1 }
 0x4eb   :  { %v4928_v33 = vadd.f32 %v10659_v21, %v4927_v8  ;;  %v6716_v6 = vpop.f32.mrb[179].mxu1  ;;  %6874 = vmatmul.mubr.msk.f32.gmra.mrb[28].mxu1 %vm784_vm2, %v4539_v4  ;;  %v4017_v49 = vpop.xlane.xlu1 %4016 }
 0x4ec   :  { %v7234_v28 = vpop.eup %7233  ;;  %v4318_v5 = vadd.f32 1e-05, %v4243_v1  ;;  %v4169_v48 = vmul.f32 %v10859_v25, %v10859_v25  ;;  %v4094_v13 = vmul.f32 0.015625, %v4017_v49  ;;  %6876 = vmatprep.mubr.msk.f32.mxu1 %vm7254_vm0, %v11316_v10  ;;  %v4469_v56 = vsub.f32 %v10435_v2, %v10859_v25 }
 0x4ed   :  { %v4540_v50 = vmul.f32 %v7234_v28, %v4465_v31  ;;  %5242 = vst.msk [vmem:[%s11208_s9 + $0x78] sm:$0xff] %vm5226_vm3, %v4928_v33  ;;  %v3423_v24 = vpop.xlane.xlu0 %3422 }
 0x4ee   :  { %7239 = vrsqrt.f32 %v4318_v5  ;;  %v4244_v11 = vsub.f32 %v4094_v13, %v4169_v48  ;;  %v10873_v58 = vmul.f32 0.015625, %v3423_v24  ;;  %v4932_v16 = vpop.f32.mrb[180].mxu1 }
 0x4ef   :  { %v4933_v34 = vadd.f32 %v10659_v21, %v4932_v16  ;;  %v6719_v36 = vpop.f32.mrb[181].mxu1  ;;  %6877 = vmatmul.mubr.msk.f32.gmra.mrb[30].mxu1 %vm784_vm2, %v4540_v50  ;;  %v3645_v3 = vpop.xlane.xlu1 %3644 }
 0x4f0   :  { %v7236_v20 = vpop.eup %7235  ;;  %v4319_v52 = vadd.f32 1e-05, %v4244_v11  ;;  %v3720_v12 = vmul.f32 0.015625, %v3645_v3  ;;  %6879 = vmatprep.mubr.msk.f32.mxu1 %vm7254_vm0, %v11316_v10  ;;  %v4096_v53 = vmul.f32 %v10873_v58, %v10873_v58  ;;  %v4396_v2 = vsub.f32 %v10439_v60, %v10873_v58 }
 0x4f1   :  { %v4541_v38 = vmul.f32 %v7236_v20, %v4466_v29  ;;  %5243 = vst.msk [vmem:[%s11208_s9 + $0x80] sm:$0xff] %vm5226_vm3, %v4933_v34  ;;  %v3798_v9 = vpop.xlane.xlu0 %3797 }
 0x4f2   :  { %7241 = vrsqrt.f32 %v4319_v52  ;;  %v4021_v18 = vmul.f32 0.015625, %v3798_v9  ;;  %v4937_v42 = vpop.f32.mrb[182].mxu1  ;;  %v4170_v39 = vmul.f32 %v3720_v12, %v3720_v12  ;;  %v4470_v4 = vsub.f32 %v10456_v61, %v3720_v12 }
 0x4f3   :  { %v4938_v0 = vadd.f32 %v10659_v21, %v4937_v42  ;;  %v6722_v51 = vpop.f32.mrb[183].mxu1  ;;  %6880 = vmatmul.mubr.msk.f32.gmra.mrb[32].mxu1 %vm784_vm2, %v4541_v38  ;;  %v4020_v19 = vpop.xlane.xlu1 %4019 }
 0x4f4   :  { %v7238_v41 = vpop.eup %7237  ;;  %v4171_v32 = vsub.f32 %v4021_v18, %v4096_v53  ;;  %v4095_v22 = vmul.f32 0.015625, %v4020_v19  ;;  %6882 = vmatprep.mubr.msk.f32.mxu1 %vm7254_vm0, %v11316_v10 }
 0x4f5   :  { %v4542_v44 = vmul.f32 %v7238_v41, %v4467_v7  ;;  %5244 = vst.msk [vmem:[%s11208_s9 + $0x88] sm:$0xff] %vm5226_vm3, %v4938_v0 }
 0x4f6   :  { %v4246_v43 = vadd.f32 1e-05, %v4171_v32  ;;  %v4245_v57 = vsub.f32 %v4095_v22, %v4170_v39  ;;  %v4942_v17 = vpop.f32.mrb[184].mxu1 }
 0x4f7   :  { %v4943_v59 = vadd.f32 %v10659_v21, %v4942_v17  ;;  %v6725_v46 = vpop.f32.mrb[185].mxu1  ;;  %6883 = vmatmul.mubr.msk.f32.gmra.mrb[34].mxu1 %vm784_vm2, %v4542_v44 }
 0x4f8   :  { %v7240_v55 = vpop.eup %7239  ;;  %7243 = vrsqrt.f32 %v4246_v43  ;;  %v4320_v37 = vadd.f32 1e-05, %v4245_v57  ;;  %6885 = vmatprep.mubr.msk.f32.mxu1 %vm7254_vm0, %v11316_v10 }
 0x4f9   :  { %v4543_v63 = vmul.f32 %v7240_v55, %v4468_v45  ;;  %5245 = vst.msk [vmem:[%s11208_s9 + $0x90] sm:$0xff] %vm5226_vm3, %v4943_v59 }
 0x4fa   :  { %7245 = vrsqrt.f32 %v4320_v37  ;;  %v4947_v40 = vpop.f32.mrb[186].mxu1 }
 0x4fb   :  { %v4948_v30 = vadd.f32 %v10659_v21, %v4947_v40  ;;  %v6728_v15 = vpop.f32.mrb[187].mxu1  ;;  %6886 = vmatmul.mubr.msk.f32.gmra.mrb[36].mxu1 %vm784_vm2, %v4543_v63 }
 0x4fc   :  { %v7242_v54 = vpop.eup %7241  ;;  %6888 = vmatprep.mubr.msk.f32.mxu1 %vm7254_vm0, %v11316_v10 }
 0x4fd   :  { %v4544_v62 = vmul.f32 %v7242_v54, %v4469_v56  ;;  %5246 = vst.msk [vmem:[%s11208_s9 + $0x98] sm:$0xff] %vm5226_vm3, %v4948_v30 }
 0x4fe   :  { %v4952_v26 = vpop.f32.mrb[188].mxu1 }
 0x4ff   :  { %v4953_v27 = vadd.f32 %v10659_v21, %v4952_v26  ;;  %v6731_v47 = vpop.f32.mrb[189].mxu1  ;;  %6889 = vmatmul.mubr.msk.f32.gmra.mrb[38].mxu1 %vm784_vm2, %v4544_v62 }
 0x500   :  { %6891 = vmatprep.mubr.msk.f32.mxu1 %vm7254_vm0, %v11316_v10 }
 0x501   :  { %5247 = vst.msk [vmem:[%s11208_s9 + $0xa0] sm:$0xff] %vm5226_vm3, %v4953_v27 }
 0x502   :  { %v7244_v14 = vpop.eup %7243  ;;  %v4957_v35 = vpop.f32.mrb[190].mxu1 }
 0x503   :  { %v4471_v23 = vmul.f32 %v7244_v14, %v4396_v2  ;;  %v4958_v1 = vadd.f32 %v10659_v21, %v4957_v35  ;;  %v6734_v25 = vpop.f32.mrb[191].mxu1 }
 0x504   :  { %v7246_v8 = vpop.eup %7245 }
 0x505   :  { %v4545_v31 = vmul.f32 %v7246_v8, %v4470_v4  ;;  %5248 = vst.msk [vmem:[%s11208_s9 + $0xa8] sm:$0xff] %vm5226_vm3, %v4958_v1  ;;  %6670 = vmatmul.mubr.msk.f32.vlgmr.msra.gmra.mrb[44].mxu0 %vm784_vm2, %v4471_v23 }
 0x506   :  { %v4962_v10 = vpop.f32.mrb[192].mxu1 }
 0x507   :  { %v4963_v60 = vadd.f32 %v10659_v21, %v4962_v10  ;;  %v6737_v33 = vpop.f32.mrb[193].mxu1  ;;  %6892 = vmatmul.mubr.msk.f32.gmra.mrb[40].mxu1 %vm784_vm2, %v4545_v31 }
 0x509   :  { %5249 = vst.msk [vmem:[%s11208_s9 + $0xb0] sm:$0xff] %vm5226_vm3, %v4963_v60 }
 0x50a   :  { %v4967_v61 = vpop.f32.mrb[194].mxu1 }
 0x50b   :  { %v4968_v6 = vadd.f32 %v10659_v21, %v4967_v61  ;;  %v6740_v49 = vpop.f32.mrb[195].mxu1 }
 0x50d   :  { %5250 = vst.msk [vmem:[%s11208_s9 + $0xb8] sm:$0xff] %vm5226_vm3, %v4968_v6 }
 0x50e   :  { %v4972_v28 = vpop.f32.mrb[196].mxu1 }
 0x50f   :  { %v4973_v5 = vadd.f32 %v10659_v21, %v4972_v28  ;;  %v6743_v48 = vpop.f32.mrb[197].mxu1 }
 0x511   :  { %5251 = vst.msk [vmem:[%s11208_s9 + $0xc0] sm:$0xff] %vm5226_vm3, %v4973_v5 }
 0x512   :  { %v4977_v13 = vpop.f32.mrb[198].mxu1 }
 0x513   :  { %v4978_v50 = vadd.f32 %v10659_v21, %v4977_v13  ;;  %v6746_v24 = vpop.f32.mrb[199].mxu1 }
 0x515   :  { %5252 = vst.msk [vmem:[%s11208_s9 + $0xc8] sm:$0xff] %vm5226_vm3, %v4978_v50 }
 0x516   :  { %v4982_v11 = vpop.f32.mrb[200].mxu1 }
 0x517   :  { %v4983_v58 = vadd.f32 %v10659_v21, %v4982_v11  ;;  %v6749_v16 = vpop.f32.mrb[201].mxu1 }
 0x519   :  { %5253 = vst.msk [vmem:[%s11208_s9 + $0xd0] sm:$0xff] %vm5226_vm3, %v4983_v58 }
 0x51a   :  { %v4987_v29 = vpop.f32.mrb[202].mxu1 }
 0x51b   :  { %v4988_v34 = vadd.f32 %v10659_v21, %v4987_v29  ;;  %v6752_v36 = vpop.f32.mrb[203].mxu1 }
 0x51d   :  { %5254 = vst.msk [vmem:[%s11208_s9 + $0xd8] sm:$0xff] %vm5226_vm3, %v4988_v34 }
 0x51e   :  { %v4992_v3 = vpop.f32.mrb[204].mxu1 }
 0x51f   :  { %v4993_v20 = vadd.f32 %v10659_v21, %v4992_v3  ;;  %v6755_v52 = vpop.f32.mrb[205].mxu1 }
 0x521   :  { %5255 = vst.msk [vmem:[%s11208_s9 + $0xe0] sm:$0xff] %vm5226_vm3, %v4993_v20 }
 0x522   :  { %v4997_v12 = vpop.f32.mrb[206].mxu1 }
 0x523   :  { %v4998_v38 = vadd.f32 %v10659_v21, %v4997_v12  ;;  %v6758_v9 = vpop.f32.mrb[207].mxu1 }
 0x525   :  { %5256 = vst.msk [vmem:[%s11208_s9 + $0xe8] sm:$0xff] %vm5226_vm3, %v4998_v38 }
 0x526   :  { %v5002_v53 = vpop.f32.mrb[208].mxu1 }
 0x527   :  { %v5003_v18 = vadd.f32 %v10659_v21, %v5002_v53  ;;  %v6761_v42 = vpop.f32.mrb[209].mxu1 }
 0x529   :  { %5257 = vst.msk [vmem:[%s11208_s9 + $0xf0] sm:$0xff] %vm5226_vm3, %v5003_v18 }
 0x52a   :  { %v5007_v7 = vpop.f32.mrb[210].mxu1 }
 0x52b   :  { %v5008_v0 = vadd.f32 %v10659_v21, %v5007_v7  ;;  %v6764_v51 = vpop.f32.mrb[211].mxu1 }
 0x52d   :  { %5258 = vst.msk [vmem:[%s11208_s9 + $0xf8] sm:$0xff] %vm5226_vm3, %v5008_v0 }
 0x52e   :  { %v5012_v19 = vpop.f32.mrb[212].mxu1 }
 0x52f   :  { %v5013_v41 = vadd.f32 %v10659_v21, %v5012_v19  ;;  %v6767_v39 = vpop.f32.mrb[213].mxu1 }
 0x531   :  { %5259 = vst.msk [vmem:[%s11208_s9 + $0x100] sm:$0xff] %vm5226_vm3, %v5013_v41 }
 0x532   :  { %v5017_v32 = vpop.f32.mrb[214].mxu1 }
 0x533   :  { %v5018_v22 = vadd.f32 %v10659_v21, %v5017_v32  ;;  %v6770_v44 = vpop.f32.mrb[215].mxu1 }
 0x535   :  { %5260 = vst.msk [vmem:[%s11208_s9 + $0x108] sm:$0xff] %vm5226_vm3, %v5018_v22 }
 0x536   :  { %v5022_v43 = vpop.f32.mrb[216].mxu1 }
 0x537   :  { %v5023_v57 = vadd.f32 %v10659_v21, %v5022_v43  ;;  %v6773_v17 = vpop.f32.mrb[217].mxu1 }
 0x539   :  { %5261 = vst.msk [vmem:[%s11208_s9 + $0x110] sm:$0xff] %vm5226_vm3, %v5023_v57 }
 0x53a   :  { %v5027_v45 = vpop.f32.mrb[218].mxu1 }
 0x53b   :  { %v5028_v59 = vadd.f32 %v10659_v21, %v5027_v45  ;;  %v6776_v46 = vpop.f32.mrb[219].mxu1 }
 0x53d   :  { %5262 = vst.msk [vmem:[%s11208_s9 + $0x118] sm:$0xff] %vm5226_vm3, %v5028_v59 }
 0x53e   :  { %v5032_v55 = vpop.f32.mrb[220].mxu1 }
 0x53f   :  { %v5033_v37 = vadd.f32 %v10659_v21, %v5032_v55  ;;  %v6779_v63 = vpop.f32.mrb[221].mxu1 }
 0x541   :  { %5263 = vst.msk [vmem:[%s11208_s9 + $0x120] sm:$0xff] %vm5226_vm3, %v5033_v37 }
 0x542   :  { %v5037_v40 = vpop.f32.mrb[222].mxu1 }
 0x543   :  { %v5038_v56 = vadd.f32 %v10659_v21, %v5037_v40  ;;  %v6782_v30 = vpop.f32.mrb[223].mxu1 }
 0x545   :  { %5264 = vst.msk [vmem:[%s11208_s9 + $0x128] sm:$0xff] %vm5226_vm3, %v5038_v56 }
 0x546   :  { %v5042_v15 = vpop.f32.mrb[224].mxu1 }
 0x547   :  { %v5043_v54 = vadd.f32 %v10659_v21, %v5042_v15  ;;  %v6785_v62 = vpop.f32.mrb[225].mxu1 }
 0x549   :  { %5265 = vst.msk [vmem:[%s11208_s9 + $0x130] sm:$0xff] %vm5226_vm3, %v5043_v54 }
 0x54a   :  { %v5047_v26 = vpop.f32.mrb[226].mxu1 }
 0x54b   :  { %v5048_v27 = vadd.f32 %v10659_v21, %v5047_v26  ;;  %v6788_v47 = vpop.f32.mrb[227].mxu1 }
 0x54d   :  { %5266 = vst.msk [vmem:[%s11208_s9 + $0x138] sm:$0xff] %vm5226_vm3, %v5048_v27 }
 0x54e   :  { %v5052_v2 = vpop.f32.mrb[228].mxu1 }
 0x54f   :  { %v5053_v14 = vadd.f32 %v10659_v21, %v5052_v2  ;;  %v6791_v35 = vpop.f32.mrb[229].mxu1 }
 0x551   :  { %5267 = vst.msk [vmem:[%s11208_s9 + $0x140] sm:$0xff] %vm5226_vm3, %v5053_v14 }
 0x552   :  { %v5057_v4 = vpop.f32.mrb[230].mxu1 }
 0x553   :  { %v5058_v23 = vadd.f32 %v10659_v21, %v5057_v4  ;;  %v6794_v1 = vpop.f32.mrb[231].mxu1 }
 0x555   :  { %5268 = vst.msk [vmem:[%s11208_s9 + $0x148] sm:$0xff] %vm5226_vm3, %v5058_v23 }
 0x556   :  { %v5062_v25 = vpop.f32.mrb[232].mxu1 }
 0x557   :  { %v5063_v8 = vadd.f32 %v10659_v21, %v5062_v25  ;;  %v6797_v31 = vpop.f32.mrb[233].mxu1 }
 0x559   :  { %5269 = vst.msk [vmem:[%s11208_s9 + $0x150] sm:$0xff] %vm5226_vm3, %v5063_v8 }
 0x55a   :  { %v5067_v10 = vpop.f32.mrb[234].mxu1 }
 0x55b   :  { %v5068_v60 = vadd.f32 %v10659_v21, %v5067_v10  ;;  %v6800_v33 = vpop.f32.mrb[235].mxu1 }
 0x55d   :  { %5270 = vst.msk [vmem:[%s11208_s9 + $0x158] sm:$0xff] %vm5226_vm3, %v5068_v60 }
 0x55e   :  { %v5072_v61 = vpop.f32.mrb[236].mxu1 }
 0x55f   :  { %v5073_v6 = vadd.f32 %v10659_v21, %v5072_v61  ;;  %v6803_v49 = vpop.f32.mrb[237].mxu1 }
 0x561   :  { %5271 = vst.msk [vmem:[%s11208_s9 + $0x160] sm:$0xff] %vm5226_vm3, %v5073_v6 }
 0x562   :  { %v5077_v28 = vpop.f32.mrb[238].mxu1 }
 0x563   :  { %v5078_v5 = vadd.f32 %v10659_v21, %v5077_v28  ;;  %v6806_v48 = vpop.f32.mrb[239].mxu1 }
 0x565   :  { %5272 = vst.msk [vmem:[%s11208_s9 + $0x168] sm:$0xff] %vm5226_vm3, %v5078_v5 }
 0x566   :  { %v5082_v13 = vpop.f32.mrb[240].mxu1 }
 0x567   :  { %v5083_v50 = vadd.f32 %v10659_v21, %v5082_v13  ;;  %v6809_v24 = vpop.f32.mrb[241].mxu1 }
 0x569   :  { %5273 = vst.msk [vmem:[%s11208_s9 + $0x170] sm:$0xff] %vm5226_vm3, %v5083_v50  ;;  %v7252_v50 = vld [vmem:[%s11207_s8] ss:$0 sm:$0xff] }
 0x56a   :  { %v5087_v11 = vpop.f32.mrb[242].mxu1 }
 0x56b   :  { %v5088_v58 = vadd.f32 %v10659_v21, %v5087_v11  ;;  %v6812_v16 = vpop.f32.mrb[243].mxu1 }
 0x56d   :  { %5274 = vst.msk [vmem:[%s11208_s9 + $0x178] sm:$0xff] %vm5226_vm3, %v5088_v58 }
 0x56e   :  { %v5092_v29 = vpop.f32.mrb[244].mxu1 }
 0x56f   :  { %v5093_v34 = vadd.f32 %v10659_v21, %v5092_v29  ;;  %v6815_v36 = vpop.f32.mrb[245].mxu1 }
 0x571   :  { %5275 = vst.msk [vmem:[%s11208_s9 + $0x180] sm:$0xff] %vm5226_vm3, %v5093_v34 }
 0x572   :  { %v5097_v3 = vpop.f32.mrb[246].mxu1 }
 0x573   :  { %v5098_v20 = vadd.f32 %v10659_v21, %v5097_v3  ;;  %v6818_v52 = vpop.f32.mrb[247].mxu1 }
 0x575   :  { %5276 = vst.msk [vmem:[%s11208_s9 + $0x188] sm:$0xff] %vm5226_vm3, %v5098_v20 }
 0x576   :  { %v5102_v12 = vpop.f32.mrb[248].mxu1 }
 0x577   :  { %v5103_v38 = vadd.f32 %v10659_v21, %v5102_v12  ;;  %v6821_v9 = vpop.f32.mrb[249].mxu1 }
 0x579   :  { %5277 = vst.msk [vmem:[%s11208_s9 + $0x190] sm:$0xff] %vm5226_vm3, %v5103_v38 }
 0x57a   :  { %v5107_v53 = vpop.f32.mrb[250].mxu1 }
 0x57b   :  { %v5108_v18 = vadd.f32 %v10659_v21, %v5107_v53  ;;  %v6824_v42 = vpop.f32.mrb[251].mxu1 }
 0x57d   :  { %5278 = vst.msk [vmem:[%s11208_s9 + $0x198] sm:$0xff] %vm5226_vm3, %v5108_v18 }
 0x57e   :  { %v5112_v7 = vpop.f32.mrb[252].mxu1 }
 0x57f   :  { %v5113_v0 = vadd.f32 %v10659_v21, %v5112_v7  ;;  %v6827_v51 = vpop.f32.mrb[253].mxu1 }
 0x581   :  { %5279 = vst.msk [vmem:[%s11208_s9 + $0x1a0] sm:$0xff] %vm5226_vm3, %v5113_v0 }
 0x582   :  { %v5117_v19 = vpop.f32.mrb[254].mxu1 }
 0x583   :  { %v5118_v41 = vadd.f32 %v10659_v21, %v5117_v19  ;;  %v6830_v39 = vpop.f32.mrb[255].mxu1 }
 0x585   :  { %5280 = vst.msk [vmem:[%s11208_s9 + $0x1a8] sm:$0xff] %vm5226_vm3, %v5118_v41 }
 0x586   :  { %v5122_v32 = vpop.f32.mrb[0].mxu1 }
 0x587   :  { %v5123_v22 = vadd.f32 %v10659_v21, %v5122_v32  ;;  %v6833_v44 = vpop.f32.mrb[1].mxu1 }
 0x589   :  { %5281 = vst.msk [vmem:[%s11208_s9 + $0x1b0] sm:$0xff] %vm5226_vm3, %v5123_v22 }
 0x58a   :  { %v5127_v43 = vpop.f32.mrb[2].mxu1 }
 0x58b   :  { %v5128_v57 = vadd.f32 %v10659_v21, %v5127_v43  ;;  %v6836_v17 = vpop.f32.mrb[3].mxu1 }
 0x58d   :  { %5282 = vst.msk [vmem:[%s11208_s9 + $0x1b8] sm:$0xff] %vm5226_vm3, %v5128_v57 }
 0x58e   :  { %v5132_v45 = vpop.f32.mrb[4].mxu1 }
 0x58f   :  { %v5133_v59 = vadd.f32 %v10659_v21, %v5132_v45  ;;  %v6839_v46 = vpop.f32.mrb[5].mxu1 }
 0x591   :  { %5283 = vst.msk [vmem:[%s11208_s9 + $0x1c0] sm:$0xff] %vm5226_vm3, %v5133_v59 }
 0x592   :  { %v5137_v55 = vpop.f32.mrb[6].mxu1 }
 0x593   :  { %v5138_v37 = vadd.f32 %v10659_v21, %v5137_v55  ;;  %v6842_v63 = vpop.f32.mrb[7].mxu1 }
 0x595   :  { %5284 = vst.msk [vmem:[%s11208_s9 + $0x1c8] sm:$0xff] %vm5226_vm3, %v5138_v37 }
 0x596   :  { %v5142_v40 = vpop.f32.mrb[8].mxu1 }
 0x597   :  { %v5143_v56 = vadd.f32 %v10659_v21, %v5142_v40  ;;  %v6845_v30 = vpop.f32.mrb[9].mxu1 }
 0x599   :  { %5285 = vst.msk [vmem:[%s11208_s9 + $0x1d0] sm:$0xff] %vm5226_vm3, %v5143_v56 }
 0x59a   :  { %v5147_v15 = vpop.f32.mrb[10].mxu1 }
 0x59b   :  { %v5148_v54 = vadd.f32 %v10659_v21, %v5147_v15  ;;  %v6848_v62 = vpop.f32.mrb[11].mxu1 }
 0x59d   :  { %5286 = vst.msk [vmem:[%s11208_s9 + $0x1d8] sm:$0xff] %vm5226_vm3, %v5148_v54 }
 0x59e   :  { %v5152_v26 = vpop.f32.mrb[12].mxu1 }
 0x59f   :  { %v5153_v27 = vadd.f32 %v10659_v21, %v5152_v26  ;;  %v6851_v47 = vpop.f32.mrb[13].mxu1 }
 0x5a1   :  { %5287 = vst.msk [vmem:[%s11208_s9 + $0x1e0] sm:$0xff] %vm5226_vm3, %v5153_v27 }
 0x5a2   :  { %v5157_v2 = vpop.f32.mrb[14].mxu1 }
 0x5a3   :  { %v5158_v14 = vadd.f32 %v10659_v21, %v5157_v2  ;;  %v6854_v35 = vpop.f32.mrb[15].mxu1 }
 0x5a5   :  { %5288 = vst.msk [vmem:[%s11208_s9 + $0x1e8] sm:$0xff] %vm5226_vm3, %v5158_v14 }
 0x5a6   :  { %v5162_v4 = vpop.f32.mrb[16].mxu1 }
 0x5a7   :  { %v5163_v23 = vadd.f32 %v10659_v21, %v5162_v4  ;;  %v6857_v1 = vpop.f32.mrb[17].mxu1 }
 0x5a9   :  { %5289 = vst.msk [vmem:[%s11208_s9 + $0x1f0] sm:$0xff] %vm5226_vm3, %v5163_v23 }
 0x5aa   :  { %v5167_v25 = vpop.f32.mrb[18].mxu1 }
 0x5ab   :  { %v5168_v8 = vadd.f32 %v10659_v21, %v5167_v25  ;;  %v6860_v31 = vpop.f32.mrb[19].mxu1 }
 0x5ad   :  { %5290 = vst.msk [vmem:[%s11208_s9 + $0x1f8] sm:$0xff] %vm5226_vm3, %v5168_v8 }
 0x5ae   :  { %v5172_v10 = vpop.f32.mrb[20].mxu1 }
 0x5af   :  { %v5173_v60 = vadd.f32 %v10659_v21, %v5172_v10  ;;  %v6863_v33 = vpop.f32.mrb[21].mxu1 }
 0x5b1   :  { %5291 = vst.msk [vmem:[%s11208_s9 + $0x200] sm:$0xff] %vm5226_vm3, %v5173_v60 }
 0x5b2   :  { %v5177_v61 = vpop.f32.mrb[22].mxu1 }
 0x5b3   :  { %v5178_v6 = vadd.f32 %v10659_v21, %v5177_v61  ;;  %v6866_v49 = vpop.f32.mrb[23].mxu1 }
 0x5b5   :  { %5292 = vst.msk [vmem:[%s11208_s9 + $0x208] sm:$0xff] %vm5226_vm3, %v5178_v6 }
 0x5b6   :  { %v5182_v28 = vpop.f32.mrb[24].mxu1 }
 0x5b7   :  { %v5183_v5 = vadd.f32 %v10659_v21, %v5182_v28  ;;  %v6869_v48 = vpop.f32.mrb[25].mxu1 }
 0x5b9   :  { %5293 = vst.msk [vmem:[%s11208_s9 + $0x210] sm:$0xff] %vm5226_vm3, %v5183_v5 }
 0x5ba   :  { %v5187_v13 = vpop.f32.mrb[26].mxu1 }
 0x5bb   :  { %v5188_v24 = vadd.f32 %v7252_v50, %v5187_v13  ;;  %v6872_v11 = vpop.f32.mrb[27].mxu1 }
 0x5bd   :  { %5294 = vst.msk [vmem:[%s11208_s9 + $0x218] sm:$0xff] %vm5226_vm3, %v5188_v24 }
 0x5be   :  { %v5192_v58 = vpop.f32.mrb[28].mxu1 }
 0x5bf   :  { %v5193_v21 = vadd.f32 %v7252_v50, %v5192_v58  ;;  %v6875_v16 = vpop.f32.mrb[29].mxu1 }
 0x5c1   :  { %5295 = vst.msk [vmem:[%s11208_s9 + $0x220] sm:$0xff] %vm5226_vm3, %v5193_v21 }
 0x5c2   :  { %v5197_v29 = vpop.f32.mrb[30].mxu1 }
 0x5c3   :  { %v5198_v34 = vadd.f32 %v7252_v50, %v5197_v29  ;;  %v6878_v36 = vpop.f32.mrb[31].mxu1 }
 0x5c5   :  { %5296 = vst.msk [vmem:[%s11208_s9 + $0x228] sm:$0xff] %vm5226_vm3, %v5198_v34 }
 0x5c6   :  { %v5202_v3 = vpop.f32.mrb[32].mxu1 }
 0x5c7   :  { %v5203_v20 = vadd.f32 %v7252_v50, %v5202_v3  ;;  %v6881_v52 = vpop.f32.mrb[33].mxu1 }
 0x5c9   :  { %5297 = vst.msk [vmem:[%s11208_s9 + $0x230] sm:$0xff] %vm5226_vm3, %v5203_v20 }
 0x5ca   :  { %v5207_v12 = vpop.f32.mrb[34].mxu1 }
 0x5cb   :  { %v5208_v38 = vadd.f32 %v7252_v50, %v5207_v12  ;;  %v6884_v9 = vpop.f32.mrb[35].mxu1 }
 0x5cd   :  { %5298 = vst.msk [vmem:[%s11208_s9 + $0x238] sm:$0xff] %vm5226_vm3, %v5208_v38 }
 0x5ce   :  { %v5212_v53 = vpop.f32.mrb[36].mxu1 }
 0x5cf   :  { %v5213_v18 = vadd.f32 %v7252_v50, %v5212_v53  ;;  %v6887_v42 = vpop.f32.mrb[37].mxu1 }
 0x5d1   :  { %5299 = vst.msk [vmem:[%s11208_s9 + $0x240] sm:$0xff] %vm5226_vm3, %v5213_v18 }
 0x5d2   :  { %v5217_v7 = vpop.f32.mrb[38].mxu1 }
 0x5d3   :  { %v5218_v0 = vadd.f32 %v7252_v50, %v5217_v7  ;;  %v6890_v51 = vpop.f32.mrb[39].mxu1 }
 0x5d5   :  { %5300 = vst.msk [vmem:[%s11208_s9 + $0x248] sm:$0xff] %vm5226_vm3, %v5218_v0 }
 0x5d8   :  { %v4852_v19 = vpop.f32.mrb[44].mxu0 }
 0x5d9   :  { %v4853_v41 = vadd.f32 %v7252_v50, %v4852_v19  ;;  %v6671_v39 = vpop.f32.mrb[45].mxu0 }
 0x5da   :  { %v5222_v32 = vpop.f32.mrb[40].mxu1 }
 0x5db   :  { %5227 = vst.msk [vmem:[%s11208_s9] sm:$0xff] %vm5226_vm3, %v4853_v41  ;;  %v5223_v22 = vadd.f32 %v7252_v50, %v5222_v32  ;;  %v6893_v44 = vpop.f32.mrb[41].mxu1 }
 0x5dd   :  { %5301 = vst.msk [vmem:[%s11208_s9 + $0x250] sm:$0xff] %vm5226_vm3, %v5223_v22 }

</bundles_post_ra>
